<compile_context>
chip_gen: v7x
topology: tpu7x:2x2x1
jax: 0.10.0
libtpu: 0.0.40
codegen_flags: <defaults>
</compile_context>

<pallas_src>
import numpy as np
import jax
import jax.numpy as jnp
from jax.experimental import pallas as pl
from jax.experimental.pallas import tpu as pltpu

EPS = 1e-5

# Static problem geometry (PyTorch module defaults at toy size).
N, H, W = 2, 16, 16
CIN = 1
C = 32                      # hidden channels
L = 8                       # 1 mask-'A' layer + 7 mask-'B' layers
OUTC = 256
KH = KW = 7
PAD = 3
HP, WP = H + 2 * PAD, W + 2 * PAD        # 22, 22
SPB = 512                                # per-image padded flat block (>= HP*WP, mult of 128)
TOT = N * SPB                            # 1024 lanes
POFF = PAD * WP + PAD                    # 69: flat offset of output pixel (0,0) in the padded block
NHW = N * H * W
INV_NHW = 1.0 / float(NHW)
HALO = 128                               # left halo (zeros) in the staging buffer, >= POFF
FCHUNK = 128                             # output-row chunk of the final 1x1 conv

# Causal (non-zero-after-masking) taps of the 7x7 kernel: all of rows
# 0..2 plus row 3 up to and including the centre (layer 0's mask-'A' centre
# tap simply has a zero weight).
TAPS = tuple((di, dj) for di in range(KH // 2) for dj in range(KW)) + \
       tuple((KH // 2, dj) for dj in range(KW // 2 + 1))
NTAPS = len(TAPS)                        # 25
NTAPS_PAD = 32                           # pad tap slots so K = 32*C = 1024 (dummy weights are zero)

# Static safety checks (see review): shifted reads must stay inside a block.
assert SPB >= HP * WP
assert (H - 1) * WP + (W - 1) + (KH - 1) * WP + (KW - 1) < HP * WP
assert HALO >= POFF and HALO % 128 == 0
assert TOT % 128 == 0 and SPB % 128 == 0
assert NTAPS == 25 and NTAPS <= NTAPS_PAD
assert OUTC % FCHUNK == 0


# ---------------------------------------------------------------------------
# The fused Pallas kernel (one grid step == one conv+BN+ReLU layer)
# ---------------------------------------------------------------------------
def pixelcnn_kernel(x_ref, w_ref, g_ref, b_ref, wf_ref, fb_ref, m_ref,
                    o_ref, ext_ref, stk_ref):
    l = pl.program_id(0)

    @pl.when(l == 0)
    def _init():
        # Left halo is always the (zero) top-padding ring.
        ext_ref[:, :HALO] = jnp.zeros((C, HALO), jnp.bfloat16)
        # Input activation (cast to bf16 once) into the staged layout.
        ext_ref[:, HALO:] = x_ref[...].astype(jnp.bfloat16)
        # Dummy tail tap slots: weights are zero, but the buffer must hold
        # finite values so 0 * x == 0 on the MXU.
        stk_ref[NTAPS * C:, :] = jnp.zeros(((NTAPS_PAD - NTAPS) * C, TOT),
                                           jnp.bfloat16)

    # In-VMEM "im2col": each causal tap is a static lane-offset slice of the
    # halo'd activation, copied into its row block of the stacked operand.
    for t, (di, dj) in enumerate(TAPS):
        s = HALO + di * WP + dj - POFF           # static, in [HALO-POFF, HALO]
        stk_ref[t * C:(t + 1) * C, :] = ext_ref[:, s:s + TOT]

    # Whole masked 7x7 conv of this layer: one K-stacked bf16 MXU matmul.
    acc = jnp.dot(w_ref[0], stk_ref[...], preferred_element_type=jnp.float32)

    # One-pass BatchNorm (training stats over the N*H*W valid pixels) + ReLU.
    mask = m_ref[...]                            # (1, TOT), 1.0 at valid pixels
    am = acc * mask
    mean = jnp.sum(am, axis=1, keepdims=True) * INV_NHW
    var = jnp.maximum(
        jnp.sum(am * acc, axis=1, keepdims=True) * INV_NHW - mean * mean, 0.0)
    inv = jax.lax.rsqrt(var + EPS)
    y = jnp.maximum((acc - mean) * inv * g_ref[0] + b_ref[0], 0.0) * mask

    # Stage this layer's output (bf16, cast once) for the next layer.
    ext_ref[:, HALO:] = y.astype(jnp.bfloat16)

    # Final 1x1 conv + bias on the last layer, lane-dense (OUTC, TOT) store.
    @pl.when(l == L - 1)
    def _final():
        yb = y.astype(jnp.bfloat16)
        for i in range(OUTC // FCHUNK):
            lo = i * FCHUNK
            o_ref[lo:lo + FCHUNK, :] = (
                jnp.dot(wf_ref[lo:lo + FCHUNK, :], yb,
                        preferred_element_type=jnp.float32)
                + fb_ref[lo:lo + FCHUNK, :])


def pixelcnn_pallas(x_packed, w_packed, gamma, beta, wf, fb, valid_mask):
    flops = 2 * L * C * (NTAPS_PAD * C) * TOT + 2 * OUTC * C * TOT
    bytes_accessed = (x_packed.size * 4 + w_packed.size * 2 + gamma.size * 4
                      + beta.size * 4 + wf.size * 2 + fb.size * 4
                      + valid_mask.size * 4 + OUTC * TOT * 4)
    return pl.pallas_call(
        pixelcnn_kernel,
        out_shape=jax.ShapeDtypeStruct((OUTC, TOT), jnp.float32),
        grid=(L,),
        in_specs=[
            pl.BlockSpec((C, TOT), lambda l: (0, 0)),                  # packed input
            pl.BlockSpec((1, C, NTAPS_PAD * C), lambda l: (l, 0, 0)),  # per-layer conv weights (bf16)
            pl.BlockSpec((1, C, 1), lambda l: (l, 0, 0)),              # BN gamma
            pl.BlockSpec((1, C, 1), lambda l: (l, 0, 0)),              # BN beta
            pl.BlockSpec((OUTC, C), lambda l: (0, 0)),                 # final 1x1 weight (bf16)
            pl.BlockSpec((OUTC, 1), lambda l: (0, 0)),                 # final bias
            pl.BlockSpec((1, TOT), lambda l: (0, 0)),                  # valid-pixel mask
        ],
        out_specs=pl.BlockSpec((OUTC, TOT), lambda l: (0, 0)),
        scratch_shapes=[
            pltpu.VMEM((C, TOT + HALO), jnp.bfloat16),       # halo'd bf16 activation
            pltpu.VMEM((NTAPS_PAD * C, TOT), jnp.bfloat16),  # stacked MXU operand
        ],
        compiler_params=pltpu.CompilerParams(
            dimension_semantics=("arbitrary",),
            vmem_limit_bytes=32 * 1024 * 1024,
        ),
        cost_estimate=pl.CostEstimate(
            flops=flops, transcendentals=L * C, bytes_accessed=bytes_accessed),
    )(x_packed, w_packed, gamma, beta, wf, fb, valid_mask)


# ---------------------------------------------------------------------------
# Glue: masking, packing, parameters, forward, pure-JAX reference
# ---------------------------------------------------------------------------
def make_spatial_mask(mask_type, kh, kw):
    m = np.ones((kh, kw), np.float32)
    if mask_type == "A":
        m[kh // 2, kw // 2:] = 0.0
    else:
        m[kh // 2, kw // 2 + 1:] = 0.0
    m[kh // 2 + 1:, :] = 0.0
    return m


def make_valid_mask():
    """Valid output pixel (n,h,w) sits at lane n*SPB + h*WP + w (shifted layout)."""
    m = np.zeros((1, TOT), np.float32)
    for n in range(N):
        for h in range(H):
            base = n * SPB + h * WP
            m[0, base:base + W] = 1.0
    return jnp.asarray(m)


def pack_input(x_nchw):
    """NCHW -> (C, N*SPB) zero-padded layout, pre-shifted by -POFF so the
    per-layer writeback roll folds into static tap offsets."""
    xp = jnp.pad(x_nchw, ((0, 0), (0, 0), (PAD, PAD), (PAD, PAD)))
    xp = xp.reshape(N, CIN, HP * WP)
    xp = jnp.pad(xp, ((0, 0), (0, C - CIN), (0, SPB - HP * WP)))
    packed = jnp.transpose(xp, (1, 0, 2)).reshape(C, TOT)
    return jnp.roll(packed, -POFF, axis=1).astype(jnp.float32)


def unpack_output(o):
    """(OUTC, N*SPB) shifted layout -> NCHW."""
    o = o.reshape(OUTC, N, SPB)[:, :, :H * WP]
    o = o.reshape(OUTC, N, H, WP)[:, :, :, :W]
    return jnp.transpose(o, (1, 0, 2, 3))


def pack_layer_weight(w_oihw):
    """(Cout, Cin, 7, 7) masked weights -> lane-dense (C, NTAPS_PAD*C)."""
    w = w_oihw.astype(jnp.float32)
    if w.shape[1] < C:
        w = jnp.pad(w, ((0, 0), (0, C - w.shape[1]), (0, 0), (0, 0)))
    cols = [w[:, :, di, dj] for (di, dj) in TAPS]          # NTAPS x (C, C)
    wl = jnp.concatenate(cols, axis=1)                      # (C, NTAPS*C)
    return jnp.pad(wl, ((0, 0), (0, (NTAPS_PAD - NTAPS) * C)))


def init_params(key):
    """Deterministic synthetic parameters matching the PyTorch module shapes."""
    masked_oihw = []
    cin = CIN
    for li in range(L):
        key, k = jax.random.split(key)
        mt = "A" if li == 0 else "B"
        wj = jax.random.normal(k, (C, cin, KH, KW), jnp.float32) * 0.05
        wj = wj * jnp.asarray(make_spatial_mask(mt, KH, KW))[None, None]
        wj = wj.astype(jnp.bfloat16)                 # bf16 MXU operands
        masked_oihw.append(wj)
        cin = C
    key, k1, k2 = jax.random.split(key, 3)
    wf = (jax.random.normal(k1, (OUTC, C), jnp.float32) * 0.05).astype(jnp.bfloat16)
    fb = jax.random.normal(k2, (OUTC,), jnp.float32) * 0.01

    w_packed = jnp.stack([pack_layer_weight(wj) for wj in masked_oihw],
                         axis=0).astype(jnp.bfloat16)        # (L, C, NTAPS_PAD*C)

    return dict(
        masked_oihw=masked_oihw,                 # for the pure-JAX reference
        w_packed=w_packed,
        gamma=jnp.ones((L, C, 1), jnp.float32),
        beta=jnp.zeros((L, C, 1), jnp.float32),
        wf=wf,
        fb=fb.reshape(OUTC, 1),
    )


def pixelcnn_forward(x_nchw, params, valid_mask):
    o = pixelcnn_pallas(pack_input(x_nchw), params["w_packed"], params["gamma"],
                        params["beta"], params["wf"], params["fb"], valid_mask)
    return unpack_output(o)


def pixelcnn_reference(x_nchw, params):
    """Plain-JAX reference with the exact PyTorch forward semantics."""
    out = x_nchw.astype(jnp.float32)
    for li, wj in enumerate(params["masked_oihw"]):
        y = jax.lax.conv_general_dilated(
            out, wj.astype(jnp.float32), window_strides=(1, 1),
            padding=((PAD, PAD), (PAD, PAD)),
            dimension_numbers=("NCHW", "OIHW", "NCHW"),
            precision=jax.lax.Precision.HIGHEST)
        mean = jnp.mean(y, axis=(0, 2, 3), keepdims=True)
        var = jnp.mean(jnp.square(y - mean), axis=(0, 2, 3), keepdims=True)
        g = params["gamma"][li].reshape(1, C, 1, 1)
        b = params["beta"][li].reshape(1, C, 1, 1)
        out = jnp.maximum((y - mean) * jax.lax.rsqrt(var + EPS) * g + b, 0.0)
    wf = params["wf"].astype(jnp.float32)
    y = jnp.einsum("nchw,oc->nohw", out, wf,
                   precision=jax.lax.Precision.HIGHEST)
    return y + params["fb"].reshape(1, OUTC, 1, 1)
    # TODO(synk): nn.BatchNorm2d's running-stat buffer updates are a training
    # side effect and do not change the forward output; not modeled.


if __name__ == "__main__":
    key = jax.random.PRNGKey(0)
    key, kx, kp = jax.random.split(key, 3)

    x = jax.random.normal(kx, (N, CIN, H, W), jnp.float32)
    params = init_params(kp)
    valid_mask = make_valid_mask()

    fwd = jax.jit(lambda xx: pixelcnn_forward(xx, params, valid_mask))
    out = fwd(x)
    jax.block_until_ready(out)

    assert out.shape == (N, OUTC, H, W), out.shape
    assert out.dtype == jnp.float32
    assert bool(jnp.all(jnp.isfinite(out)))

    # Cross-check against the pure-JAX reference (loose tolerance: the kernel
    # uses bf16 MXU operands while the reference runs in f32).
    ref = pixelcnn_reference(x, params)
    err = float(jnp.max(jnp.abs(out - ref)))
    assert err < 0.3, f"mismatch vs reference: max abs err {err}"

    print("KERNEL_OK")
</pallas_src>

<mosaic_0001>
module attributes {stable_mosaic.version = 11 : i64} {
  func.func @pixelcnn_kernel(%arg0: i32, %arg1: memref<32x1024xf32, #tpu.memory_space<vmem>>, %arg2: memref<1x32x1024xbf16, #tpu.memory_space<vmem>>, %arg3: memref<1x32x1xf32, #tpu.memory_space<vmem>>, %arg4: memref<1x32x1xf32, #tpu.memory_space<vmem>>, %arg5: memref<256x32xbf16, #tpu.memory_space<vmem>>, %arg6: memref<256x1xf32, #tpu.memory_space<vmem>>, %arg7: memref<1x1024xf32, #tpu.memory_space<vmem>>, %arg8: memref<256x1024xf32, #tpu.memory_space<vmem>>, %arg9: memref<32x1152xbf16, #tpu.memory_space<vmem>>, %arg10: memref<1024x1024xbf16, #tpu.memory_space<vmem>>) attributes {dimension_semantics = [#tpu.dimension_semantics<arbitrary>], iteration_bounds = array<i64: 8>, scalar_prefetch = 0 : i64, scratch_operands = 2 : i64, tpu.core_type = #tpu.core_type<tc>, window_params = [{pipeline_mode = #tpu.pipeline_mode<synchronous>, transform_indices = @transform_0, window_bounds = array<i64: 32, 1024>}, {transform_indices = @transform_1, window_bounds = array<i64: 1, 32, 1024>}, {transform_indices = @transform_2, window_bounds = array<i64: 1, 32, 1>}, {transform_indices = @transform_3, window_bounds = array<i64: 1, 32, 1>}, {pipeline_mode = #tpu.pipeline_mode<synchronous>, transform_indices = @transform_4, window_bounds = array<i64: 256, 32>}, {pipeline_mode = #tpu.pipeline_mode<synchronous>, transform_indices = @transform_5, window_bounds = array<i64: 256, 1>}, {pipeline_mode = #tpu.pipeline_mode<synchronous>, transform_indices = @transform_6, window_bounds = array<i64: 1, 1024>}, {pipeline_mode = #tpu.pipeline_mode<synchronous>, transform_indices = @transform_7, window_bounds = array<i64: 256, 1024>}]} {
    %c0_i32 = arith.constant 0 : i32
    %0 = arith.cmpi eq, %arg0, %c0_i32 : i32
    %1 = arith.extui %0 : i1 to i32
    %c0_i32_0 = arith.constant 0 : i32
    %2 = arith.cmpi ne, %1, %c0_i32_0 : i32
    scf.if %2 {
      %cst_76 = arith.constant 0.000000e+00 : bf16
      %97 = vector.broadcast %cst_76 : bf16 to vector<32x128xbf16>
      %c0_77 = arith.constant 0 : index
      %c0_78 = arith.constant 0 : index
      %98 = vector.load %arg9[%c0_77, %c0_78] : memref<32x1152xbf16, #tpu.memory_space<vmem>>, vector<32x128xbf16>
      tpu.vector_store %arg9[%c0_77, %c0_78], %97 {strides = array<i32>} : memref<32x1152xbf16, #tpu.memory_space<vmem>>, vector<32x128xbf16>,
      %c0_79 = arith.constant 0 : index
      %c0_80 = arith.constant 0 : index
      %99 = vector.load %arg1[%c0_79, %c0_80] : memref<32x1024xf32, #tpu.memory_space<vmem>>, vector<32x1024xf32>
      %100 = arith.truncf %99 : vector<32x1024xf32> to vector<32x1024xbf16>
      %c0_81 = arith.constant 0 : index
      %c128_82 = arith.constant 128 : index
      %101 = vector.load %arg9[%c0_81, %c128_82] : memref<32x1152xbf16, #tpu.memory_space<vmem>>, vector<32x1024xbf16>
      tpu.vector_store %arg9[%c0_81, %c128_82], %100 {strides = array<i32>} : memref<32x1152xbf16, #tpu.memory_space<vmem>>, vector<32x1024xbf16>,
      %cst_83 = arith.constant 0.000000e+00 : bf16
      %102 = vector.broadcast %cst_83 : bf16 to vector<224x1024xbf16>
      %c800 = arith.constant 800 : index
      %c0_84 = arith.constant 0 : index
      %103 = vector.load %arg10[%c800, %c0_84] : memref<1024x1024xbf16, #tpu.memory_space<vmem>>, vector<224x1024xbf16>
      tpu.vector_store %arg10[%c800, %c0_84], %102 {strides = array<i32>} : memref<1024x1024xbf16, #tpu.memory_space<vmem>>, vector<224x1024xbf16>,
    } else {
    }
    %c0 = arith.constant 0 : index
    %c59 = arith.constant 59 : index
    %3 = vector.load %arg9[%c0, %c59] : memref<32x1152xbf16, #tpu.memory_space<vmem>>, vector<32x1024xbf16>
    %c0_1 = arith.constant 0 : index
    %c0_2 = arith.constant 0 : index
    %4 = vector.load %arg10[%c0_1, %c0_2] : memref<1024x1024xbf16, #tpu.memory_space<vmem>>, vector<32x1024xbf16>
    tpu.vector_store %arg10[%c0_1, %c0_2], %3 {strides = array<i32>} : memref<1024x1024xbf16, #tpu.memory_space<vmem>>, vector<32x1024xbf16>,
    %c0_3 = arith.constant 0 : index
    %c60 = arith.constant 60 : index
    %5 = vector.load %arg9[%c0_3, %c60] : memref<32x1152xbf16, #tpu.memory_space<vmem>>, vector<32x1024xbf16>
    %c32 = arith.constant 32 : index
    %c0_4 = arith.constant 0 : index
    %6 = vector.load %arg10[%c32, %c0_4] : memref<1024x1024xbf16, #tpu.memory_space<vmem>>, vector<32x1024xbf16>
    tpu.vector_store %arg10[%c32, %c0_4], %5 {strides = array<i32>} : memref<1024x1024xbf16, #tpu.memory_space<vmem>>, vector<32x1024xbf16>,
    %c0_5 = arith.constant 0 : index
    %c61 = arith.constant 61 : index
    %7 = vector.load %arg9[%c0_5, %c61] : memref<32x1152xbf16, #tpu.memory_space<vmem>>, vector<32x1024xbf16>
    %c64 = arith.constant 64 : index
    %c0_6 = arith.constant 0 : index
    %8 = vector.load %arg10[%c64, %c0_6] : memref<1024x1024xbf16, #tpu.memory_space<vmem>>, vector<32x1024xbf16>
    tpu.vector_store %arg10[%c64, %c0_6], %7 {strides = array<i32>} : memref<1024x1024xbf16, #tpu.memory_space<vmem>>, vector<32x1024xbf16>,
    %c0_7 = arith.constant 0 : index
    %c62 = arith.constant 62 : index
    %9 = vector.load %arg9[%c0_7, %c62] : memref<32x1152xbf16, #tpu.memory_space<vmem>>, vector<32x1024xbf16>
    %c96 = arith.constant 96 : index
    %c0_8 = arith.constant 0 : index
    %10 = vector.load %arg10[%c96, %c0_8] : memref<1024x1024xbf16, #tpu.memory_space<vmem>>, vector<32x1024xbf16>
    tpu.vector_store %arg10[%c96, %c0_8], %9 {strides = array<i32>} : memref<1024x1024xbf16, #tpu.memory_space<vmem>>, vector<32x1024xbf16>,
    %c0_9 = arith.constant 0 : index
    %c63 = arith.constant 63 : index
    %11 = vector.load %arg9[%c0_9, %c63] : memref<32x1152xbf16, #tpu.memory_space<vmem>>, vector<32x1024xbf16>
    %c128 = arith.constant 128 : index
    %c0_10 = arith.constant 0 : index
    %12 = vector.load %arg10[%c128, %c0_10] : memref<1024x1024xbf16, #tpu.memory_space<vmem>>, vector<32x1024xbf16>
    tpu.vector_store %arg10[%c128, %c0_10], %11 {strides = array<i32>} : memref<1024x1024xbf16, #tpu.memory_space<vmem>>, vector<32x1024xbf16>,
    %c0_11 = arith.constant 0 : index
    %c64_12 = arith.constant 64 : index
    %13 = vector.load %arg9[%c0_11, %c64_12] : memref<32x1152xbf16, #tpu.memory_space<vmem>>, vector<32x1024xbf16>
    %c160 = arith.constant 160 : index
    %c0_13 = arith.constant 0 : index
    %14 = vector.load %arg10[%c160, %c0_13] : memref<1024x1024xbf16, #tpu.memory_space<vmem>>, vector<32x1024xbf16>
    tpu.vector_store %arg10[%c160, %c0_13], %13 {strides = array<i32>} : memref<1024x1024xbf16, #tpu.memory_space<vmem>>, vector<32x1024xbf16>,
    %c0_14 = arith.constant 0 : index
    %c65 = arith.constant 65 : index
    %15 = vector.load %arg9[%c0_14, %c65] : memref<32x1152xbf16, #tpu.memory_space<vmem>>, vector<32x1024xbf16>
    %c192 = arith.constant 192 : index
    %c0_15 = arith.constant 0 : index
    %16 = vector.load %arg10[%c192, %c0_15] : memref<1024x1024xbf16, #tpu.memory_space<vmem>>, vector<32x1024xbf16>
    tpu.vector_store %arg10[%c192, %c0_15], %15 {strides = array<i32>} : memref<1024x1024xbf16, #tpu.memory_space<vmem>>, vector<32x1024xbf16>,
    %c0_16 = arith.constant 0 : index
    %c81 = arith.constant 81 : index
    %17 = vector.load %arg9[%c0_16, %c81] : memref<32x1152xbf16, #tpu.memory_space<vmem>>, vector<32x1024xbf16>
    %c224 = arith.constant 224 : index
    %c0_17 = arith.constant 0 : index
    %18 = vector.load %arg10[%c224, %c0_17] : memref<1024x1024xbf16, #tpu.memory_space<vmem>>, vector<32x1024xbf16>
    tpu.vector_store %arg10[%c224, %c0_17], %17 {strides = array<i32>} : memref<1024x1024xbf16, #tpu.memory_space<vmem>>, vector<32x1024xbf16>,
    %c0_18 = arith.constant 0 : index
    %c82 = arith.constant 82 : index
    %19 = vector.load %arg9[%c0_18, %c82] : memref<32x1152xbf16, #tpu.memory_space<vmem>>, vector<32x1024xbf16>
    %c256 = arith.constant 256 : index
    %c0_19 = arith.constant 0 : index
    %20 = vector.load %arg10[%c256, %c0_19] : memref<1024x1024xbf16, #tpu.memory_space<vmem>>, vector<32x1024xbf16>
    tpu.vector_store %arg10[%c256, %c0_19], %19 {strides = array<i32>} : memref<1024x1024xbf16, #tpu.memory_space<vmem>>, vector<32x1024xbf16>,
    %c0_20 = arith.constant 0 : index
    %c83 = arith.constant 83 : index
    %21 = vector.load %arg9[%c0_20, %c83] : memref<32x1152xbf16, #tpu.memory_space<vmem>>, vector<32x1024xbf16>
    %c288 = arith.constant 288 : index
    %c0_21 = arith.constant 0 : index
    %22 = vector.load %arg10[%c288, %c0_21] : memref<1024x1024xbf16, #tpu.memory_space<vmem>>, vector<32x1024xbf16>
    tpu.vector_store %arg10[%c288, %c0_21], %21 {strides = array<i32>} : memref<1024x1024xbf16, #tpu.memory_space<vmem>>, vector<32x1024xbf16>,
    %c0_22 = arith.constant 0 : index
    %c84 = arith.constant 84 : index
    %23 = vector.load %arg9[%c0_22, %c84] : memref<32x1152xbf16, #tpu.memory_space<vmem>>, vector<32x1024xbf16>
    %c320 = arith.constant 320 : index
    %c0_23 = arith.constant 0 : index
    %24 = vector.load %arg10[%c320, %c0_23] : memref<1024x1024xbf16, #tpu.memory_space<vmem>>, vector<32x1024xbf16>
    tpu.vector_store %arg10[%c320, %c0_23], %23 {strides = array<i32>} : memref<1024x1024xbf16, #tpu.memory_space<vmem>>, vector<32x1024xbf16>,
    %c0_24 = arith.constant 0 : index
    %c85 = arith.constant 85 : index
    %25 = vector.load %arg9[%c0_24, %c85] : memref<32x1152xbf16, #tpu.memory_space<vmem>>, vector<32x1024xbf16>
    %c352 = arith.constant 352 : index
    %c0_25 = arith.constant 0 : index
    %26 = vector.load %arg10[%c352, %c0_25] : memref<1024x1024xbf16, #tpu.memory_space<vmem>>, vector<32x1024xbf16>
    tpu.vector_store %arg10[%c352, %c0_25], %25 {strides = array<i32>} : memref<1024x1024xbf16, #tpu.memory_space<vmem>>, vector<32x1024xbf16>,
    %c0_26 = arith.constant 0 : index
    %c86 = arith.constant 86 : index
    %27 = vector.load %arg9[%c0_26, %c86] : memref<32x1152xbf16, #tpu.memory_space<vmem>>, vector<32x1024xbf16>
    %c384 = arith.constant 384 : index
    %c0_27 = arith.constant 0 : index
    %28 = vector.load %arg10[%c384, %c0_27] : memref<1024x1024xbf16, #tpu.memory_space<vmem>>, vector<32x1024xbf16>
    tpu.vector_store %arg10[%c384, %c0_27], %27 {strides = array<i32>} : memref<1024x1024xbf16, #tpu.memory_space<vmem>>, vector<32x1024xbf16>,
    %c0_28 = arith.constant 0 : index
    %c87 = arith.constant 87 : index
    %29 = vector.load %arg9[%c0_28, %c87] : memref<32x1152xbf16, #tpu.memory_space<vmem>>, vector<32x1024xbf16>
    %c416 = arith.constant 416 : index
    %c0_29 = arith.constant 0 : index
    %30 = vector.load %arg10[%c416, %c0_29] : memref<1024x1024xbf16, #tpu.memory_space<vmem>>, vector<32x1024xbf16>
    tpu.vector_store %arg10[%c416, %c0_29], %29 {strides = array<i32>} : memref<1024x1024xbf16, #tpu.memory_space<vmem>>, vector<32x1024xbf16>,
    %c0_30 = arith.constant 0 : index
    %c103 = arith.constant 103 : index
    %31 = vector.load %arg9[%c0_30, %c103] : memref<32x1152xbf16, #tpu.memory_space<vmem>>, vector<32x1024xbf16>
    %c448 = arith.constant 448 : index
    %c0_31 = arith.constant 0 : index
    %32 = vector.load %arg10[%c448, %c0_31] : memref<1024x1024xbf16, #tpu.memory_space<vmem>>, vector<32x1024xbf16>
    tpu.vector_store %arg10[%c448, %c0_31], %31 {strides = array<i32>} : memref<1024x1024xbf16, #tpu.memory_space<vmem>>, vector<32x1024xbf16>,
    %c0_32 = arith.constant 0 : index
    %c104 = arith.constant 104 : index
    %33 = vector.load %arg9[%c0_32, %c104] : memref<32x1152xbf16, #tpu.memory_space<vmem>>, vector<32x1024xbf16>
    %c480 = arith.constant 480 : index
    %c0_33 = arith.constant 0 : index
    %34 = vector.load %arg10[%c480, %c0_33] : memref<1024x1024xbf16, #tpu.memory_space<vmem>>, vector<32x1024xbf16>
    tpu.vector_store %arg10[%c480, %c0_33], %33 {strides = array<i32>} : memref<1024x1024xbf16, #tpu.memory_space<vmem>>, vector<32x1024xbf16>,
    %c0_34 = arith.constant 0 : index
    %c105 = arith.constant 105 : index
    %35 = vector.load %arg9[%c0_34, %c105] : memref<32x1152xbf16, #tpu.memory_space<vmem>>, vector<32x1024xbf16>
    %c512 = arith.constant 512 : index
    %c0_35 = arith.constant 0 : index
    %36 = vector.load %arg10[%c512, %c0_35] : memref<1024x1024xbf16, #tpu.memory_space<vmem>>, vector<32x1024xbf16>
    tpu.vector_store %arg10[%c512, %c0_35], %35 {strides = array<i32>} : memref<1024x1024xbf16, #tpu.memory_space<vmem>>, vector<32x1024xbf16>,
    %c0_36 = arith.constant 0 : index
    %c106 = arith.constant 106 : index
    %37 = vector.load %arg9[%c0_36, %c106] : memref<32x1152xbf16, #tpu.memory_space<vmem>>, vector<32x1024xbf16>
    %c544 = arith.constant 544 : index
    %c0_37 = arith.constant 0 : index
    %38 = vector.load %arg10[%c544, %c0_37] : memref<1024x1024xbf16, #tpu.memory_space<vmem>>, vector<32x1024xbf16>
    tpu.vector_store %arg10[%c544, %c0_37], %37 {strides = array<i32>} : memref<1024x1024xbf16, #tpu.memory_space<vmem>>, vector<32x1024xbf16>,
    %c0_38 = arith.constant 0 : index
    %c107 = arith.constant 107 : index
    %39 = vector.load %arg9[%c0_38, %c107] : memref<32x1152xbf16, #tpu.memory_space<vmem>>, vector<32x1024xbf16>
    %c576 = arith.constant 576 : index
    %c0_39 = arith.constant 0 : index
    %40 = vector.load %arg10[%c576, %c0_39] : memref<1024x1024xbf16, #tpu.memory_space<vmem>>, vector<32x1024xbf16>
    tpu.vector_store %arg10[%c576, %c0_39], %39 {strides = array<i32>} : memref<1024x1024xbf16, #tpu.memory_space<vmem>>, vector<32x1024xbf16>,
    %c0_40 = arith.constant 0 : index
    %c108 = arith.constant 108 : index
    %41 = vector.load %arg9[%c0_40, %c108] : memref<32x1152xbf16, #tpu.memory_space<vmem>>, vector<32x1024xbf16>
    %c608 = arith.constant 608 : index
    %c0_41 = arith.constant 0 : index
    %42 = vector.load %arg10[%c608, %c0_41] : memref<1024x1024xbf16, #tpu.memory_space<vmem>>, vector<32x1024xbf16>
    tpu.vector_store %arg10[%c608, %c0_41], %41 {strides = array<i32>} : memref<1024x1024xbf16, #tpu.memory_space<vmem>>, vector<32x1024xbf16>,
    %c0_42 = arith.constant 0 : index
    %c109 = arith.constant 109 : index
    %43 = vector.load %arg9[%c0_42, %c109] : memref<32x1152xbf16, #tpu.memory_space<vmem>>, vector<32x1024xbf16>
    %c640 = arith.constant 640 : index
    %c0_43 = arith.constant 0 : index
    %44 = vector.load %arg10[%c640, %c0_43] : memref<1024x1024xbf16, #tpu.memory_space<vmem>>, vector<32x1024xbf16>
    tpu.vector_store %arg10[%c640, %c0_43], %43 {strides = array<i32>} : memref<1024x1024xbf16, #tpu.memory_space<vmem>>, vector<32x1024xbf16>,
    %c0_44 = arith.constant 0 : index
    %c125 = arith.constant 125 : index
    %45 = vector.load %arg9[%c0_44, %c125] : memref<32x1152xbf16, #tpu.memory_space<vmem>>, vector<32x1024xbf16>
    %c672 = arith.constant 672 : index
    %c0_45 = arith.constant 0 : index
    %46 = vector.load %arg10[%c672, %c0_45] : memref<1024x1024xbf16, #tpu.memory_space<vmem>>, vector<32x1024xbf16>
    tpu.vector_store %arg10[%c672, %c0_45], %45 {strides = array<i32>} : memref<1024x1024xbf16, #tpu.memory_space<vmem>>, vector<32x1024xbf16>,
    %c0_46 = arith.constant 0 : index
    %c126 = arith.constant 126 : index
    %47 = vector.load %arg9[%c0_46, %c126] : memref<32x1152xbf16, #tpu.memory_space<vmem>>, vector<32x1024xbf16>
    %c704 = arith.constant 704 : index
    %c0_47 = arith.constant 0 : index
    %48 = vector.load %arg10[%c704, %c0_47] : memref<1024x1024xbf16, #tpu.memory_space<vmem>>, vector<32x1024xbf16>
    tpu.vector_store %arg10[%c704, %c0_47], %47 {strides = array<i32>} : memref<1024x1024xbf16, #tpu.memory_space<vmem>>, vector<32x1024xbf16>,
    %c0_48 = arith.constant 0 : index
    %c127 = arith.constant 127 : index
    %49 = vector.load %arg9[%c0_48, %c127] : memref<32x1152xbf16, #tpu.memory_space<vmem>>, vector<32x1024xbf16>
    %c736 = arith.constant 736 : index
    %c0_49 = arith.constant 0 : index
    %50 = vector.load %arg10[%c736, %c0_49] : memref<1024x1024xbf16, #tpu.memory_space<vmem>>, vector<32x1024xbf16>
    tpu.vector_store %arg10[%c736, %c0_49], %49 {strides = array<i32>} : memref<1024x1024xbf16, #tpu.memory_space<vmem>>, vector<32x1024xbf16>,
    %c0_50 = arith.constant 0 : index
    %c128_51 = arith.constant 128 : index
    %51 = vector.load %arg9[%c0_50, %c128_51] : memref<32x1152xbf16, #tpu.memory_space<vmem>>, vector<32x1024xbf16>
    %c768 = arith.constant 768 : index
    %c0_52 = arith.constant 0 : index
    %52 = vector.load %arg10[%c768, %c0_52] : memref<1024x1024xbf16, #tpu.memory_space<vmem>>, vector<32x1024xbf16>
    tpu.vector_store %arg10[%c768, %c0_52], %51 {strides = array<i32>} : memref<1024x1024xbf16, #tpu.memory_space<vmem>>, vector<32x1024xbf16>,
    %c0_53 = arith.constant 0 : index
    %c0_54 = arith.constant 0 : index
    %c0_55 = arith.constant 0 : index
    %53 = vector.load %arg2[%c0_53, %c0_54, %c0_55] : memref<1x32x1024xbf16, #tpu.memory_space<vmem>>, vector<1x32x1024xbf16>
    %54 = vector.shape_cast %53 : vector<1x32x1024xbf16> to vector<32x1024xbf16>
    %c0_56 = arith.constant 0 : index
    %c0_57 = arith.constant 0 : index
    %55 = vector.load %arg10[%c0_56, %c0_57] : memref<1024x1024xbf16, #tpu.memory_space<vmem>>, vector<1024x1024xbf16>
    %cst = arith.constant dense<0.000000e+00> : vector<32x1024xf32>
    %56 = tpu.matmul %54, %55, %cst {dimension_numbers = #tpu.dot_dimension_numbers<[1], [0], [0], [1], [0, 0, 1, 1], [], []>} : vector<32x1024xbf16>, vector<1024x1024xbf16>, vector<32x1024xf32> -> vector<32x1024xf32>
    %c0_58 = arith.constant 0 : index
    %c0_59 = arith.constant 0 : index
    %57 = vector.load %arg7[%c0_58, %c0_59] : memref<1x1024xf32, #tpu.memory_space<vmem>>, vector<1x1024xf32>
    %58 = vector.broadcast %57 : vector<1x1024xf32> to vector<32x1024xf32>
    %59 = arith.mulf %56, %58 : vector<32x1024xf32>
    %cst_60 = arith.constant dense<0.000000e+00> : vector<32xf32>
    %60 = vector.multi_reduction <add>, %59, %cst_60 [1] : vector<32x1024xf32> to vector<32xf32>
    %61 = vector.shape_cast %60 : vector<32xf32> to vector<32x1xf32>
    %cst_61 = arith.constant 0.001953125 : f32
    %62 = vector.broadcast %cst_61 : f32 to vector<32x1xf32>
    %63 = arith.mulf %61, %62 : vector<32x1xf32>
    %64 = arith.mulf %59, %56 : vector<32x1024xf32>
    %cst_62 = arith.constant dense<0.000000e+00> : vector<32xf32>
    %65 = vector.multi_reduction <add>, %64, %cst_62 [1] : vector<32x1024xf32> to vector<32xf32>
    %66 = vector.shape_cast %65 : vector<32xf32> to vector<32x1xf32>
    %cst_63 = arith.constant 0.001953125 : f32
    %67 = vector.broadcast %cst_63 : f32 to vector<32x1xf32>
    %68 = arith.mulf %66, %67 : vector<32x1xf32>
    %69 = arith.mulf %63, %63 : vector<32x1xf32>
    %70 = arith.subf %68, %69 : vector<32x1xf32>
    %cst_64 = arith.constant 0.000000e+00 : f32
    %71 = vector.broadcast %cst_64 : f32 to vector<32x1xf32>
    %72 = arith.maximumf %70, %71 : vector<32x1xf32>
    %cst_65 = arith.constant 9.99999974E-6 : f32
    %73 = vector.broadcast %cst_65 : f32 to vector<32x1xf32>
    %74 = arith.addf %72, %73 : vector<32x1xf32>
    %75 = math.rsqrt %74 : vector<32x1xf32>
    %76 = vector.broadcast %63 : vector<32x1xf32> to vector<32x1024xf32>
    %77 = arith.subf %56, %76 : vector<32x1024xf32>
    %78 = vector.broadcast %75 : vector<32x1xf32> to vector<32x1024xf32>
    %79 = arith.mulf %77, %78 : vector<32x1024xf32>
    %c0_66 = arith.constant 0 : index
    %c0_67 = arith.constant 0 : index
    %c0_68 = arith.constant 0 : index
    %80 = vector.load %arg3[%c0_66, %c0_67, %c0_68] : memref<1x32x1xf32, #tpu.memory_space<vmem>>, vector<1x32x1xf32>
    %81 = vector.shape_cast %80 : vector<1x32x1xf32> to vector<32x1xf32>
    %82 = vector.broadcast %81 : vector<32x1xf32> to vector<32x1024xf32>
    %83 = arith.mulf %79, %82 : vector<32x1024xf32>
    %c0_69 = arith.constant 0 : index
    %c0_70 = arith.constant 0 : index
    %c0_71 = arith.constant 0 : index
    %84 = vector.load %arg4[%c0_69, %c0_70, %c0_71] : memref<1x32x1xf32, #tpu.memory_space<vmem>>, vector<1x32x1xf32>
    %85 = vector.shape_cast %84 : vector<1x32x1xf32> to vector<32x1xf32>
    %86 = vector.broadcast %85 : vector<32x1xf32> to vector<32x1024xf32>
    %87 = arith.addf %83, %86 : vector<32x1024xf32>
    %cst_72 = arith.constant 0.000000e+00 : f32
    %88 = vector.broadcast %cst_72 : f32 to vector<32x1024xf32>
    %89 = arith.maximumf %87, %88 : vector<32x1024xf32>
    %90 = vector.broadcast %57 : vector<1x1024xf32> to vector<32x1024xf32>
    %91 = arith.mulf %89, %90 : vector<32x1024xf32>
    %92 = arith.truncf %91 : vector<32x1024xf32> to vector<32x1024xbf16>
    %c0_73 = arith.constant 0 : index
    %c128_74 = arith.constant 128 : index
    %93 = vector.load %arg9[%c0_73, %c128_74] : memref<32x1152xbf16, #tpu.memory_space<vmem>>, vector<32x1024xbf16>
    tpu.vector_store %arg9[%c0_73, %c128_74], %92 {strides = array<i32>} : memref<32x1152xbf16, #tpu.memory_space<vmem>>, vector<32x1024xbf16>,
    %c7_i32 = arith.constant 7 : i32
    %94 = arith.cmpi eq, %arg0, %c7_i32 : i32
    %95 = arith.extui %94 : i1 to i32
    %c0_i32_75 = arith.constant 0 : i32
    %96 = arith.cmpi ne, %95, %c0_i32_75 : i32
    scf.if %96 {
      %97 = arith.truncf %91 : vector<32x1024xf32> to vector<32x1024xbf16>
      %c0_76 = arith.constant 0 : index
      %c0_77 = arith.constant 0 : index
      %98 = vector.load %arg5[%c0_76, %c0_77] : memref<256x32xbf16, #tpu.memory_space<vmem>>, vector<128x32xbf16>
      %cst_78 = arith.constant dense<0.000000e+00> : vector<128x1024xf32>
      %99 = tpu.matmul %98, %97, %cst_78 {dimension_numbers = #tpu.dot_dimension_numbers<[1], [0], [0], [1], [0, 0, 1, 1], [], []>} : vector<128x32xbf16>, vector<32x1024xbf16>, vector<128x1024xf32> -> vector<128x1024xf32>
      %c0_79 = arith.constant 0 : index
      %c0_80 = arith.constant 0 : index
      %100 = vector.load %arg6[%c0_79, %c0_80] : memref<256x1xf32, #tpu.memory_space<vmem>>, vector<128x1xf32>
      %101 = vector.broadcast %100 : vector<128x1xf32> to vector<128x1024xf32>
      %102 = arith.addf %99, %101 : vector<128x1024xf32>
      %c0_81 = arith.constant 0 : index
      %c0_82 = arith.constant 0 : index
      %103 = vector.load %arg8[%c0_81, %c0_82] : memref<256x1024xf32, #tpu.memory_space<vmem>>, vector<128x1024xf32>
      tpu.vector_store %arg8[%c0_81, %c0_82], %102 {strides = array<i32>} : memref<256x1024xf32, #tpu.memory_space<vmem>>, vector<128x1024xf32>,
      %c128_83 = arith.constant 128 : index
      %c0_84 = arith.constant 0 : index
      %104 = vector.load %arg5[%c128_83, %c0_84] : memref<256x32xbf16, #tpu.memory_space<vmem>>, vector<128x32xbf16>
      %cst_85 = arith.constant dense<0.000000e+00> : vector<128x1024xf32>
      %105 = tpu.matmul %104, %97, %cst_85 {dimension_numbers = #tpu.dot_dimension_numbers<[1], [0], [0], [1], [0, 0, 1, 1], [], []>} : vector<128x32xbf16>, vector<32x1024xbf16>, vector<128x1024xf32> -> vector<128x1024xf32>
      %c128_86 = arith.constant 128 : index
      %c0_87 = arith.constant 0 : index
      %106 = vector.load %arg6[%c128_86, %c0_87] : memref<256x1xf32, #tpu.memory_space<vmem>>, vector<128x1xf32>
      %107 = vector.broadcast %106 : vector<128x1xf32> to vector<128x1024xf32>
      %108 = arith.addf %105, %107 : vector<128x1024xf32>
      %c128_88 = arith.constant 128 : index
      %c0_89 = arith.constant 0 : index
      %109 = vector.load %arg8[%c128_88, %c0_89] : memref<256x1024xf32, #tpu.memory_space<vmem>>, vector<128x1024xf32>
      tpu.vector_store %arg8[%c128_88, %c0_89], %108 {strides = array<i32>} : memref<256x1024xf32, #tpu.memory_space<vmem>>, vector<128x1024xf32>,
    } else {
    }
    return
  }
  func.func @transform_0(%arg0: i32) -> (i32, i32) {
    %c0_i32 = arith.constant 0 : i32
    %c0_i32_0 = arith.constant 0 : i32
    %c0_i32_1 = arith.constant 0 : i32
    return %c0_i32, %c0_i32_0 : i32, i32
  }
  func.func @transform_1(%arg0: i32) -> (i32, i32, i32) {
    %c0_i32 = arith.constant 0 : i32
    %c0_i32_0 = arith.constant 0 : i32
    %c0_i32_1 = arith.constant 0 : i32
    return %arg0, %c0_i32, %c0_i32_0 : i32, i32, i32
  }
  func.func @transform_2(%arg0: i32) -> (i32, i32, i32) {
    %c0_i32 = arith.constant 0 : i32
    %c0_i32_0 = arith.constant 0 : i32
    %c0_i32_1 = arith.constant 0 : i32
    return %arg0, %c0_i32, %c0_i32_0 : i32, i32, i32
  }
  func.func @transform_3(%arg0: i32) -> (i32, i32, i32) {
    %c0_i32 = arith.constant 0 : i32
    %c0_i32_0 = arith.constant 0 : i32
    %c0_i32_1 = arith.constant 0 : i32
    return %arg0, %c0_i32, %c0_i32_0 : i32, i32, i32
  }
  func.func @transform_4(%arg0: i32) -> (i32, i32) {
    %c0_i32 = arith.constant 0 : i32
    %c0_i32_0 = arith.constant 0 : i32
    %c0_i32_1 = arith.constant 0 : i32
    return %c0_i32, %c0_i32_0 : i32, i32
  }
  func.func @transform_5(%arg0: i32) -> (i32, i32) {
    %c0_i32 = arith.constant 0 : i32
    %c0_i32_0 = arith.constant 0 : i32
    %c0_i32_1 = arith.constant 0 : i32
    return %c0_i32, %c0_i32_0 : i32, i32
  }
  func.func @transform_6(%arg0: i32) -> (i32, i32) {
    %c0_i32 = arith.constant 0 : i32
    %c0_i32_0 = arith.constant 0 : i32
    %c0_i32_1 = arith.constant 0 : i32
    return %c0_i32, %c0_i32_0 : i32, i32
  }
  func.func @transform_7(%arg0: i32) -> (i32, i32) {
    %c0_i32 = arith.constant 0 : i32
    %c0_i32_0 = arith.constant 0 : i32
    %c0_i32_1 = arith.constant 0 : i32
    return %c0_i32, %c0_i32_0 : i32, i32
  }
}

</mosaic_0001>

<bundles_post_ra>
// kernel: _lambda_.1
= control target key start
LH: loop header
LB: loop body
LE: loop exit
PB: predicated region body
PF: predicated region fallthrough
CT: control target
= control target key end

     0   :  { %s7273_s24 = smov 0   ;;  %s11353_s0 = inlined_call_operand.vmem [shape: f32[32,1024], index: 0, kind: input, shape index: {}]   ;;  %s11354_s1 = inlined_call_operand.vmem [shape: bf16[8,32,1024], index: 1, kind: input, shape index: {}]   ;;  %s11355_s2 = inlined_call_operand.vmem [shape: f32[8,32,1], index: 2, kind: input, shape index: {}]   ;;  %s11356_s3 = inlined_call_operand.vmem [shape: f32[8,32,1], index: 3, kind: input, shape index: {}]   ;;  %s11357_s4 = inlined_call_operand.vmem [shape: bf16[256,32], index: 4, kind: input, shape index: {}]   ;;  %s11358_s5 = inlined_call_operand.vmem [shape: f32[256,1], index: 5, kind: input, shape index: {}]   ;;  %s11359_s6 = inlined_call_operand.vmem [shape: f32[1,1024], index: 6, kind: input, shape index: {}]   ;;  %s11360_s7 = inlined_call_operand.vmem [shape: f32[256,1024], index: 7, kind: output, shape index: {}]  }
   0x1 LB: > { %s7279_s25 = sadd.s32 4294967295, %s7204_s24   ;;  %p6929_p0 = scmp.ge.s32.totalorder %s7204_s24, 1  ;;  %s7204_s24 = sphi %s7273_s24, %s17_s24  }
   0x2   : > { %p252_p1 = scmp.lt.s32.totalorder %s7204_s24, 9 }
   0x4   : > { %p253_p2 = pnand %p6929_p0, %p252_p1 }
   0x6   : > { %256 = sbr.rel (%p253_p2) target bundleno = 2033 (0x7f1), region = 48 }
   0xd   : > { %p289_p3 = scmp.lt.s32.totalorder %s7279_s25, 7  ;;  %p6936_p4 = scmp.ne.s32.totalorder %s7279_s25, 0 }
   0xe   : > { %v7304_v0 = vld [vmem:[%s11353_s0] sm:$0xff] (!%p6936_p4)  ;;  %v7314_v2 = vld [vmem:[%s11353_s0 + $0x8] sm:$0xff] (!%p6936_p4)  ;;  %v7206_v3 = vmov (!%p6936_p4), 0   ;;  %v313_v6 = vld [vmem:[%s11353_s0 + $0x10] sm:$0xff] (!%p6936_p4) }
   0xf   : > { %s290_s26 = scalar_select %p289_p3, %s7279_s25, 7 }
  0x10   : > { %308 = sbr.rel (%p6936_p4) target bundleno = 81 (0x51), region = 52  ;;  %v7309_v1 = vld [vmem:[%s11353_s0 + $0x40] sm:$0xff] (!%p6936_p4)  ;;  %309 = vst [vmem:[#allocation2] sm:$0xff] (!%p6936_p4), %v7206_v3  ;;  %310 = vst [vmem:[#allocation2 + $0x48] sm:$0xff] (!%p6936_p4), %v7206_v3  ;;  %v320_v5 = vld [vmem:[%s11353_s0 + $0x48] sm:$0xff] (!%p6936_p4) }
  0x11   : > { %s7036_s27 = sshll.u32 %s290_s26, 7  ;;  %s7037_s28 = sshll.u32 %s290_s26, 5  ;;  %375 = vst [vmem:[#allocation3 + $0xc80] sm:$0xff] (!%p6936_p4), %v7206_v3  ;;  %376 = vst [vmem:[#allocation3 + $0xc88] sm:$0xff] (!%p6936_p4), %v7206_v3  ;;  %v343_v4 = vpack.c.bf16 (!%p6936_p4), %v7309_v1, %v7304_v0  ;;  %v321_v7 = vld [vmem:[%s11353_s0 + $0x50] sm:$0xff] (!%p6936_p4)  ;;  %v344_v8 = vpack.c.bf16 (!%p6936_p4), %v320_v5, %v7314_v2  ;;  %v314_v10 = vld [vmem:[%s11353_s0 + $0x18] sm:$0xff] (!%p6936_p4) }
  0x12   : > { %s7288_s8 = scalar_lea.vmem %s11354_s1, %s7036_s27  ;;  %s7293_s11 = scalar_lea.vmem %s11355_s2, %s7037_s28  ;;  %377 = vst [vmem:[#allocation3 + $0xc90] sm:$0xff] (!%p6936_p4), %v7206_v3  ;;  %378 = vst [vmem:[#allocation3 + $0xc98] sm:$0xff] (!%p6936_p4), %v7206_v3  ;;  %v345_v9 = vpack.c.bf16 (!%p6936_p4), %v321_v7, %v313_v6  ;;  %v322_v11 = vld [vmem:[%s11353_s0 + $0x58] sm:$0xff] (!%p6936_p4)  ;;  %v315_v12 = vld [vmem:[%s11353_s0 + $0x20] sm:$0xff] (!%p6936_p4) }
  0x13   : > { %s7298_s14 = scalar_lea.vmem %s11356_s3, %s7037_s28  ;;  %379 = vst [vmem:[#allocation3 + $0xca0] sm:$0xff] (!%p6936_p4), %v7206_v3  ;;  %380 = vst [vmem:[#allocation3 + $0xca8] sm:$0xff] (!%p6936_p4), %v7206_v3  ;;  %v346_v13 = vpack.c.bf16 (!%p6936_p4), %v322_v11, %v314_v10  ;;  %v323_v14 = vld [vmem:[%s11353_s0 + $0x60] sm:$0xff] (!%p6936_p4)  ;;  %v316_v15 = vld [vmem:[%s11353_s0 + $0x28] sm:$0xff] (!%p6936_p4) }
  0x14   : > { %381 = vst [vmem:[#allocation3 + $0xcb0] sm:$0xff] (!%p6936_p4), %v7206_v3  ;;  %382 = vst [vmem:[#allocation3 + $0xcb8] sm:$0xff] (!%p6936_p4), %v7206_v3  ;;  %v324_v16 = vld [vmem:[%s11353_s0 + $0x68] sm:$0xff] (!%p6936_p4)  ;;  %v347_v17 = vpack.c.bf16 (!%p6936_p4), %v323_v14, %v315_v12  ;;  %v317_v19 = vld [vmem:[%s11353_s0 + $0x30] sm:$0xff] (!%p6936_p4) }
  0x15   : > { %383 = vst [vmem:[#allocation3 + $0xcc0] sm:$0xff] (!%p6936_p4), %v7206_v3  ;;  %384 = vst [vmem:[#allocation3 + $0xcc8] sm:$0xff] (!%p6936_p4), %v7206_v3  ;;  %v348_v18 = vpack.c.bf16 (!%p6936_p4), %v324_v16, %v316_v15  ;;  %v325_v20 = vld [vmem:[%s11353_s0 + $0x70] sm:$0xff] (!%p6936_p4)  ;;  %v318_v21 = vld [vmem:[%s11353_s0 + $0x38] sm:$0xff] (!%p6936_p4) }
  0x16   : > { %385 = vst [vmem:[#allocation3 + $0xcd0] sm:$0xff] (!%p6936_p4), %v7206_v3  ;;  %386 = vst [vmem:[#allocation3 + $0xcd8] sm:$0xff] (!%p6936_p4), %v7206_v3  ;;  %v349_v22 = vpack.c.bf16 (!%p6936_p4), %v325_v20, %v317_v19  ;;  %v326_v23 = vld [vmem:[%s11353_s0 + $0x78] sm:$0xff] (!%p6936_p4)  ;;  %v327_v24 = vld [vmem:[%s11353_s0 + $0x80] sm:$0xff] (!%p6936_p4) }
  0x17   : > { %387 = vst [vmem:[#allocation3 + $0xce0] sm:$0xff] %v7206_v3  ;;  %388 = vst [vmem:[#allocation3 + $0xce8] sm:$0xff] %v7206_v3  ;;  %v335_v25 = vld [vmem:[%s11353_s0 + $0xc0] sm:$0xff]  ;;  %v350_v26 = vpack.c.bf16 %v326_v23, %v318_v21  ;;  %v328_v28 = vld [vmem:[%s11353_s0 + $0x88] sm:$0xff] }
  0x18   : > { %389 = vst [vmem:[#allocation3 + $0xcf0] sm:$0xff] %v7206_v3  ;;  %390 = vst [vmem:[#allocation3 + $0xcf8] sm:$0xff] %v7206_v3  ;;  %v351_v27 = vpack.c.bf16 %v335_v25, %v327_v24  ;;  %v336_v29 = vld [vmem:[%s11353_s0 + $0xc8] sm:$0xff]  ;;  %v329_v30 = vld [vmem:[%s11353_s0 + $0x90] sm:$0xff] }
  0x19   : > { %391 = vst [vmem:[#allocation3 + $0xd00] sm:$0xff] %v7206_v3  ;;  %392 = vst [vmem:[#allocation3 + $0xd08] sm:$0xff] %v7206_v3  ;;  %v352_v31 = vpack.c.bf16 %v336_v29, %v328_v28  ;;  %v337_v32 = vld [vmem:[%s11353_s0 + $0xd0] sm:$0xff]  ;;  %v330_v33 = vld [vmem:[%s11353_s0 + $0x98] sm:$0xff] }
  0x1a   : > { %393 = vst [vmem:[#allocation3 + $0xd10] sm:$0xff] %v7206_v3  ;;  %394 = vst [vmem:[#allocation3 + $0xd18] sm:$0xff] %v7206_v3  ;;  %v338_v34 = vld [vmem:[%s11353_s0 + $0xd8] sm:$0xff]  ;;  %v353_v35 = vpack.c.bf16 %v337_v32, %v329_v30  ;;  %v331_v37 = vld [vmem:[%s11353_s0 + $0xa0] sm:$0xff] }
  0x1b   : > { %395 = vst [vmem:[#allocation3 + $0xd20] sm:$0xff] %v7206_v3  ;;  %396 = vst [vmem:[#allocation3 + $0xd28] sm:$0xff] %v7206_v3  ;;  %v354_v36 = vpack.c.bf16 %v338_v34, %v330_v33  ;;  %v339_v38 = vld [vmem:[%s11353_s0 + $0xe0] sm:$0xff]  ;;  %v332_v39 = vld [vmem:[%s11353_s0 + $0xa8] sm:$0xff] }
  0x1c   : > { %397 = vst [vmem:[#allocation3 + $0xd30] sm:$0xff] %v7206_v3  ;;  %398 = vst [vmem:[#allocation3 + $0xd38] sm:$0xff] %v7206_v3  ;;  %v355_v40 = vpack.c.bf16 %v339_v38, %v331_v37  ;;  %v340_v41 = vld [vmem:[%s11353_s0 + $0xe8] sm:$0xff]  ;;  %v333_v42 = vld [vmem:[%s11353_s0 + $0xb0] sm:$0xff] }
  0x1d   : > { %399 = vst [vmem:[#allocation3 + $0xd40] sm:$0xff] %v7206_v3  ;;  %400 = vst [vmem:[#allocation3 + $0xd48] sm:$0xff] %v7206_v3  ;;  %v341_v43 = vld [vmem:[%s11353_s0 + $0xf0] sm:$0xff]  ;;  %v356_v44 = vpack.c.bf16 %v340_v41, %v332_v39  ;;  %v334_v46 = vld [vmem:[%s11353_s0 + $0xb8] sm:$0xff] }
  0x1e   : > { %401 = vst [vmem:[#allocation3 + $0xd50] sm:$0xff] %v7206_v3  ;;  %402 = vst [vmem:[#allocation3 + $0xd58] sm:$0xff] %v7206_v3  ;;  %v357_v45 = vpack.c.bf16 %v341_v43, %v333_v42  ;;  %v342_v47 = vld [vmem:[%s11353_s0 + $0xf8] sm:$0xff] }
  0x1f   : > { %403 = vst [vmem:[#allocation3 + $0xd60] sm:$0xff] %v7206_v3  ;;  %404 = vst [vmem:[#allocation3 + $0xd68] sm:$0xff] %v7206_v3  ;;  %v358_v48 = vpack.c.bf16 %v342_v47, %v334_v46 }
  0x20   : > { %405 = vst [vmem:[#allocation3 + $0xd70] sm:$0xff] %v7206_v3  ;;  %406 = vst [vmem:[#allocation3 + $0xd78] sm:$0xff] %v7206_v3 }
  0x21   : > { %407 = vst [vmem:[#allocation3 + $0xd80] sm:$0xff] %v7206_v3  ;;  %408 = vst [vmem:[#allocation3 + $0xd88] sm:$0xff] %v7206_v3 }
  0x22   : > { %409 = vst [vmem:[#allocation3 + $0xd90] sm:$0xff] %v7206_v3  ;;  %410 = vst [vmem:[#allocation3 + $0xd98] sm:$0xff] %v7206_v3 }
  0x23   : > { %411 = vst [vmem:[#allocation3 + $0xda0] sm:$0xff] %v7206_v3  ;;  %412 = vst [vmem:[#allocation3 + $0xda8] sm:$0xff] %v7206_v3 }
  0x24   : > { %413 = vst [vmem:[#allocation3 + $0xdb0] sm:$0xff] %v7206_v3  ;;  %414 = vst [vmem:[#allocation3 + $0xdb8] sm:$0xff] %v7206_v3 }
  0x25   : > { %415 = vst [vmem:[#allocation3 + $0xdc0] sm:$0xff] %v7206_v3  ;;  %416 = vst [vmem:[#allocation3 + $0xdc8] sm:$0xff] %v7206_v3 }
  0x26   : > { %417 = vst [vmem:[#allocation3 + $0xdd0] sm:$0xff] %v7206_v3  ;;  %418 = vst [vmem:[#allocation3 + $0xdd8] sm:$0xff] %v7206_v3 }
  0x27   : > { %419 = vst [vmem:[#allocation3 + $0xde0] sm:$0xff] %v7206_v3  ;;  %420 = vst [vmem:[#allocation3 + $0xde8] sm:$0xff] %v7206_v3 }
  0x28   : > { %421 = vst [vmem:[#allocation3 + $0xdf0] sm:$0xff] %v7206_v3  ;;  %422 = vst [vmem:[#allocation3 + $0xdf8] sm:$0xff] %v7206_v3 }
  0x29   : > { %423 = vst [vmem:[#allocation3 + $0xe00] sm:$0xff] %v7206_v3  ;;  %424 = vst [vmem:[#allocation3 + $0xe08] sm:$0xff] %v7206_v3 }
  0x2a   : > { %425 = vst [vmem:[#allocation3 + $0xe10] sm:$0xff] %v7206_v3  ;;  %426 = vst [vmem:[#allocation3 + $0xe18] sm:$0xff] %v7206_v3 }
  0x2b   : > { %427 = vst [vmem:[#allocation3 + $0xe20] sm:$0xff] %v7206_v3  ;;  %428 = vst [vmem:[#allocation3 + $0xe28] sm:$0xff] %v7206_v3 }
  0x2c   : > { %429 = vst [vmem:[#allocation3 + $0xe30] sm:$0xff] %v7206_v3  ;;  %430 = vst [vmem:[#allocation3 + $0xe38] sm:$0xff] %v7206_v3 }
  0x2d   : > { %431 = vst [vmem:[#allocation3 + $0xe40] sm:$0xff] %v7206_v3  ;;  %432 = vst [vmem:[#allocation3 + $0xe48] sm:$0xff] %v7206_v3 }
  0x2e   : > { %433 = vst [vmem:[#allocation3 + $0xe50] sm:$0xff] %v7206_v3  ;;  %434 = vst [vmem:[#allocation3 + $0xe58] sm:$0xff] %v7206_v3 }
  0x2f   : > { %435 = vst [vmem:[#allocation3 + $0xe60] sm:$0xff] %v7206_v3  ;;  %436 = vst [vmem:[#allocation3 + $0xe68] sm:$0xff] %v7206_v3 }
  0x30   : > { %437 = vst [vmem:[#allocation3 + $0xe70] sm:$0xff] %v7206_v3  ;;  %438 = vst [vmem:[#allocation3 + $0xe78] sm:$0xff] %v7206_v3 }
  0x31   : > { %439 = vst [vmem:[#allocation3 + $0xe80] sm:$0xff] %v7206_v3  ;;  %440 = vst [vmem:[#allocation3 + $0xe88] sm:$0xff] %v7206_v3 }
  0x32   : > { %441 = vst [vmem:[#allocation3 + $0xe90] sm:$0xff] %v7206_v3  ;;  %442 = vst [vmem:[#allocation3 + $0xe98] sm:$0xff] %v7206_v3 }
  0x33   : > { %443 = vst [vmem:[#allocation3 + $0xea0] sm:$0xff] %v7206_v3  ;;  %444 = vst [vmem:[#allocation3 + $0xea8] sm:$0xff] %v7206_v3 }
  0x34   : > { %445 = vst [vmem:[#allocation3 + $0xeb0] sm:$0xff] %v7206_v3  ;;  %446 = vst [vmem:[#allocation3 + $0xeb8] sm:$0xff] %v7206_v3 }
  0x35   : > { %447 = vst [vmem:[#allocation3 + $0xec0] sm:$0xff] %v7206_v3  ;;  %448 = vst [vmem:[#allocation3 + $0xec8] sm:$0xff] %v7206_v3 }
  0x36   : > { %449 = vst [vmem:[#allocation3 + $0xed0] sm:$0xff] %v7206_v3  ;;  %450 = vst [vmem:[#allocation3 + $0xed8] sm:$0xff] %v7206_v3 }
  0x37   : > { %451 = vst [vmem:[#allocation3 + $0xee0] sm:$0xff] %v7206_v3  ;;  %452 = vst [vmem:[#allocation3 + $0xee8] sm:$0xff] %v7206_v3 }
  0x38   : > { %453 = vst [vmem:[#allocation3 + $0xef0] sm:$0xff] %v7206_v3  ;;  %454 = vst [vmem:[#allocation3 + $0xef8] sm:$0xff] %v7206_v3 }
  0x39   : > { %455 = vst [vmem:[#allocation3 + $0xf00] sm:$0xff] %v7206_v3  ;;  %456 = vst [vmem:[#allocation3 + $0xf08] sm:$0xff] %v7206_v3 }
  0x3a   : > { %457 = vst [vmem:[#allocation3 + $0xf10] sm:$0xff] %v7206_v3  ;;  %458 = vst [vmem:[#allocation3 + $0xf18] sm:$0xff] %v7206_v3 }
  0x3b   : > { %459 = vst [vmem:[#allocation3 + $0xf20] sm:$0xff] %v7206_v3  ;;  %460 = vst [vmem:[#allocation3 + $0xf28] sm:$0xff] %v7206_v3 }
  0x3c   : > { %461 = vst [vmem:[#allocation3 + $0xf30] sm:$0xff] %v7206_v3  ;;  %462 = vst [vmem:[#allocation3 + $0xf38] sm:$0xff] %v7206_v3 }
  0x3d   : > { %463 = vst [vmem:[#allocation3 + $0xf40] sm:$0xff] %v7206_v3  ;;  %464 = vst [vmem:[#allocation3 + $0xf48] sm:$0xff] %v7206_v3 }
  0x3e   : > { %465 = vst [vmem:[#allocation3 + $0xf50] sm:$0xff] %v7206_v3  ;;  %466 = vst [vmem:[#allocation3 + $0xf58] sm:$0xff] %v7206_v3 }
  0x3f   : > { %467 = vst [vmem:[#allocation3 + $0xf60] sm:$0xff] %v7206_v3  ;;  %468 = vst [vmem:[#allocation3 + $0xf68] sm:$0xff] %v7206_v3 }
  0x40   : > { %469 = vst [vmem:[#allocation3 + $0xf70] sm:$0xff] %v7206_v3  ;;  %470 = vst [vmem:[#allocation3 + $0xf78] sm:$0xff] %v7206_v3 }
  0x41   : > { %471 = vst [vmem:[#allocation3 + $0xf80] sm:$0xff] %v7206_v3  ;;  %472 = vst [vmem:[#allocation3 + $0xf88] sm:$0xff] %v7206_v3 }
  0x42   : > { %473 = vst [vmem:[#allocation3 + $0xf90] sm:$0xff] %v7206_v3  ;;  %474 = vst [vmem:[#allocation3 + $0xf98] sm:$0xff] %v7206_v3 }
  0x43   : > { %475 = vst [vmem:[#allocation3 + $0xfa0] sm:$0xff] %v7206_v3  ;;  %476 = vst [vmem:[#allocation3 + $0xfa8] sm:$0xff] %v7206_v3 }
  0x44   : > { %477 = vst [vmem:[#allocation3 + $0xfb0] sm:$0xff] %v7206_v3  ;;  %478 = vst [vmem:[#allocation3 + $0xfb8] sm:$0xff] %v7206_v3 }
  0x45   : > { %479 = vst [vmem:[#allocation3 + $0xfc0] sm:$0xff] %v7206_v3  ;;  %480 = vst [vmem:[#allocation3 + $0xfc8] sm:$0xff] %v7206_v3 }
  0x46   : > { %481 = vst [vmem:[#allocation3 + $0xfd0] sm:$0xff] %v7206_v3  ;;  %482 = vst [vmem:[#allocation3 + $0xfd8] sm:$0xff] %v7206_v3 }
  0x47   : > { %483 = vst [vmem:[#allocation3 + $0xfe0] sm:$0xff] %v7206_v3  ;;  %484 = vst [vmem:[#allocation3 + $0xfe8] sm:$0xff] %v7206_v3 }
  0x48   : > { %485 = vst [vmem:[#allocation3 + $0xff0] sm:$0xff] %v7206_v3  ;;  %486 = vst [vmem:[#allocation3 + $0xff8] sm:$0xff] %v7206_v3 }
  0x49   : > { %359 = vst [vmem:[#allocation2 + $0x8] sm:$0xff] %v343_v4  ;;  %360 = vst [vmem:[#allocation2 + $0x10] sm:$0xff] %v344_v8 }
  0x4a   : > { %361 = vst [vmem:[#allocation2 + $0x18] sm:$0xff] %v345_v9  ;;  %362 = vst [vmem:[#allocation2 + $0x20] sm:$0xff] %v346_v13 }
  0x4b   : > { %363 = vst [vmem:[#allocation2 + $0x28] sm:$0xff] %v347_v17  ;;  %364 = vst [vmem:[#allocation2 + $0x30] sm:$0xff] %v348_v18 }
  0x4c   : > { %365 = vst [vmem:[#allocation2 + $0x38] sm:$0xff] %v349_v22  ;;  %366 = vst [vmem:[#allocation2 + $0x40] sm:$0xff] %v350_v26 }
  0x4d   : > { %367 = vst [vmem:[#allocation2 + $0x50] sm:$0xff] %v351_v27  ;;  %368 = vst [vmem:[#allocation2 + $0x58] sm:$0xff] %v352_v31 }
  0x4e   : > { %369 = vst [vmem:[#allocation2 + $0x60] sm:$0xff] %v353_v35  ;;  %370 = vst [vmem:[#allocation2 + $0x68] sm:$0xff] %v354_v36 }
  0x4f   : > { %371 = vst [vmem:[#allocation2 + $0x70] sm:$0xff] %v355_v40  ;;  %372 = vst [vmem:[#allocation2 + $0x78] sm:$0xff] %v356_v44 }
  0x50   : > { %373 = vst [vmem:[#allocation2 + $0x80] sm:$0xff] %v357_v45  ;;  %374 = vst [vmem:[#allocation2 + $0x88] sm:$0xff] %v358_v48 }
  0x51 PF: > { %v7520_v49 = vld [vmem:[#allocation2 + $0x10] sm:$0xff]  ;;  %v7522_v50 = vld [vmem:[#allocation2] sm:$0xff]  ;;  %s7207_s27 = smov 69   ;;  %v7528_v51 = vld [vmem:[#allocation2 + $0x18] sm:$0xff]  ;;  %s7208_s28 = smov 68   ;;  %vm559_vm0 = vcmask 564224  }
  0x52   : > { %527 = vrot.lane.b32.xlu1 %v7520_v49, %s7207_s27  ;;  %523 = vrot.lane.b32.xlu0 %v7522_v50, %s7207_s27  ;;  %v7530_v52 = vld [vmem:[#allocation2 + $0x8] sm:$0xff]  ;;  %v7536_v54 = vld [vmem:[#allocation2 + $0x20] sm:$0xff]  ;;  %v493_v56 = vld [vmem:[#allocation2 + $0x30] sm:$0xff]  ;;  %s7209_s29 = smov 67   ;;  %s7210_s30 = smov 66   ;;  %vm680_vm1 = vcmask 556032  }
  0x53   : > { %v492_v53 = vld [vmem:[#allocation2 + $0x28] sm:$0xff]  ;;  %v494_v55 = vld [vmem:[#allocation2 + $0x38] sm:$0xff]  ;;  %v495_v58 = vld [vmem:[#allocation2 + $0x40] sm:$0xff]  ;;  %s7211_s9 = smov 65   ;;  %s7212_s10 = smov 64   ;;  %vm801_vm2 = vcmask 547840  }
  0x54   : > { %v7543_v57 = vld [vmem:[#allocation2 + $0x48] sm:$0xff]  ;;  %v7548_v59 = vld [vmem:[#allocation2 + $0x58] sm:$0xff]  ;;  %v7550_v60 = vld [vmem:[#allocation2 + $0x50] sm:$0xff]  ;;  %s7213_s12 = smov 63   ;;  %s7214_s13 = smov 47   ;;  %vm922_vm3 = vcmask 539648  }
  0x55   : > { %v7556_v61 = vld [vmem:[#allocation2 + $0x68] sm:$0xff]  ;;  %v7558_v62 = vld [vmem:[#allocation2 + $0x60] sm:$0xff]  ;;  %s7215_s15 = smov 46   ;;  %s7216_s16 = smov 45   ;;  %vm1043_vm4 = vcmask 531456   ;;  %vm1164_vm5 = vcmask 523264  }
  0x56   : > { %529 = vrot.lane.b32.xlu1 %v7528_v51, %s7207_s27  ;;  %525 = vrot.lane.b32.xlu0 %v7530_v52, %s7207_s27  ;;  %v502_v63 = vld [vmem:[#allocation2 + $0x78] sm:$0xff]  ;;  %v501_v0 = vld [vmem:[#allocation2 + $0x70] sm:$0xff]  ;;  %s7217_s17 = smov 44   ;;  %s7218_s18 = smov 43   ;;  %vm1285_vm6 = vcmask 515072   ;;  %vm1406_vm7 = vcmask 384000  }
  0x57   : > { %v504_v1 = vld [vmem:[#allocation2 + $0x88] sm:$0xff]  ;;  %v503_v2 = vld [vmem:[#allocation2 + $0x80] sm:$0xff]  ;;  %s7219_s19 = smov 42   ;;  %s7220_s20 = smov 41   ;;  %vm1527_vm8 = vcmask 375808   ;;  %vm1648_vm9 = vcmask 367616  }
  0x58   : > { %s7221_s21 = smov 25   ;;  %s7222_s22 = smov 24   ;;  %vm1769_vm10 = vcmask 359424   ;;  %vm1890_vm11 = vcmask 351232   ;;  %vm2011_vm12 = vcmask 343040   ;;  %vm2132_vm13 = vcmask 334848  }
  0x59   : > { %s7223_s23 = smov 23   ;;  %s11361_s26 = smov 22   ;;  %vm2253_vm14 = vcmask 203776   ;;  %vm11369_vm15 = vcmask 195584  }
  0x5a   : > { %533 = vrot.lane.b32.xlu1 %v492_v53, %s7207_s27  ;;  %531 = vrot.lane.b32.xlu0 %v7536_v54, %s7207_s27  ;;  %p6953_p5 = scmp.ne.s32.totalorder %s7279_s25, 7 }
  0x5e   : > { %537 = vrot.lane.b32.xlu1 %v494_v55, %s7207_s27  ;;  %535 = vrot.lane.b32.xlu0 %v493_v56, %s7207_s27  ;;  %v3423_v56 = vld [vmem:[%s7288_s8] sm:$0xff] }
  0x62   : > { %541 = vrot.lane.b32.xlu1 %v7543_v57, %s7207_s27  ;;  %539 = vrot.lane.b32.xlu0 %v495_v58, %s7207_s27  ;;  %v3427_v58 = vld [vmem:[%s7288_s8 + $0x20] sm:$0xff] }
  0x66   : > { %545 = vrot.lane.b32.xlu1 %v7548_v59, %s7207_s27  ;;  %543 = vrot.lane.b32.xlu0 %v7550_v60, %s7207_s27 }
  0x6a   : > { %549 = vrot.lane.b32.xlu1 %v7556_v61, %s7207_s27  ;;  %547 = vrot.lane.b32.xlu0 %v7558_v62, %s7207_s27 }
  0x6e   : > { %553 = vrot.lane.b32.xlu1 %v502_v63, %s7207_s27  ;;  %551 = vrot.lane.b32.xlu0 %v501_v0, %s7207_s27 }
  0x72   : > { %557 = vrot.lane.b32.xlu1 %v504_v1, %s7207_s27  ;;  %555 = vrot.lane.b32.xlu0 %v503_v2, %s7207_s27  ;;  %v7729_v1 = vcombine.high %v3423_v56, %v3427_v58  ;;  %s11363_s27 = smov 21  }
  0x74   : > { %4063 = vmatprep.mubr.bf16.mxu0 %v7729_v1  ;;  %4275 = vmatprep.mubr.bf16.mxu1 %v7729_v1 }
  0x76   : > { %648 = vrot.lane.b32.xlu1 %v7520_v49, %s7208_s28  ;;  %646 = vrot.lane.b32.xlu0 %v7530_v52, %s7208_s28 }
  0x7a   : > { %650 = vrot.lane.b32.xlu1 %v7528_v51, %s7208_s28  ;;  %644 = vrot.lane.b32.xlu0 %v7522_v50, %s7208_s28 }
  0x7e   : > { %664 = vrot.lane.b32.xlu1 %v7550_v60, %s7208_s28  ;;  %652 = vrot.lane.b32.xlu0 %v7536_v54, %s7208_s28 }
  0x82   : > { %662 = vrot.lane.b32.xlu1 %v7543_v57, %s7208_s28  ;;  %666 = vrot.lane.b32.xlu0 %v7548_v59, %s7208_s28 }
  0x86   : > { %670 = vrot.lane.b32.xlu1 %v7556_v61, %s7208_s28  ;;  %668 = vrot.lane.b32.xlu0 %v7558_v62, %s7208_s28 }
  0x8a   : > { %769 = vrot.lane.b32.xlu1 %v7520_v49, %s7209_s29  ;;  %767 = vrot.lane.b32.xlu0 %v7530_v52, %s7209_s29 }
  0x8e   : > { %771 = vrot.lane.b32.xlu1 %v7528_v51, %s7209_s29  ;;  %765 = vrot.lane.b32.xlu0 %v7522_v50, %s7209_s29 }
  0x92   : > { %785 = vrot.lane.b32.xlu1 %v7550_v60, %s7209_s29  ;;  %773 = vrot.lane.b32.xlu0 %v7536_v54, %s7209_s29 }
  0x96   : > { %783 = vrot.lane.b32.xlu1 %v7543_v57, %s7209_s29  ;;  %787 = vrot.lane.b32.xlu0 %v7548_v59, %s7209_s29 }
  0x9a   : > { %791 = vrot.lane.b32.xlu1 %v7556_v61, %s7209_s29  ;;  %789 = vrot.lane.b32.xlu0 %v7558_v62, %s7209_s29 }
  0x9e   : > { %890 = vrot.lane.b32.xlu1 %v7520_v49, %s7210_s30  ;;  %888 = vrot.lane.b32.xlu0 %v7530_v52, %s7210_s30 }
  0xa2   : > { %892 = vrot.lane.b32.xlu1 %v7528_v51, %s7210_s30  ;;  %886 = vrot.lane.b32.xlu0 %v7522_v50, %s7210_s30 }
  0xa6   : > { %906 = vrot.lane.b32.xlu1 %v7550_v60, %s7210_s30  ;;  %894 = vrot.lane.b32.xlu0 %v7536_v54, %s7210_s30 }
  0xaa   : > { %904 = vrot.lane.b32.xlu1 %v7543_v57, %s7210_s30  ;;  %908 = vrot.lane.b32.xlu0 %v7548_v59, %s7210_s30 }
  0xae   : > { %912 = vrot.lane.b32.xlu1 %v7556_v61, %s7210_s30  ;;  %910 = vrot.lane.b32.xlu0 %v7558_v62, %s7210_s30 }
  0xb2   : > { %1011 = vrot.lane.b32.xlu1 %v7520_v49, %s7211_s9  ;;  %1009 = vrot.lane.b32.xlu0 %v7530_v52, %s7211_s9 }
  0xb6   : > { %1013 = vrot.lane.b32.xlu1 %v7528_v51, %s7211_s9  ;;  %1007 = vrot.lane.b32.xlu0 %v7522_v50, %s7211_s9 }
  0xba   : > { %1027 = vrot.lane.b32.xlu1 %v7550_v60, %s7211_s9  ;;  %1015 = vrot.lane.b32.xlu0 %v7536_v54, %s7211_s9 }
  0xbe   : > { %1025 = vrot.lane.b32.xlu1 %v7543_v57, %s7211_s9  ;;  %1029 = vrot.lane.b32.xlu0 %v7548_v59, %s7211_s9 }
  0xc2   : > { %1033 = vrot.lane.b32.xlu1 %v7556_v61, %s7211_s9  ;;  %1031 = vrot.lane.b32.xlu0 %v7558_v62, %s7211_s9 }
  0xc4   : > { %v528_v3 = vpop.permute.xlu1 %527  ;;  %v524_v4 = vpop.permute.xlu0 %523 }
  0xc6   : > { %1132 = vrot.lane.b32.xlu1 %v7520_v49, %s7212_s10  ;;  %1130 = vrot.lane.b32.xlu0 %v7530_v52, %s7212_s10 }
  0xc8   : > { %v530_v5 = vpop.permute.xlu1 %529  ;;  %v526_v6 = vpop.permute.xlu0 %525 }
  0xc9   : > { %v562_v7 = vsel %vm559_vm0, %v528_v3, %v530_v5  ;;  %v560_v8 = vsel %vm559_vm0, %v524_v4, %v526_v6  ;;  %v561_v9 = vsel %vm559_vm0, %v526_v6, %v528_v3  ;;  %v7734_v4 = vcombine.low %v3423_v56, %v3427_v58 }
  0xca   : > { %1134 = vrot.lane.b32.xlu1 %v7528_v51, %s7212_s10  ;;  %1128 = vrot.lane.b32.xlu0 %v7522_v50, %s7212_s10 }
  0xcb   : > { %4031 = vmatprep.subr.bf16.mxu0 %v561_v9 }
  0xcc   : > { %v534_v10 = vpop.permute.xlu1 %533  ;;  %v532_v11 = vpop.permute.xlu0 %531  ;;  %4032 = vmatpush1.bf16.msra.mxu0 %v560_v8 }
  0xcd   : > { %v563_v12 = vsel %vm559_vm0, %v530_v5, %v532_v11  ;;  %v564_v13 = vsel %vm559_vm0, %v532_v11, %v534_v10 }
  0xce   : > { %596 = vst [vmem:[#allocation3 + $0x20] sm:$0xff] %v564_v13  ;;  %1148 = vrot.lane.b32.xlu1 %v7550_v60, %s7212_s10  ;;  %1136 = vrot.lane.b32.xlu0 %v7536_v54, %s7212_s10 }
  0xcf   : > { %4243 = vmatprep.subr.bf16.mxu1 %v563_v12 }
  0xd0   : > { %v538_v14 = vpop.permute.xlu1 %537  ;;  %v536_v15 = vpop.permute.xlu0 %535  ;;  %4244 = vmatpush1.bf16.msra.mxu1 %v562_v7 }
  0xd1   : > { %v565_v16 = vsel %vm559_vm0, %v534_v10, %v536_v15  ;;  %v566_v17 = vsel %vm559_vm0, %v536_v15, %v538_v14 }
  0xd2   : > { %597 = vst [vmem:[#allocation3 + $0x28] sm:$0xff] %v565_v16  ;;  %598 = vst [vmem:[#allocation3 + $0x30] sm:$0xff] %v566_v17  ;;  %1146 = vrot.lane.b32.xlu1 %v7543_v57, %s7212_s10  ;;  %1150 = vrot.lane.b32.xlu0 %v7548_v59, %s7212_s10 }
  0xd4   : > { %v542_v18 = vpop.permute.xlu1 %541  ;;  %v540_v19 = vpop.permute.xlu0 %539 }
  0xd5   : > { %v567_v20 = vsel %vm559_vm0, %v538_v14, %v540_v19 }
  0xd6   : > { %599 = vst [vmem:[#allocation3 + $0x38] sm:$0xff] %v567_v20  ;;  %1154 = vrot.lane.b32.xlu1 %v7556_v61, %s7212_s10  ;;  %1152 = vrot.lane.b32.xlu0 %v7558_v62, %s7212_s10 }
  0xd8   : > { %v546_v21 = vpop.permute.xlu1 %545  ;;  %v544_v22 = vpop.permute.xlu0 %543 }
  0xd9   : > { %v568_v23 = vsel %vm559_vm0, %v542_v18, %v544_v22  ;;  %v569_v24 = vsel %vm559_vm0, %v544_v22, %v546_v21 }
  0xda   : > { %1253 = vrot.lane.b32.xlu1 %v7520_v49, %s7213_s12  ;;  %1251 = vrot.lane.b32.xlu0 %v7530_v52, %s7213_s12 }
  0xdb   : > { %4033 = vmatprep.subr.bf16.mxu0 %v569_v24 }
  0xdc   : > { %v550_v25 = vpop.permute.xlu1 %549  ;;  %v548_v26 = vpop.permute.xlu0 %547  ;;  %4034 = vmatpush1.bf16.msra.mxu0 %v568_v23 }
  0xdd   : > { %v570_v27 = vsel %vm559_vm0, %v546_v21, %v548_v26  ;;  %v571_v28 = vsel %vm559_vm0, %v548_v26, %v550_v25 }
  0xde   : > { %1255 = vrot.lane.b32.xlu1 %v7528_v51, %s7213_s12  ;;  %1249 = vrot.lane.b32.xlu0 %v7522_v50, %s7213_s12 }
  0xdf   : > { %4245 = vmatprep.subr.bf16.mxu1 %v571_v28 }
  0xe0   : > { %v554_v29 = vpop.permute.xlu1 %553  ;;  %v552_v30 = vpop.permute.xlu0 %551  ;;  %4246 = vmatpush1.bf16.msra.mxu1 %v570_v27 }
  0xe1   : > { %v572_v31 = vsel %vm559_vm0, %v550_v25, %v552_v30  ;;  %v573_v32 = vsel %vm559_vm0, %v552_v30, %v554_v29 }
  0xe2   : > { %604 = vst [vmem:[#allocation3 + $0x60] sm:$0xff] %v572_v31  ;;  %605 = vst [vmem:[#allocation3 + $0x68] sm:$0xff] %v573_v32  ;;  %1269 = vrot.lane.b32.xlu1 %v7550_v60, %s7213_s12  ;;  %1257 = vrot.lane.b32.xlu0 %v7536_v54, %s7213_s12 }
  0xe4   : > { %v558_v33 = vpop.permute.xlu1 %557  ;;  %v556_v34 = vpop.permute.xlu0 %555 }
  0xe5   : > { %v574_v35 = vsel %vm559_vm0, %v554_v29, %v556_v34  ;;  %v575_v36 = vsel %vm559_vm0, %v556_v34, %v558_v33  ;;  %vm11372_vm0 = vcmask 187392  }
  0xe6   : > { %606 = vst [vmem:[#allocation3 + $0x70] sm:$0xff] %v574_v35  ;;  %607 = vst [vmem:[#allocation3 + $0x78] sm:$0xff] %v575_v36  ;;  %1267 = vrot.lane.b32.xlu1 %v7543_v57, %s7213_s12  ;;  %1271 = vrot.lane.b32.xlu0 %v7548_v59, %s7213_s12 }
  0xe8   : > { %v649_v37 = vpop.permute.xlu1 %648  ;;  %v647_v38 = vpop.permute.xlu0 %646 }
  0xe9   : > { %v682_v39 = vsel %vm680_vm1, %v647_v38, %v649_v37 }
  0xea   : > { %1275 = vrot.lane.b32.xlu1 %v7556_v61, %s7213_s12  ;;  %1273 = vrot.lane.b32.xlu0 %v7558_v62, %s7213_s12 }
  0xeb   : > { %4035 = vmatprep.subr.bf16.mxu0 %v682_v39 }
  0xec   : > { %v651_v40 = vpop.permute.xlu1 %650  ;;  %v645_v41 = vpop.permute.xlu0 %644 }
  0xed   : > { %v683_v42 = vsel %vm680_vm1, %v649_v37, %v651_v40  ;;  %v681_v43 = vsel %vm680_vm1, %v645_v41, %v647_v38 }
  0xee   : > { %1374 = vrot.lane.b32.xlu1 %v7520_v49, %s7214_s13  ;;  %1372 = vrot.lane.b32.xlu0 %v7530_v52, %s7214_s13 }
  0xef   : > { %4036 = vmatpush1.bf16.msra.mxu0 %v681_v43 }
  0xf0   : > { %v665_v44 = vpop.permute.xlu1 %664  ;;  %v7711_v45 = vpop.permute.xlu0 %652 }
  0xf1   : > { %v684_v46 = vsel %vm680_vm1, %v651_v40, %v7711_v45 }
  0xf2   : > { %1376 = vrot.lane.b32.xlu1 %v7528_v51, %s7214_s13  ;;  %1370 = vrot.lane.b32.xlu0 %v7522_v50, %s7214_s13 }
  0xf3   : > { %4247 = vmatprep.subr.bf16.mxu1 %v684_v46 }
  0xf4   : > { %v663_v47 = vpop.permute.xlu1 %662  ;;  %v667_v48 = vpop.permute.xlu0 %666  ;;  %4248 = vmatpush1.bf16.msra.mxu1 %v683_v42 }
  0xf5   : > { %v689_v53 = vsel %vm680_vm1, %v663_v47, %v665_v44  ;;  %v690_v55 = vsel %vm680_vm1, %v665_v44, %v667_v48 }
  0xf6   : > { %1390 = vrot.lane.b32.xlu1 %v7550_v60, %s7214_s13  ;;  %1378 = vrot.lane.b32.xlu0 %v7536_v54, %s7214_s13 }
  0xf7   : > { %4037 = vmatprep.subr.bf16.mxu0 %v690_v55 }
  0xf8   : > { %v7727_v63 = vpop.permute.xlu1 %670  ;;  %v669_v0 = vpop.permute.xlu0 %668  ;;  %4038 = vmatpush1.bf16.msra.mxu0 %v689_v53 }
  0xf9   : > { %v691_v2 = vsel %vm680_vm1, %v667_v48, %v669_v0  ;;  %v692_v3 = vsel %vm680_vm1, %v669_v0, %v7727_v63 }
  0xfa   : > { %1388 = vrot.lane.b32.xlu1 %v7543_v57, %s7214_s13  ;;  %1392 = vrot.lane.b32.xlu0 %v7548_v59, %s7214_s13 }
  0xfb   : > { %4249 = vmatprep.subr.bf16.mxu1 %v692_v3 }
  0xfc   : > { %v770_v5 = vpop.permute.xlu1 %769  ;;  %v768_v6 = vpop.permute.xlu0 %767  ;;  %4250 = vmatpush1.bf16.msra.mxu1 %v691_v2 }
  0xfd   : > { %v803_v7 = vsel %vm801_vm2, %v768_v6, %v770_v5 }
  0xfe   : > { %1396 = vrot.lane.b32.xlu1 %v7556_v61, %s7214_s13  ;;  %1394 = vrot.lane.b32.xlu0 %v7558_v62, %s7214_s13 }
  0xff   : > { %4039 = vmatprep.subr.bf16.mxu0 %v803_v7 }
 0x100   : > { %v772_v8 = vpop.permute.xlu1 %771  ;;  %v766_v9 = vpop.permute.xlu0 %765 }
 0x101   : > { %v804_v10 = vsel %vm801_vm2, %v770_v5, %v772_v8  ;;  %v802_v11 = vsel %vm801_vm2, %v766_v9, %v768_v6 }
 0x102   : > { %1495 = vrot.lane.b32.xlu1 %v7520_v49, %s7215_s15  ;;  %1493 = vrot.lane.b32.xlu0 %v7530_v52, %s7215_s15 }
 0x103   : > { %4040 = vmatpush1.bf16.msra.mxu0 %v802_v11 }
 0x104   : > { %v786_v12 = vpop.permute.xlu1 %785  ;;  %v7753_v13 = vpop.permute.xlu0 %773 }
 0x105   : > { %v805_v14 = vsel %vm801_vm2, %v772_v8, %v7753_v13 }
 0x106   : > { %1497 = vrot.lane.b32.xlu1 %v7528_v51, %s7215_s15  ;;  %1491 = vrot.lane.b32.xlu0 %v7522_v50, %s7215_s15 }
 0x107   : > { %4251 = vmatprep.subr.bf16.mxu1 %v805_v14 }
 0x108   : > { %v784_v15 = vpop.permute.xlu1 %783  ;;  %v788_v16 = vpop.permute.xlu0 %787  ;;  %4252 = vmatpush1.bf16.msra.mxu1 %v804_v10 }
 0x109   : > { %v810_v17 = vsel %vm801_vm2, %v784_v15, %v786_v12  ;;  %v811_v18 = vsel %vm801_vm2, %v786_v12, %v788_v16 }
 0x10a   : > { %1511 = vrot.lane.b32.xlu1 %v7550_v60, %s7215_s15  ;;  %1499 = vrot.lane.b32.xlu0 %v7536_v54, %s7215_s15 }
 0x10b   : > { %4041 = vmatprep.subr.bf16.mxu0 %v811_v18 }
 0x10c   : > { %v7767_v19 = vpop.permute.xlu1 %791  ;;  %v790_v20 = vpop.permute.xlu0 %789  ;;  %4042 = vmatpush1.bf16.msra.mxu0 %v810_v17 }
 0x10d   : > { %v812_v21 = vsel %vm801_vm2, %v788_v16, %v790_v20  ;;  %v813_v22 = vsel %vm801_vm2, %v790_v20, %v7767_v19  ;;  %v7869_v20 = vld [vmem:[#allocation2 + $0x48] sm:$0xff] }
 0x10e   : > { %1509 = vrot.lane.b32.xlu1 %v7543_v57, %s7215_s15  ;;  %1513 = vrot.lane.b32.xlu0 %v7548_v59, %s7215_s15 }
 0x10f   : > { %4253 = vmatprep.subr.bf16.mxu1 %v813_v22 }
 0x110   : > { %v891_v23 = vpop.permute.xlu1 %890  ;;  %v889_v24 = vpop.permute.xlu0 %888  ;;  %4254 = vmatpush1.bf16.msra.mxu1 %v812_v21 }
 0x111   : > { %v924_v25 = vsel %vm922_vm3, %v889_v24, %v891_v23 }
 0x112   : > { %1517 = vrot.lane.b32.xlu1 %v7556_v61, %s7215_s15  ;;  %1515 = vrot.lane.b32.xlu0 %v7558_v62, %s7215_s15 }
 0x113   : > { %4043 = vmatprep.subr.bf16.mxu0 %v924_v25 }
 0x114   : > { %v893_v26 = vpop.permute.xlu1 %892  ;;  %v887_v27 = vpop.permute.xlu0 %886 }
 0x115   : > { %v925_v28 = vsel %vm922_vm3, %v891_v23, %v893_v26  ;;  %v923_v29 = vsel %vm922_vm3, %v887_v27, %v889_v24 }
 0x116   : > { %1616 = vrot.lane.b32.xlu1 %v7520_v49, %s7216_s16  ;;  %1614 = vrot.lane.b32.xlu0 %v7530_v52, %s7216_s16 }
 0x117   : > { %4044 = vmatpush1.bf16.msra.mxu0 %v923_v29 }
 0x118   : > { %v907_v30 = vpop.permute.xlu1 %906  ;;  %v7787_v31 = vpop.permute.xlu0 %894 }
 0x119   : > { %v926_v32 = vsel %vm922_vm3, %v893_v26, %v7787_v31  ;;  %v7889_v26 = vld [vmem:[#allocation2 + $0x10] sm:$0xff] }
 0x11a   : > { %1618 = vrot.lane.b32.xlu1 %v7528_v51, %s7216_s16  ;;  %1612 = vrot.lane.b32.xlu0 %v7522_v50, %s7216_s16 }
 0x11b   : > { %4255 = vmatprep.subr.bf16.mxu1 %v926_v32  ;;  %v7899_v32 = vld [vmem:[#allocation2 + $0x18] sm:$0xff] }
 0x11c   : > { %v905_v33 = vpop.permute.xlu1 %904  ;;  %v909_v34 = vpop.permute.xlu0 %908  ;;  %4256 = vmatpush1.bf16.msra.mxu1 %v925_v28 }
 0x11d   : > { %v931_v35 = vsel %vm922_vm3, %v905_v33, %v907_v30  ;;  %v932_v36 = vsel %vm922_vm3, %v907_v30, %v909_v34  ;;  %v7901_v33 = vld [vmem:[#allocation2] sm:$0xff] }
 0x11e   : > { %1632 = vrot.lane.b32.xlu1 %v7550_v60, %s7216_s16  ;;  %1620 = vrot.lane.b32.xlu0 %v7536_v54, %s7216_s16 }
 0x11f   : > { %4045 = vmatprep.subr.bf16.mxu0 %v932_v36 }
 0x120   : > { %v7801_v37 = vpop.permute.xlu1 %912  ;;  %v911_v38 = vpop.permute.xlu0 %910  ;;  %4046 = vmatpush1.bf16.msra.mxu0 %v931_v35 }
 0x121   : > { %v933_v39 = vsel %vm922_vm3, %v909_v34, %v911_v38  ;;  %v934_v40 = vsel %vm922_vm3, %v911_v38, %v7801_v37  ;;  %v7911_v38 = vld [vmem:[#allocation2 + $0x50] sm:$0xff] }
 0x122   : > { %1630 = vrot.lane.b32.xlu1 %v7543_v57, %s7216_s16  ;;  %1634 = vrot.lane.b32.xlu0 %v7548_v59, %s7216_s16 }
 0x123   : > { %4257 = vmatprep.subr.bf16.mxu1 %v934_v40 }
 0x124   : > { %v1012_v41 = vpop.permute.xlu1 %1011  ;;  %v1010_v42 = vpop.permute.xlu0 %1009  ;;  %4258 = vmatpush1.bf16.msra.mxu1 %v933_v39  ;;  %v7913_v39 = vld [vmem:[#allocation2 + $0x20] sm:$0xff] }
 0x125   : > { %v1045_v43 = vsel %vm1043_vm4, %v1010_v42, %v1012_v41 }
 0x126   : > { %1638 = vrot.lane.b32.xlu1 %v7556_v61, %s7216_s16  ;;  %1636 = vrot.lane.b32.xlu0 %v7558_v62, %s7216_s16 }
 0x127   : > { %4047 = vmatprep.subr.bf16.mxu0 %v1045_v43 }
 0x128   : > { %v1014_v44 = vpop.permute.xlu1 %1013  ;;  %v1008_v46 = vpop.permute.xlu0 %1007 }
 0x129   : > { %v1046_v47 = vsel %vm1043_vm4, %v1012_v41, %v1014_v44  ;;  %v1044_v48 = vsel %vm1043_vm4, %v1008_v46, %v1010_v42 }
 0x12a   : > { %1737 = vrot.lane.b32.xlu1 %v7520_v49, %s7217_s17  ;;  %1735 = vrot.lane.b32.xlu0 %v7530_v52, %s7217_s17 }
 0x12b   : > { %4048 = vmatpush1.bf16.msra.mxu0 %v1044_v48 }
 0x12c   : > { %v1028_v53 = vpop.permute.xlu1 %1027  ;;  %v7821_v55 = vpop.permute.xlu0 %1015 }
 0x12d   : > { %v1047_v56 = vsel %vm1043_vm4, %v1014_v44, %v7821_v55  ;;  %v7921_v44 = vld [vmem:[#allocation2 + $0x58] sm:$0xff] }
 0x12e   : > { %1739 = vrot.lane.b32.xlu1 %v7528_v51, %s7217_s17  ;;  %1733 = vrot.lane.b32.xlu0 %v7522_v50, %s7217_s17 }
 0x12f   : > { %4259 = vmatprep.subr.bf16.mxu1 %v1047_v56 }
 0x130   : > { %v1026_v58 = vpop.permute.xlu1 %1025  ;;  %v1030_v0 = vpop.permute.xlu0 %1029  ;;  %4260 = vmatpush1.bf16.msra.mxu1 %v1046_v47 }
 0x131   : > { %v1052_v2 = vsel %vm1043_vm4, %v1026_v58, %v1028_v53  ;;  %v1053_v3 = vsel %vm1043_vm4, %v1028_v53, %v1030_v0 }
 0x132   : > { %1753 = vrot.lane.b32.xlu1 %v7550_v60, %s7217_s17  ;;  %1741 = vrot.lane.b32.xlu0 %v7536_v54, %s7217_s17 }
 0x133   : > { %4049 = vmatprep.subr.bf16.mxu0 %v1053_v3 }
 0x134   : > { %v7835_v5 = vpop.permute.xlu1 %1033  ;;  %v1032_v6 = vpop.permute.xlu0 %1031  ;;  %4050 = vmatpush1.bf16.msra.mxu0 %v1052_v2 }
 0x135   : > { %v1054_v7 = vsel %vm1043_vm4, %v1030_v0, %v1032_v6  ;;  %v1055_v8 = vsel %vm1043_vm4, %v1032_v6, %v7835_v5 }
 0x136   : > { %1751 = vrot.lane.b32.xlu1 %v7543_v57, %s7217_s17  ;;  %1755 = vrot.lane.b32.xlu0 %v7548_v59, %s7217_s17 }
 0x137   : > { %4261 = vmatprep.subr.bf16.mxu1 %v1055_v8 }
 0x138   : > { %v1133_v9 = vpop.permute.xlu1 %1132  ;;  %v1131_v10 = vpop.permute.xlu0 %1130  ;;  %4262 = vmatpush1.bf16.msra.mxu1 %v1054_v7 }
 0x139   : > { %v1166_v11 = vsel %vm1164_vm5, %v1131_v10, %v1133_v9 }
 0x13a   : > { %1759 = vrot.lane.b32.xlu1 %v7556_v61, %s7217_s17  ;;  %1757 = vrot.lane.b32.xlu0 %v7558_v62, %s7217_s17 }
 0x13b   : > { %4051 = vmatprep.subr.bf16.mxu0 %v1166_v11 }
 0x13c   : > { %v1135_v12 = vpop.permute.xlu1 %1134  ;;  %v1129_v14 = vpop.permute.xlu0 %1128 }
 0x13d   : > { %v1167_v57 = vsel %vm1164_vm5, %v1133_v9, %v1135_v12  ;;  %v1165_v15 = vsel %vm1164_vm5, %v1129_v14, %v1131_v10 }
 0x13e   : > { %1858 = vrot.lane.b32.xlu1 %v7520_v49, %s7218_s18  ;;  %1856 = vrot.lane.b32.xlu0 %v7530_v52, %s7218_s18 }
 0x13f   : > { %4052 = vmatpush1.bf16.msra.mxu0 %v1165_v15 }
 0x140   : > { %v1149_v16 = vpop.permute.xlu1 %1148  ;;  %v7855_v61 = vpop.permute.xlu0 %1136 }
 0x141   : > { %v1168_v62 = vsel %vm1164_vm5, %v1135_v12, %v7855_v61 }
 0x142   : > { %1860 = vrot.lane.b32.xlu1 %v7528_v51, %s7218_s18  ;;  %1854 = vrot.lane.b32.xlu0 %v7522_v50, %s7218_s18 }
 0x143   : > { %4263 = vmatprep.subr.bf16.mxu1 %v1168_v62 }
 0x144   : > { %v1147_v17 = vpop.permute.xlu1 %1146  ;;  %v1151_v18 = vpop.permute.xlu0 %1150  ;;  %4264 = vmatpush1.bf16.msra.mxu1 %v1167_v57 }
 0x145   : > { %v1173_v49 = vsel %vm1164_vm5, %v1147_v17, %v1149_v16  ;;  %v1174_v52 = vsel %vm1164_vm5, %v1149_v16, %v1151_v18 }
 0x146   : > { %1874 = vrot.lane.b32.xlu1 %v7550_v60, %s7218_s18  ;;  %1862 = vrot.lane.b32.xlu0 %v7536_v54, %s7218_s18  ;;  %v7880_v54 = vld [vmem:[#allocation2 + $0x68] sm:$0xff]  ;;  %v7882_v60 = vld [vmem:[#allocation2 + $0x60] sm:$0xff] }
 0x147   : > { %4053 = vmatprep.subr.bf16.mxu0 %v1174_v52 }
 0x148   : > { %v7871_v51 = vpop.permute.xlu1 %1154  ;;  %v1153_v50 = vpop.permute.xlu0 %1152  ;;  %4054 = vmatpush1.bf16.msra.mxu0 %v1173_v49 }
 0x149   : > { %v1175_v21 = vsel %vm1164_vm5, %v1151_v18, %v1153_v50  ;;  %v1176_v22 = vsel %vm1164_vm5, %v1153_v50, %v7871_v51 }
 0x14a   : > { %1872 = vrot.lane.b32.xlu1 %v7869_v20, %s7218_s18  ;;  %1876 = vrot.lane.b32.xlu0 %v7548_v59, %s7218_s18  ;;  %v7891_v59 = vld [vmem:[#allocation2 + $0x8] sm:$0xff] }
 0x14b   : > { %4265 = vmatprep.subr.bf16.mxu1 %v1176_v22 }
 0x14c   : > { %v1254_v23 = vpop.permute.xlu1 %1253  ;;  %v1252_v24 = vpop.permute.xlu0 %1251  ;;  %4266 = vmatpush1.bf16.msra.mxu1 %v1175_v21 }
 0x14d   : > { %v1287_v25 = vsel %vm1285_vm6, %v1252_v24, %v1254_v23 }
 0x14e   : > { %1880 = vrot.lane.b32.xlu1 %v7880_v54, %s7218_s18  ;;  %1878 = vrot.lane.b32.xlu0 %v7882_v60, %s7218_s18 }
 0x14f   : > { %4055 = vmatprep.subr.bf16.mxu0 %v1287_v25 }
 0x150   : > { %v1256_v27 = vpop.permute.xlu1 %1255  ;;  %v1250_v28 = vpop.permute.xlu0 %1249 }
 0x151   : > { %v1288_v29 = vsel %vm1285_vm6, %v1254_v23, %v1256_v27  ;;  %v1286_v30 = vsel %vm1285_vm6, %v1250_v28, %v1252_v24 }
 0x152   : > { %1979 = vrot.lane.b32.xlu1 %v7889_v26, %s7219_s19  ;;  %1977 = vrot.lane.b32.xlu0 %v7891_v59, %s7219_s19 }
 0x153   : > { %4056 = vmatpush1.bf16.msra.mxu0 %v1286_v30 }
 0x154   : > { %v1270_v34 = vpop.permute.xlu1 %1269  ;;  %v7903_v35 = vpop.permute.xlu0 %1257 }
 0x155   : > { %v1289_v36 = vsel %vm1285_vm6, %v1256_v27, %v7903_v35 }
 0x156   : > { %1981 = vrot.lane.b32.xlu1 %v7899_v32, %s7219_s19  ;;  %1975 = vrot.lane.b32.xlu0 %v7901_v33, %s7219_s19 }
 0x157   : > { %4267 = vmatprep.subr.bf16.mxu1 %v1289_v36 }
 0x158   : > { %v1268_v40 = vpop.permute.xlu1 %1267  ;;  %v1272_v41 = vpop.permute.xlu0 %1271  ;;  %4268 = vmatpush1.bf16.msra.mxu1 %v1288_v29 }
 0x159   : > { %v1294_v42 = vsel %vm1285_vm6, %v1268_v40, %v1270_v34  ;;  %v1295_v43 = vsel %vm1285_vm6, %v1270_v34, %v1272_v41 }
 0x15a   : > { %1995 = vrot.lane.b32.xlu1 %v7911_v38, %s7219_s19  ;;  %1983 = vrot.lane.b32.xlu0 %v7913_v39, %s7219_s19 }
 0x15b   : > { %4057 = vmatprep.subr.bf16.mxu0 %v1295_v43 }
 0x15c   : > { %v7923_v46 = vpop.permute.xlu1 %1275  ;;  %v1274_v47 = vpop.permute.xlu0 %1273  ;;  %4058 = vmatpush1.bf16.msra.mxu0 %v1294_v42 }
 0x15d   : > { %v1296_v48 = vsel %vm1285_vm6, %v1272_v41, %v1274_v47  ;;  %v1297_v53 = vsel %vm1285_vm6, %v1274_v47, %v7923_v46 }
 0x15e   : > { %1993 = vrot.lane.b32.xlu1 %v7869_v20, %s7219_s19  ;;  %1997 = vrot.lane.b32.xlu0 %v7921_v44, %s7219_s19 }
 0x15f   : > { %4269 = vmatprep.subr.bf16.mxu1 %v1297_v53 }
 0x160   : > { %v1375_v56 = vpop.permute.xlu1 %1374  ;;  %v1373_v58 = vpop.permute.xlu0 %1372  ;;  %4270 = vmatpush1.bf16.msra.mxu1 %v1296_v48 }
 0x161   : > { %v1408_v0 = vsel %vm1406_vm7, %v1373_v58, %v1375_v56 }
 0x162   : > { %2001 = vrot.lane.b32.xlu1 %v7880_v54, %s7219_s19  ;;  %1999 = vrot.lane.b32.xlu0 %v7882_v60, %s7219_s19 }
 0x163   : > { %4059 = vmatprep.subr.bf16.mxu0 %v1408_v0 }
 0x164   : > { %v1377_v2 = vpop.permute.xlu1 %1376  ;;  %v1371_v3 = vpop.permute.xlu0 %1370 }
 0x165   : > { %v1409_v6 = vsel %vm1406_vm7, %v1375_v56, %v1377_v2  ;;  %v1407_v7 = vsel %vm1406_vm7, %v1371_v3, %v1373_v58  ;;  %v3435_v3 = vld [vmem:[%s7288_s8 + $0x60] sm:$0xff] }
 0x166   : > { %2100 = vrot.lane.b32.xlu1 %v7889_v26, %s7220_s20  ;;  %2098 = vrot.lane.b32.xlu0 %v7891_v59, %s7220_s20 }
 0x167   : > { %4060 = vmatpush1.bf16.msra.mxu0 %v1407_v7 }
 0x168   : > { %v1391_v8 = vpop.permute.xlu1 %1390  ;;  %v7943_v9 = vpop.permute.xlu0 %1378 }
 0x169   : > { %v1410_v10 = vsel %vm1406_vm7, %v1377_v2, %v7943_v9  ;;  %v3431_v2 = vld [vmem:[%s7288_s8 + $0x40] sm:$0xff] }
 0x16a   : > { %2102 = vrot.lane.b32.xlu1 %v7899_v32, %s7220_s20  ;;  %2096 = vrot.lane.b32.xlu0 %v7901_v33, %s7220_s20 }
 0x16b   : > { %4271 = vmatprep.subr.bf16.mxu1 %v1410_v10 }
 0x16c   : > { %v1389_v11 = vpop.permute.xlu1 %1388  ;;  %v1393_v12 = vpop.permute.xlu0 %1392  ;;  %4272 = vmatpush1.bf16.msra.mxu1 %v1409_v6 }
 0x16d   : > { %v1415_v14 = vsel %vm1406_vm7, %v1389_v11, %v1391_v8  ;;  %v1416_v57 = vsel %vm1406_vm7, %v1391_v8, %v1393_v12  ;;  %v8017_v8 = vcombine.high %v3431_v2, %v3435_v3  ;;  %v8021_v11 = vcombine.low %v3431_v2, %v3435_v3 }
 0x16e   : > { %2116 = vrot.lane.b32.xlu1 %v7911_v38, %s7220_s20  ;;  %2104 = vrot.lane.b32.xlu0 %v7913_v39, %s7220_s20 }
 0x16f   : > { %4061 = vmatprep.subr.bf16.mxu0 %v1416_v57  ;;  %11433 = vst [vmem:[#allocation5_spill] sm:$0xff] %v8017_v8  ;;  %11434 = vst [vmem:[#allocation6_spill] sm:$0xff] %v8021_v11 }
 0x170   : > { %v7957_v15 = vpop.permute.xlu1 %1396  ;;  %v1395_v16 = vpop.permute.xlu0 %1394  ;;  %4062 = vmatpush1.bf16.msra.mxu0 %v1415_v14 }
 0x171   : > { %v1417_v62 = vsel %vm1406_vm7, %v1393_v12, %v1395_v16  ;;  %v1418_v17 = vsel %vm1406_vm7, %v1395_v16, %v7957_v15 }
 0x172   : > { %2114 = vrot.lane.b32.xlu1 %v7869_v20, %s7220_s20  ;;  %2118 = vrot.lane.b32.xlu0 %v7921_v44, %s7220_s20 }
 0x173   : > { %4273 = vmatprep.subr.bf16.mxu1 %v1418_v17  ;;  %4064 = vmatmul.mubr.bf16.vlgmr.msra.gmra.mrb[0].mxu0 %v7734_v4  ;;  %v3428_v17 = vld [vmem:[%s7288_s8 + $0x28] sm:$0xff] }
 0x174   : > { %v1496_v18 = vpop.permute.xlu1 %1495  ;;  %v1494_v49 = vpop.permute.xlu0 %1493  ;;  %4274 = vmatpush1.bf16.msra.mxu1 %v1417_v62  ;;  %4073 = vmatprep.mubr.bf16.mxu0 %v8017_v8  ;;  %v3424_v62 = vld [vmem:[%s7288_s8 + $0x8] sm:$0xff] }
 0x175   : > { %v1529_v52 = vsel %vm1527_vm8, %v1494_v49, %v1496_v18 }
 0x176   : > { %2122 = vrot.lane.b32.xlu1 %v7880_v54, %s7220_s20  ;;  %2120 = vrot.lane.b32.xlu0 %v7882_v60, %s7220_s20 }
 0x177   : > { %4084 = vmatprep.subr.bf16.mxu0 %v1529_v52  ;;  %4276 = vmatmul.mubr.bf16.vlgmr.msra.gmra.mrb[0].mxu1 %v7734_v4  ;;  %v8041_v52 = vcombine.high %v3424_v62, %v3428_v17 }
 0x178   : > { %v1498_v50 = vpop.permute.xlu1 %1497  ;;  %v1492_v21 = vpop.permute.xlu0 %1491  ;;  %4285 = vmatprep.mubr.bf16.mxu1 %v8017_v8  ;;  %v3945_v8 = vld [vmem:[#allocation3 + $0xfd0] sm:$0xff] }
 0x179   : > { %v1530_v22 = vsel %vm1527_vm8, %v1496_v18, %v1498_v50  ;;  %v1528_v23 = vsel %vm1527_vm8, %v1492_v21, %v1494_v49  ;;  %11436 = vst [vmem:[#allocation8_spill] sm:$0xff] %v8041_v52 }
 0x17a   : > { %2221 = vrot.lane.b32.xlu1 %v7889_v26, %s7221_s21  ;;  %2219 = vrot.lane.b32.xlu0 %v7891_v59, %s7221_s21 }
 0x17b   : > { %4085 = vmatpush1.bf16.msra.mxu0 %v1528_v23 }
 0x17c   : > { %v1512_v24 = vpop.permute.xlu1 %1511  ;;  %v7979_v25 = vpop.permute.xlu0 %1499  ;;  %4074 = vmatmul.mubr.bf16.gmra.mrb[4].mxu0 %v8021_v11 }
 0x17d   : > { %v1531_v27 = vsel %vm1527_vm8, %v1498_v50, %v7979_v25  ;;  %4116 = vmatprep.mubr.bf16.mxu0 %v8041_v52 }
 0x17e   : > { %2223 = vrot.lane.b32.xlu1 %v7899_v32, %s7221_s21  ;;  %2217 = vrot.lane.b32.xlu0 %v7901_v33, %s7221_s21 }
 0x17f   : > { %4296 = vmatprep.subr.bf16.mxu1 %v1531_v27  ;;  %4286 = vmatmul.mubr.bf16.gmra.mrb[4].mxu1 %v8021_v11 }
 0x180   : > { %v1510_v28 = vpop.permute.xlu1 %1509  ;;  %v1514_v29 = vpop.permute.xlu0 %1513  ;;  %4297 = vmatpush1.bf16.msra.mxu1 %v1530_v22  ;;  %v8046_v22 = vcombine.low %v3424_v62, %v3428_v17  ;;  %4328 = vmatprep.mubr.bf16.mxu1 %v8041_v52  ;;  %v3938_v52 = vld [vmem:[#allocation3 + $0xf98] sm:$0xff] }
 0x181   : > { %v1536_v30 = vsel %vm1527_vm8, %v1510_v28, %v1512_v24  ;;  %v1537_v34 = vsel %vm1527_vm8, %v1512_v24, %v1514_v29 }
 0x182   : > { %2237 = vrot.lane.b32.xlu1 %v7911_v38, %s7221_s21  ;;  %2225 = vrot.lane.b32.xlu0 %v7913_v39, %s7221_s21  ;;  %11437 = vst [vmem:[#allocation9_spill] sm:$0xff] %v8046_v22 }
 0x183   : > { %4086 = vmatprep.subr.bf16.mxu0 %v1537_v34 }
 0x184   : > { %v7993_v36 = vpop.permute.xlu1 %1517  ;;  %v1516_v40 = vpop.permute.xlu0 %1515  ;;  %4087 = vmatpush1.bf16.msra.mxu0 %v1536_v30 }
 0x185   : > { %v1538_v41 = vsel %vm1527_vm8, %v1514_v29, %v1516_v40  ;;  %v1539_v42 = vsel %vm1527_vm8, %v1516_v40, %v7993_v36 }
 0x186   : > { %2235 = vrot.lane.b32.xlu1 %v7869_v20, %s7221_s21  ;;  %2239 = vrot.lane.b32.xlu0 %v7921_v44, %s7221_s21 }
 0x187   : > { %4298 = vmatprep.subr.bf16.mxu1 %v1539_v42 }
 0x188   : > { %v1617_v43 = vpop.permute.xlu1 %1616  ;;  %v1615_v47 = vpop.permute.xlu0 %1614  ;;  %4299 = vmatpush1.bf16.msra.mxu1 %v1538_v41 }
 0x189   : > { %v1650_v48 = vsel %vm1648_vm9, %v1615_v47, %v1617_v43 }
 0x18a   : > { %2243 = vrot.lane.b32.xlu1 %v7880_v54, %s7221_s21  ;;  %2241 = vrot.lane.b32.xlu0 %v7882_v60, %s7221_s21 }
 0x18b   : > { %4088 = vmatprep.subr.bf16.mxu0 %v1650_v48 }
 0x18c   : > { %v1619_v53 = vpop.permute.xlu1 %1618  ;;  %v1613_v56 = vpop.permute.xlu0 %1612 }
 0x18d   : > { %v1651_v58 = vsel %vm1648_vm9, %v1617_v43, %v1619_v53  ;;  %v1649_v0 = vsel %vm1648_vm9, %v1613_v56, %v1615_v47 }
 0x18e   : > { %2342 = vrot.lane.b32.xlu1 %v7889_v26, %s7222_s22  ;;  %2340 = vrot.lane.b32.xlu0 %v7891_v59, %s7222_s22 }
 0x18f   : > { %4089 = vmatpush1.bf16.msra.mxu0 %v1649_v0 }
 0x190   : > { %v1633_v6 = vpop.permute.xlu1 %1632  ;;  %v8015_v7 = vpop.permute.xlu0 %1620 }
 0x191   : > { %11432 = vst [vmem:[#allocation4_spill] sm:$0xff] %v8015_v7  ;;  %v1652_v10 = vsel %vm1648_vm9, %v1619_v53, %v8015_v7 }
 0x192   : > { %2344 = vrot.lane.b32.xlu1 %v7899_v32, %s7222_s22  ;;  %2338 = vrot.lane.b32.xlu0 %v7901_v33, %s7222_s22 }
 0x193   : > { %4300 = vmatprep.subr.bf16.mxu1 %v1652_v10 }
 0x194   : > { %v1631_v12 = vpop.permute.xlu1 %1630  ;;  %v1635_v14 = vpop.permute.xlu0 %1634  ;;  %4301 = vmatpush1.bf16.msra.mxu1 %v1651_v58 }
 0x195   : > { %v1657_v57 = vsel %vm1648_vm9, %v1631_v12, %v1633_v6  ;;  %v1658_v16 = vsel %vm1648_vm9, %v1633_v6, %v1635_v14 }
 0x196   : > { %2358 = vrot.lane.b32.xlu1 %v7911_v38, %s7222_s22  ;;  %2346 = vrot.lane.b32.xlu0 %v7913_v39, %s7222_s22 }
 0x197   : > { %4090 = vmatprep.subr.bf16.mxu0 %v1658_v16 }
 0x198   : > { %v8039_v18 = vpop.permute.xlu1 %1638  ;;  %v1637_v49 = vpop.permute.xlu0 %1636  ;;  %4091 = vmatpush1.bf16.msra.mxu0 %v1657_v57 }
 0x199   : > { %11435 = vst [vmem:[#allocation7_spill] sm:$0xff] %v8039_v18  ;;  %v1659_v50 = vsel %vm1648_vm9, %v1635_v14, %v1637_v49  ;;  %v1660_v21 = vsel %vm1648_vm9, %v1637_v49, %v8039_v18 }
 0x19a   : > { %2356 = vrot.lane.b32.xlu1 %v7869_v20, %s7222_s22  ;;  %2360 = vrot.lane.b32.xlu0 %v7921_v44, %s7222_s22 }
 0x19b   : > { %4302 = vmatprep.subr.bf16.mxu1 %v1660_v21 }
 0x19c   : > { %v1738_v23 = vpop.permute.xlu1 %1737  ;;  %v1736_v24 = vpop.permute.xlu0 %1735  ;;  %4303 = vmatpush1.bf16.msra.mxu1 %v1659_v50 }
 0x19d   : > { %v1771_v27 = vsel %vm1769_vm10, %v1736_v24, %v1738_v23 }
 0x19e   : > { %2364 = vrot.lane.b32.xlu1 %v7880_v54, %s7222_s22  ;;  %2362 = vrot.lane.b32.xlu0 %v7882_v60, %s7222_s22 }
 0x19f   : > { %4092 = vmatprep.subr.bf16.mxu0 %v1771_v27 }
 0x1a0   : > { %v1740_v28 = vpop.permute.xlu1 %1739  ;;  %v1734_v29 = vpop.permute.xlu0 %1733 }
 0x1a1   : > { %v1772_v30 = vsel %vm1769_vm10, %v1738_v23, %v1740_v28  ;;  %v1770_v34 = vsel %vm1769_vm10, %v1734_v29, %v1736_v24 }
 0x1a2   : > { %2463 = vrot.lane.b32.xlu1 %v7889_v26, %s7223_s23  ;;  %2461 = vrot.lane.b32.xlu0 %v7891_v59, %s7223_s23 }
 0x1a3   : > { %4093 = vmatpush1.bf16.msra.mxu0 %v1770_v34 }
 0x1a4   : > { %v1754_v40 = vpop.permute.xlu1 %1753  ;;  %v8065_v41 = vpop.permute.xlu0 %1741 }
 0x1a5   : > { %11438 = vst [vmem:[#allocation10_spill] sm:$0xff] %v8065_v41  ;;  %v1773_v42 = vsel %vm1769_vm10, %v1740_v28, %v8065_v41  ;;  %v3944_v41 = vld [vmem:[#allocation3 + $0xfc8] sm:$0xff] }
 0x1a6   : > { %2465 = vrot.lane.b32.xlu1 %v7899_v32, %s7223_s23  ;;  %2459 = vrot.lane.b32.xlu0 %v7901_v33, %s7223_s23 }
 0x1a7   : > { %4304 = vmatprep.subr.bf16.mxu1 %v1773_v42 }
 0x1a8   : > { %v1752_v43 = vpop.permute.xlu1 %1751  ;;  %v1756_v47 = vpop.permute.xlu0 %1755  ;;  %4305 = vmatpush1.bf16.msra.mxu1 %v1772_v30 }
 0x1a9   : > { %v1778_v48 = vsel %vm1769_vm10, %v1752_v43, %v1754_v40  ;;  %v1779_v53 = vsel %vm1769_vm10, %v1754_v40, %v1756_v47 }
 0x1aa   : > { %2479 = vrot.lane.b32.xlu1 %v7911_v38, %s7223_s23  ;;  %2467 = vrot.lane.b32.xlu0 %v7913_v39, %s7223_s23 }
 0x1ab   : > { %4094 = vmatprep.subr.bf16.mxu0 %v1779_v53 }
 0x1ac   : > { %v8079_v56 = vpop.permute.xlu1 %1759  ;;  %v1758_v58 = vpop.permute.xlu0 %1757  ;;  %4095 = vmatpush1.bf16.msra.mxu0 %v1778_v48 }
 0x1ad   : > { %11439 = vst [vmem:[#allocation11_spill] sm:$0xff] %v8079_v56  ;;  %v1780_v0 = vsel %vm1769_vm10, %v1756_v47, %v1758_v58  ;;  %v1781_v2 = vsel %vm1769_vm10, %v1758_v58, %v8079_v56 }
 0x1ae   : > { %2477 = vrot.lane.b32.xlu1 %v7869_v20, %s7223_s23  ;;  %2481 = vrot.lane.b32.xlu0 %v7921_v44, %s7223_s23 }
 0x1af   : > { %4306 = vmatprep.subr.bf16.mxu1 %v1781_v2 }
 0x1b0   : > { %v1859_v3 = vpop.permute.xlu1 %1858  ;;  %v1857_v6 = vpop.permute.xlu0 %1856  ;;  %4307 = vmatpush1.bf16.msra.mxu1 %v1780_v0 }
 0x1b1   : > { %v1892_v10 = vsel %vm1890_vm11, %v1857_v6, %v1859_v3 }
 0x1b2   : > { %2485 = vrot.lane.b32.xlu1 %v7880_v54, %s7223_s23  ;;  %2483 = vrot.lane.b32.xlu0 %v7882_v60, %s7223_s23 }
 0x1b3   : > { %4096 = vmatprep.subr.bf16.mxu0 %v1892_v10 }
 0x1b4   : > { %v1861_v12 = vpop.permute.xlu1 %1860  ;;  %v1855_v14 = vpop.permute.xlu0 %1854 }
 0x1b5   : > { %v1893_v57 = vsel %vm1890_vm11, %v1859_v3, %v1861_v12  ;;  %v1891_v16 = vsel %vm1890_vm11, %v1855_v14, %v1857_v6 }
 0x1b6   : > { %2584 = vrot.lane.b32.xlu1 %v7889_v26, %s11361_s26  ;;  %2582 = vrot.lane.b32.xlu0 %v7891_v59, %s11361_s26 }
 0x1b7   : > { %4097 = vmatpush1.bf16.msra.mxu0 %v1891_v16 }
 0x1b8   : > { %v1875_v62 = vpop.permute.xlu1 %1874  ;;  %v8099_v17 = vpop.permute.xlu0 %1862 }
 0x1b9   : > { %11440 = vst [vmem:[#allocation12_spill] sm:$0xff] %v8099_v17  ;;  %v1894_v49 = vsel %vm1890_vm11, %v1861_v12, %v8099_v17  ;;  %v3922_v17 = vld [vmem:[#allocation3 + $0xf18] sm:$0xff] }
 0x1ba   : > { %2586 = vrot.lane.b32.xlu1 %v7899_v32, %s11361_s26  ;;  %2580 = vrot.lane.b32.xlu0 %v7901_v33, %s11361_s26 }
 0x1bb   : > { %4308 = vmatprep.subr.bf16.mxu1 %v1894_v49 }
 0x1bc   : > { %v1873_v50 = vpop.permute.xlu1 %1872  ;;  %v1877_v21 = vpop.permute.xlu0 %1876  ;;  %4309 = vmatpush1.bf16.msra.mxu1 %v1893_v57 }
 0x1bd   : > { %v1899_v23 = vsel %vm1890_vm11, %v1873_v50, %v1875_v62  ;;  %v1900_v24 = vsel %vm1890_vm11, %v1875_v62, %v1877_v21 }
 0x1be   : > { %2600 = vrot.lane.b32.xlu1 %v7911_v38, %s11361_s26  ;;  %2588 = vrot.lane.b32.xlu0 %v7913_v39, %s11361_s26 }
 0x1bf   : > { %4098 = vmatprep.subr.bf16.mxu0 %v1900_v24 }
 0x1c0   : > { %v8113_v27 = vpop.permute.xlu1 %1880  ;;  %v1879_v28 = vpop.permute.xlu0 %1878  ;;  %4099 = vmatpush1.bf16.msra.mxu0 %v1899_v23 }
 0x1c1   : > { %11441 = vst [vmem:[#allocation13_spill] sm:$0xff] %v8113_v27  ;;  %v1901_v29 = vsel %vm1890_vm11, %v1877_v21, %v1879_v28  ;;  %v1902_v30 = vsel %vm1890_vm11, %v1879_v28, %v8113_v27  ;;  %v3928_v27 = vld [vmem:[#allocation3 + $0xf48] sm:$0xff] }
 0x1c2   : > { %2598 = vrot.lane.b32.xlu1 %v7869_v20, %s11361_s26  ;;  %2602 = vrot.lane.b32.xlu0 %v7921_v44, %s11361_s26 }
 0x1c3   : > { %4310 = vmatprep.subr.bf16.mxu1 %v1902_v30 }
 0x1c4   : > { %v1980_v34 = vpop.permute.xlu1 %1979  ;;  %v1978_v40 = vpop.permute.xlu0 %1977  ;;  %4311 = vmatpush1.bf16.msra.mxu1 %v1901_v29 }
 0x1c5   : > { %v2013_v42 = vsel %vm2011_vm12, %v1978_v40, %v1980_v34 }
 0x1c6   : > { %2606 = vrot.lane.b32.xlu1 %v7880_v54, %s11361_s26  ;;  %2604 = vrot.lane.b32.xlu0 %v7882_v60, %s11361_s26  ;;  %s11365_s26 = smov 20  }
 0x1c7   : > { %4100 = vmatprep.subr.bf16.mxu0 %v2013_v42 }
 0x1c8   : > { %v1982_v43 = vpop.permute.xlu1 %1981  ;;  %v1976_v47 = vpop.permute.xlu0 %1975 }
 0x1c9   : > { %v2014_v48 = vsel %vm2011_vm12, %v1980_v34, %v1982_v43  ;;  %v2012_v53 = vsel %vm2011_vm12, %v1976_v47, %v1978_v40  ;;  %v8181_v40 = vld [vmem:[#allocation2 + $0x48] sm:$0xff] }
 0x1ca   : > { %2705 = vrot.lane.b32.xlu1 %v7889_v26, %s11363_s27  ;;  %2703 = vrot.lane.b32.xlu0 %v7891_v59, %s11363_s27 }
 0x1cb   : > { %4101 = vmatpush1.bf16.msra.mxu0 %v2012_v53 }
 0x1cc   : > { %v1996_v58 = vpop.permute.xlu1 %1995  ;;  %v8133_v0 = vpop.permute.xlu0 %1983 }
 0x1cd   : > { %11442 = vst [vmem:[#allocation14_spill] sm:$0xff] %v8133_v0  ;;  %v2015_v2 = vsel %vm2011_vm12, %v1982_v43, %v8133_v0 }
 0x1ce   : > { %2707 = vrot.lane.b32.xlu1 %v7899_v32, %s11363_s27  ;;  %2701 = vrot.lane.b32.xlu0 %v7901_v33, %s11363_s27 }
 0x1cf   : > { %4312 = vmatprep.subr.bf16.mxu1 %v2015_v2 }
 0x1d0   : > { %v1994_v3 = vpop.permute.xlu1 %1993  ;;  %v1998_v6 = vpop.permute.xlu0 %1997  ;;  %4313 = vmatpush1.bf16.msra.mxu1 %v2014_v48 }
 0x1d1   : > { %v2020_v10 = vsel %vm2011_vm12, %v1994_v3, %v1996_v58  ;;  %v2021_v12 = vsel %vm2011_vm12, %v1996_v58, %v1998_v6  ;;  %v8201_v58 = vld [vmem:[#allocation2 + $0x10] sm:$0xff] }
 0x1d2   : > { %2721 = vrot.lane.b32.xlu1 %v7911_v38, %s11363_s27  ;;  %2709 = vrot.lane.b32.xlu0 %v7913_v39, %s11363_s27 }
 0x1d3   : > { %4102 = vmatprep.subr.bf16.mxu0 %v2021_v12  ;;  %v8211_v12 = vld [vmem:[#allocation2 + $0x18] sm:$0xff] }
 0x1d4   : > { %v8147_v14 = vpop.permute.xlu1 %2001  ;;  %v2000_v57 = vpop.permute.xlu0 %1999  ;;  %4103 = vmatpush1.bf16.msra.mxu0 %v2020_v10 }
 0x1d5   : > { %11443 = vst [vmem:[#allocation15_spill] sm:$0xff] %v8147_v14  ;;  %v2022_v16 = vsel %vm2011_vm12, %v1998_v6, %v2000_v57  ;;  %v2023_v62 = vsel %vm2011_vm12, %v2000_v57, %v8147_v14  ;;  %v8213_v57 = vld [vmem:[#allocation2] sm:$0xff]  ;;  %v3920_v14 = vld [vmem:[#allocation3 + $0xf08] sm:$0xff] }
 0x1d6   : > { %2719 = vrot.lane.b32.xlu1 %v7869_v20, %s11363_s27  ;;  %2723 = vrot.lane.b32.xlu0 %v7921_v44, %s11363_s27 }
 0x1d7   : > { %4314 = vmatprep.subr.bf16.mxu1 %v2023_v62 }
 0x1d8   : > { %v2101_v49 = vpop.permute.xlu1 %2100  ;;  %v2099_v50 = vpop.permute.xlu0 %2098  ;;  %4315 = vmatpush1.bf16.msra.mxu1 %v2022_v16 }
 0x1d9   : > { %v2134_v21 = vsel %vm2132_vm13, %v2099_v50, %v2101_v49 }
 0x1da   : > { %2727 = vrot.lane.b32.xlu1 %v7880_v54, %s11363_s27  ;;  %2725 = vrot.lane.b32.xlu0 %v7882_v60, %s11363_s27  ;;  %s11367_s27 = smov 19  }
 0x1db   : > { %4104 = vmatprep.subr.bf16.mxu0 %v2134_v21  ;;  %v8225_v21 = vld [vmem:[#allocation2 + $0x20] sm:$0xff] }
 0x1dc   : > { %v2103_v23 = vpop.permute.xlu1 %2102  ;;  %v2097_v24 = vpop.permute.xlu0 %2096 }
 0x1dd   : > { %v2135_v20 = vsel %vm2132_vm13, %v2101_v49, %v2103_v23  ;;  %v2133_v28 = vsel %vm2132_vm13, %v2097_v24, %v2099_v50  ;;  %v8223_v50 = vld [vmem:[#allocation2 + $0x50] sm:$0xff] }
 0x1de   : > { %2826 = vrot.lane.b32.xlu1 %v7889_v26, %s11365_s26  ;;  %2824 = vrot.lane.b32.xlu0 %v7891_v59, %s11365_s26 }
 0x1df   : > { %4105 = vmatpush1.bf16.msra.mxu0 %v2133_v28 }
 0x1e0   : > { %v2117_v29 = vpop.permute.xlu1 %2116  ;;  %v8167_v54 = vpop.permute.xlu0 %2104 }
 0x1e1   : > { %11444 = vst [vmem:[#allocation16_spill] sm:$0xff] %v8167_v54  ;;  %v2136_v60 = vsel %vm2132_vm13, %v2103_v23, %v8167_v54 }
 0x1e2   : > { %2828 = vrot.lane.b32.xlu1 %v7899_v32, %s11365_s26  ;;  %2822 = vrot.lane.b32.xlu0 %v7901_v33, %s11365_s26 }
 0x1e3   : > { %4316 = vmatprep.subr.bf16.mxu1 %v2136_v60 }
 0x1e4   : > { %v2115_v30 = vpop.permute.xlu1 %2114  ;;  %v2119_v34 = vpop.permute.xlu0 %2118  ;;  %4317 = vmatpush1.bf16.msra.mxu1 %v2135_v20 }
 0x1e5   : > { %v2141_v26 = vsel %vm2132_vm13, %v2115_v30, %v2117_v29  ;;  %v2142_v59 = vsel %vm2132_vm13, %v2117_v29, %v2119_v34  ;;  %v8233_v29 = vld [vmem:[#allocation2 + $0x58] sm:$0xff] }
 0x1e6   : > { %2842 = vrot.lane.b32.xlu1 %v7911_v38, %s11365_s26  ;;  %2830 = vrot.lane.b32.xlu0 %v7913_v39, %s11365_s26  ;;  %v8192_v38 = vld [vmem:[#allocation2 + $0x68] sm:$0xff]  ;;  %v8194_v39 = vld [vmem:[#allocation2 + $0x60] sm:$0xff] }
 0x1e7   : > { %4106 = vmatprep.subr.bf16.mxu0 %v2142_v59 }
 0x1e8   : > { %v8183_v32 = vpop.permute.xlu1 %2122  ;;  %v2121_v33 = vpop.permute.xlu0 %2120  ;;  %4107 = vmatpush1.bf16.msra.mxu0 %v2141_v26 }
 0x1e9   : > { %11445 = vst [vmem:[#allocation17_spill] sm:$0xff] %v8183_v32  ;;  %v2143_v42 = vsel %vm2132_vm13, %v2119_v34, %v2121_v33  ;;  %v2144_v43 = vsel %vm2132_vm13, %v2121_v33, %v8183_v32  ;;  %v3906_v32 = vld [vmem:[#allocation3 + $0xe98] sm:$0xff] }
 0x1ea   : > { %2840 = vrot.lane.b32.xlu1 %v8181_v40, %s11365_s26  ;;  %2844 = vrot.lane.b32.xlu0 %v7921_v44, %s11365_s26  ;;  %v8203_v44 = vld [vmem:[#allocation2 + $0x8] sm:$0xff] }
 0x1eb   : > { %4318 = vmatprep.subr.bf16.mxu1 %v2144_v43 }
 0x1ec   : > { %v2222_v47 = vpop.permute.xlu1 %2221  ;;  %v2220_v48 = vpop.permute.xlu0 %2219  ;;  %4319 = vmatpush1.bf16.msra.mxu1 %v2143_v42 }
 0x1ed   : > { %v2255_v53 = vsel %vm2253_vm14, %v2220_v48, %v2222_v47 }
 0x1ee   : > { %2848 = vrot.lane.b32.xlu1 %v8192_v38, %s11365_s26  ;;  %2846 = vrot.lane.b32.xlu0 %v8194_v39, %s11365_s26  ;;  %s7228_s26 = smov 3  }
 0x1ef   : > { %4108 = vmatprep.subr.bf16.mxu0 %v2255_v53 }
 0x1f0   : > { %v2224_v2 = vpop.permute.xlu1 %2223  ;;  %v2218_v3 = vpop.permute.xlu0 %2217 }
 0x1f1   : > { %v2256_v6 = vsel %vm2253_vm14, %v2222_v47, %v2224_v2  ;;  %v2254_v10 = vsel %vm2253_vm14, %v2218_v3, %v2220_v48 }
 0x1f2   : > { %2947 = vrot.lane.b32.xlu1 %v8201_v58, %s11367_s27  ;;  %2945 = vrot.lane.b32.xlu0 %v8203_v44, %s11367_s27 }
 0x1f3   : > { %4109 = vmatpush1.bf16.msra.mxu0 %v2254_v10 }
 0x1f4   : > { %v2238_v16 = vpop.permute.xlu1 %2237  ;;  %v8215_v62 = vpop.permute.xlu0 %2225 }
 0x1f5   : > { %11446 = vst [vmem:[#allocation18_spill] sm:$0xff] %v8215_v62  ;;  %v2257_v49 = vsel %vm2253_vm14, %v2224_v2, %v8215_v62  ;;  %v3912_v62 = vld [vmem:[#allocation3 + $0xec8] sm:$0xff] }
 0x1f6   : > { %2949 = vrot.lane.b32.xlu1 %v8211_v12, %s11367_s27  ;;  %2943 = vrot.lane.b32.xlu0 %v8213_v57, %s11367_s27 }
 0x1f7   : > { %4320 = vmatprep.subr.bf16.mxu1 %v2257_v49 }
 0x1f8   : > { %v2236_v23 = vpop.permute.xlu1 %2235  ;;  %v2240_v24 = vpop.permute.xlu0 %2239  ;;  %4321 = vmatpush1.bf16.msra.mxu1 %v2256_v6 }
 0x1f9   : > { %v2262_v20 = vsel %vm2253_vm14, %v2236_v23, %v2238_v16  ;;  %v2263_v28 = vsel %vm2253_vm14, %v2238_v16, %v2240_v24 }
 0x1fa   : > { %2963 = vrot.lane.b32.xlu1 %v8223_v50, %s11367_s27  ;;  %2951 = vrot.lane.b32.xlu0 %v8225_v21, %s11367_s27 }
 0x1fb   : > { %4110 = vmatprep.subr.bf16.mxu0 %v2263_v28 }
 0x1fc   : > { %v8235_v60 = vpop.permute.xlu1 %2243  ;;  %v2242_v30 = vpop.permute.xlu0 %2241  ;;  %4111 = vmatpush1.bf16.msra.mxu0 %v2262_v20 }
 0x1fd   : > { %11447 = vst [vmem:[#allocation19_spill] sm:$0xff] %v8235_v60  ;;  %v2264_v34 = vsel %vm2253_vm14, %v2240_v24, %v2242_v30  ;;  %v2265_v26 = vsel %vm2253_vm14, %v2242_v30, %v8235_v60  ;;  %v3897_v60 = vld [vmem:[#allocation3 + $0xe50] sm:$0xff] }
 0x1fe   : > { %2961 = vrot.lane.b32.xlu1 %v8181_v40, %s11367_s27  ;;  %2965 = vrot.lane.b32.xlu0 %v8233_v29, %s11367_s27 }
 0x1ff   : > { %4322 = vmatprep.subr.bf16.mxu1 %v2265_v26 }
 0x200   : > { %v2343_v59 = vpop.permute.xlu1 %2342  ;;  %v2341_v33 = vpop.permute.xlu0 %2340  ;;  %4323 = vmatpush1.bf16.msra.mxu1 %v2264_v34 }
 0x201   : > { %v2376_v42 = vsel %vm11369_vm15, %v2341_v33, %v2343_v59 }
 0x202   : > { %2969 = vrot.lane.b32.xlu1 %v8192_v38, %s11367_s27  ;;  %2967 = vrot.lane.b32.xlu0 %v8194_v39, %s11367_s27  ;;  %s11370_s27 = smov 2  }
 0x203   : > { %4112 = vmatprep.subr.bf16.mxu0 %v2376_v42 }
 0x204   : > { %v2345_v43 = vpop.permute.xlu1 %2344  ;;  %v2339_v47 = vpop.permute.xlu0 %2338 }
 0x205   : > { %v2377_v48 = vsel %vm11369_vm15, %v2343_v59, %v2345_v43  ;;  %v2375_v53 = vsel %vm11369_vm15, %v2339_v47, %v2341_v33 }
 0x206   : > { %3068 = vrot.lane.b32.xlu1 %v8201_v58, %s7228_s26  ;;  %3066 = vrot.lane.b32.xlu0 %v8203_v44, %s7228_s26 }
 0x207   : > { %4113 = vmatpush1.bf16.msra.mxu0 %v2375_v53 }
 0x208   : > { %v2359_v2 = vpop.permute.xlu1 %2358  ;;  %v8255_v3 = vpop.permute.xlu0 %2346 }
 0x209   : > { %11448 = vst [vmem:[#allocation20_spill] sm:$0xff] %v8255_v3  ;;  %v2378_v6 = vsel %vm11369_vm15, %v2345_v43, %v8255_v3 }
 0x20a   : > { %3070 = vrot.lane.b32.xlu1 %v8211_v12, %s7228_s26  ;;  %3064 = vrot.lane.b32.xlu0 %v8213_v57, %s7228_s26 }
 0x20b   : > { %4324 = vmatprep.subr.bf16.mxu1 %v2378_v6 }
 0x20c   : > { %v2357_v10 = vpop.permute.xlu1 %2356  ;;  %v2361_v16 = vpop.permute.xlu0 %2360  ;;  %4325 = vmatpush1.bf16.msra.mxu1 %v2377_v48 }
 0x20d   : > { %v2383_v49 = vsel %vm11369_vm15, %v2357_v10, %v2359_v2  ;;  %v2384_v23 = vsel %vm11369_vm15, %v2359_v2, %v2361_v16 }
 0x20e   : > { %3084 = vrot.lane.b32.xlu1 %v8223_v50, %s7228_s26  ;;  %3072 = vrot.lane.b32.xlu0 %v8225_v21, %s7228_s26 }
 0x20f   : > { %4114 = vmatprep.subr.bf16.mxu0 %v2384_v23 }
 0x210   : > { %v8269_v24 = vpop.permute.xlu1 %2364  ;;  %v2363_v20 = vpop.permute.xlu0 %2362  ;;  %4115 = vmatpush1.bf16.msra.mxu0 %v2383_v49 }
 0x211   : > { %11449 = vst [vmem:[#allocation21_spill] sm:$0xff] %v8269_v24  ;;  %v2385_v28 = vsel %vm11369_vm15, %v2361_v16, %v2363_v20  ;;  %v2386_v30 = vsel %vm11369_vm15, %v2363_v20, %v8269_v24  ;;  %vm11379_vm15 = vcmask 179200   ;;  %v8739_v24 = vld [vmem:[#allocation2 + $0x70] sm:$0xff] }
 0x212   : > { %3082 = vrot.lane.b32.xlu1 %v8181_v40, %s7228_s26  ;;  %3086 = vrot.lane.b32.xlu0 %v8233_v29, %s7228_s26 }
 0x213   : > { %4326 = vmatprep.subr.bf16.mxu1 %v2386_v30  ;;  %4117 = vmatmul.mubr.bf16.vlgmr.msra.gmra.mrb[0].mxu0 %v8046_v22 }
 0x214   : > { %v2464_v34 = vpop.permute.xlu1 %2463  ;;  %v2462_v26 = vpop.permute.xlu0 %2461  ;;  %4327 = vmatpush1.bf16.msra.mxu1 %v2385_v28 }
 0x215   : > { %v2497_v59 = vsel %vm11372_vm0, %v2462_v26, %v2464_v34 }
 0x216   : > { %3090 = vrot.lane.b32.xlu1 %v8192_v38, %s7228_s26  ;;  %3088 = vrot.lane.b32.xlu0 %v8194_v39, %s7228_s26 }
 0x217   : > { %4137 = vmatprep.subr.bf16.mxu0 %v2497_v59  ;;  %4329 = vmatmul.mubr.bf16.vlgmr.msra.gmra.mrb[0].mxu1 %v8046_v22  ;;  %v3432_v59 = vld [vmem:[%s7288_s8 + $0x48] sm:$0xff]  ;;  %v3904_v22 = vld [vmem:[#allocation3 + $0xe88] sm:$0xff] }
 0x218   : > { %v2466_v33 = vpop.permute.xlu1 %2465  ;;  %v2460_v42 = vpop.permute.xlu0 %2459 }
 0x219   : > { %v2498_v43 = vsel %vm11372_vm0, %v2464_v34, %v2466_v33  ;;  %v2496_v47 = vsel %vm11372_vm0, %v2460_v42, %v2462_v26 }
 0x21a   : > { %3189 = vrot.lane.b32.xlu1 %v8201_v58, %s11370_s27  ;;  %3187 = vrot.lane.b32.xlu0 %v8203_v44, %s11370_s27 }
 0x21b   : > { %4138 = vmatpush1.bf16.msra.mxu0 %v2496_v47 }
 0x21c   : > { %v2480_v48 = vpop.permute.xlu1 %2479  ;;  %v8291_v53 = vpop.permute.xlu0 %2467 }
 0x21d   : > { %11450 = vst [vmem:[#allocation22_spill] sm:$0xff] %v8291_v53  ;;  %v2499_v2 = vsel %vm11372_vm0, %v2466_v33, %v8291_v53  ;;  %v3436_v33 = vld [vmem:[%s7288_s8 + $0x68] sm:$0xff] }
 0x21e   : > { %3191 = vrot.lane.b32.xlu1 %v8211_v12, %s11370_s27  ;;  %3185 = vrot.lane.b32.xlu0 %v8213_v57, %s11370_s27  ;;  %v8323_v47 = vcombine.low %v3432_v59, %v3436_v33 }
 0x21f   : > { %4349 = vmatprep.subr.bf16.mxu1 %v2499_v2 }
 0x220   : > { %v2478_v6 = vpop.permute.xlu1 %2477  ;;  %v2482_v10 = vpop.permute.xlu0 %2481  ;;  %4350 = vmatpush1.bf16.msra.mxu1 %v2498_v43  ;;  %v8317_v43 = vcombine.high %v3432_v59, %v3436_v33  ;;  %11453 = vst [vmem:[#allocation25_spill] sm:$0xff] %v8323_v47 }
 0x221   : > { %v2504_v16 = vsel %vm11372_vm0, %v2478_v6, %v2480_v48  ;;  %v2505_v49 = vsel %vm11372_vm0, %v2480_v48, %v2482_v10 }
 0x222   : > { %3205 = vrot.lane.b32.xlu1 %v8223_v50, %s11370_s27  ;;  %3193 = vrot.lane.b32.xlu0 %v8225_v21, %s11370_s27  ;;  %11452 = vst [vmem:[#allocation24_spill] sm:$0xff] %v8317_v43 }
 0x223   : > { %4139 = vmatprep.subr.bf16.mxu0 %v2505_v49  ;;  %4126 = vmatprep.mubr.bf16.mxu0 %v8317_v43 }
 0x224   : > { %v8305_v23 = vpop.permute.xlu1 %2485  ;;  %v2484_v20 = vpop.permute.xlu0 %2483  ;;  %4140 = vmatpush1.bf16.msra.mxu0 %v2504_v16  ;;  %4338 = vmatprep.mubr.bf16.mxu1 %v8317_v43 }
 0x225   : > { %11451 = vst [vmem:[#allocation23_spill] sm:$0xff] %v8305_v23  ;;  %v2506_v28 = vsel %vm11372_vm0, %v2482_v10, %v2484_v20  ;;  %v2507_v30 = vsel %vm11372_vm0, %v2484_v20, %v8305_v23  ;;  %4127 = vmatmul.mubr.bf16.gmra.mrb[4].mxu0 %v8323_v47  ;;  %4339 = vmatmul.mubr.bf16.gmra.mrb[4].mxu1 %v8323_v47  ;;  %v3425_v20 = vld [vmem:[%s7288_s8 + $0x10] sm:$0xff]  ;;  %vm11384_vm0 = vcmask 171008  }
 0x226   : > { %3203 = vrot.lane.b32.xlu1 %v8181_v40, %s11370_s27  ;;  %3207 = vrot.lane.b32.xlu0 %v8233_v29, %s11370_s27 }
 0x227   : > { %4351 = vmatprep.subr.bf16.mxu1 %v2507_v30 }
 0x228   : > { %v2585_v34 = vpop.permute.xlu1 %2584  ;;  %v2583_v26 = vpop.permute.xlu0 %2582  ;;  %4352 = vmatpush1.bf16.msra.mxu1 %v2506_v28  ;;  %v3429_v28 = vld [vmem:[%s7288_s8 + $0x30] sm:$0xff] }
 0x229   : > { %v2618_v42 = vsel %vm11379_vm15, %v2583_v26, %v2585_v34 }
 0x22a   : > { %3211 = vrot.lane.b32.xlu1 %v8192_v38, %s11370_s27  ;;  %3209 = vrot.lane.b32.xlu0 %v8194_v39, %s11370_s27  ;;  %s7230_s27 = smov 1  }
 0x22b   : > { %4141 = vmatprep.subr.bf16.mxu0 %v2618_v42 }
 0x22c   : > { %v2587_v48 = vpop.permute.xlu1 %2586  ;;  %v2581_v2 = vpop.permute.xlu0 %2580 }
 0x22d   : > { %v2619_v6 = vsel %vm11379_vm15, %v2585_v34, %v2587_v48  ;;  %v2617_v10 = vsel %vm11379_vm15, %v2581_v2, %v2583_v26  ;;  %v8341_v34 = vcombine.high %v3425_v20, %v3429_v28  ;;  %v8352_v26 = vld [vmem:[#allocation2 + $0x8] sm:$0xff]  ;;  %v8365_v2 = vld [vmem:[#allocation2 + $0x50] sm:$0xff] }
 0x22e   : > { %3310 = vrot.lane.b32.xlu1 %v8201_v58, %s7230_s27  ;;  %3308 = vrot.lane.b32.xlu0 %v8203_v44, %s7230_s27  ;;  %v8347_v58 = vcombine.low %v3425_v20, %v3429_v28  ;;  %v8349_v44 = vld [vmem:[#allocation2 + $0x10] sm:$0xff]  ;;  %v8380_v28 = vld [vmem:[#allocation2 + $0x60] sm:$0xff] }
 0x22f   : > { %4142 = vmatpush1.bf16.msra.mxu0 %v2617_v10  ;;  %11455 = vst [vmem:[#allocation27_spill] sm:$0xff] %v8341_v34  ;;  %4169 = vmatprep.mubr.bf16.mxu0 %v8341_v34 }
 0x230   : > { %v2601_v16 = vpop.permute.xlu1 %2600  ;;  %v8335_v49 = vpop.permute.xlu0 %2588  ;;  %11456 = vst [vmem:[#allocation28_spill] sm:$0xff] %v8347_v58  ;;  %4381 = vmatprep.mubr.bf16.mxu1 %v8341_v34 }
 0x231   : > { %11454 = vst [vmem:[#allocation26_spill] sm:$0xff] %v8335_v49  ;;  %v2620_v30 = vsel %vm11379_vm15, %v2587_v48, %v8335_v49  ;;  %v8363_v48 = vld [vmem:[#allocation2 + $0x20] sm:$0xff] }
 0x232   : > { %3312 = vrot.lane.b32.xlu1 %v8211_v12, %s7230_s27  ;;  %3306 = vrot.lane.b32.xlu0 %v8213_v57, %s7230_s27  ;;  %v8361_v57 = vld [vmem:[#allocation2 + $0x58] sm:$0xff] }
 0x233   : > { %4353 = vmatprep.subr.bf16.mxu1 %v2620_v30 }
 0x234   : > { %v2599_v59 = vpop.permute.xlu1 %2598  ;;  %v2603_v33 = vpop.permute.xlu0 %2602  ;;  %4354 = vmatpush1.bf16.msra.mxu1 %v2619_v6  ;;  %v8367_v6 = vld [vmem:[#allocation2 + $0x18] sm:$0xff] }
 0x235   : > { %v2625_v42 = vsel %vm11379_vm15, %v2599_v59, %v2601_v16  ;;  %v2626_v12 = vsel %vm11379_vm15, %v2601_v16, %v2603_v33 }
 0x236   : > { %3326 = vrot.lane.b32.xlu1 %v8223_v50, %s7230_s27  ;;  %3314 = vrot.lane.b32.xlu0 %v8225_v21, %s7230_s27  ;;  %v8378_v21 = vld [vmem:[#allocation2 + $0x68] sm:$0xff] }
 0x237   : > { %4143 = vmatprep.subr.bf16.mxu0 %v2626_v12 }
 0x238   : > { %v8369_v10 = vpop.permute.xlu1 %2606  ;;  %v2605_v20 = vpop.permute.xlu0 %2604  ;;  %4144 = vmatpush1.bf16.msra.mxu0 %v2625_v42 }
 0x239   : > { %11457 = vst [vmem:[#allocation29_spill] sm:$0xff] %v8369_v10  ;;  %v2627_v16 = vsel %vm11379_vm15, %v2603_v33, %v2605_v20  ;;  %v2628_v50 = vsel %vm11379_vm15, %v2605_v20, %v8369_v10  ;;  %vm11387_vm15 = vcmask 162816  }
 0x23a   : > { %3324 = vrot.lane.b32.xlu1 %v8181_v40, %s7230_s27  ;;  %3328 = vrot.lane.b32.xlu0 %v8233_v29, %s7230_s27  ;;  %v8387_v40 = vld [vmem:[#allocation2 + $0x30] sm:$0xff]  ;;  %v8389_v29 = vld [vmem:[#allocation2 + $0x28] sm:$0xff] }
 0x23b   : > { %4355 = vmatprep.subr.bf16.mxu1 %v2628_v50 }
 0x23c   : > { %v2706_v30 = vpop.permute.xlu1 %2705  ;;  %v2704_v59 = vpop.permute.xlu0 %2703  ;;  %4356 = vmatpush1.bf16.msra.mxu1 %v2627_v16 }
 0x23d   : > { %v2739_v33 = vsel %vm11384_vm0, %v2704_v59, %v2706_v30 }
 0x23e   : > { %3332 = vrot.lane.b32.xlu1 %v8192_v38, %s7230_s27  ;;  %3330 = vrot.lane.b32.xlu0 %v8194_v39, %s7230_s27  ;;  %v8397_v38 = vld [vmem:[#allocation2 + $0x40] sm:$0xff]  ;;  %v8399_v39 = vld [vmem:[#allocation2 + $0x38] sm:$0xff] }
 0x23f   : > { %4145 = vmatprep.subr.bf16.mxu0 %v2739_v33 }
 0x240   : > { %v2708_v42 = vpop.permute.xlu1 %2707  ;;  %v2702_v12 = vpop.permute.xlu0 %2701 }
 0x241   : > { %v2740_v20 = vsel %vm11384_vm0, %v2706_v30, %v2708_v42  ;;  %v2738_v50 = vsel %vm11384_vm0, %v2702_v12, %v2704_v59  ;;  %v8409_v30 = vld [vmem:[#allocation2 + $0x78] sm:$0xff]  ;;  %v8411_v59 = vld [vmem:[#allocation2 + $0x70] sm:$0xff] }
 0x242   : > { %656 = vrot.lane.b32.xlu1 %v8387_v40, %s7208_s28  ;;  %654 = vrot.lane.b32.xlu0 %v8389_v29, %s7208_s28 }
 0x243   : > { %4146 = vmatpush1.bf16.msra.mxu0 %v2738_v50 }
 0x244   : > { %v2722_v16 = vpop.permute.xlu1 %2721  ;;  %v8401_v10 = vpop.permute.xlu0 %2709 }
 0x245   : > { %11458 = vst [vmem:[#allocation30_spill] sm:$0xff] %v8401_v10  ;;  %v2741_v33 = vsel %vm11384_vm0, %v2708_v42, %v8401_v10  ;;  %v8419_v42 = vld [vmem:[#allocation2 + $0x88] sm:$0xff]  ;;  %v8421_v10 = vld [vmem:[#allocation2 + $0x80] sm:$0xff] }
 0x246   : > { %660 = vrot.lane.b32.xlu1 %v8397_v38, %s7208_s28  ;;  %658 = vrot.lane.b32.xlu0 %v8399_v39, %s7208_s28 }
 0x247   : > { %4357 = vmatprep.subr.bf16.mxu1 %v2741_v33 }
 0x248   : > { %v2720_v12 = vpop.permute.xlu1 %2719  ;;  %v2724_v49 = vpop.permute.xlu0 %2723  ;;  %4358 = vmatpush1.bf16.msra.mxu1 %v2740_v20 }
 0x249   : > { %v2746_v50 = vsel %vm11384_vm0, %v2720_v12, %v2722_v16  ;;  %v2747_v23 = vsel %vm11384_vm0, %v2722_v16, %v2724_v49 }
 0x24a   : > { %674 = vrot.lane.b32.xlu1 %v8409_v30, %s7208_s28  ;;  %672 = vrot.lane.b32.xlu0 %v8411_v59, %s7208_s28 }
 0x24b   : > { %4147 = vmatprep.subr.bf16.mxu0 %v2747_v23 }
 0x24c   : > { %v8423_v34 = vpop.permute.xlu1 %2727  ;;  %v2726_v33 = vpop.permute.xlu0 %2725  ;;  %4148 = vmatpush1.bf16.msra.mxu0 %v2746_v50 }
 0x24d   : > { %11459 = vst [vmem:[#allocation31_spill] sm:$0xff] %v8423_v34  ;;  %v2748_v20 = vsel %vm11384_vm0, %v2724_v49, %v2726_v33  ;;  %v2749_v16 = vsel %vm11384_vm0, %v2726_v33, %v8423_v34  ;;  %vm11390_vm0 = vcmask 154624  }
 0x24e   : > { %678 = vrot.lane.b32.xlu1 %v8419_v42, %s7208_s28  ;;  %676 = vrot.lane.b32.xlu0 %v8421_v10, %s7208_s28  ;;  %s11481_s28 = smov 21  }
 0x24f   : > { %4359 = vmatprep.subr.bf16.mxu1 %v2749_v16 }
 0x250   : > { %v2827_v12 = vpop.permute.xlu1 %2826  ;;  %v2825_v47 = vpop.permute.xlu0 %2824  ;;  %4360 = vmatpush1.bf16.msra.mxu1 %v2748_v20 }
 0x251   : > { %v2860_v23 = vsel %vm11387_vm15, %v2825_v47, %v2827_v12 }
 0x252   : > { %777 = vrot.lane.b32.xlu1 %v8387_v40, %s7209_s29  ;;  %775 = vrot.lane.b32.xlu0 %v8389_v29, %s7209_s29 }
 0x253   : > { %4149 = vmatprep.subr.bf16.mxu0 %v2860_v23 }
 0x254   : > { %v2829_v49 = vpop.permute.xlu1 %2828  ;;  %v2823_v50 = vpop.permute.xlu0 %2822 }
 0x255   : > { %v2861_v33 = vsel %vm11387_vm15, %v2827_v12, %v2829_v49  ;;  %v2859_v34 = vsel %vm11387_vm15, %v2823_v50, %v2825_v47 }
 0x256   : > { %781 = vrot.lane.b32.xlu1 %v8397_v38, %s7209_s29  ;;  %779 = vrot.lane.b32.xlu0 %v8399_v39, %s7209_s29 }
 0x257   : > { %4150 = vmatpush1.bf16.msra.mxu0 %v2859_v34 }
 0x258   : > { %v2843_v20 = vpop.permute.xlu1 %2842  ;;  %v8443_v16 = vpop.permute.xlu0 %2830 }
 0x259   : > { %11460 = vst [vmem:[#allocation32_spill] sm:$0xff] %v8443_v16  ;;  %v2862_v53 = vsel %vm11387_vm15, %v2829_v49, %v8443_v16 }
 0x25a   : > { %795 = vrot.lane.b32.xlu1 %v8409_v30, %s7209_s29  ;;  %793 = vrot.lane.b32.xlu0 %v8411_v59, %s7209_s29 }
 0x25b   : > { %4361 = vmatprep.subr.bf16.mxu1 %v2862_v53 }
 0x25c   : > { %v2841_v47 = vpop.permute.xlu1 %2840  ;;  %v2845_v12 = vpop.permute.xlu0 %2844  ;;  %4362 = vmatpush1.bf16.msra.mxu1 %v2861_v33 }
 0x25d   : > { %v2867_v23 = vsel %vm11387_vm15, %v2841_v47, %v2843_v20  ;;  %v2868_v34 = vsel %vm11387_vm15, %v2843_v20, %v2845_v12 }
 0x25e   : > { %799 = vrot.lane.b32.xlu1 %v8419_v42, %s7209_s29  ;;  %797 = vrot.lane.b32.xlu0 %v8421_v10, %s7209_s29  ;;  %s11484_s29 = smov 20  }
 0x25f   : > { %4151 = vmatprep.subr.bf16.mxu0 %v2868_v34 }
 0x260   : > { %v8457_v49 = vpop.permute.xlu1 %2848  ;;  %v2847_v50 = vpop.permute.xlu0 %2846  ;;  %4152 = vmatpush1.bf16.msra.mxu0 %v2867_v23 }
 0x261   : > { %11461 = vst [vmem:[#allocation33_spill] sm:$0xff] %v8457_v49  ;;  %v2869_v53 = vsel %vm11387_vm15, %v2845_v12, %v2847_v50  ;;  %v2870_v33 = vsel %vm11387_vm15, %v2847_v50, %v8457_v49  ;;  %vm11393_vm15 = vcmask 23552  }
 0x262   : > { %898 = vrot.lane.b32.xlu1 %v8387_v40, %s7210_s30  ;;  %896 = vrot.lane.b32.xlu0 %v8389_v29, %s7210_s30 }
 0x263   : > { %4363 = vmatprep.subr.bf16.mxu1 %v2870_v33 }
 0x264   : > { %v2948_v20 = vpop.permute.xlu1 %2947  ;;  %v2946_v47 = vpop.permute.xlu0 %2945  ;;  %4364 = vmatpush1.bf16.msra.mxu1 %v2869_v53 }
 0x265   : > { %v2981_v34 = vsel %vm11390_vm0, %v2946_v47, %v2948_v20 }
 0x266   : > { %902 = vrot.lane.b32.xlu1 %v8397_v38, %s7210_s30  ;;  %900 = vrot.lane.b32.xlu0 %v8399_v39, %s7210_s30 }
 0x267   : > { %4153 = vmatprep.subr.bf16.mxu0 %v2981_v34 }
 0x268   : > { %v2950_v12 = vpop.permute.xlu1 %2949  ;;  %v2944_v23 = vpop.permute.xlu0 %2943 }
 0x269   : > { %v2982_v50 = vsel %vm11390_vm0, %v2948_v20, %v2950_v12  ;;  %v2980_v49 = vsel %vm11390_vm0, %v2944_v23, %v2946_v47 }
 0x26a   : > { %916 = vrot.lane.b32.xlu1 %v8409_v30, %s7210_s30  ;;  %914 = vrot.lane.b32.xlu0 %v8411_v59, %s7210_s30 }
 0x26b   : > { %4154 = vmatpush1.bf16.msra.mxu0 %v2980_v49 }
 0x26c   : > { %v2964_v53 = vpop.permute.xlu1 %2963  ;;  %v8477_v33 = vpop.permute.xlu0 %2951 }
 0x26d   : > { %11462 = vst [vmem:[#allocation34_spill] sm:$0xff] %v8477_v33  ;;  %v2983_v16 = vsel %vm11390_vm0, %v2950_v12, %v8477_v33 }
 0x26e   : > { %920 = vrot.lane.b32.xlu1 %v8419_v42, %s7210_s30  ;;  %918 = vrot.lane.b32.xlu0 %v8421_v10, %s7210_s30  ;;  %s11487_s30 = smov 19  }
 0x26f   : > { %4365 = vmatprep.subr.bf16.mxu1 %v2983_v16 }
 0x270   : > { %v2962_v20 = vpop.permute.xlu1 %2961  ;;  %v2966_v47 = vpop.permute.xlu0 %2965  ;;  %4366 = vmatpush1.bf16.msra.mxu1 %v2982_v50 }
 0x271   : > { %v2988_v34 = vsel %vm11390_vm0, %v2962_v20, %v2964_v53  ;;  %v2989_v49 = vsel %vm11390_vm0, %v2964_v53, %v2966_v47 }
 0x272   : > { %1019 = vrot.lane.b32.xlu1 %v8387_v40, %s7211_s9  ;;  %1017 = vrot.lane.b32.xlu0 %v8389_v29, %s7211_s9 }
 0x273   : > { %4155 = vmatprep.subr.bf16.mxu0 %v2989_v49 }
 0x274   : > { %v8491_v12 = vpop.permute.xlu1 %2969  ;;  %v2968_v23 = vpop.permute.xlu0 %2967  ;;  %4156 = vmatpush1.bf16.msra.mxu0 %v2988_v34 }
 0x275   : > { %11463 = vst [vmem:[#allocation35_spill] sm:$0xff] %v8491_v12  ;;  %v2990_v16 = vsel %vm11390_vm0, %v2966_v47, %v2968_v23  ;;  %v2991_v50 = vsel %vm11390_vm0, %v2968_v23, %v8491_v12  ;;  %vm3221_vm0 = vcmask 15360  }
 0x276   : > { %1023 = vrot.lane.b32.xlu1 %v8397_v38, %s7211_s9  ;;  %1021 = vrot.lane.b32.xlu0 %v8399_v39, %s7211_s9 }
 0x277   : > { %4367 = vmatprep.subr.bf16.mxu1 %v2991_v50 }
 0x278   : > { %v3069_v53 = vpop.permute.xlu1 %3068  ;;  %v3067_v20 = vpop.permute.xlu0 %3066  ;;  %4368 = vmatpush1.bf16.msra.mxu1 %v2990_v16 }
 0x279   : > { %v3102_v49 = vsel %vm11393_vm15, %v3067_v20, %v3069_v53 }
 0x27a   : > { %1037 = vrot.lane.b32.xlu1 %v8409_v30, %s7211_s9  ;;  %1035 = vrot.lane.b32.xlu0 %v8411_v59, %s7211_s9 }
 0x27b   : > { %4157 = vmatprep.subr.bf16.mxu0 %v3102_v49 }
 0x27c   : > { %v3071_v47 = vpop.permute.xlu1 %3070  ;;  %v3065_v34 = vpop.permute.xlu0 %3064 }
 0x27d   : > { %v3103_v23 = vsel %vm11393_vm15, %v3069_v53, %v3071_v47  ;;  %v3101_v12 = vsel %vm11393_vm15, %v3065_v34, %v3067_v20 }
 0x27e   : > { %1041 = vrot.lane.b32.xlu1 %v8419_v42, %s7211_s9  ;;  %1039 = vrot.lane.b32.xlu0 %v8421_v10, %s7211_s9  ;;  %s11492_s9 = smov 2  }
 0x27f   : > { %4158 = vmatpush1.bf16.msra.mxu0 %v3101_v12 }
 0x280   : > { %v3085_v16 = vpop.permute.xlu1 %3084  ;;  %v8511_v50 = vpop.permute.xlu0 %3072 }
 0x281   : > { %11464 = vst [vmem:[#allocation36_spill] sm:$0xff] %v8511_v50  ;;  %v3104_v33 = vsel %vm11393_vm15, %v3071_v47, %v8511_v50 }
 0x282   : > { %1140 = vrot.lane.b32.xlu1 %v8387_v40, %s7212_s10  ;;  %1138 = vrot.lane.b32.xlu0 %v8389_v29, %s7212_s10 }
 0x283   : > { %4369 = vmatprep.subr.bf16.mxu1 %v3104_v33 }
 0x284   : > { %v3083_v53 = vpop.permute.xlu1 %3082  ;;  %v3087_v20 = vpop.permute.xlu0 %3086  ;;  %4370 = vmatpush1.bf16.msra.mxu1 %v3103_v23 }
 0x285   : > { %v3109_v49 = vsel %vm11393_vm15, %v3083_v53, %v3085_v16  ;;  %v3110_v12 = vsel %vm11393_vm15, %v3085_v16, %v3087_v20 }
 0x286   : > { %1144 = vrot.lane.b32.xlu1 %v8397_v38, %s7212_s10  ;;  %1142 = vrot.lane.b32.xlu0 %v8399_v39, %s7212_s10 }
 0x287   : > { %4159 = vmatprep.subr.bf16.mxu0 %v3110_v12 }
 0x288   : > { %v8525_v47 = vpop.permute.xlu1 %3090  ;;  %v3089_v34 = vpop.permute.xlu0 %3088  ;;  %4160 = vmatpush1.bf16.msra.mxu0 %v3109_v49 }
 0x289   : > { %11465 = vst [vmem:[#allocation37_spill] sm:$0xff] %v8525_v47  ;;  %v3111_v33 = vsel %vm11393_vm15, %v3087_v20, %v3089_v34  ;;  %v3112_v23 = vsel %vm11393_vm15, %v3089_v34, %v8525_v47  ;;  %vm3342_vm15 = vcmask 7168  }
 0x28a   : > { %1158 = vrot.lane.b32.xlu1 %v8409_v30, %s7212_s10  ;;  %1156 = vrot.lane.b32.xlu0 %v8411_v59, %s7212_s10 }
 0x28b   : > { %4371 = vmatprep.subr.bf16.mxu1 %v3112_v23 }
 0x28c   : > { %v3190_v16 = vpop.permute.xlu1 %3189  ;;  %v3188_v53 = vpop.permute.xlu0 %3187  ;;  %4372 = vmatpush1.bf16.msra.mxu1 %v3111_v33 }
 0x28d   : > { %v3223_v12 = vsel %vm3221_vm0, %v3188_v53, %v3190_v16 }
 0x28e   : > { %1162 = vrot.lane.b32.xlu1 %v8419_v42, %s7212_s10  ;;  %1160 = vrot.lane.b32.xlu0 %v8421_v10, %s7212_s10 }
 0x28f   : > { %4161 = vmatprep.subr.bf16.mxu0 %v3223_v12 }
 0x290   : > { %v3192_v20 = vpop.permute.xlu1 %3191  ;;  %v3186_v49 = vpop.permute.xlu0 %3185 }
 0x291   : > { %v3224_v34 = vsel %vm3221_vm0, %v3190_v16, %v3192_v20  ;;  %v3222_v47 = vsel %vm3221_vm0, %v3186_v49, %v3188_v53 }
 0x292   : > { %1261 = vrot.lane.b32.xlu1 %v8387_v40, %s7213_s12  ;;  %1259 = vrot.lane.b32.xlu0 %v8389_v29, %s7213_s12 }
 0x293   : > { %4162 = vmatpush1.bf16.msra.mxu0 %v3222_v47 }
 0x294   : > { %v3206_v33 = vpop.permute.xlu1 %3205  ;;  %v8545_v23 = vpop.permute.xlu0 %3193 }
 0x295   : > { %11466 = vst [vmem:[#allocation38_spill] sm:$0xff] %v8545_v23  ;;  %v3225_v50 = vsel %vm3221_vm0, %v3192_v20, %v8545_v23  ;;  %v3433_v23 = vld [vmem:[%s7288_s8 + $0x50] sm:$0xff] }
 0x296   : > { %1265 = vrot.lane.b32.xlu1 %v8397_v38, %s7213_s12  ;;  %1263 = vrot.lane.b32.xlu0 %v8399_v39, %s7213_s12 }
 0x297   : > { %4373 = vmatprep.subr.bf16.mxu1 %v3225_v50 }
 0x298   : > { %v3204_v16 = vpop.permute.xlu1 %3203  ;;  %v3208_v53 = vpop.permute.xlu0 %3207  ;;  %4374 = vmatpush1.bf16.msra.mxu1 %v3224_v34 }
 0x299   : > { %v3230_v12 = vsel %vm3221_vm0, %v3204_v16, %v3206_v33  ;;  %v3231_v47 = vsel %vm3221_vm0, %v3206_v33, %v3208_v53 }
 0x29a   : > { %1279 = vrot.lane.b32.xlu1 %v8409_v30, %s7213_s12  ;;  %1277 = vrot.lane.b32.xlu0 %v8411_v59, %s7213_s12 }
 0x29b   : > { %4163 = vmatprep.subr.bf16.mxu0 %v3231_v47 }
 0x29c   : > { %v8559_v20 = vpop.permute.xlu1 %3211  ;;  %v3210_v49 = vpop.permute.xlu0 %3209  ;;  %4164 = vmatpush1.bf16.msra.mxu0 %v3230_v12 }
 0x29d   : > { %11467 = vst [vmem:[#allocation39_spill] sm:$0xff] %v8559_v20  ;;  %v3232_v50 = vsel %vm3221_vm0, %v3208_v53, %v3210_v49  ;;  %v3233_v34 = vsel %vm3221_vm0, %v3210_v49, %v8559_v20 }
 0x29e   : > { %1283 = vrot.lane.b32.xlu1 %v8419_v42, %s7213_s12  ;;  %1281 = vrot.lane.b32.xlu0 %v8421_v10, %s7213_s12 }
 0x29f   : > { %4375 = vmatprep.subr.bf16.mxu1 %v3233_v34 }
 0x2a0   : > { %v3311_v33 = vpop.permute.xlu1 %3310  ;;  %v3309_v16 = vpop.permute.xlu0 %3308  ;;  %4376 = vmatpush1.bf16.msra.mxu1 %v3232_v50 }
 0x2a1   : > { %v3344_v47 = vsel %vm3342_vm15, %v3309_v16, %v3311_v33 }
 0x2a2   : > { %1382 = vrot.lane.b32.xlu1 %v8387_v40, %s7214_s13  ;;  %1380 = vrot.lane.b32.xlu0 %v8389_v29, %s7214_s13 }
 0x2a3   : > { %4165 = vmatprep.subr.bf16.mxu0 %v3344_v47 }
 0x2a4   : > { %v3313_v53 = vpop.permute.xlu1 %3312  ;;  %v3307_v12 = vpop.permute.xlu0 %3306 }
 0x2a5   : > { %v3345_v49 = vsel %vm3342_vm15, %v3311_v33, %v3313_v53  ;;  %v3343_v20 = vsel %vm3342_vm15, %v3307_v12, %v3309_v16 }
 0x2a6   : > { %1386 = vrot.lane.b32.xlu1 %v8397_v38, %s7214_s13  ;;  %1384 = vrot.lane.b32.xlu0 %v8399_v39, %s7214_s13 }
 0x2a7   : > { %4166 = vmatpush1.bf16.msra.mxu0 %v3343_v20 }
 0x2a8   : > { %v3327_v50 = vpop.permute.xlu1 %3326  ;;  %v8579_v34 = vpop.permute.xlu0 %3314 }
 0x2a9   : > { %11468 = vst [vmem:[#allocation40_spill] sm:$0xff] %v8579_v34  ;;  %v3346_v47 = vsel %vm3342_vm15, %v3313_v53, %v8579_v34 }
 0x2aa   : > { %1400 = vrot.lane.b32.xlu1 %v8409_v30, %s7214_s13  ;;  %1398 = vrot.lane.b32.xlu0 %v8411_v59, %s7214_s13 }
 0x2ab   : > { %4377 = vmatprep.subr.bf16.mxu1 %v3346_v47  ;;  %v3437_v47 = vld [vmem:[%s7288_s8 + $0x70] sm:$0xff] }
 0x2ac   : > { %v3325_v33 = vpop.permute.xlu1 %3324  ;;  %v3329_v16 = vpop.permute.xlu0 %3328  ;;  %4378 = vmatpush1.bf16.msra.mxu1 %v3345_v49 }
 0x2ad   : > { %v3351_v20 = vsel %vm3342_vm15, %v3325_v33, %v3327_v50  ;;  %v3352_v12 = vsel %vm3342_vm15, %v3327_v50, %v3329_v16  ;;  %v8606_v50 = vcombine.high %v3433_v23, %v3437_v47 }
 0x2ae   : > { %1404 = vrot.lane.b32.xlu1 %v8419_v42, %s7214_s13  ;;  %1402 = vrot.lane.b32.xlu0 %v8421_v10, %s7214_s13 }
 0x2af   : > { %4167 = vmatprep.subr.bf16.mxu0 %v3352_v12  ;;  %11470 = vst [vmem:[#allocation42_spill] sm:$0xff] %v8606_v50 }
 0x2b0   : > { %v8593_v53 = vpop.permute.xlu1 %3332  ;;  %v3331_v34 = vpop.permute.xlu0 %3330  ;;  %4168 = vmatpush1.bf16.msra.mxu0 %v3351_v20 }
 0x2b1   : > { %11469 = vst [vmem:[#allocation41_spill] sm:$0xff] %v8593_v53  ;;  %v3353_v43 = vsel %vm3342_vm15, %v3329_v16, %v3331_v34  ;;  %v3354_v49 = vsel %vm3342_vm15, %v3331_v34, %v8593_v53  ;;  %4190 = vmatprep.subr.bf16.mxu0 %v8349_v44  ;;  %v3858_v53 = vld [vmem:[#allocation3 + $0xd18] sm:$0xff] }
 0x2b2   : > { %1503 = vrot.lane.b32.xlu1 %v8387_v40, %s7215_s15  ;;  %1501 = vrot.lane.b32.xlu0 %v8389_v29, %s7215_s15 }
 0x2b3   : > { %4379 = vmatprep.subr.bf16.mxu1 %v3354_v49  ;;  %4170 = vmatmul.mubr.bf16.vlgmr.msra.gmra.mrb[0].mxu0 %v8347_v58 }
 0x2b4   : > { %v657_v33 = vpop.permute.xlu1 %656  ;;  %v655_v20 = vpop.permute.xlu0 %654  ;;  %4191 = vmatpush1.bf16.msra.mxu0 %v8352_v26  ;;  %4380 = vmatpush1.bf16.msra.mxu1 %v3353_v43  ;;  %v3840_v26 = vld [vmem:[#allocation3 + $0xc88] sm:$0xff] }
 0x2b5   : > { %v8611_v44 = vsel %vm680_vm1, %v7711_v45, %v655_v20  ;;  %v8614_v34 = vsel %vm680_vm1, %v655_v20, %v657_v33  ;;  %4192 = vmatprep.subr.bf16.mxu0 %v8361_v57  ;;  %4402 = vmatprep.subr.bf16.mxu1 %v8363_v48  ;;  %v8624_v45 = vcombine.low %v3433_v23, %v3437_v47  ;;  %v8629_v57 = vld [vmem:[%s7288_s8 + $0x18] sm:$0xff]  ;;  %v3839_v23 = vld [vmem:[#allocation3 + $0xc80] sm:$0xff] }
 0x2b6   : > { %1507 = vrot.lane.b32.xlu1 %v8397_v38, %s7215_s15  ;;  %1505 = vrot.lane.b32.xlu0 %v8399_v39, %s7215_s15  ;;  %v8632_v48 = vld [vmem:[%s7288_s8 + $0x38] sm:$0xff] }
 0x2b7   : > { %4382 = vmatmul.mubr.bf16.vlgmr.msra.gmra.mrb[0].mxu1 %v8347_v58  ;;  %4179 = vmatprep.mubr.bf16.mxu0 %v8606_v50  ;;  %11471 = vst [vmem:[#allocation43_spill] sm:$0xff] %v8624_v45  ;;  %v8649_v47 = vcombine.high %v8629_v57, %v8632_v48  ;;  %v3849_v58 = vld [vmem:[#allocation3 + $0xcd0] sm:$0xff] }
 0x2b8   : > { %v661_v43 = vpop.permute.xlu1 %660  ;;  %v659_v16 = vpop.permute.xlu0 %658  ;;  %4193 = vmatpush1.bf16.msra.mxu0 %v8365_v2  ;;  %4403 = vmatpush1.bf16.msra.mxu1 %v8367_v6  ;;  %v3848_v2 = vld [vmem:[#allocation3 + $0xcc8] sm:$0xff]  ;;  %v3842_v6 = vld [vmem:[#allocation3 + $0xc98] sm:$0xff] }
 0x2b9   : > { %v8635_v12 = vsel %vm680_vm1, %v657_v33, %v659_v16  ;;  %v8638_v49 = vsel %vm680_vm1, %v659_v16, %v661_v43  ;;  %4194 = vmatprep.subr.bf16.mxu0 %v3840_v26  ;;  %4404 = vmatprep.subr.bf16.mxu1 %v8378_v21  ;;  %11472 = vst [vmem:[#allocation44_spill] sm:$0xff] %v8649_v47  ;;  %v3847_v43 = vld [vmem:[#allocation3 + $0xcc0] sm:$0xff]  ;;  %v3841_v16 = vld [vmem:[#allocation3 + $0xc90] sm:$0xff] }
 0x2ba   : > { %1521 = vrot.lane.b32.xlu1 %v8409_v30, %s7215_s15  ;;  %1519 = vrot.lane.b32.xlu0 %v8411_v59, %s7215_s15 }
 0x2bb   : > { %4180 = vmatmul.mubr.bf16.gmra.mrb[4].mxu0 %v8624_v45  ;;  %4391 = vmatprep.mubr.bf16.mxu1 %v8606_v50  ;;  %v3850_v50 = vld [vmem:[#allocation3 + $0xcd8] sm:$0xff] }
 0x2bc   : > { %v675_v33 = vpop.permute.xlu1 %674  ;;  %v673_v20 = vpop.permute.xlu0 %672  ;;  %4195 = vmatpush1.bf16.msra.mxu0 %v3839_v23  ;;  %4405 = vmatpush1.bf16.msra.mxu1 %v8380_v28  ;;  %v3856_v23 = vld [vmem:[#allocation3 + $0xd08] sm:$0xff] }
 0x2bd   : > { %v8654_v21 = vsel %vm680_vm1, %v7727_v63, %v673_v20  ;;  %v8657_v26 = vsel %vm680_vm1, %v673_v20, %v675_v33  ;;  %4196 = vmatprep.subr.bf16.mxu0 %v3848_v2  ;;  %4406 = vmatprep.subr.bf16.mxu1 %v3842_v6  ;;  %v3855_v20 = vld [vmem:[#allocation3 + $0xd00] sm:$0xff] }
 0x2be   : > { %1525 = vrot.lane.b32.xlu1 %v8419_v42, %s7215_s15  ;;  %1523 = vrot.lane.b32.xlu0 %v8421_v10, %s7215_s15 }
 0x2bf   : > { %4392 = vmatmul.mubr.bf16.gmra.mrb[4].mxu1 %v8624_v45  ;;  %4222 = vmatprep.mubr.bf16.mxu0 %v8649_v47  ;;  %v3864_v45 = vld [vmem:[#allocation3 + $0xd48] sm:$0xff] }
 0x2c0   : > { %v679_v63 = vpop.permute.xlu1 %678  ;;  %v677_v28 = vpop.permute.xlu0 %676  ;;  %4197 = vmatpush1.bf16.msra.mxu0 %v3847_v43  ;;  %4407 = vmatpush1.bf16.msra.mxu1 %v3841_v16 }
 0x2c1   : > { %v8666_v2 = vsel %vm680_vm1, %v675_v33, %v677_v28  ;;  %v8669_v6 = vsel %vm680_vm1, %v677_v28, %v679_v63  ;;  %4198 = vmatprep.subr.bf16.mxu0 %v3856_v23  ;;  %4408 = vmatprep.subr.bf16.mxu1 %v3850_v50  ;;  %v3857_v23 = vld [vmem:[#allocation3 + $0xd10] sm:$0xff]  ;;  %v3866_v63 = vld [vmem:[#allocation3 + $0xd58] sm:$0xff]  ;;  %vm11494_vm1 = vcmask 195584  }
 0x2c2   : > { %1624 = vrot.lane.b32.xlu1 %v8387_v40, %s7216_s16  ;;  %1622 = vrot.lane.b32.xlu0 %v8389_v29, %s7216_s16  ;;  %v3863_v40 = vld [vmem:[#allocation3 + $0xd40] sm:$0xff]  ;;  %v3872_v29 = vld [vmem:[#allocation3 + $0xd88] sm:$0xff] }
 0x2c3   : > { %4434 = vmatprep.mubr.bf16.mxu1 %v8649_v47 }
 0x2c4   : > { %v778_v43 = vpop.permute.xlu1 %777  ;;  %v776_v33 = vpop.permute.xlu0 %775  ;;  %4199 = vmatpush1.bf16.msra.mxu0 %v3855_v20  ;;  %4409 = vmatpush1.bf16.msra.mxu1 %v3849_v58  ;;  %v3865_v20 = vld [vmem:[#allocation3 + $0xd50] sm:$0xff] }
 0x2c5   : > { %v8678_v16 = vsel %vm801_vm2, %v7753_v13, %v776_v33  ;;  %v8681_v50 = vsel %vm801_vm2, %v776_v33, %v778_v43  ;;  %4200 = vmatprep.subr.bf16.mxu0 %v3864_v45  ;;  %4410 = vmatprep.subr.bf16.mxu1 %v3858_v53  ;;  %v3871_v53 = vld [vmem:[#allocation3 + $0xd80] sm:$0xff] }
 0x2c6   : > { %1628 = vrot.lane.b32.xlu1 %v8397_v38, %s7216_s16  ;;  %1626 = vrot.lane.b32.xlu0 %v8399_v39, %s7216_s16  ;;  %v3880_v38 = vld [vmem:[#allocation3 + $0xdc8] sm:$0xff]  ;;  %v3874_v39 = vld [vmem:[#allocation3 + $0xd98] sm:$0xff] }
 0x2c8   : > { %v782_v58 = vpop.permute.xlu1 %781  ;;  %v780_v28 = vpop.permute.xlu0 %779  ;;  %4201 = vmatpush1.bf16.msra.mxu0 %v3863_v40  ;;  %4411 = vmatpush1.bf16.msra.mxu1 %v3857_v23 }
 0x2c9   : > { %v8688_v13 = vsel %vm801_vm2, %v778_v43, %v780_v28  ;;  %v8691_v45 = vsel %vm801_vm2, %v780_v28, %v782_v58  ;;  %4202 = vmatprep.subr.bf16.mxu0 %v3872_v29  ;;  %4412 = vmatprep.subr.bf16.mxu1 %v3866_v63  ;;  %v3879_v29 = vld [vmem:[#allocation3 + $0xdc0] sm:$0xff]  ;;  %v3882_v63 = vld [vmem:[#allocation3 + $0xdd8] sm:$0xff] }
 0x2ca   : > { %1642 = vrot.lane.b32.xlu1 %v8409_v30, %s7216_s16  ;;  %1640 = vrot.lane.b32.xlu0 %v8411_v59, %s7216_s16  ;;  %v3873_v30 = vld [vmem:[#allocation3 + $0xd90] sm:$0xff]  ;;  %v3888_v59 = vld [vmem:[#allocation3 + $0xe08] sm:$0xff]  ;;  %v8708_v58 = vld [vmem:[#allocation2 + $0x30] sm:$0xff] }
 0x2cb   : > { %v8710_v28 = vld [vmem:[#allocation2 + $0x28] sm:$0xff] }
 0x2cc   : > { %v796_v33 = vpop.permute.xlu1 %795  ;;  %v794_v40 = vpop.permute.xlu0 %793  ;;  %4203 = vmatpush1.bf16.msra.mxu0 %v3871_v53  ;;  %4413 = vmatpush1.bf16.msra.mxu1 %v3865_v20 }
 0x2cd   : > { %v8699_v43 = vsel %vm801_vm2, %v7767_v19, %v794_v40  ;;  %v8702_v23 = vsel %vm801_vm2, %v794_v40, %v796_v33  ;;  %4204 = vmatprep.subr.bf16.mxu0 %v3880_v38  ;;  %4414 = vmatprep.subr.bf16.mxu1 %v3874_v39  ;;  %v3896_v39 = vld [vmem:[#allocation3 + $0xe48] sm:$0xff]  ;;  %v3890_v40 = vld [vmem:[#allocation3 + $0xe18] sm:$0xff] }
 0x2ce   : > { %1646 = vrot.lane.b32.xlu1 %v8419_v42, %s7216_s16  ;;  %1644 = vrot.lane.b32.xlu0 %v8421_v10, %s7216_s16  ;;  %v3887_v42 = vld [vmem:[#allocation3 + $0xe00] sm:$0xff]  ;;  %v3881_v10 = vld [vmem:[#allocation3 + $0xdd0] sm:$0xff] }
 0x2d0   : > { %v800_v19 = vpop.permute.xlu1 %799  ;;  %v798_v53 = vpop.permute.xlu0 %797  ;;  %4205 = vmatpush1.bf16.msra.mxu0 %v3879_v29  ;;  %4415 = vmatpush1.bf16.msra.mxu1 %v3873_v30  ;;  %v8722_v29 = vld [vmem:[#allocation2 + $0x40] sm:$0xff]  ;;  %v8724_v30 = vld [vmem:[#allocation2 + $0x38] sm:$0xff] }
 0x2d1   : > { %v8713_v20 = vsel %vm801_vm2, %v796_v33, %v798_v53  ;;  %v8716_v38 = vsel %vm801_vm2, %v798_v53, %v800_v19  ;;  %4206 = vmatprep.subr.bf16.mxu0 %v3888_v59  ;;  %4416 = vmatprep.subr.bf16.mxu1 %v3882_v63  ;;  %v3895_v19 = vld [vmem:[#allocation3 + $0xe40] sm:$0xff]  ;;  %v3889_v53 = vld [vmem:[#allocation3 + $0xe10] sm:$0xff]  ;;  %vm11495_vm2 = vmmov %vm11494_vm1 }
 0x2d2   : > { %1745 = vrot.lane.b32.xlu1 %v8708_v58, %s7217_s17  ;;  %1743 = vrot.lane.b32.xlu0 %v8710_v28, %s7217_s17 }
 0x2d4   : > { %v899_v33 = vpop.permute.xlu1 %898  ;;  %v897_v47 = vpop.permute.xlu0 %896  ;;  %4207 = vmatpush1.bf16.msra.mxu0 %v3887_v42  ;;  %4417 = vmatpush1.bf16.msra.mxu1 %v3881_v10  ;;  %v3898_v42 = vld [vmem:[#allocation3 + $0xe58] sm:$0xff]  ;;  %v8737_v10 = vld [vmem:[#allocation2 + $0x78] sm:$0xff] }
 0x2d5   : > { %v8728_v59 = vsel %vm922_vm3, %v7787_v31, %v897_v47  ;;  %v8731_v63 = vsel %vm922_vm3, %v897_v47, %v899_v33  ;;  %4208 = vmatprep.subr.bf16.mxu0 %v3896_v39  ;;  %4418 = vmatprep.subr.bf16.mxu1 %v3890_v40  ;;  %v3903_v40 = vld [vmem:[#allocation3 + $0xe80] sm:$0xff] }
 0x2d6   : > { %1749 = vrot.lane.b32.xlu1 %v8722_v29, %s7217_s17  ;;  %1747 = vrot.lane.b32.xlu0 %v8724_v30, %s7217_s17 }
 0x2d8   : > { %v903_v31 = vpop.permute.xlu1 %902  ;;  %v901_v3 = vpop.permute.xlu0 %900  ;;  %4209 = vmatpush1.bf16.msra.mxu0 %v3895_v19  ;;  %4419 = vmatpush1.bf16.msra.mxu1 %v3889_v53  ;;  %v8751_v19 = vld [vmem:[#allocation2 + $0x88] sm:$0xff]  ;;  %v8753_v53 = vld [vmem:[#allocation2 + $0x80] sm:$0xff] }
 0x2d9   : > { %v8742_v47 = vsel %vm922_vm3, %v899_v33, %v901_v3  ;;  %v8745_v39 = vsel %vm922_vm3, %v901_v3, %v903_v31  ;;  %4210 = vmatprep.subr.bf16.mxu0 %v3904_v22  ;;  %4420 = vmatprep.subr.bf16.mxu1 %v3898_v42  ;;  %v3911_v42 = vld [vmem:[#allocation3 + $0xec0] sm:$0xff]  ;;  %v3905_v31 = vld [vmem:[#allocation3 + $0xe90] sm:$0xff] }
 0x2da   : > { %1763 = vrot.lane.b32.xlu1 %v8737_v10, %s7217_s17  ;;  %1761 = vrot.lane.b32.xlu0 %v8739_v24, %s7217_s17 }
 0x2dc   : > { %v917_v33 = vpop.permute.xlu1 %916  ;;  %v915_v54 = vpop.permute.xlu0 %914  ;;  %4211 = vmatpush1.bf16.msra.mxu0 %v3903_v40  ;;  %4421 = vmatpush1.bf16.msra.mxu1 %v3897_v60  ;;  %v3914_v40 = vld [vmem:[#allocation3 + $0xed8] sm:$0xff] }
 0x2dd   : > { %v8757_v22 = vsel %vm922_vm3, %v7801_v37, %v915_v54  ;;  %v8760_v3 = vsel %vm922_vm3, %v915_v54, %v917_v33  ;;  %4212 = vmatprep.subr.bf16.mxu0 %v3912_v62  ;;  %4422 = vmatprep.subr.bf16.mxu1 %v3906_v32  ;;  %v3919_v32 = vld [vmem:[#allocation3 + $0xf00] sm:$0xff]  ;;  %v3913_v62 = vld [vmem:[#allocation3 + $0xed0] sm:$0xff] }
 0x2de   : > { %1767 = vrot.lane.b32.xlu1 %v8751_v19, %s7217_s17  ;;  %1765 = vrot.lane.b32.xlu0 %v8753_v53, %s7217_s17 }
 0x2e0   : > { %v921_v60 = vpop.permute.xlu1 %920  ;;  %v919_v0 = vpop.permute.xlu0 %918  ;;  %4213 = vmatpush1.bf16.msra.mxu0 %v3911_v42  ;;  %4423 = vmatpush1.bf16.msra.mxu1 %v3905_v31 }
 0x2e1   : > { %v8767_v37 = vsel %vm922_vm3, %v917_v33, %v919_v0  ;;  %v8770_v54 = vsel %vm922_vm3, %v919_v0, %v921_v60  ;;  %4214 = vmatprep.subr.bf16.mxu0 %v3920_v14  ;;  %4424 = vmatprep.subr.bf16.mxu1 %v3914_v40  ;;  %v3927_v33 = vld [vmem:[#allocation3 + $0xf40] sm:$0xff]  ;;  %v3921_v40 = vld [vmem:[#allocation3 + $0xf10] sm:$0xff]  ;;  %v3936_v60 = vld [vmem:[#allocation3 + $0xf88] sm:$0xff] }
 0x2e2   : > { %1866 = vrot.lane.b32.xlu1 %v8708_v58, %s7218_s18  ;;  %1864 = vrot.lane.b32.xlu0 %v8710_v28, %s7218_s18  ;;  %vm11496_vm3 = vmmov %vm11494_vm1 }
 0x2e4   : > { %v1020_v42 = vpop.permute.xlu1 %1019  ;;  %v1018_v31 = vpop.permute.xlu0 %1017  ;;  %4215 = vmatpush1.bf16.msra.mxu0 %v3919_v32  ;;  %4425 = vmatpush1.bf16.msra.mxu1 %v3913_v62  ;;  %v3930_v32 = vld [vmem:[#allocation3 + $0xf58] sm:$0xff] }
 0x2e5   : > { %v8778_v0 = vsel %vm1043_vm4, %v7821_v55, %v1018_v31  ;;  %v8781_v14 = vsel %vm1043_vm4, %v1018_v31, %v1020_v42  ;;  %4216 = vmatprep.subr.bf16.mxu0 %v3928_v27  ;;  %4426 = vmatprep.subr.bf16.mxu1 %v3922_v17  ;;  %v3935_v17 = vld [vmem:[#allocation3 + $0xf80] sm:$0xff]  ;;  %v3929_v31 = vld [vmem:[#allocation3 + $0xf50] sm:$0xff] }
 0x2e6   : > { %1870 = vrot.lane.b32.xlu1 %v8722_v29, %s7218_s18  ;;  %1868 = vrot.lane.b32.xlu0 %v8724_v30, %s7218_s18 }
 0x2e8   : > { %v1024_v62 = vpop.permute.xlu1 %1023  ;;  %v1022_v56 = vpop.permute.xlu0 %1021  ;;  %4217 = vmatpush1.bf16.msra.mxu0 %v3927_v33  ;;  %4427 = vmatpush1.bf16.msra.mxu1 %v3921_v40 }
 0x2e9   : > { %v8788_v55 = vsel %vm1043_vm4, %v1020_v42, %v1022_v56  ;;  %v8791_v27 = vsel %vm1043_vm4, %v1022_v56, %v1024_v62  ;;  %4218 = vmatprep.subr.bf16.mxu0 %v3936_v60  ;;  %4428 = vmatprep.subr.bf16.mxu1 %v3930_v32  ;;  %v3943_v60 = vld [vmem:[#allocation3 + $0xfc0] sm:$0xff]  ;;  %v3937_v32 = vld [vmem:[#allocation3 + $0xf90] sm:$0xff]  ;;  %v3946_v62 = vld [vmem:[#allocation3 + $0xfd8] sm:$0xff] }
 0x2ea   : > { %1884 = vrot.lane.b32.xlu1 %v8737_v10, %s7218_s18  ;;  %1882 = vrot.lane.b32.xlu0 %v8739_v24, %s7218_s18 }
 0x2ec   : > { %v1038_v33 = vpop.permute.xlu1 %1037  ;;  %v1036_v40 = vpop.permute.xlu0 %1035  ;;  %4219 = vmatpush1.bf16.msra.mxu0 %v3935_v17  ;;  %4429 = vmatpush1.bf16.msra.mxu1 %v3929_v31  ;;  %v8810_v17 = vcombine.low %v8629_v57, %v8632_v48  ;;  %v3443_v57 = vld [vmem:[#allocation3 + $0x20] sm:$0xff] }
 0x2ed   : > { %v8799_v56 = vsel %vm1043_vm4, %v7835_v5, %v1036_v40  ;;  %v8802_v42 = vsel %vm1043_vm4, %v1036_v40, %v1038_v33  ;;  %4220 = vmatprep.subr.bf16.mxu0 %v3944_v41  ;;  %4430 = vmatprep.subr.bf16.mxu1 %v3938_v52  ;;  %v3444_v40 = vld [vmem:[#allocation3 + $0x28] sm:$0xff] }
 0x2ee   : > { %1888 = vrot.lane.b32.xlu1 %v8751_v19, %s7218_s18  ;;  %1886 = vrot.lane.b32.xlu0 %v8753_v53, %s7218_s18  ;;  %v3434_v41 = vld [vmem:[%s7288_s8 + $0x58] sm:$0xff] }
 0x2ef   : > { %v3438_v52 = vld [vmem:[%s7288_s8 + $0x78] sm:$0xff]  ;;  %s11478_s8 = smov 22  }
 0x2f0   : > { %v1042_v5 = vpop.permute.xlu1 %1041  ;;  %v1040_v31 = vpop.permute.xlu0 %1039  ;;  %4221 = vmatpush1.bf16.msra.mxu0 %v3943_v60  ;;  %4431 = vmatpush1.bf16.msra.mxu1 %v3937_v32  ;;  %v8825_v48 = vcombine.high %v3434_v41, %v3438_v52  ;;  %v3452_v32 = vld [vmem:[#allocation3 + $0x68] sm:$0xff] }
 0x2f1   : > { %v8815_v18 = vsel %vm1043_vm4, %v1038_v33, %v1040_v31  ;;  %v8818_v11 = vsel %vm1043_vm4, %v1040_v31, %v1042_v5  ;;  %4455 = vmatprep.subr.bf16.mxu0 %v3444_v40  ;;  %4432 = vmatprep.subr.bf16.mxu1 %v3946_v62  ;;  %v3446_v5 = vld [vmem:[#allocation3 + $0x38] sm:$0xff]  ;;  %v3445_v40 = vld [vmem:[#allocation3 + $0x30] sm:$0xff]  ;;  %vm11497_vm4 = vmmov %vm11494_vm1 }
 0x2f2   : > { %1987 = vrot.lane.b32.xlu1 %v8708_v58, %s7219_s19  ;;  %1985 = vrot.lane.b32.xlu0 %v8710_v28, %s7219_s19 }
 0x2f3   : > { %4223 = vmatmul.mubr.bf16.vlgmr.msra.gmra.mrb[0].mxu0 %v8810_v17 }
 0x2f4   : > { %v1141_v60 = vpop.permute.xlu1 %1140  ;;  %v1139_v33 = vpop.permute.xlu0 %1138  ;;  %4433 = vmatpush1.bf16.msra.mxu1 %v3945_v8  ;;  %4456 = vmatpush1.bf16.msra.mxu0 %v3443_v57  ;;  %v3451_v8 = vld [vmem:[#allocation3 + $0x60] sm:$0xff]  ;;  %v8840_v57 = vcombine.low %v3434_v41, %v3438_v52  ;;  %v3453_v41 = vld [vmem:[#allocation3 + $0x70] sm:$0xff] }
 0x2f5   : > { %v8829_v62 = vsel %vm1164_vm5, %v7855_v61, %v1139_v33  ;;  %v8832_v31 = vsel %vm1164_vm5, %v1139_v33, %v1141_v60  ;;  %4457 = vmatprep.subr.bf16.mxu0 %v3452_v32  ;;  %4667 = vmatprep.subr.bf16.mxu1 %v3446_v5  ;;  %v3454_v33 = vld [vmem:[#allocation3 + $0x78] sm:$0xff] }
 0x2f6   : > { %1991 = vrot.lane.b32.xlu1 %v8722_v29, %s7219_s19  ;;  %1989 = vrot.lane.b32.xlu0 %v8724_v30, %s7219_s19 }
 0x2f7   : > { %4435 = vmatmul.mubr.bf16.vlgmr.msra.gmra.mrb[0].mxu1 %v8810_v17  ;;  %4232 = vmatprep.mubr.bf16.mxu0 %v8825_v48 }
 0x2f8   : > { %v1145_v61 = vpop.permute.xlu1 %1144  ;;  %v1143_v7 = vpop.permute.xlu0 %1142  ;;  %4458 = vmatpush1.bf16.msra.mxu0 %v3451_v8  ;;  %4668 = vmatpush1.bf16.msra.mxu1 %v3445_v40 }
 0x2f9   : > { %v8843_v32 = vsel %vm1164_vm5, %v1141_v60, %v1143_v7  ;;  %v8846_v5 = vsel %vm1164_vm5, %v1143_v7, %v1145_v61  ;;  %4459 = vmatprep.subr.bf16.mxu0 %v8614_v34  ;;  %4669 = vmatprep.subr.bf16.mxu1 %v3454_v33 }
 0x2fa   : > { %2005 = vrot.lane.b32.xlu1 %v8737_v10, %s7219_s19  ;;  %2003 = vrot.lane.b32.xlu0 %v8739_v24, %s7219_s19 }
 0x2fb   : > { %4233 = vmatmul.mubr.bf16.gmra.mrb[4].mxu0 %v8840_v57  ;;  %4444 = vmatprep.mubr.bf16.mxu1 %v8825_v48 }
 0x2fc   : > { %v1159_v52 = vpop.permute.xlu1 %1158  ;;  %v1157_v60 = vpop.permute.xlu0 %1156  ;;  %4460 = vmatpush1.bf16.msra.mxu0 %v8611_v44  ;;  %4670 = vmatpush1.bf16.msra.mxu1 %v3453_v41 }
 0x2fd   : > { %v8858_v7 = vsel %vm1164_vm5, %v7871_v51, %v1157_v60  ;;  %v8861_v34 = vsel %vm1164_vm5, %v1157_v60, %v1159_v52  ;;  %4461 = vmatprep.subr.bf16.mxu0 %v8657_v26  ;;  %4671 = vmatprep.subr.bf16.mxu1 %v8638_v49 }
 0x2fe   : > { %2009 = vrot.lane.b32.xlu1 %v8751_v19, %s7219_s19  ;;  %2007 = vrot.lane.b32.xlu0 %v8753_v53, %s7219_s19 }
 0x2ff   : > { %4445 = vmatmul.mubr.bf16.gmra.mrb[4].mxu1 %v8840_v57  ;;  %4487 = vmatprep.mubr.bf16.mxu0 %v7729_v1 }
 0x300   : > { %v1163_v44 = vpop.permute.xlu1 %1162  ;;  %v1161_v51 = vpop.permute.xlu0 %1160  ;;  %4462 = vmatpush1.bf16.msra.mxu0 %v8654_v21  ;;  %4672 = vmatpush1.bf16.msra.mxu1 %v8635_v12 }
 0x301   : > { %v8874_v26 = vsel %vm1164_vm5, %v1159_v52, %v1161_v51  ;;  %v8877_v49 = vsel %vm1164_vm5, %v1161_v51, %v1163_v44  ;;  %4463 = vmatprep.subr.bf16.mxu0 %v8681_v50  ;;  %4673 = vmatprep.subr.bf16.mxu1 %v8669_v6  ;;  %vm11499_vm5 = vmmov %vm11494_vm1 }
 0x302   : > { %2108 = vrot.lane.b32.xlu1 %v8708_v58, %s7220_s20  ;;  %2106 = vrot.lane.b32.xlu0 %v8710_v28, %s7220_s20 }
 0x303   : > { %4699 = vmatprep.mubr.bf16.mxu1 %v7729_v1 }
 0x304   : > { %v1262_v21 = vpop.permute.xlu1 %1261  ;;  %v1260_v12 = vpop.permute.xlu0 %1259  ;;  %4464 = vmatpush1.bf16.msra.mxu0 %v8678_v16  ;;  %4674 = vmatpush1.bf16.msra.mxu1 %v8666_v2 }
 0x305   : > { %v8890_v8 = vsel %vm1285_vm6, %v7903_v35, %v1260_v12  ;;  %v8893_v6 = vsel %vm1285_vm6, %v1260_v12, %v1262_v21  ;;  %4465 = vmatprep.subr.bf16.mxu0 %v8702_v23  ;;  %4675 = vmatprep.subr.bf16.mxu1 %v8691_v45 }
 0x306   : > { %2112 = vrot.lane.b32.xlu1 %v8722_v29, %s7220_s20  ;;  %2110 = vrot.lane.b32.xlu0 %v8724_v30, %s7220_s20 }
 0x308   : > { %v1266_v1 = vpop.permute.xlu1 %1265  ;;  %v1264_v16 = vpop.permute.xlu0 %1263  ;;  %4466 = vmatpush1.bf16.msra.mxu0 %v8699_v43  ;;  %4676 = vmatpush1.bf16.msra.mxu1 %v8688_v13 }
 0x309   : > { %v8904_v35 = vsel %vm1285_vm6, %v1262_v21, %v1264_v16  ;;  %v8907_v2 = vsel %vm1285_vm6, %v1264_v16, %v1266_v1  ;;  %4467 = vmatprep.subr.bf16.mxu0 %v8731_v63  ;;  %4677 = vmatprep.subr.bf16.mxu1 %v8716_v38  ;;  %v11476_v1 = vld [vmem:[#allocation7_spill] sm:$0xff] }
 0x30a   : > { %2126 = vrot.lane.b32.xlu1 %v8737_v10, %s7220_s20  ;;  %2124 = vrot.lane.b32.xlu0 %v8739_v24, %s7220_s20 }
 0x30c   : > { %v1280_v50 = vpop.permute.xlu1 %1279  ;;  %v1278_v45 = vpop.permute.xlu0 %1277  ;;  %4468 = vmatpush1.bf16.msra.mxu0 %v8728_v59  ;;  %4678 = vmatpush1.bf16.msra.mxu1 %v8713_v20 }
 0x30d   : > { %v8919_v13 = vsel %vm1285_vm6, %v7923_v46, %v1278_v45  ;;  %v1299_v43 = vsel %vm1285_vm6, %v1278_v45, %v1280_v50  ;;  %4469 = vmatprep.subr.bf16.mxu0 %v8760_v3  ;;  %4679 = vmatprep.subr.bf16.mxu1 %v8745_v39 }
 0x30e   : > { %2130 = vrot.lane.b32.xlu1 %v8751_v19, %s7220_s20  ;;  %2128 = vrot.lane.b32.xlu0 %v8753_v53, %s7220_s20 }
 0x310   : > { %v1284_v23 = vpop.permute.xlu1 %1283  ;;  %v1282_v38 = vpop.permute.xlu0 %1281  ;;  %4470 = vmatpush1.bf16.msra.mxu0 %v8757_v22  ;;  %4680 = vmatpush1.bf16.msra.mxu1 %v8742_v47 }
 0x311   : > { %v8931_v46 = vsel %vm1285_vm6, %v1280_v50, %v1282_v38  ;;  %v1301_v20 = vsel %vm1285_vm6, %v1282_v38, %v1284_v23  ;;  %4471 = vmatprep.subr.bf16.mxu0 %v8781_v14  ;;  %4681 = vmatprep.subr.bf16.mxu1 %v8770_v54  ;;  %vm11500_vm6 = vmmov %vm11494_vm1 }
 0x312   : > { %2229 = vrot.lane.b32.xlu1 %v8708_v58, %s7221_s21  ;;  %2227 = vrot.lane.b32.xlu0 %v8710_v28, %s7221_s21 }
 0x314   : > { %v1383_v59 = vpop.permute.xlu1 %1382  ;;  %v1381_v63 = vpop.permute.xlu0 %1380  ;;  %4472 = vmatpush1.bf16.msra.mxu0 %v8778_v0  ;;  %4682 = vmatpush1.bf16.msra.mxu1 %v8767_v37 }
 0x315   : > { %v1411_v47 = vsel %vm1406_vm7, %v7943_v9, %v1381_v63  ;;  %v1412_v39 = vsel %vm1406_vm7, %v1381_v63, %v1383_v59  ;;  %4473 = vmatprep.subr.bf16.mxu0 %v8802_v42  ;;  %4683 = vmatprep.subr.bf16.mxu1 %v8791_v27  ;;  %v9063_v63 = vld [vmem:[#allocation2 + $0x78] sm:$0xff] }
 0x316   : > { %2233 = vrot.lane.b32.xlu1 %v8722_v29, %s7221_s21  ;;  %2231 = vrot.lane.b32.xlu0 %v8724_v30, %s7221_s21 }
 0x318   : > { %v1387_v22 = vpop.permute.xlu1 %1386  ;;  %v1385_v3 = vpop.permute.xlu0 %1384  ;;  %4474 = vmatpush1.bf16.msra.mxu0 %v8799_v56  ;;  %4684 = vmatpush1.bf16.msra.mxu1 %v8788_v55 }
 0x319   : > { %v1413_v9 = vsel %vm1406_vm7, %v1383_v59, %v1385_v3  ;;  %v1414_v37 = vsel %vm1406_vm7, %v1385_v3, %v1387_v22  ;;  %4475 = vmatprep.subr.bf16.mxu0 %v8832_v31  ;;  %4685 = vmatprep.subr.bf16.mxu1 %v8818_v11 }
 0x31a   : > { %2247 = vrot.lane.b32.xlu1 %v8737_v10, %s7221_s21  ;;  %2245 = vrot.lane.b32.xlu0 %v8739_v24, %s7221_s21 }
 0x31c   : > { %v1401_v54 = vpop.permute.xlu1 %1400  ;;  %v1399_v0 = vpop.permute.xlu0 %1398  ;;  %4476 = vmatpush1.bf16.msra.mxu0 %v8829_v62  ;;  %4686 = vmatpush1.bf16.msra.mxu1 %v8815_v18 }
 0x31d   : > { %v1419_v14 = vsel %vm1406_vm7, %v7957_v15, %v1399_v0  ;;  %v1420_v55 = vsel %vm1406_vm7, %v1399_v0, %v1401_v54  ;;  %4477 = vmatprep.subr.bf16.mxu0 %v8861_v34  ;;  %4687 = vmatprep.subr.bf16.mxu1 %v8846_v5 }
 0x31e   : > { %2251 = vrot.lane.b32.xlu1 %v8751_v19, %s7221_s21  ;;  %2249 = vrot.lane.b32.xlu0 %v8753_v53, %s7221_s21 }
 0x320   : > { %v1405_v11 = vpop.permute.xlu1 %1404  ;;  %v1403_v27 = vpop.permute.xlu0 %1402  ;;  %4478 = vmatpush1.bf16.msra.mxu0 %v8858_v7  ;;  %4688 = vmatpush1.bf16.msra.mxu1 %v8843_v32 }
 0x321   : > { %v1421_v15 = vsel %vm1406_vm7, %v1401_v54, %v1403_v27  ;;  %v1422_v18 = vsel %vm1406_vm7, %v1403_v27, %v1405_v11  ;;  %4479 = vmatprep.subr.bf16.mxu0 %v8893_v6  ;;  %4689 = vmatprep.subr.bf16.mxu1 %v8877_v49  ;;  %v9075_v54 = vld [vmem:[#allocation2 + $0x80] sm:$0xff]  ;;  %vm11501_vm7 = vmmov %vm11494_vm1 }
 0x322   : > { %2350 = vrot.lane.b32.xlu1 %v8708_v58, %s7222_s22  ;;  %2348 = vrot.lane.b32.xlu0 %v8710_v28, %s7222_s22 }
 0x324   : > { %v1504_v56 = vpop.permute.xlu1 %1503  ;;  %v1502_v42 = vpop.permute.xlu0 %1501  ;;  %4480 = vmatpush1.bf16.msra.mxu0 %v8890_v8  ;;  %4690 = vmatpush1.bf16.msra.mxu1 %v8874_v26  ;;  %v11473_v26 = vld [vmem:[#allocation4_spill] sm:$0xff] }
 0x325   : > { %v1532_v62 = vsel %vm1527_vm8, %v7979_v25, %v1502_v42  ;;  %v1533_v31 = vsel %vm1527_vm8, %v1502_v42, %v1504_v56  ;;  %4481 = vmatprep.subr.bf16.mxu0 %v1299_v43  ;;  %4691 = vmatprep.subr.bf16.mxu1 %v8907_v2  ;;  %v11477_v2 = vld [vmem:[#allocation8_spill] sm:$0xff] }
 0x326   : > { %2354 = vrot.lane.b32.xlu1 %v8722_v29, %s7222_s22  ;;  %2352 = vrot.lane.b32.xlu0 %v8724_v30, %s7222_s22 }
 0x328   : > { %v1508_v40 = vpop.permute.xlu1 %1507  ;;  %v1506_v61 = vpop.permute.xlu0 %1505  ;;  %4482 = vmatpush1.bf16.msra.mxu0 %v8919_v13  ;;  %4692 = vmatpush1.bf16.msra.mxu1 %v8904_v35 }
 0x329   : > { %v1534_v33 = vsel %vm1527_vm8, %v1504_v56, %v1506_v61  ;;  %v1535_v25 = vsel %vm1527_vm8, %v1506_v61, %v1508_v40  ;;  %4483 = vmatprep.subr.bf16.mxu0 %v1412_v39  ;;  %4693 = vmatprep.subr.bf16.mxu1 %v1301_v20  ;;  %v11482_v40 = vld [vmem:[#allocation12_spill] sm:$0xff] }
 0x32a   : > { %2368 = vrot.lane.b32.xlu1 %v8737_v10, %s7222_s22  ;;  %2366 = vrot.lane.b32.xlu0 %v8739_v24, %s7222_s22 }
 0x32c   : > { %v1522_v32 = vpop.permute.xlu1 %1521  ;;  %v1520_v5 = vpop.permute.xlu0 %1519  ;;  %4484 = vmatpush1.bf16.msra.mxu0 %v1411_v47  ;;  %4694 = vmatpush1.bf16.msra.mxu1 %v8931_v46  ;;  %v11479_v46 = vld [vmem:[#allocation10_spill] sm:$0xff]  ;;  %v9065_v47 = vld [vmem:[#allocation2 + $0x70] sm:$0xff] }
 0x32d   : > { %v1540_v41 = vsel %vm1527_vm8, %v7993_v36, %v1520_v5  ;;  %v1541_v52 = vsel %vm1527_vm8, %v1520_v5, %v1522_v32  ;;  %4485 = vmatprep.subr.bf16.mxu0 %v1420_v55  ;;  %4695 = vmatprep.subr.bf16.mxu1 %v1414_v37  ;;  %v9073_v37 = vld [vmem:[#allocation2 + $0x88] sm:$0xff] }
 0x32e   : > { %2372 = vrot.lane.b32.xlu1 %v8751_v19, %s7222_s22  ;;  %2370 = vrot.lane.b32.xlu0 %v8753_v53, %s7222_s22  ;;  %v11480_v55 = vld [vmem:[#allocation11_spill] sm:$0xff] }
 0x330   : > { %v1526_v60 = vpop.permute.xlu1 %1525  ;;  %v1524_v7 = vpop.permute.xlu0 %1523  ;;  %4486 = vmatpush1.bf16.msra.mxu0 %v1419_v14  ;;  %4696 = vmatpush1.bf16.msra.mxu1 %v1413_v9 }
 0x331   : > { %v1542_v34 = vsel %vm1527_vm8, %v1522_v32, %v1524_v7  ;;  %v1543_v44 = vsel %vm1527_vm8, %v1524_v7, %v1526_v60  ;;  %4508 = vmatprep.subr.bf16.mxu0 %v1533_v31  ;;  %4697 = vmatprep.subr.bf16.mxu1 %v1422_v18  ;;  %v11483_v7 = vld [vmem:[#allocation13_spill] sm:$0xff]  ;;  %vm11502_vm8 = vmmov %vm11494_vm1 }
 0x332   : > { %2471 = vrot.lane.b32.xlu1 %v8708_v58, %s7223_s23  ;;  %2469 = vrot.lane.b32.xlu0 %v8710_v28, %s7223_s23  ;;  %v11474_v58 = vld [vmem:[#allocation5_spill] sm:$0xff] }
 0x333   : > { %4488 = vmatmul.mubr.bf16.vlgmr.msra.gmra.mrb[8].mxu0 %v7734_v4 }
 0x334   : > { %v1625_v36 = vpop.permute.xlu1 %1624  ;;  %v1623_v51 = vpop.permute.xlu0 %1622  ;;  %4509 = vmatpush1.bf16.msra.mxu0 %v1532_v62  ;;  %4698 = vmatpush1.bf16.msra.mxu1 %v1421_v15 }
 0x335   : > { %v1653_v49 = vsel %vm1648_vm9, %v11473_v26, %v1623_v51  ;;  %v1654_v21 = vsel %vm1648_vm9, %v1623_v51, %v1625_v36  ;;  %4510 = vmatprep.subr.bf16.mxu0 %v1541_v52  ;;  %4720 = vmatprep.subr.bf16.mxu1 %v1535_v25 }
 0x336   : > { %2475 = vrot.lane.b32.xlu1 %v8722_v29, %s7223_s23  ;;  %2473 = vrot.lane.b32.xlu0 %v8724_v30, %s7223_s23  ;;  %v11475_v29 = vld [vmem:[#allocation6_spill] sm:$0xff] }
 0x337   : > { %4700 = vmatmul.mubr.bf16.vlgmr.msra.gmra.mrb[8].mxu1 %v7734_v4  ;;  %4497 = vmatprep.mubr.bf16.mxu0 %v11474_v58 }
 0x338   : > { %v1629_v28 = vpop.permute.xlu1 %1628  ;;  %v1627_v12 = vpop.permute.xlu0 %1626  ;;  %4511 = vmatpush1.bf16.msra.mxu0 %v1540_v41  ;;  %4721 = vmatpush1.bf16.msra.mxu1 %v1534_v33 }
 0x339   : > { %v1655_v8 = vsel %vm1648_vm9, %v1625_v36, %v1627_v12  ;;  %v1656_v6 = vsel %vm1648_vm9, %v1627_v12, %v1629_v28  ;;  %4512 = vmatprep.subr.bf16.mxu0 %v1654_v21  ;;  %4722 = vmatprep.subr.bf16.mxu1 %v1543_v44  ;;  %v11485_v28 = vld [vmem:[#allocation14_spill] sm:$0xff] }
 0x33a   : > { %2489 = vrot.lane.b32.xlu1 %v8737_v10, %s7223_s23  ;;  %2487 = vrot.lane.b32.xlu0 %v8739_v24, %s7223_s23  ;;  %v9040_v24 = vld [vmem:[#allocation2 + $0x30] sm:$0xff]  ;;  %v9042_v10 = vld [vmem:[#allocation2 + $0x28] sm:$0xff] }
 0x33b   : > { %4498 = vmatmul.mubr.bf16.gmra.mrb[12].mxu0 %v11475_v29  ;;  %4709 = vmatprep.mubr.bf16.mxu1 %v11474_v58 }
 0x33c   : > { %v1643_v4 = vpop.permute.xlu1 %1642  ;;  %v1641_v30 = vpop.permute.xlu0 %1640  ;;  %4513 = vmatpush1.bf16.msra.mxu0 %v1653_v49  ;;  %4723 = vmatpush1.bf16.msra.mxu1 %v1542_v34 }
 0x33d   : > { %v1661_v16 = vsel %vm1648_vm9, %v11476_v1, %v1641_v30  ;;  %v1662_v35 = vsel %vm1648_vm9, %v1641_v30, %v1643_v4  ;;  %4724 = vmatprep.subr.bf16.mxu1 %v1656_v6  ;;  %4540 = vmatprep.mubr.bf16.mxu0 %v11477_v2 }
 0x33e   : > { %2493 = vrot.lane.b32.xlu1 %v8751_v19, %s7223_s23  ;;  %2491 = vrot.lane.b32.xlu0 %v8753_v53, %s7223_s23  ;;  %v9052_v19 = vld [vmem:[#allocation2 + $0x40] sm:$0xff]  ;;  %v9054_v53 = vld [vmem:[#allocation2 + $0x38] sm:$0xff] }
 0x33f   : > { %4514 = vmatprep.subr.bf16.mxu0 %v1662_v35  ;;  %4710 = vmatmul.mubr.bf16.gmra.mrb[12].mxu1 %v11475_v29  ;;  %v11486_v35 = vld [vmem:[#allocation15_spill] sm:$0xff] }
 0x340   : > { %v1647_v50 = vpop.permute.xlu1 %1646  ;;  %v1645_v45 = vpop.permute.xlu0 %1644  ;;  %4515 = vmatpush1.bf16.msra.mxu0 %v1661_v16  ;;  %4725 = vmatpush1.bf16.msra.mxu1 %v1655_v8 }
 0x341   : > { %v1663_v13 = vsel %vm1648_vm9, %v1643_v4, %v1645_v45  ;;  %v1664_v43 = vsel %vm1648_vm9, %v1645_v45, %v1647_v50  ;;  %4752 = vmatprep.mubr.bf16.mxu1 %v11477_v2  ;;  %vm11506_vm9 = vcmask 187392  }
 0x342   : > { %2592 = vrot.lane.b32.xlu1 %v9040_v24, %s11478_s8  ;;  %2590 = vrot.lane.b32.xlu0 %v9042_v10, %s11478_s8 }
 0x343   : > { %4726 = vmatprep.subr.bf16.mxu1 %v1664_v43 }
 0x344   : > { %v1746_v23 = vpop.permute.xlu1 %1745  ;;  %v1744_v38 = vpop.permute.xlu0 %1743  ;;  %4727 = vmatpush1.bf16.msra.mxu1 %v1663_v13 }
 0x345   : > { %v1774_v20 = vsel %vm1769_vm10, %v11479_v46, %v1744_v38  ;;  %v1775_v59 = vsel %vm1769_vm10, %v1744_v38, %v1746_v23 }
 0x346   : > { %2596 = vrot.lane.b32.xlu1 %v9052_v19, %s11478_s8  ;;  %2594 = vrot.lane.b32.xlu0 %v9054_v53, %s11478_s8 }
 0x347   : > { %4516 = vmatprep.subr.bf16.mxu0 %v1775_v59 }
 0x348   : > { %v1750_v39 = vpop.permute.xlu1 %1749  ;;  %v1748_v22 = vpop.permute.xlu0 %1747  ;;  %4517 = vmatpush1.bf16.msra.mxu0 %v1774_v20  ;;  %v11488_v20 = vld [vmem:[#allocation16_spill] sm:$0xff] }
 0x349   : > { %v1776_v3 = vsel %vm1769_vm10, %v1746_v23, %v1748_v22  ;;  %v1777_v9 = vsel %vm1769_vm10, %v1748_v22, %v1750_v39 }
 0x34a   : > { %2610 = vrot.lane.b32.xlu1 %v9063_v63, %s11478_s8  ;;  %2608 = vrot.lane.b32.xlu0 %v9065_v47, %s11478_s8 }
 0x34b   : > { %4728 = vmatprep.subr.bf16.mxu1 %v1777_v9 }
 0x34c   : > { %v1764_v0 = vpop.permute.xlu1 %1763  ;;  %v1762_v14 = vpop.permute.xlu0 %1761  ;;  %4729 = vmatpush1.bf16.msra.mxu1 %v1776_v3 }
 0x34d   : > { %v1782_v11 = vsel %vm1769_vm10, %v11480_v55, %v1762_v14  ;;  %v1783_v27 = vsel %vm1769_vm10, %v1762_v14, %v1764_v0 }
 0x34e   : > { %2614 = vrot.lane.b32.xlu1 %v9073_v37, %s11478_s8  ;;  %2612 = vrot.lane.b32.xlu0 %v9075_v54, %s11478_s8 }
 0x34f   : > { %4518 = vmatprep.subr.bf16.mxu0 %v1783_v27 }
 0x350   : > { %v1768_v15 = vpop.permute.xlu1 %1767  ;;  %v1766_v18 = vpop.permute.xlu0 %1765  ;;  %4519 = vmatpush1.bf16.msra.mxu0 %v1782_v11  ;;  %v11489_v11 = vld [vmem:[#allocation17_spill] sm:$0xff] }
 0x351   : > { %v1784_v56 = vsel %vm1769_vm10, %v1764_v0, %v1766_v18  ;;  %v1785_v42 = vsel %vm1769_vm10, %v1766_v18, %v1768_v15  ;;  %vm11507_vm10 = vmmov %vm11506_vm9 }
 0x352   : > { %2713 = vrot.lane.b32.xlu1 %v9040_v24, %s11481_s28  ;;  %2711 = vrot.lane.b32.xlu0 %v9042_v10, %s11481_s28 }
 0x353   : > { %4730 = vmatprep.subr.bf16.mxu1 %v1785_v42 }
 0x354   : > { %v1867_v62 = vpop.permute.xlu1 %1866  ;;  %v1865_v31 = vpop.permute.xlu0 %1864  ;;  %4731 = vmatpush1.bf16.msra.mxu1 %v1784_v56 }
 0x355   : > { %v1895_v61 = vsel %vm1890_vm11, %v11482_v40, %v1865_v31  ;;  %v1896_v33 = vsel %vm1890_vm11, %v1865_v31, %v1867_v62 }
 0x356   : > { %2717 = vrot.lane.b32.xlu1 %v9052_v19, %s11481_s28  ;;  %2715 = vrot.lane.b32.xlu0 %v9054_v53, %s11481_s28 }
 0x357   : > { %4520 = vmatprep.subr.bf16.mxu0 %v1896_v33 }
 0x358   : > { %v1871_v25 = vpop.permute.xlu1 %1870  ;;  %v1869_v32 = vpop.permute.xlu0 %1868  ;;  %4521 = vmatpush1.bf16.msra.mxu0 %v1895_v61  ;;  %v11490_v61 = vld [vmem:[#allocation18_spill] sm:$0xff] }
 0x359   : > { %v1897_v5 = vsel %vm1890_vm11, %v1867_v62, %v1869_v32  ;;  %v1898_v41 = vsel %vm1890_vm11, %v1869_v32, %v1871_v25 }
 0x35a   : > { %2731 = vrot.lane.b32.xlu1 %v9063_v63, %s11481_s28  ;;  %2729 = vrot.lane.b32.xlu0 %v9065_v47, %s11481_s28 }
 0x35b   : > { %4732 = vmatprep.subr.bf16.mxu1 %v1898_v41 }
 0x35c   : > { %v1885_v52 = vpop.permute.xlu1 %1884  ;;  %v1883_v60 = vpop.permute.xlu0 %1882  ;;  %4733 = vmatpush1.bf16.msra.mxu1 %v1897_v5 }
 0x35d   : > { %v1903_v34 = vsel %vm1890_vm11, %v11483_v7, %v1883_v60  ;;  %v1904_v44 = vsel %vm1890_vm11, %v1883_v60, %v1885_v52 }
 0x35e   : > { %2735 = vrot.lane.b32.xlu1 %v9073_v37, %s11481_s28  ;;  %2733 = vrot.lane.b32.xlu0 %v9075_v54, %s11481_s28 }
 0x35f   : > { %4522 = vmatprep.subr.bf16.mxu0 %v1904_v44 }
 0x360   : > { %v1889_v36 = vpop.permute.xlu1 %1888  ;;  %v1887_v51 = vpop.permute.xlu0 %1886  ;;  %4523 = vmatpush1.bf16.msra.mxu0 %v1903_v34  ;;  %v11491_v34 = vld [vmem:[#allocation19_spill] sm:$0xff] }
 0x361   : > { %v1905_v26 = vsel %vm1890_vm11, %v1885_v52, %v1887_v51  ;;  %v1906_v49 = vsel %vm1890_vm11, %v1887_v51, %v1889_v36  ;;  %vm11508_vm11 = vmmov %vm11506_vm9 }
 0x362   : > { %2834 = vrot.lane.b32.xlu1 %v9040_v24, %s11484_s29  ;;  %2832 = vrot.lane.b32.xlu0 %v9042_v10, %s11484_s29 }
 0x363   : > { %4734 = vmatprep.subr.bf16.mxu1 %v1906_v49 }
 0x364   : > { %v1988_v21 = vpop.permute.xlu1 %1987  ;;  %v1986_v58 = vpop.permute.xlu0 %1985  ;;  %4735 = vmatpush1.bf16.msra.mxu1 %v1905_v26 }
 0x365   : > { %v2016_v12 = vsel %vm2011_vm12, %v11485_v28, %v1986_v58  ;;  %v2017_v8 = vsel %vm2011_vm12, %v1986_v58, %v1988_v21 }
 0x366   : > { %2838 = vrot.lane.b32.xlu1 %v9052_v19, %s11484_s29  ;;  %2836 = vrot.lane.b32.xlu0 %v9054_v53, %s11484_s29 }
 0x367   : > { %4524 = vmatprep.subr.bf16.mxu0 %v2017_v8 }
 0x368   : > { %v1992_v6 = vpop.permute.xlu1 %1991  ;;  %v1990_v29 = vpop.permute.xlu0 %1989  ;;  %4525 = vmatpush1.bf16.msra.mxu0 %v2016_v12  ;;  %v11493_v12 = vld [vmem:[#allocation20_spill] sm:$0xff] }
 0x369   : > { %v2018_v4 = vsel %vm2011_vm12, %v1988_v21, %v1990_v29  ;;  %v2019_v30 = vsel %vm2011_vm12, %v1990_v29, %v1992_v6 }
 0x36a   : > { %2852 = vrot.lane.b32.xlu1 %v9063_v63, %s11484_s29  ;;  %2850 = vrot.lane.b32.xlu0 %v9065_v47, %s11484_s29 }
 0x36b   : > { %4736 = vmatprep.subr.bf16.mxu1 %v2019_v30 }
 0x36c   : > { %v2006_v1 = vpop.permute.xlu1 %2005  ;;  %v2004_v16 = vpop.permute.xlu0 %2003  ;;  %4737 = vmatpush1.bf16.msra.mxu1 %v2018_v4 }
 0x36d   : > { %v2024_v2 = vsel %vm2011_vm12, %v11486_v35, %v2004_v16  ;;  %v2025_v50 = vsel %vm2011_vm12, %v2004_v16, %v2006_v1 }
 0x36e   : > { %2856 = vrot.lane.b32.xlu1 %v9073_v37, %s11484_s29  ;;  %2854 = vrot.lane.b32.xlu0 %v9075_v54, %s11484_s29 }
 0x36f   : > { %4526 = vmatprep.subr.bf16.mxu0 %v2025_v50 }
 0x370   : > { %v2010_v45 = vpop.permute.xlu1 %2009  ;;  %v2008_v13 = vpop.permute.xlu0 %2007  ;;  %4527 = vmatpush1.bf16.msra.mxu0 %v2024_v2  ;;  %v11498_v2 = vld [vmem:[#allocation21_spill] sm:$0xff] }
 0x371   : > { %v2026_v43 = vsel %vm2011_vm12, %v2006_v1, %v2008_v13  ;;  %v2027_v23 = vsel %vm2011_vm12, %v2008_v13, %v2010_v45  ;;  %vm11509_vm12 = vmmov %vm11506_vm9 }
 0x372   : > { %2955 = vrot.lane.b32.xlu1 %v9040_v24, %s11487_s30  ;;  %2953 = vrot.lane.b32.xlu0 %v9042_v10, %s11487_s30 }
 0x373   : > { %4738 = vmatprep.subr.bf16.mxu1 %v2027_v23 }
 0x374   : > { %v2109_v38 = vpop.permute.xlu1 %2108  ;;  %v2107_v46 = vpop.permute.xlu0 %2106  ;;  %4739 = vmatpush1.bf16.msra.mxu1 %v2026_v43 }
 0x375   : > { %v2137_v59 = vsel %vm2132_vm13, %v11488_v20, %v2107_v46  ;;  %v2138_v39 = vsel %vm2132_vm13, %v2107_v46, %v2109_v38  ;;  %v9220_v46 = vld [vmem:[#allocation2 + $0x30] sm:$0xff]  ;;  %v9222_v20 = vld [vmem:[#allocation2 + $0x28] sm:$0xff] }
 0x376   : > { %2959 = vrot.lane.b32.xlu1 %v9052_v19, %s11487_s30  ;;  %2957 = vrot.lane.b32.xlu0 %v9054_v53, %s11487_s30 }
 0x377   : > { %4528 = vmatprep.subr.bf16.mxu0 %v2138_v39  ;;  %v9225_v39 = vld [vmem:[#allocation2 + $0x78] sm:$0xff] }
 0x378   : > { %v2113_v22 = vpop.permute.xlu1 %2112  ;;  %v2111_v3 = vpop.permute.xlu0 %2110  ;;  %4529 = vmatpush1.bf16.msra.mxu0 %v2137_v59  ;;  %v11503_v59 = vld [vmem:[#allocation9_spill] sm:$0xff] }
 0x379   : > { %v2139_v9 = vsel %vm2132_vm13, %v2109_v38, %v2111_v3  ;;  %v2140_v0 = vsel %vm2132_vm13, %v2111_v3, %v2113_v22 }
 0x37a   : > { %2973 = vrot.lane.b32.xlu1 %v9063_v63, %s11487_s30  ;;  %2971 = vrot.lane.b32.xlu0 %v9065_v47, %s11487_s30 }
 0x37b   : > { %4740 = vmatprep.subr.bf16.mxu1 %v2140_v0  ;;  %v9228_v0 = vld [vmem:[#allocation2 + $0x40] sm:$0xff] }
 0x37c   : > { %v2127_v14 = vpop.permute.xlu1 %2126  ;;  %v2125_v55 = vpop.permute.xlu0 %2124  ;;  %4741 = vmatpush1.bf16.msra.mxu1 %v2139_v9  ;;  %v11504_v9 = vld [vmem:[#allocation24_spill] sm:$0xff] }
 0x37d   : > { %v2145_v27 = vsel %vm2132_vm13, %v11489_v11, %v2125_v55  ;;  %v2146_v15 = vsel %vm2132_vm13, %v2125_v55, %v2127_v14  ;;  %v9240_v11 = vld [vmem:[#allocation2 + $0x38] sm:$0xff] }
 0x37e   : > { %2977 = vrot.lane.b32.xlu1 %v9073_v37, %s11487_s30  ;;  %2975 = vrot.lane.b32.xlu0 %v9075_v54, %s11487_s30 }
 0x37f   : > { %4530 = vmatprep.subr.bf16.mxu0 %v2146_v15 }
 0x380   : > { %v2131_v18 = vpop.permute.xlu1 %2130  ;;  %v2129_v56 = vpop.permute.xlu0 %2128  ;;  %4531 = vmatpush1.bf16.msra.mxu0 %v2145_v27 }
 0x381   : > { %v2147_v42 = vsel %vm2132_vm13, %v2127_v14, %v2129_v56  ;;  %v2148_v62 = vsel %vm2132_vm13, %v2129_v56, %v2131_v18  ;;  %v11505_v14 = vld [vmem:[#allocation22_spill] sm:$0xff]  ;;  %v9243_v18 = vld [vmem:[#allocation2 + $0x88] sm:$0xff]  ;;  %vm11513_vm13 = vmmov %vm11506_vm9 }
 0x382   : > { %3076 = vrot.lane.b32.xlu1 %v9040_v24, %s7228_s26  ;;  %3074 = vrot.lane.b32.xlu0 %v9042_v10, %s7228_s26 }
 0x383   : > { %4742 = vmatprep.subr.bf16.mxu1 %v2148_v62 }
 0x384   : > { %v2230_v31 = vpop.permute.xlu1 %2229  ;;  %v2228_v40 = vpop.permute.xlu0 %2227  ;;  %4743 = vmatpush1.bf16.msra.mxu1 %v2147_v42 }
 0x385   : > { %v2258_v33 = vsel %vm2253_vm14, %v11490_v61, %v2228_v40  ;;  %v2259_v25 = vsel %vm2253_vm14, %v2228_v40, %v2230_v31  ;;  %v11511_v40 = vld [vmem:[#allocation27_spill] sm:$0xff] }
 0x386   : > { %3080 = vrot.lane.b32.xlu1 %v9052_v19, %s7228_s26  ;;  %3078 = vrot.lane.b32.xlu0 %v9054_v53, %s7228_s26  ;;  %v11512_v61 = vld [vmem:[#allocation23_spill] sm:$0xff] }
 0x387   : > { %4532 = vmatprep.subr.bf16.mxu0 %v2259_v25 }
 0x388   : > { %v2234_v32 = vpop.permute.xlu1 %2233  ;;  %v2232_v5 = vpop.permute.xlu0 %2231  ;;  %4533 = vmatpush1.bf16.msra.mxu0 %v2258_v33 }
 0x389   : > { %v2260_v41 = vsel %vm2253_vm14, %v2230_v31, %v2232_v5  ;;  %v2261_v52 = vsel %vm2253_vm14, %v2232_v5, %v2234_v32 }
 0x38a   : > { %3094 = vrot.lane.b32.xlu1 %v9063_v63, %s7228_s26  ;;  %3092 = vrot.lane.b32.xlu0 %v9065_v47, %s7228_s26 }
 0x38b   : > { %4744 = vmatprep.subr.bf16.mxu1 %v2261_v52 }
 0x38c   : > { %v2248_v60 = vpop.permute.xlu1 %2247  ;;  %v2246_v7 = vpop.permute.xlu0 %2245  ;;  %4745 = vmatpush1.bf16.msra.mxu1 %v2260_v41 }
 0x38d   : > { %v2266_v44 = vsel %vm2253_vm14, %v11491_v34, %v2246_v7  ;;  %v2267_v36 = vsel %vm2253_vm14, %v2246_v7, %v2248_v60  ;;  %v4881_v7 = vlaneseq }
 0x38e   : > { %3098 = vrot.lane.b32.xlu1 %v9073_v37, %s7228_s26  ;;  %3096 = vrot.lane.b32.xlu0 %v9075_v54, %s7228_s26 }
 0x38f   : > { %4534 = vmatprep.subr.bf16.mxu0 %v2267_v36 }
 0x390   : > { %v2252_v51 = vpop.permute.xlu1 %2251  ;;  %v2250_v26 = vpop.permute.xlu0 %2249  ;;  %4535 = vmatpush1.bf16.msra.mxu0 %v2266_v44 }
 0x391   : > { %v2268_v49 = vsel %vm2253_vm14, %v2248_v60, %v2250_v26  ;;  %v2269_v21 = vsel %vm2253_vm14, %v2250_v26, %v2252_v51  ;;  %vm11514_vm14 = vmmov %vm11506_vm9  ;;  %v9271_v26 = vshrl.u32 %v4881_v7, 7 }
 0x392   : > { %3197 = vrot.lane.b32.xlu1 %v9040_v24, %s11492_s9  ;;  %3195 = vrot.lane.b32.xlu0 %v9042_v10, %s11492_s9 }
 0x393   : > { %4746 = vmatprep.subr.bf16.mxu1 %v2269_v21 }
 0x394   : > { %v2351_v58 = vpop.permute.xlu1 %2350  ;;  %v2349_v28 = vpop.permute.xlu0 %2348  ;;  %4747 = vmatpush1.bf16.msra.mxu1 %v2268_v49 }
 0x395   : > { %v2379_v8 = vsel %vm11494_vm1, %v11493_v12, %v2349_v28  ;;  %v2380_v6 = vsel %vm11495_vm2, %v2349_v28, %v2351_v58  ;;  %vm11515_vm1 = vmmov %vm11506_vm9 }
 0x396   : > { %3201 = vrot.lane.b32.xlu1 %v9052_v19, %s11492_s9  ;;  %3199 = vrot.lane.b32.xlu0 %v9054_v53, %s11492_s9  ;;  %vm11516_vm2 = vmmov %vm11515_vm1 }
 0x397   : > { %4536 = vmatprep.subr.bf16.mxu0 %v2380_v6 }
 0x398   : > { %v2355_v29 = vpop.permute.xlu1 %2354  ;;  %v2353_v4 = vpop.permute.xlu0 %2352  ;;  %4537 = vmatpush1.bf16.msra.mxu0 %v2379_v8  ;;  %v4883_v8 = vsub.s32 0, %v9271_v26 }
 0x399   : > { %v2381_v30 = vsel %vm11496_vm3, %v2351_v58, %v2353_v4  ;;  %v2382_v1 = vsel %vm11497_vm4, %v2353_v4, %v2355_v29  ;;  %vm11518_vm3 = vcmask 179200   ;;  %v11522_v58 = vld [vmem:[#allocation29_spill] sm:$0xff]  ;;  %v9280_v4 = vld [vmem:[%s11359_s6] sm:$0xff] }
 0x39a   : > { %3215 = vrot.lane.b32.xlu1 %v9063_v63, %s11492_s9  ;;  %3213 = vrot.lane.b32.xlu0 %v9065_v47, %s11492_s9  ;;  %vm11519_vm4 = vmmov %vm11518_vm3 }
 0x39b   : > { %4748 = vmatprep.subr.bf16.mxu1 %v2382_v1 }
 0x39c   : > { %v2369_v16 = vpop.permute.xlu1 %2368  ;;  %v2367_v35 = vpop.permute.xlu0 %2366  ;;  %4749 = vmatpush1.bf16.msra.mxu1 %v2381_v30  ;;  %v4887_v30 = vsub.s32 1, %v9271_v26 }
 0x39d   : > { %v2387_v50 = vsel %vm11499_vm5, %v11498_v2, %v2367_v35  ;;  %v2388_v45 = vsel %vm11500_vm6, %v2367_v35, %v2369_v16  ;;  %vm11520_vm5 = vmmov %vm11518_vm3  ;;  %v9286_v35 = vrot.slane %v9280_v4, %v4883_v8  ;;  %v4891_v2 = vsub.s32 2, %v9271_v26 }
 0x39e   : > { %3219 = vrot.lane.b32.xlu1 %v9073_v37, %s11492_s9  ;;  %3217 = vrot.lane.b32.xlu0 %v9075_v54, %s11492_s9  ;;  %vm11521_vm6 = vmmov %vm11518_vm3 }
 0x39f   : > { %4538 = vmatprep.subr.bf16.mxu0 %v2388_v45 }
 0x3a0   : > { %v2373_v13 = vpop.permute.xlu1 %2372  ;;  %v2371_v43 = vpop.permute.xlu0 %2370  ;;  %4539 = vmatpush1.bf16.msra.mxu0 %v2387_v50 }
 0x3a1   : > { %v2389_v23 = vsel %vm11501_vm7, %v2369_v16, %v2371_v43  ;;  %v2390_v38 = vsel %vm11502_vm8, %v2371_v43, %v2373_v13  ;;  %vm11523_vm7 = vmmov %vm11518_vm3  ;;  %v9290_v13 = vrot.slane %v9280_v4, %v4887_v30  ;;  %v4895_v43 = vsub.s32 3, %v9271_v26 }
 0x3a2   : > { %3318 = vrot.lane.b32.xlu1 %v9040_v24, %s7230_s27  ;;  %3316 = vrot.lane.b32.xlu0 %v9042_v10, %s7230_s27  ;;  %v9230_v24 = vld [vmem:[#allocation2 + $0x70] sm:$0xff]  ;;  %vm11524_vm8 = vmmov %vm11518_vm3 }
 0x3a3   : > { %4750 = vmatprep.subr.bf16.mxu1 %v2390_v38  ;;  %4541 = vmatmul.mubr.bf16.vlgmr.msra.gmra.mrb[8].mxu0 %v11503_v59 }
 0x3a4   : > { %v2472_v22 = vpop.permute.xlu1 %2471  ;;  %v2470_v3 = vpop.permute.xlu0 %2469  ;;  %4751 = vmatpush1.bf16.msra.mxu1 %v2389_v23  ;;  %4550 = vmatprep.mubr.bf16.mxu0 %v11504_v9  ;;  %v11527_v23 = vld [vmem:[#allocation30_spill] sm:$0xff] }
 0x3a5   : > { %v2500_v10 = vsel %vm11506_vm9, %v11505_v14, %v2470_v3  ;;  %v2501_v55 = vsel %vm11507_vm10, %v2470_v3, %v2472_v22  ;;  %vm11525_vm9 = vmmov %vm11518_vm3  ;;  %v9303_v14 = vrot.slane %v9280_v4, %v4891_v2 }
 0x3a6   : > { %3322 = vrot.lane.b32.xlu1 %v9052_v19, %s7230_s27  ;;  %3320 = vrot.lane.b32.xlu0 %v9054_v53, %s7230_s27  ;;  %v11510_v19 = vld [vmem:[#allocation25_spill] sm:$0xff]  ;;  %v9252_v53 = vld [vmem:[#allocation2 + $0x80] sm:$0xff]  ;;  %vm11526_vm10 = vmmov %vm11518_vm3 }
 0x3a7   : > { %4561 = vmatprep.subr.bf16.mxu0 %v2501_v55  ;;  %4753 = vmatmul.mubr.bf16.vlgmr.msra.gmra.mrb[8].mxu1 %v11503_v59 }
 0x3a8   : > { %v2476_v27 = vpop.permute.xlu1 %2475  ;;  %v2474_v15 = vpop.permute.xlu0 %2473  ;;  %4562 = vmatpush1.bf16.msra.mxu0 %v2500_v10  ;;  %4762 = vmatprep.mubr.bf16.mxu1 %v11504_v9 }
 0x3a9   : > { %v2502_v56 = vsel %vm11508_vm11, %v2472_v22, %v2474_v15  ;;  %v2503_v42 = vsel %vm11509_vm12, %v2474_v15, %v2476_v27  ;;  %vm11528_vm11 = vcmask 171008   ;;  %v9308_v15 = vrot.slane %v9280_v4, %v4895_v43 }
 0x3aa   : > { %3336 = vrot.lane.b32.xlu1 %v9063_v63, %s7230_s27  ;;  %3334 = vrot.lane.b32.xlu0 %v9065_v47, %s7230_s27  ;;  %vm11529_vm12 = vmmov %vm11528_vm11 }
 0x3ab   : > { %4773 = vmatprep.subr.bf16.mxu1 %v2503_v42  ;;  %4551 = vmatmul.mubr.bf16.gmra.mrb[12].mxu0 %v11510_v19 }
 0x3ac   : > { %v2490_v62 = vpop.permute.xlu1 %2489  ;;  %v2488_v31 = vpop.permute.xlu0 %2487  ;;  %4774 = vmatpush1.bf16.msra.mxu1 %v2502_v56  ;;  %4593 = vmatprep.mubr.bf16.mxu0 %v11511_v40 }
 0x3ad   : > { %v2508_v33 = vsel %vm11513_vm13, %v11512_v61, %v2488_v31  ;;  %v2509_v25 = vsel %vm11514_vm14, %v2488_v31, %v2490_v62  ;;  %vm11530_vm13 = vmmov %vm11528_vm11 }
 0x3ae   : > { %3340 = vrot.lane.b32.xlu1 %v9073_v37, %s7230_s27  ;;  %3338 = vrot.lane.b32.xlu0 %v9075_v54, %s7230_s27  ;;  %v11517_v37 = vld [vmem:[#allocation26_spill] sm:$0xff]  ;;  %vm11531_vm14 = vmmov %vm11528_vm11 }
 0x3af   : > { %4563 = vmatprep.subr.bf16.mxu0 %v2509_v25  ;;  %4763 = vmatmul.mubr.bf16.gmra.mrb[12].mxu1 %v11510_v19 }
 0x3b0   : > { %v2494_v63 = vpop.permute.xlu1 %2493  ;;  %v2492_v47 = vpop.permute.xlu0 %2491  ;;  %4564 = vmatpush1.bf16.msra.mxu0 %v2508_v33  ;;  %4805 = vmatprep.mubr.bf16.mxu1 %v11511_v40 }
 0x3b1   : > { %v2510_v32 = vsel %vm11515_vm1, %v2490_v62, %v2492_v47  ;;  %v2511_v5 = vsel %vm11516_vm2, %v2492_v47, %v2494_v63  ;;  %vm11533_vm1 = vmmov %vm11528_vm11 }
 0x3b2   : > { %4775 = vmatprep.subr.bf16.mxu1 %v2511_v5  ;;  %vm11534_vm2 = vmmov %vm11533_vm1 }
 0x3b3   : > { %4776 = vmatpush1.bf16.msra.mxu1 %v2510_v32 }
 0x3b4   : > { %v2593_v41 = vpop.permute.xlu1 %2592  ;;  %v2591_v52 = vpop.permute.xlu0 %2590 }
 0x3b5   : > { %v2621_v60 = vsel %vm11518_vm3, %v11517_v37, %v2591_v52  ;;  %v2622_v54 = vsel %vm11519_vm4, %v2591_v52, %v2593_v41  ;;  %vm11535_vm3 = vmmov %vm11533_vm1 }
 0x3b6   : > { %4565 = vmatprep.subr.bf16.mxu0 %v2622_v54  ;;  %v11532_v54 = vld [vmem:[#allocation31_spill] sm:$0xff]  ;;  %vm11536_vm4 = vmmov %vm11533_vm1 }
 0x3b7   : > { %4566 = vmatpush1.bf16.msra.mxu0 %v2621_v60 }
 0x3b8   : > { %v2597_v34 = vpop.permute.xlu1 %2596  ;;  %v2595_v44 = vpop.permute.xlu0 %2594 }
 0x3b9   : > { %v2623_v36 = vsel %vm11520_vm5, %v2593_v41, %v2595_v44  ;;  %v2624_v51 = vsel %vm11521_vm6, %v2595_v44, %v2597_v34  ;;  %vm11538_vm5 = vcmask 162816  }
 0x3ba   : > { %4777 = vmatprep.subr.bf16.mxu1 %v2624_v51  ;;  %vm11539_vm6 = vmmov %vm11538_vm5 }
 0x3bb   : > { %4778 = vmatpush1.bf16.msra.mxu1 %v2623_v36 }
 0x3bc   : > { %v2611_v49 = vpop.permute.xlu1 %2610  ;;  %v2609_v21 = vpop.permute.xlu0 %2608 }
 0x3bd   : > { %v2629_v28 = vsel %vm11523_vm7, %v11522_v58, %v2609_v21  ;;  %v2630_v12 = vsel %vm11524_vm8, %v2609_v21, %v2611_v49  ;;  %vm11540_vm7 = vmmov %vm11538_vm5 }
 0x3be   : > { %4567 = vmatprep.subr.bf16.mxu0 %v2630_v12  ;;  %vm11541_vm8 = vmmov %vm11538_vm5 }
 0x3bf   : > { %4568 = vmatpush1.bf16.msra.mxu0 %v2629_v28 }
 0x3c0   : > { %v2615_v6 = vpop.permute.xlu1 %2614  ;;  %v2613_v29 = vpop.permute.xlu0 %2612 }
 0x3c1   : > { %v2631_v1 = vsel %vm11525_vm9, %v2611_v49, %v2613_v29  ;;  %v2632_v16 = vsel %vm11526_vm10, %v2613_v29, %v2615_v6  ;;  %vm11543_vm9 = vmmov %vm11538_vm5 }
 0x3c2   : > { %4779 = vmatprep.subr.bf16.mxu1 %v2632_v16  ;;  %vm11544_vm10 = vmmov %vm11538_vm5 }
 0x3c3   : > { %4780 = vmatpush1.bf16.msra.mxu1 %v2631_v1 }
 0x3c4   : > { %v2714_v50 = vpop.permute.xlu1 %2713  ;;  %v2712_v45 = vpop.permute.xlu0 %2711 }
 0x3c5   : > { %v2742_v38 = vsel %vm11528_vm11, %v11527_v23, %v2712_v45  ;;  %v2743_v59 = vsel %vm11529_vm12, %v2712_v45, %v2714_v50  ;;  %vm11545_vm11 = vmmov %vm11538_vm5 }
 0x3c6   : > { %v9296_v22 = vpop.f32.mrb[0].mxu0  ;;  %4569 = vmatprep.subr.bf16.mxu0 %v2743_v59  ;;  %vm11546_vm12 = vmmov %vm11538_vm5 }
 0x3c7   : > { %v4921_v3 = vmul.f32 %v9286_v35, %v9296_v22  ;;  %v9300_v9 = vpop.f32.mrb[1].mxu0  ;;  %4570 = vmatpush1.bf16.msra.mxu0 %v2742_v38 }
 0x3c8   : > { %v2718_v10 = vpop.permute.xlu1 %2717  ;;  %v2716_v55 = vpop.permute.xlu0 %2715  ;;  %v4922_v27 = vmul.f32 %v9290_v13, %v9300_v9 }
 0x3c9   : > { %v2744_v56 = vsel %vm11530_vm13, %v2714_v50, %v2716_v55  ;;  %v2745_v42 = vsel %vm11531_vm14, %v2716_v55, %v2718_v10  ;;  %v4993_v19 = vmul.f32 %v4921_v3, %v9296_v22  ;;  %v9313_v62 = vpop.f32.mrb[2].mxu0  ;;  %vm11548_vm13 = vcmask 154624  }
 0x3ca   : > { %v4953_v31 = vadd.f32 %v4922_v27, %v4921_v3  ;;  %v4994_v40 = vmul.f32 %v4922_v27, %v9300_v9  ;;  %v4929_v61 = vmul.f32 %v9286_v35, %v9313_v62  ;;  %v9318_v33 = vpop.f32.mrb[3].mxu0  ;;  %v9320_v25 = vpop.f32.mrb[0].mxu1  ;;  %4781 = vmatprep.subr.bf16.mxu1 %v2745_v42  ;;  %vm11549_vm14 = vmmov %vm11548_vm13 }
 0x3cb   : > { %v4930_v63 = vmul.f32 %v9290_v13, %v9318_v33  ;;  %v4923_v47 = vmul.f32 %v9303_v14, %v9320_v25  ;;  %v9326_v32 = vpop.f32.mrb[1].mxu1  ;;  %4782 = vmatpush1.bf16.msra.mxu1 %v2744_v56 }
 0x3cc   : > { %v2732_v5 = vpop.permute.xlu1 %2731  ;;  %v2730_v41 = vpop.permute.xlu0 %2729  ;;  %v5025_v52 = vadd.f32 %v4994_v40, %v4993_v19  ;;  %v5001_v37 = vmul.f32 %v4929_v61, %v9313_v62  ;;  %v4924_v60 = vmul.f32 %v9308_v15, %v9326_v32 }
 0x3cd   : > { %v2750_v7 = vsel %vm11533_vm1, %v11532_v54, %v2730_v41  ;;  %v2751_v34 = vsel %vm11534_vm2, %v2730_v41, %v2732_v5  ;;  %v4962_v44 = vadd.f32 %v4930_v63, %v4929_v61  ;;  %v5002_v36 = vmul.f32 %v4930_v63, %v9318_v33  ;;  %v9335_v51 = vpop.f32.mrb[2].mxu1  ;;  %vm11550_vm1 = vmmov %vm11548_vm13 }
 0x3ce   : > { %v4954_v49 = vadd.f32 %v4953_v31, %v4923_v47  ;;  %v4995_v21 = vmul.f32 %v4923_v47, %v9320_v25  ;;  %v4996_v58 = vmul.f32 %v4924_v60, %v9326_v32  ;;  %v4931_v28 = vmul.f32 %v9303_v14, %v9335_v51  ;;  %v9341_v12 = vpop.f32.mrb[3].mxu1  ;;  %v9343_v8 = vpop.f32.mrb[4].mxu0  ;;  %4571 = vmatprep.subr.bf16.mxu0 %v2751_v34  ;;  %v11537_v34 = vld [vmem:[#allocation32_spill] sm:$0xff]  ;;  %vm11551_vm2 = vmmov %vm11550_vm1 }
 0x3cf   : > { %v5034_v6 = vadd.f32 %v5002_v36, %v5001_v37  ;;  %v4932_v29 = vmul.f32 %v9308_v15, %v9341_v12  ;;  %v4937_v30 = vmul.f32 %v9286_v35, %v9343_v8  ;;  %v9349_v1 = vpop.f32.mrb[5].mxu0  ;;  %4572 = vmatpush1.bf16.msra.mxu0 %v2750_v7 }
 0x3d0   : > { %v2736_v16 = vpop.permute.xlu1 %2735  ;;  %v2734_v2 = vpop.permute.xlu0 %2733  ;;  %v5026_v50 = vadd.f32 %v5025_v52, %v4995_v21  ;;  %v9351_v45 = vadd.f32 %v4954_v49, %v4924_v60  ;;  %v4963_v43 = vadd.f32 %v4962_v44, %v4931_v28  ;;  %v5003_v23 = vmul.f32 %v4931_v28, %v9335_v51 }
 0x3d1   : > { %v2752_v38 = vsel %vm11535_vm3, %v2732_v5, %v2734_v2  ;;  %v2753_v59 = vsel %vm11536_vm4, %v2734_v2, %v2736_v16  ;;  %v5004_v3 = vmul.f32 %v4932_v29, %v9341_v12  ;;  %v5009_v10 = vmul.f32 %v4937_v30, %v9343_v8  ;;  %v9358_v55 = vpop.f32.mrb[6].mxu0  ;;  %vm11553_vm3 = vmmov %vm11550_vm1 }
 0x3d2   : > { %v9360_v27 = vadd.f32 %v5026_v50, %v4996_v58  ;;  %v5035_v56 = vadd.f32 %v5034_v6, %v5003_v23  ;;  %v9362_v42 = vadd.f32 %v4963_v43, %v4932_v29  ;;  %v4938_v19 = vmul.f32 %v9290_v13, %v9349_v1  ;;  %v9366_v31 = vpop.f32.mrb[7].mxu0  ;;  %v9368_v40 = vpop.f32.mrb[4].mxu1  ;;  %4783 = vmatprep.subr.bf16.mxu1 %v2753_v59  ;;  %vm11554_vm4 = vmmov %vm11550_vm1 }
 0x3d3   : > { %v4945_v61 = vmul.f32 %v9286_v35, %v9358_v55  ;;  %v4946_v63 = vmul.f32 %v9290_v13, %v9366_v31  ;;  %v4939_v47 = vmul.f32 %v9303_v14, %v9368_v40  ;;  %v9376_v5 = vpop.f32.mrb[5].mxu1  ;;  %4784 = vmatpush1.bf16.msra.mxu1 %v2752_v38 }
 0x3d4   : > { %v2835_v41 = vpop.permute.xlu1 %2834  ;;  %v9378_v52 = vadd.f32 %v5035_v56, %v5004_v3  ;;  %v2833_v37 = vpop.permute.xlu0 %2832  ;;  %v4971_v60 = vadd.f32 %v4938_v19, %v4937_v30  ;;  %v5010_v54 = vmul.f32 %v4938_v19, %v9349_v1  ;;  %v4940_v7 = vmul.f32 %v9308_v15, %v9376_v5 }
 0x3d5   : > { %v2863_v44 = vsel %vm11538_vm5, %v11537_v34, %v2833_v37  ;;  %v2864_v36 = vsel %vm11539_vm6, %v2833_v37, %v2835_v41  ;;  %v5017_v49 = vmul.f32 %v4945_v61, %v9358_v55  ;;  %v4980_v21 = vadd.f32 %v4946_v63, %v4945_v61  ;;  %v9387_v58 = vpop.f32.mrb[6].mxu1  ;;  %vm11555_vm5 = vmmov %vm11550_vm1 }
 0x3d6   : > { %v5043_v28 = vadd.f32 %v5010_v54, %v5009_v10  ;;  %v5018_v6 = vmul.f32 %v4946_v63, %v9366_v31  ;;  %v4972_v29 = vadd.f32 %v4971_v60, %v4939_v47  ;;  %v5011_v30 = vmul.f32 %v4939_v47, %v9368_v40  ;;  %v9391_v16 = vpop.f32.mrb[7].mxu1  ;;  %4573 = vmatprep.subr.bf16.mxu0 %v2864_v36  ;;  %v11542_v36 = vld [vmem:[#allocation33_spill] sm:$0xff]  ;;  %vm11556_vm6 = vmmov %vm11550_vm1 }
 0x3d7   : > { %v5012_v2 = vmul.f32 %v4940_v7, %v9376_v5  ;;  %v4947_v50 = vmul.f32 %v9303_v14, %v9387_v58  ;;  %v4948_v43 = vmul.f32 %v9308_v15, %v9391_v16  ;;  %4574 = vmatpush1.bf16.msra.mxu0 %v2863_v44 }
 0x3d8   : > { %v2839_v23 = vpop.permute.xlu1 %2838  ;;  %v5052_v38 = vadd.f32 %v5018_v6, %v5017_v49  ;;  %v2837_v59 = vpop.permute.xlu0 %2836  ;;  %v5044_v3 = vadd.f32 %v5043_v28, %v5011_v30  ;;  %v9398_v10 = vadd.f32 %v4972_v29, %v4940_v7 }
 0x3d9   : > { %v2865_v56 = vsel %vm11540_vm7, %v2835_v41, %v2837_v59  ;;  %v2866_v19 = vsel %vm11541_vm8, %v2837_v59, %v2839_v23  ;;  %v4981_v61 = vadd.f32 %v4980_v21, %v4947_v50  ;;  %v5019_v63 = vmul.f32 %v4947_v50, %v9387_v58  ;;  %v11547_v50 = vld [vmem:[#allocation34_spill] sm:$0xff] }
 0x3da   : > { %v9403_v47 = vadd.f32 %v5044_v3, %v5012_v2  ;;  %v5020_v37 = vmul.f32 %v4948_v43, %v9391_v16  ;;  %4785 = vmatprep.subr.bf16.mxu1 %v2866_v19  ;;  %vm11558_vm7 = vcmask 23552  }
 0x3db   : > { %v5053_v60 = vadd.f32 %v5052_v38, %v5019_v63  ;;  %v9406_v54 = vadd.f32 %v4981_v61, %v4948_v43  ;;  %4786 = vmatpush1.bf16.msra.mxu1 %v2865_v56  ;;  %v11552_v63 = vld [vmem:[#allocation35_spill] sm:$0xff]  ;;  %vm11559_vm8 = vmmov %vm11558_vm7 }
 0x3dc   : > { %v2853_v34 = vpop.permute.xlu1 %2852  ;;  %v2851_v44 = vpop.permute.xlu0 %2850 }
 0x3dd   : > { %v9408_v7 = vadd.f32 %v5053_v60, %v5020_v37  ;;  %v2871_v41 = vsel %vm11543_vm9, %v11542_v36, %v2851_v44  ;;  %v2872_v49 = vsel %vm11544_vm10, %v2851_v44, %v2853_v34  ;;  %vm11560_vm9 = vmmov %vm11558_vm7 }
 0x3de   : > { %4575 = vmatprep.subr.bf16.mxu0 %v2872_v49  ;;  %vm11561_vm10 = vmmov %vm11558_vm7 }
 0x3df   : > { %4576 = vmatpush1.bf16.msra.mxu0 %v2871_v41 }
 0x3e0   : > { %v2857_v21 = vpop.permute.xlu1 %2856  ;;  %v2855_v28 = vpop.permute.xlu0 %2854 }
 0x3e1   : > { %v2873_v6 = vsel %vm11545_vm11, %v2853_v34, %v2855_v28  ;;  %v2874_v29 = vsel %vm11546_vm12, %v2855_v28, %v2857_v21  ;;  %v11557_v28 = vld [vmem:[#allocation36_spill] sm:$0xff]  ;;  %vm11563_vm11 = vmmov %vm11558_vm7 }
 0x3e2   : > { %4787 = vmatprep.subr.bf16.mxu1 %v2874_v29  ;;  %vm11564_vm12 = vmmov %vm11558_vm7 }
 0x3e3   : > { %4788 = vmatpush1.bf16.msra.mxu1 %v2873_v6 }
 0x3e4   : > { %v2956_v30 = vpop.permute.xlu1 %2955  ;;  %v2954_v2 = vpop.permute.xlu0 %2953 }
 0x3e5   : > { %v2984_v43 = vsel %vm11548_vm13, %v11547_v50, %v2954_v2  ;;  %v2985_v23 = vsel %vm11549_vm14, %v2954_v2, %v2956_v30  ;;  %vm11565_vm13 = vmmov %vm11558_vm7 }
 0x3e6   : > { %4577 = vmatprep.subr.bf16.mxu0 %v2985_v23  ;;  %vm11566_vm14 = vmmov %vm11558_vm7 }
 0x3e7   : > { %4578 = vmatpush1.bf16.msra.mxu0 %v2984_v43 }
 0x3e8   : > { %v2960_v38 = vpop.permute.xlu1 %2959  ;;  %v2958_v59 = vpop.permute.xlu0 %2957 }
 0x3e9   : > { %v2986_v3 = vsel %vm11550_vm1, %v2956_v30, %v2958_v59  ;;  %v2987_v56 = vsel %vm11551_vm2, %v2958_v59, %v2960_v38  ;;  %v11562_v59 = vld [vmem:[#allocation37_spill] sm:$0xff] }
 0x3ea   : > { %4789 = vmatprep.subr.bf16.mxu1 %v2987_v56 }
 0x3eb   : > { %4790 = vmatpush1.bf16.msra.mxu1 %v2986_v3 }
 0x3ec   : > { %v2974_v19 = vpop.permute.xlu1 %2973  ;;  %v2972_v61 = vpop.permute.xlu0 %2971 }
 0x3ed   : > { %v2992_v37 = vsel %vm11553_vm3, %v11552_v63, %v2972_v61  ;;  %v2993_v60 = vsel %vm11554_vm4, %v2972_v61, %v2974_v19 }
 0x3ee   : > { %4579 = vmatprep.subr.bf16.mxu0 %v2993_v60 }
 0x3ef   : > { %4580 = vmatpush1.bf16.msra.mxu0 %v2992_v37 }
 0x3f0   : > { %v2978_v34 = vpop.permute.xlu1 %2977  ;;  %v2976_v44 = vpop.permute.xlu0 %2975 }
 0x3f1   : > { %v2994_v36 = vsel %vm11555_vm5, %v2974_v19, %v2976_v44  ;;  %v2995_v41 = vsel %vm11556_vm6, %v2976_v44, %v2978_v34  ;;  %v11567_v44 = vld [vmem:[#allocation38_spill] sm:$0xff] }
 0x3f2   : > { %4791 = vmatprep.subr.bf16.mxu1 %v2995_v41 }
 0x3f3   : > { %4792 = vmatpush1.bf16.msra.mxu1 %v2994_v36 }
 0x3f4   : > { %v3077_v49 = vpop.permute.xlu1 %3076  ;;  %v3075_v21 = vpop.permute.xlu0 %3074 }
 0x3f5   : > { %v3105_v6 = vsel %vm11558_vm7, %v11557_v28, %v3075_v21  ;;  %v3106_v29 = vsel %vm11559_vm8, %v3075_v21, %v3077_v49 }
 0x3f6   : > { %4581 = vmatprep.subr.bf16.mxu0 %v3106_v29 }
 0x3f7   : > { %4582 = vmatpush1.bf16.msra.mxu0 %v3105_v6 }
 0x3f8   : > { %v3081_v30 = vpop.permute.xlu1 %3080  ;;  %v3079_v2 = vpop.permute.xlu0 %3078 }
 0x3f9   : > { %v3107_v50 = vsel %vm11560_vm9, %v3077_v49, %v3079_v2  ;;  %v3108_v43 = vsel %vm11561_vm10, %v3079_v2, %v3081_v30  ;;  %v11568_v2 = vld [vmem:[#allocation39_spill] sm:$0xff] }
 0x3fa   : > { %4793 = vmatprep.subr.bf16.mxu1 %v3108_v43 }
 0x3fb   : > { %4794 = vmatpush1.bf16.msra.mxu1 %v3107_v50 }
 0x3fc   : > { %v3095_v23 = vpop.permute.xlu1 %3094  ;;  %v3093_v38 = vpop.permute.xlu0 %3092 }
 0x3fd   : > { %v3113_v3 = vsel %vm11563_vm11, %v11562_v59, %v3093_v38  ;;  %v3114_v56 = vsel %vm11564_vm12, %v3093_v38, %v3095_v23 }
 0x3fe   : > { %4583 = vmatprep.subr.bf16.mxu0 %v3114_v56 }
 0x3ff   : > { %4584 = vmatpush1.bf16.msra.mxu0 %v3113_v3 }
 0x400   : > { %v3099_v19 = vpop.permute.xlu1 %3098  ;;  %v3097_v61 = vpop.permute.xlu0 %3096 }
 0x401   : > { %v3115_v63 = vsel %vm11565_vm13, %v3095_v23, %v3097_v61  ;;  %v3116_v37 = vsel %vm11566_vm14, %v3097_v61, %v3099_v19  ;;  %v11569_v61 = vld [vmem:[#allocation40_spill] sm:$0xff] }
 0x402   : > { %4795 = vmatprep.subr.bf16.mxu1 %v3116_v37 }
 0x403   : > { %4796 = vmatpush1.bf16.msra.mxu1 %v3115_v63 }
 0x404   : > { %v3198_v60 = vpop.permute.xlu1 %3197  ;;  %v3196_v34 = vpop.permute.xlu0 %3195 }
 0x405   : > { %v3226_v36 = vsel %vm3221_vm0, %v11567_v44, %v3196_v34  ;;  %v3227_v41 = vsel %vm3221_vm0, %v3196_v34, %v3198_v60 }
 0x406   : > { %4585 = vmatprep.subr.bf16.mxu0 %v3227_v41 }
 0x407   : > { %4586 = vmatpush1.bf16.msra.mxu0 %v3226_v36 }
 0x408   : > { %v3202_v49 = vpop.permute.xlu1 %3201  ;;  %v3200_v21 = vpop.permute.xlu0 %3199 }
 0x409   : > { %v3228_v28 = vsel %vm3221_vm0, %v3198_v60, %v3200_v21  ;;  %v3229_v6 = vsel %vm3221_vm0, %v3200_v21, %v3202_v49  ;;  %v11570_v21 = vld [vmem:[#allocation41_spill] sm:$0xff] }
 0x40a   : > { %4797 = vmatprep.subr.bf16.mxu1 %v3229_v6 }
 0x40b   : > { %4798 = vmatpush1.bf16.msra.mxu1 %v3228_v28 }
 0x40c   : > { %v3216_v29 = vpop.permute.xlu1 %3215  ;;  %v3214_v30 = vpop.permute.xlu0 %3213 }
 0x40d   : > { %v3234_v50 = vsel %vm3221_vm0, %v11568_v2, %v3214_v30  ;;  %v3235_v43 = vsel %vm3221_vm0, %v3214_v30, %v3216_v29 }
 0x40e   : > { %4587 = vmatprep.subr.bf16.mxu0 %v3235_v43  ;;  %v11571_v43 = vld [vmem:[#allocation28_spill] sm:$0xff] }
 0x40f   : > { %4588 = vmatpush1.bf16.msra.mxu0 %v3234_v50 }
 0x410   : > { %v3220_v23 = vpop.permute.xlu1 %3219  ;;  %v3218_v38 = vpop.permute.xlu0 %3217 }
 0x411   : > { %v3236_v59 = vsel %vm3221_vm0, %v3216_v29, %v3218_v38  ;;  %v3237_v3 = vsel %vm3221_vm0, %v3218_v38, %v3220_v23  ;;  %v3844_v23 = vld [vmem:[#allocation3 + $0xca8] sm:$0xff]  ;;  %v11572_v38 = vld [vmem:[#allocation42_spill] sm:$0xff] }
 0x412   : > { %4799 = vmatprep.subr.bf16.mxu1 %v3237_v3  ;;  %v3845_v3 = vld [vmem:[#allocation3 + $0xcb0] sm:$0xff] }
 0x413   : > { %4800 = vmatpush1.bf16.msra.mxu1 %v3236_v59  ;;  %v3852_v59 = vld [vmem:[#allocation3 + $0xce8] sm:$0xff] }
 0x414   : > { %v3319_v56 = vpop.permute.xlu1 %3318  ;;  %v3317_v19 = vpop.permute.xlu0 %3316 }
 0x415   : > { %v3347_v63 = vsel %vm3342_vm15, %v11569_v61, %v3317_v19  ;;  %v3348_v37 = vsel %vm3342_vm15, %v3317_v19, %v3319_v56  ;;  %v3853_v19 = vld [vmem:[#allocation3 + $0xcf0] sm:$0xff]  ;;  %v3868_v61 = vld [vmem:[#allocation3 + $0xd68] sm:$0xff] }
 0x416   : > { %4589 = vmatprep.subr.bf16.mxu0 %v3348_v37  ;;  %v3861_v37 = vld [vmem:[#allocation3 + $0xd30] sm:$0xff] }
 0x417   : > { %4590 = vmatpush1.bf16.msra.mxu0 %v3347_v63  ;;  %v3862_v63 = vld [vmem:[#allocation3 + $0xd38] sm:$0xff] }
 0x418   : > { %v3323_v60 = vpop.permute.xlu1 %3322  ;;  %v3321_v34 = vpop.permute.xlu0 %3320 }
 0x419   : > { %v3349_v44 = vsel %vm3342_vm15, %v3319_v56, %v3321_v34  ;;  %v3350_v36 = vsel %vm3342_vm15, %v3321_v34, %v3323_v60  ;;  %v3854_v56 = vld [vmem:[#allocation3 + $0xcf8] sm:$0xff]  ;;  %v3876_v60 = vld [vmem:[#allocation3 + $0xda8] sm:$0xff] }
 0x41a   : > { %4801 = vmatprep.subr.bf16.mxu1 %v3350_v36  ;;  %v3870_v34 = vld [vmem:[#allocation3 + $0xd78] sm:$0xff]  ;;  %v3869_v36 = vld [vmem:[#allocation3 + $0xd70] sm:$0xff] }
 0x41b   : > { %4802 = vmatpush1.bf16.msra.mxu1 %v3349_v44  ;;  %v3875_v44 = vld [vmem:[#allocation3 + $0xda0] sm:$0xff] }
 0x41c   : > { %v3337_v41 = vpop.permute.xlu1 %3336  ;;  %v3335_v49 = vpop.permute.xlu0 %3334 }
 0x41d   : > { %v3355_v28 = vsel %vm3342_vm15, %v11570_v21, %v3335_v49  ;;  %v3356_v6 = vsel %vm3342_vm15, %v3335_v49, %v3337_v41  ;;  %v3878_v49 = vld [vmem:[#allocation3 + $0xdb8] sm:$0xff]  ;;  %v3883_v21 = vld [vmem:[#allocation3 + $0xde0] sm:$0xff] }
 0x41e   : > { %4591 = vmatprep.subr.bf16.mxu0 %v3356_v6  ;;  %v3892_v6 = vld [vmem:[#allocation3 + $0xe28] sm:$0xff] }
 0x41f   : > { %4592 = vmatpush1.bf16.msra.mxu0 %v3355_v28  ;;  %v3877_v28 = vld [vmem:[#allocation3 + $0xdb0] sm:$0xff] }
 0x420   : > { %v3341_v29 = vpop.permute.xlu1 %3340  ;;  %v3339_v30 = vpop.permute.xlu0 %3338  ;;  %4614 = vmatprep.subr.bf16.mxu0 %v9220_v46  ;;  %v3843_v46 = vld [vmem:[#allocation3 + $0xca0] sm:$0xff] }
 0x421   : > { %v3357_v2 = vsel %vm3342_vm15, %v3337_v41, %v3339_v30  ;;  %v3358_v50 = vsel %vm3342_vm15, %v3339_v30, %v3341_v29  ;;  %v3884_v41 = vld [vmem:[#allocation3 + $0xde8] sm:$0xff]  ;;  %v3886_v29 = vld [vmem:[#allocation3 + $0xdf8] sm:$0xff]  ;;  %v3891_v30 = vld [vmem:[#allocation3 + $0xe20] sm:$0xff]  ;;  %vm5513_vm15 = vcmask (!%p6953_p5), 261120  }
 0x422   : > { %4803 = vmatprep.subr.bf16.mxu1 %v3358_v50  ;;  %4594 = vmatmul.mubr.bf16.vlgmr.msra.gmra.mrb[8].mxu0 %v11571_v43  ;;  %v3900_v50 = vld [vmem:[#allocation3 + $0xe68] sm:$0xff] }
 0x423   : > { %4615 = vmatpush1.bf16.msra.mxu0 %v9222_v20  ;;  %4804 = vmatpush1.bf16.msra.mxu1 %v3357_v2  ;;  %v3846_v20 = vld [vmem:[#allocation3 + $0xcb8] sm:$0xff]  ;;  %v3885_v2 = vld [vmem:[#allocation3 + $0xdf0] sm:$0xff] }
 0x424   : > { %4616 = vmatprep.subr.bf16.mxu0 %v9225_v39  ;;  %4826 = vmatprep.subr.bf16.mxu1 %v9228_v0  ;;  %v11573_v39 = vld [vmem:[#allocation43_spill] sm:$0xff]  ;;  %v3851_v0 = vld [vmem:[#allocation3 + $0xce0] sm:$0xff] }
 0x425   : > { %4603 = vmatprep.mubr.bf16.mxu0 %v11572_v38 }
 0x426   : > { %4806 = vmatmul.mubr.bf16.vlgmr.msra.gmra.mrb[8].mxu1 %v11571_v43  ;;  %v3894_v43 = vld [vmem:[#allocation3 + $0xe38] sm:$0xff] }
 0x427   : > { %4617 = vmatpush1.bf16.msra.mxu0 %v9230_v24  ;;  %4827 = vmatpush1.bf16.msra.mxu1 %v9240_v11  ;;  %v3860_v24 = vld [vmem:[#allocation3 + $0xd28] sm:$0xff]  ;;  %v11574_v11 = vld [vmem:[#allocation44_spill] sm:$0xff] }
 0x428   : > { %4618 = vmatprep.subr.bf16.mxu0 %v3844_v23  ;;  %4828 = vmatprep.subr.bf16.mxu1 %v9243_v18  ;;  %v3859_v18 = vld [vmem:[#allocation3 + $0xd20] sm:$0xff] }
 0x429   : > { %4815 = vmatprep.mubr.bf16.mxu1 %v11572_v38  ;;  %v3899_v23 = vld [vmem:[#allocation3 + $0xe60] sm:$0xff]  ;;  %v3893_v38 = vld [vmem:[#allocation3 + $0xe30] sm:$0xff] }
 0x42a   : > { %4604 = vmatmul.mubr.bf16.gmra.mrb[12].mxu0 %v11573_v39 }
 0x42b   : > { %4619 = vmatpush1.bf16.msra.mxu0 %v3843_v46  ;;  %4829 = vmatpush1.bf16.msra.mxu1 %v9252_v53  ;;  %v3867_v53 = vld [vmem:[#allocation3 + $0xd60] sm:$0xff]  ;;  %v3908_v46 = vld [vmem:[#allocation3 + $0xea8] sm:$0xff] }
 0x42c   : > { %4620 = vmatprep.subr.bf16.mxu0 %v3852_v59  ;;  %4830 = vmatprep.subr.bf16.mxu1 %v3846_v20  ;;  %v3902_v59 = vld [vmem:[#allocation3 + $0xe78] sm:$0xff]  ;;  %v3907_v20 = vld [vmem:[#allocation3 + $0xea0] sm:$0xff] }
 0x42d   : > { %4646 = vmatprep.mubr.bf16.mxu0 %v11574_v11 }
 0x42e   : > { %4816 = vmatmul.mubr.bf16.gmra.mrb[12].mxu1 %v11573_v39  ;;  %v3901_v39 = vld [vmem:[#allocation3 + $0xe70] sm:$0xff] }
 0x42f   : > { %4621 = vmatpush1.bf16.msra.mxu0 %v3851_v0  ;;  %4831 = vmatpush1.bf16.msra.mxu1 %v3845_v3  ;;  %v3916_v0 = vld [vmem:[#allocation3 + $0xee8] sm:$0xff]  ;;  %v3910_v3 = vld [vmem:[#allocation3 + $0xeb8] sm:$0xff] }
 0x430   : > { %4622 = vmatprep.subr.bf16.mxu0 %v3860_v24  ;;  %4832 = vmatprep.subr.bf16.mxu1 %v3854_v56  ;;  %v3915_v24 = vld [vmem:[#allocation3 + $0xee0] sm:$0xff]  ;;  %v3909_v56 = vld [vmem:[#allocation3 + $0xeb0] sm:$0xff] }
 0x431   : > { %4858 = vmatprep.mubr.bf16.mxu1 %v11574_v11  ;;  %v3924_v11 = vld [vmem:[#allocation3 + $0xf28] sm:$0xff] }
 0x433   : > { %4623 = vmatpush1.bf16.msra.mxu0 %v3859_v18  ;;  %4833 = vmatpush1.bf16.msra.mxu1 %v3853_v19  ;;  %v3918_v18 = vld [vmem:[#allocation3 + $0xef8] sm:$0xff]  ;;  %v3923_v19 = vld [vmem:[#allocation3 + $0xf20] sm:$0xff] }
 0x434   : > { %4624 = vmatprep.subr.bf16.mxu0 %v3868_v61  ;;  %4834 = vmatprep.subr.bf16.mxu1 %v3862_v63  ;;  %v3917_v61 = vld [vmem:[#allocation3 + $0xef0] sm:$0xff]  ;;  %v3932_v63 = vld [vmem:[#allocation3 + $0xf68] sm:$0xff] }
 0x437   : > { %4625 = vmatpush1.bf16.msra.mxu0 %v3867_v53  ;;  %4835 = vmatpush1.bf16.msra.mxu1 %v3861_v37  ;;  %v3926_v53 = vld [vmem:[#allocation3 + $0xf38] sm:$0xff]  ;;  %v3931_v37 = vld [vmem:[#allocation3 + $0xf60] sm:$0xff] }
 0x438   : > { %4626 = vmatprep.subr.bf16.mxu0 %v3876_v60  ;;  %4836 = vmatprep.subr.bf16.mxu1 %v3870_v34  ;;  %v3925_v60 = vld [vmem:[#allocation3 + $0xf30] sm:$0xff]  ;;  %v3940_v34 = vld [vmem:[#allocation3 + $0xfa8] sm:$0xff] }
 0x43b   : > { %4627 = vmatpush1.bf16.msra.mxu0 %v3875_v44  ;;  %4837 = vmatpush1.bf16.msra.mxu1 %v3869_v36  ;;  %v3934_v44 = vld [vmem:[#allocation3 + $0xf78] sm:$0xff]  ;;  %v3939_v36 = vld [vmem:[#allocation3 + $0xfa0] sm:$0xff] }
 0x43c   : > { %4628 = vmatprep.subr.bf16.mxu0 %v3884_v41  ;;  %4838 = vmatprep.subr.bf16.mxu1 %v3878_v49  ;;  %v3933_v41 = vld [vmem:[#allocation3 + $0xf70] sm:$0xff]  ;;  %v3948_v49 = vld [vmem:[#allocation3 + $0xfe8] sm:$0xff] }
 0x43f   : > { %4629 = vmatpush1.bf16.msra.mxu0 %v3883_v21  ;;  %4839 = vmatpush1.bf16.msra.mxu1 %v3877_v28  ;;  %v3942_v21 = vld [vmem:[#allocation3 + $0xfb8] sm:$0xff]  ;;  %v3947_v28 = vld [vmem:[#allocation3 + $0xfe0] sm:$0xff] }
 0x440   : > { %4630 = vmatprep.subr.bf16.mxu0 %v3892_v6  ;;  %4840 = vmatprep.subr.bf16.mxu1 %v3886_v29  ;;  %v3941_v6 = vld [vmem:[#allocation3 + $0xfb0] sm:$0xff]  ;;  %v3950_v29 = vld [vmem:[#allocation3 + $0xff8] sm:$0xff] }
 0x443   : > { %4631 = vmatpush1.bf16.msra.mxu0 %v3891_v30  ;;  %4841 = vmatpush1.bf16.msra.mxu1 %v3885_v2  ;;  %v3949_v30 = vld [vmem:[#allocation3 + $0xff0] sm:$0xff]  ;;  %v7231_v2 = vmov 0  }
 0x444   : > { %4632 = vmatprep.subr.bf16.mxu0 %v3900_v50  ;;  %4842 = vmatprep.subr.bf16.mxu1 %v3894_v43  ;;  %v4899_v50 = vsub.s32 4, %v9271_v26  ;;  %v4903_v43 = vsub.s32 5, %v9271_v26 }
 0x445   : > { %7170 = vset.pattern.permute.xlu1 %v7231_v2  ;;  %7171 = vset.pattern.permute.xlu0 %v7231_v2 }
 0x447   : > { %4633 = vmatpush1.bf16.msra.mxu0 %v3899_v23  ;;  %4843 = vmatpush1.bf16.msra.mxu1 %v3893_v38  ;;  %v9480_v23 = vrot.slane %v9280_v4, %v4899_v50  ;;  %v9483_v38 = vrot.slane %v9280_v4, %v4903_v43 }
 0x448   : > { %4634 = vmatprep.subr.bf16.mxu0 %v3908_v46  ;;  %4844 = vmatprep.subr.bf16.mxu1 %v3902_v59 }
 0x44b   : > { %4635 = vmatpush1.bf16.msra.mxu0 %v3907_v20  ;;  %4845 = vmatpush1.bf16.msra.mxu1 %v3901_v39 }
 0x44c   : > { %4636 = vmatprep.subr.bf16.mxu0 %v3916_v0  ;;  %4846 = vmatprep.subr.bf16.mxu1 %v3910_v3 }
 0x44f   : > { %4637 = vmatpush1.bf16.msra.mxu0 %v3915_v24  ;;  %4847 = vmatpush1.bf16.msra.mxu1 %v3909_v56 }
 0x450   : > { %4638 = vmatprep.subr.bf16.mxu0 %v3924_v11  ;;  %4848 = vmatprep.subr.bf16.mxu1 %v3918_v18 }
 0x453   : > { %4639 = vmatpush1.bf16.msra.mxu0 %v3923_v19  ;;  %4849 = vmatpush1.bf16.msra.mxu1 %v3917_v61 }
 0x454   : > { %4640 = vmatprep.subr.bf16.mxu0 %v3932_v63  ;;  %4850 = vmatprep.subr.bf16.mxu1 %v3926_v53 }
 0x457   : > { %4641 = vmatpush1.bf16.msra.mxu0 %v3931_v37  ;;  %4851 = vmatpush1.bf16.msra.mxu1 %v3925_v60 }
 0x458   : > { %4642 = vmatprep.subr.bf16.mxu0 %v3940_v34  ;;  %4852 = vmatprep.subr.bf16.mxu1 %v3934_v44 }
 0x45b   : > { %4643 = vmatpush1.bf16.msra.mxu0 %v3939_v36  ;;  %4853 = vmatpush1.bf16.msra.mxu1 %v3933_v41 }
 0x45c   : > { %4644 = vmatprep.subr.bf16.mxu0 %v3948_v49  ;;  %4854 = vmatprep.subr.bf16.mxu1 %v3942_v21 }
 0x45f   : > { %4645 = vmatpush1.bf16.msra.mxu0 %v3947_v28  ;;  %4855 = vmatpush1.bf16.msra.mxu1 %v3941_v6 }
 0x460   : > { %4856 = vmatprep.subr.bf16.mxu1 %v3950_v29 }
 0x462   : > { %4647 = vmatmul.mubr.bf16.vlgmr.msra.gmra.mrb[8].mxu0 %v8810_v17 }
 0x463   : > { %4857 = vmatpush1.bf16.msra.mxu1 %v3949_v30  ;;  %4656 = vmatprep.mubr.bf16.mxu0 %v8825_v48 }
 0x466   : > { %4859 = vmatmul.mubr.bf16.vlgmr.msra.gmra.mrb[8].mxu1 %v8810_v17  ;;  %v4907_v17 = vsub.s32 6, %v9271_v26 }
 0x467   : > { %4868 = vmatprep.mubr.bf16.mxu1 %v8825_v48  ;;  %v4911_v48 = vsub.s32 7, %v9271_v26 }
 0x468   : > { %v9498_v0 = vrot.slane %v9280_v4, %v4907_v17 }
 0x469   : > { %v9501_v3 = vrot.slane %v9280_v4, %v4911_v48 }
 0x46a   : > { %4657 = vmatmul.mubr.bf16.gmra.mrb[12].mxu0 %v8840_v57 }
 0x46e   : > { %4869 = vmatmul.mubr.bf16.gmra.mrb[12].mxu1 %v8840_v57 }
 0x535   : > { %v9487_v46 = vpop.f32.mrb[8].mxu0 }
 0x536   : > { %v4925_v57 = vmul.f32 %v9480_v23, %v9487_v46  ;;  %v9491_v59 = vpop.f32.mrb[9].mxu0 }
 0x537   : > { %v4926_v20 = vmul.f32 %v9483_v38, %v9491_v59  ;;  %v9495_v39 = vpop.f32.mrb[10].mxu0 }
 0x538   : > { %v4956_v26 = vadd.f32 %v9351_v45, %v4925_v57  ;;  %v4997_v24 = vmul.f32 %v4925_v57, %v9487_v46  ;;  %v4933_v56 = vmul.f32 %v9480_v23, %v9495_v39  ;;  %v9507_v11 = vpop.f32.mrb[11].mxu0 }
 0x539   : > { %v4998_v18 = vmul.f32 %v4926_v20, %v9491_v59  ;;  %v4934_v19 = vmul.f32 %v9483_v38, %v9507_v11  ;;  %v9512_v61 = vpop.f32.mrb[8].mxu1 }
 0x53a   : > { %v5028_v63 = vadd.f32 %v9360_v27, %v4997_v24  ;;  %v4957_v4 = vadd.f32 %v4956_v26, %v4926_v20  ;;  %v4965_v53 = vadd.f32 %v9362_v42, %v4933_v56  ;;  %v5005_v45 = vmul.f32 %v4933_v56, %v9495_v39  ;;  %v9517_v37 = vpop.f32.mrb[9].mxu1 }
 0x53b   : > { %v5006_v60 = vmul.f32 %v4934_v19, %v9507_v11  ;;  %v4927_v34 = vmul.f32 %v9498_v0, %v9512_v61  ;;  %v4928_v44 = vmul.f32 %v9501_v3, %v9517_v37  ;;  %v9524_v36 = vpop.f32.mrb[10].mxu1 }
 0x53c   : > { %v5029_v41 = vadd.f32 %v5028_v63, %v4998_v18  ;;  %v5037_v27 = vadd.f32 %v9378_v52, %v5005_v45  ;;  %v4966_v49 = vadd.f32 %v4965_v53, %v4934_v19  ;;  %v4935_v42 = vmul.f32 %v9498_v0, %v9524_v36  ;;  %v9529_v21 = vpop.f32.mrb[11].mxu1 }
 0x53d   : > { %v4958_v28 = vadd.f32 %v4957_v4, %v4927_v34  ;;  %v4999_v6 = vmul.f32 %v4927_v34, %v9512_v61  ;;  %v5000_v29 = vmul.f32 %v4928_v44, %v9517_v37  ;;  %v4936_v30 = vmul.f32 %v9501_v3, %v9529_v21  ;;  %v9535_v2 = vpop.f32.mrb[12].mxu0 }
 0x53e   : > { %v5038_v50 = vadd.f32 %v5037_v27, %v5006_v60  ;;  %v4967_v43 = vadd.f32 %v4966_v49, %v4935_v42  ;;  %v5007_v52 = vmul.f32 %v4935_v42, %v9524_v36  ;;  %v4941_v17 = vmul.f32 %v9480_v23, %v9535_v2  ;;  %v9540_v48 = vpop.f32.mrb[13].mxu0 }
 0x53f   : > { %v5030_v57 = vadd.f32 %v5029_v41, %v4999_v6  ;;  %v5008_v20 = vmul.f32 %v4936_v30, %v9529_v21  ;;  %v4942_v26 = vmul.f32 %v9483_v38, %v9540_v48  ;;  %v9545_v24 = vpop.f32.mrb[14].mxu0  ;;  %v4959_v56 = vadd.f32 %v4958_v28, %v4928_v44 }
 0x540   : > { %v5039_v18 = vadd.f32 %v5038_v50, %v5007_v52  ;;  %v4974_v19 = vadd.f32 %v9398_v10, %v4941_v17  ;;  %v5013_v63 = vmul.f32 %v4941_v17, %v9535_v2  ;;  %v4949_v4 = vmul.f32 %v9480_v23, %v9545_v24  ;;  %v9551_v53 = vpop.f32.mrb[15].mxu0 }
 0x541   : > { %v5014_v45 = vmul.f32 %v4942_v26, %v9540_v48  ;;  %v4950_v60 = vmul.f32 %v9483_v38, %v9551_v53  ;;  %4960 = vadd.xlane.f32.xlu0 %v4959_v56  ;;  %v9556_v34 = vpop.f32.mrb[12].mxu1  ;;  %v4968_v41 = vadd.f32 %v4967_v43, %v4936_v30  ;;  %v5031_v44 = vadd.f32 %v5030_v57, %v5000_v29 }
 0x542   : > { %v5046_v27 = vadd.f32 %v9403_v47, %v5013_v63  ;;  %v4975_v10 = vadd.f32 %v4974_v19, %v4942_v26  ;;  %v4983_v49 = vadd.f32 %v9406_v54, %v4949_v4  ;;  %v5021_v42 = vmul.f32 %v4949_v4, %v9545_v24  ;;  %v9561_v28 = vpop.f32.mrb[13].mxu1 }
 0x543   : > { %v5022_v6 = vmul.f32 %v4950_v60, %v9551_v53  ;;  %v4943_v50 = vmul.f32 %v9498_v0, %v9556_v34  ;;  %4969 = vadd.xlane.f32.xlu1 %v4968_v41  ;;  %v4944_v52 = vmul.f32 %v9501_v3, %v9561_v28  ;;  %v9568_v30 = vpop.f32.mrb[14].mxu1  ;;  %v5040_v29 = vadd.f32 %v5039_v18, %v5008_v20 }
 0x544   : > { %v5047_v47 = vadd.f32 %v5046_v27, %v5014_v45  ;;  %v5055_v43 = vadd.f32 %v9408_v7, %v5021_v42  ;;  %v4984_v54 = vadd.f32 %v4983_v49, %v4950_v60  ;;  %v4951_v17 = vmul.f32 %v9498_v0, %v9568_v30  ;;  %v9573_v57 = vpop.f32.mrb[15].mxu1  ;;  %v5149_v42 = vld [vmem:[%s7293_s11] sm:$0xff] }
 0x545   : > { %11575 = vst [vmem:[#allocation4_spill] sm:$0xff] %v9573_v57  ;;  %v4976_v26 = vadd.f32 %v4975_v10, %v4943_v50  ;;  %v5015_v56 = vmul.f32 %v4943_v50, %v9556_v34  ;;  %v5016_v19 = vmul.f32 %v4944_v52, %v9561_v28  ;;  %v4952_v63 = vmul.f32 %v9501_v3, %v9573_v57  ;;  %v5205_v50 = vld [vmem:[%s7298_s14] sm:$0xff] }
 0x546   : > { %v5056_v4 = vadd.f32 %v5055_v43, %v5022_v6  ;;  %v4985_v20 = vadd.f32 %v4984_v54, %v4951_v17  ;;  %v5023_v18 = vmul.f32 %v4951_v17, %v9568_v30  ;;  %v5151_v6 = vld [vmem:[%s7293_s11 + $0x10] sm:$0xff]  ;;  %v5208_v54 = vld [vmem:[%s7298_s14 + $0x18] sm:$0xff] }
 0x547   : > { %v5048_v7 = vadd.f32 %v5047_v47, %v5015_v56  ;;  %v5024_v45 = vmul.f32 %v4952_v63, %v9573_v57  ;;  %5032 = vadd.xlane.f32.xlu1 %v5031_v44  ;;  %v4977_v60 = vadd.f32 %v4976_v26, %v4944_v52  ;;  %v5152_v44 = vld [vmem:[%s7293_s11 + $0x18] sm:$0xff]  ;;  %v5150_v52 = vld [vmem:[%s7293_s11 + $0x8] sm:$0xff]  ;;  %v5207_v43 = vld [vmem:[%s7298_s14 + $0x10] sm:$0xff] }
 0x548   : > { %v5057_v41 = vadd.f32 %v5056_v4, %v5023_v18  ;;  %v4986_v27 = vadd.f32 %v4985_v20, %v4952_v63  ;;  %v5206_v47 = vld [vmem:[%s7298_s14 + $0x8] sm:$0xff] }
 0x549   : > { %4978 = vadd.xlane.f32.xlu0 %v4977_v60  ;;  %v5049_v10 = vadd.f32 %v5048_v7, %v5016_v19 }
 0x54a   : > { %v5058_v49 = vadd.f32 %v5057_v41, %v5024_v45 }
 0x54b   : > { %5050 = vadd.xlane.f32.xlu1 %v5049_v10 }
 0x54d   : > { %4987 = vadd.xlane.f32.xlu0 %v4986_v27 }
 0x551   : > { %5041 = vadd.xlane.f32.xlu0 %v5040_v29 }
 0x555   : > { %5059 = vadd.xlane.f32.xlu0 %v5058_v49 }
 0x55c   : > { %5155 = vperm.xlu1 %7170, %v5149_v42  }
 0x560   : > { %5165 = vperm.xlu1 %7170, %v5151_v6  }
 0x564   : > { %5170 = vperm.xlu1 %7170, %v5152_v44  }
 0x568   : > { %5211 = vperm.xlu1 %7170, %v5205_v50  }
 0x56b   : > { %5160 = vperm.xlu0 %7171, %v5150_v52  }
 0x56c   : > { %5216 = vperm.xlu1 %7170, %v5206_v47  }
 0x570   : > { %5221 = vperm.xlu1 %7170, %v5207_v43  }
 0x574   : > { %5226 = vperm.xlu1 %7170, %v5208_v54  }
 0x5ce   : > { %v4961_v17 = vpop.xlane.xlu0 %4960 }
 0x5cf   : > { %v9589_v26 = vmul.f32 0.001953125, %v4961_v17 }
 0x5d0   : > { %v4970_v29 = vpop.xlane.xlu1 %4969 }
 0x5d1   : > { %v5065_v19 = vmul.f32 %v9589_v26, %v9589_v26  ;;  %v9597_v27 = vmul.f32 0.001953125, %v4970_v29  ;;  %v5085_v6 = vsub.f32 %v9296_v22, %v9589_v26  ;;  %v5086_v44 = vsub.f32 %v9300_v9, %v9589_v26 }
 0x5d2   : > { %v5087_v50 = vsub.f32 %v9320_v25, %v9589_v26  ;;  %v5088_v43 = vsub.f32 %v9326_v32, %v9589_v26  ;;  %v5089_v54 = vsub.f32 %v9487_v46, %v9589_v26  ;;  %v5090_v17 = vsub.f32 %v9491_v59, %v9589_v26 }
 0x5d3   : > { %v5091_v22 = vsub.f32 %v9512_v61, %v9589_v26  ;;  %v5092_v9 = vsub.f32 %v9517_v37, %v9589_v26  ;;  %v5066_v25 = vmul.f32 %v9597_v27, %v9597_v27 }
 0x5d4   : > { %v5033_v56 = vpop.xlane.xlu1 %5032 }
 0x5d5   : > { %v5061_v63 = vmul.f32 0.001953125, %v5033_v56 }
 0x5d6   : > { %v4979_v4 = vpop.xlane.xlu0 %4978 }
 0x5d7   : > { %v5069_v20 = vsub.f32 %v5061_v63, %v5065_v19  ;;  %v9593_v18 = vmul.f32 0.001953125, %v4979_v4 }
 0x5d8   : > { %v5051_v7 = vpop.xlane.xlu1 %5050 }
 0x5d9   : > { %v5073_v45 = vmax.f32 %v5069_v20, 0.0  ;;  %v5063_v60 = vmul.f32 0.001953125, %v5051_v7  ;;  %v5067_v41 = vmul.f32 %v9593_v18, %v9593_v18 }
 0x5da   : > { %v4988_v10 = vpop.xlane.xlu0 %4987 }
 0x5db   : > { %v5077_v49 = vadd.f32 1e-05, %v5073_v45  ;;  %v5071_v42 = vsub.f32 %v5063_v60, %v5067_v41  ;;  %v9619_v19 = vmul.f32 0.001953125, %v4988_v10  ;;  %v5101_v45 = vsub.f32 %v9343_v8, %v9593_v18 }
 0x5dc   : > { %v9605_v52 = vpop.permute.xlu1 %5155  ;;  %v5102_v60 = vsub.f32 %v9349_v1, %v9593_v18  ;;  %v5103_v41 = vsub.f32 %v9368_v40, %v9593_v18  ;;  %v5105_v8 = vsub.f32 %v9535_v2, %v9593_v18  ;;  %v5106_v1 = vsub.f32 %v9540_v48, %v9593_v18 }
 0x5dd   : > { %7172 = vrsqrt.f32 %v5077_v49  ;;  %v5075_v47 = vmax.f32 %v5071_v42, 0.0  ;;  %v5107_v40 = vsub.f32 %v9556_v34, %v9593_v18 }
 0x5de   : > { %v5042_v29 = vpop.xlane.xlu0 %5041 }
 0x5df   : > { %v5079_v56 = vadd.f32 1e-05, %v5075_v47  ;;  %v5062_v32 = vmul.f32 0.001953125, %v5042_v29  ;;  %v5104_v47 = vsub.f32 %v9376_v5, %v9593_v18 }
 0x5e0   : > { %v9623_v63 = vpop.permute.xlu1 %5165 }
 0x5e1   : > { %7174 = vrsqrt.f32 %v5079_v56  ;;  %v5070_v4 = vsub.f32 %v5062_v32, %v5066_v25  ;;  %v5068_v25 = vmul.f32 %v9619_v19, %v9619_v19  ;;  %v5108_v56 = vsub.f32 %v9561_v28, %v9593_v18 }
 0x5e2   : > { %v5060_v10 = vpop.xlane.xlu0 %5059 }
 0x5e3   : > { %v5074_v42 = vmax.f32 %v5070_v4, 0.0  ;;  %v5064_v29 = vmul.f32 0.001953125, %v5060_v10 }
 0x5e4   : > { %v9657_v32 = vpop.permute.xlu1 %5170 }
 0x5e5   : > { %11576 = vst [vmem:[#allocation5_spill] sm:$0xff] %v9657_v32  ;;  %v5078_v4 = vadd.f32 1e-05, %v5074_v42  ;;  %v5072_v5 = vsub.f32 %v5064_v29, %v5068_v25 }
 0x5e7   : > { %v7173_v18 = vpop.eup %7172  ;;  %7176 = vrsqrt.f32 %v5078_v4  ;;  %v5076_v42 = vmax.f32 %v5072_v5, 0.0 }
 0x5e8   : > { %v5117_v10 = vmul.f32 %v7173_v18, %v5085_v6  ;;  %v5118_v2 = vmul.f32 %v7173_v18, %v5086_v44  ;;  %v5119_v49 = vmul.f32 %v7173_v18, %v5087_v50  ;;  %v5120_v7 = vmul.f32 %v7173_v18, %v5088_v43  ;;  %v5212_v48 = vpop.permute.xlu1 %5211 }
 0x5e9   : > { %v5121_v20 = vmul.f32 %v7173_v18, %v5089_v54  ;;  %v5122_v26 = vmul.f32 %v7173_v18, %v5090_v17  ;;  %v5123_v34 = vmul.f32 %v7173_v18, %v5091_v22  ;;  %v5124_v37 = vmul.f32 %v7173_v18, %v5092_v9 }
 0x5ea   : > { %v5173_v28 = vmul.f32 %v9605_v52, %v5117_v10  ;;  %v5174_v4 = vmul.f32 %v9605_v52, %v5118_v2  ;;  %v5175_v5 = vmul.f32 %v9605_v52, %v5119_v49  ;;  %v5176_v25 = vmul.f32 %v9605_v52, %v5120_v7 }
 0x5eb   : > { %v7175_v61 = vpop.eup %7174  ;;  %v5177_v29 = vmul.f32 %v9605_v52, %v5121_v20  ;;  %v5178_v6 = vmul.f32 %v9605_v52, %v5122_v26  ;;  %v5179_v44 = vmul.f32 %v9605_v52, %v5123_v34  ;;  %v5180_v50 = vmul.f32 %v9605_v52, %v5124_v37 }
 0x5ec   : > { %v5133_v43 = vmul.f32 %v7175_v61, %v5101_v45  ;;  %v5134_v54 = vmul.f32 %v7175_v61, %v5102_v60  ;;  %v5135_v17 = vmul.f32 %v7175_v61, %v5103_v41  ;;  %v5136_v22 = vmul.f32 %v7175_v61, %v5104_v47  ;;  %v9683_v49 = vpop.permute.xlu1 %5216 }
 0x5ed   : > { %v5137_v9 = vmul.f32 %v7175_v61, %v5105_v8  ;;  %v5138_v10 = vmul.f32 %v7175_v61, %v5106_v1  ;;  %v5139_v2 = vmul.f32 %v7175_v61, %v5107_v40  ;;  %v5140_v18 = vmul.f32 %v7175_v61, %v5108_v56 }
 0x5ee   : > { %v5189_v7 = vmul.f32 %v9623_v63, %v5133_v43  ;;  %v5190_v20 = vmul.f32 %v9623_v63, %v5134_v54  ;;  %v5191_v26 = vmul.f32 %v9623_v63, %v5135_v17  ;;  %v5192_v34 = vmul.f32 %v9623_v63, %v5136_v22 }
 0x5ef   : > { %v5193_v52 = vmul.f32 %v9623_v63, %v5137_v9  ;;  %v5194_v37 = vmul.f32 %v9623_v63, %v5138_v10  ;;  %v5195_v45 = vmul.f32 %v9623_v63, %v5139_v2  ;;  %v5196_v60 = vmul.f32 %v9623_v63, %v5140_v18 }
 0x5f0   : > { %v5080_v41 = vadd.f32 1e-05, %v5076_v42  ;;  %v5229_v61 = vadd.f32 %v5212_v48, %v5173_v28  ;;  %v5230_v47 = vadd.f32 %v5212_v48, %v5174_v4  ;;  %v5231_v8 = vadd.f32 %v5212_v48, %v5175_v5  ;;  %v5222_v2 = vpop.permute.xlu1 %5221 }
 0x5f1   : > { %v7177_v1 = vpop.eup %7176  ;;  %v5232_v40 = vadd.f32 %v5212_v48, %v5176_v25  ;;  %v5233_v56 = vadd.f32 %v5212_v48, %v5177_v29  ;;  %v5234_v43 = vadd.f32 %v5212_v48, %v5178_v6  ;;  %v5235_v54 = vadd.f32 %v5212_v48, %v5179_v44 }
 0x5f2   : > { %7178 = vrsqrt.f32 %v5080_v41  ;;  %v5236_v17 = vadd.f32 %v5212_v48, %v5180_v50  ;;  %v5261_v22 = vmax.f32 %v5229_v61, 0.0  ;;  %v5262_v59 = vmax.f32 %v5230_v47, 0.0 }
 0x5f3   : > { %v5263_v9 = vmax.f32 %v5231_v8, 0.0  ;;  %v5264_v46 = vmax.f32 %v5232_v40, 0.0  ;;  %v5265_v10 = vmax.f32 %v5233_v56, 0.0  ;;  %v5266_v32 = vmax.f32 %v5234_v43, 0.0 }
 0x5f4   : > { %v5267_v57 = vmax.f32 %v5235_v54, 0.0  ;;  %v5268_v63 = vmax.f32 %v5236_v17, 0.0  ;;  %v9694_v28 = vmul.f32 %v5261_v22, %v9286_v35  ;;  %v9697_v42 = vmul.f32 %v5262_v59, %v9290_v13 }
 0x5f5   : > { %v9700_v25 = vmul.f32 %v5263_v9, %v9303_v14  ;;  %v9703_v48 = vmul.f32 %v5264_v46, %v9308_v15  ;;  %v9706_v29 = vmul.f32 %v5265_v10, %v9480_v23  ;;  %v9709_v4 = vmul.f32 %v5266_v32, %v9483_v38 }
 0x5f6   : > { %v9712_v5 = vmul.f32 %v5267_v57, %v9498_v0  ;;  %v9715_v6 = vmul.f32 %v5268_v63, %v9501_v3  ;;  %v9717_v59 = vadd.f32 %v5222_v2, %v5189_v7  ;;  %v9719_v44 = vadd.f32 %v5222_v2, %v5190_v20 }
 0x5f7   : > { %v9721_v50 = vadd.f32 %v5222_v2, %v5191_v26  ;;  %v9723_v46 = vadd.f32 %v5222_v2, %v5192_v34  ;;  %v9725_v18 = vadd.f32 %v5222_v2, %v5193_v52  ;;  %v9727_v41 = vadd.f32 %v5222_v2, %v5194_v37  ;;  %v5161_v52 = vpop.permute.xlu0 %5160 }
 0x5f8   : > { %v9729_v32 = vadd.f32 %v5222_v2, %v5195_v45  ;;  %v9731_v61 = vadd.f32 %v5222_v2, %v5196_v60  ;;  %v5277_v57 = vmax.f32 %v9717_v59, 0.0  ;;  %v5278_v47 = vmax.f32 %v9719_v44, 0.0 }
 0x5f9   : > { %v5279_v7 = vmax.f32 %v9721_v50, 0.0  ;;  %v5280_v20 = vmax.f32 %v9723_v46, 0.0  ;;  %v11577_v60 = vsub.f32 %v9313_v62, %v9597_v27  ;;  %v11578_v40 = vsub.f32 %v9318_v33, %v9597_v27 }
 0x5fa   : > { %v11579_v43 = vsub.f32 %v9335_v51, %v9597_v27  ;;  %v11580_v17 = vsub.f32 %v9341_v12, %v9597_v27  ;;  %v11581_v9 = vsub.f32 %v9495_v39, %v9597_v27  ;;  %v11582_v62 = vsub.f32 %v9507_v11, %v9597_v27 }
 0x5fb   : > { %v5125_v8 = vmul.f32 %v7177_v1, %v11577_v60  ;;  %v5126_v56 = vmul.f32 %v7177_v1, %v11578_v40  ;;  %v11583_v33 = vsub.f32 %v9524_v36, %v9597_v27  ;;  %v11584_v51 = vsub.f32 %v9529_v21, %v9597_v27 }
 0x5fc   : > { %v5127_v54 = vmul.f32 %v7177_v1, %v11579_v43  ;;  %v5128_v22 = vmul.f32 %v7177_v1, %v11580_v17  ;;  %v5129_v10 = vmul.f32 %v7177_v1, %v11581_v9  ;;  %v5130_v2 = vmul.f32 %v7177_v1, %v11582_v62  ;;  %v7179_v63 = vpop.eup %7178 }
 0x5fd   : > { %v5131_v60 = vmul.f32 %v7177_v1, %v11583_v33  ;;  %v5132_v40 = vmul.f32 %v7177_v1, %v11584_v51  ;;  %v5181_v43 = vmul.f32 %v5161_v52, %v5125_v8  ;;  %v5182_v12 = vmul.f32 %v5161_v52, %v5126_v56 }
 0x5fe   : > { %v5183_v17 = vmul.f32 %v5161_v52, %v5127_v54  ;;  %v5184_v45 = vmul.f32 %v5161_v52, %v5128_v22  ;;  %v5185_v37 = vmul.f32 %v5161_v52, %v5129_v10  ;;  %v5186_v39 = vmul.f32 %v5161_v52, %v5130_v2 }
 0x5ff   : > { %v5187_v9 = vmul.f32 %v5161_v52, %v5131_v60  ;;  %v5188_v34 = vmul.f32 %v5161_v52, %v5132_v40  ;;  %v5237_v11 = vadd.f32 %v9683_v49, %v5181_v43  ;;  %v5238_v62 = vadd.f32 %v9683_v49, %v5182_v12 }
 0x600   : > { %v5239_v26 = vadd.f32 %v9683_v49, %v5183_v17  ;;  %v5240_v36 = vadd.f32 %v9683_v49, %v5184_v45  ;;  %v5241_v33 = vadd.f32 %v9683_v49, %v5185_v37  ;;  %v5242_v21 = vadd.f32 %v9683_v49, %v5186_v39 }
 0x601   : > { %v5243_v27 = vadd.f32 %v9683_v49, %v5187_v9  ;;  %v5244_v1 = vadd.f32 %v9683_v49, %v5188_v34  ;;  %v5269_v8 = vmax.f32 %v5237_v11, 0.0  ;;  %v5270_v56 = vmax.f32 %v5238_v62, 0.0 }
 0x602   : > { %v5271_v54 = vmax.f32 %v5239_v26, 0.0  ;;  %v5272_v52 = vmax.f32 %v5240_v36, 0.0  ;;  %v5273_v22 = vmax.f32 %v5241_v33, 0.0  ;;  %v5274_v10 = vmax.f32 %v5242_v21, 0.0 }
 0x603   : > { %v5275_v2 = vmax.f32 %v5243_v27, 0.0  ;;  %v5276_v60 = vmax.f32 %v5244_v1, 0.0  ;;  %v5301_v51 = vmul.f32 %v5269_v8, %v9286_v35  ;;  %v5302_v45 = vmul.f32 %v5270_v56, %v9290_v13  ;;  %v11592_v8 = vld [vmem:[#allocation4_spill] sm:$0xff] }
 0x604   : > { %v5303_v37 = vmul.f32 %v5271_v54, %v9303_v14  ;;  %v5304_v40 = vmul.f32 %v5272_v52, %v9308_v15  ;;  %v5305_v43 = vmul.f32 %v5273_v22, %v9480_v23  ;;  %v5306_v49 = vmul.f32 %v5274_v10, %v9483_v38  ;;  %v11594_v54 = vld [vmem:[#allocation5_spill] sm:$0xff]  ;;  %v5227_v22 = vpop.permute.xlu1 %5226 }
 0x605   : > { %v5307_v34 = vmul.f32 %v5275_v2, %v9498_v0  ;;  %v5308_v26 = vmul.f32 %v5276_v60, %v9501_v3  ;;  %v9782_v12 = vpack.c.bf16 %v5301_v51, %v9694_v28  ;;  %v9785_v17 = vpack.c.bf16 %v5302_v45, %v9697_v42 }
 0x606   : > { %v9788_v39 = vpack.c.bf16 %v5303_v37, %v9700_v25  ;;  %v9791_v9 = vpack.c.bf16 %v5304_v40, %v9703_v48  ;;  %v9794_v11 = vpack.c.bf16 %v5305_v43, %v9706_v29  ;;  %v9797_v62 = vpack.c.bf16 %v5306_v49, %v9709_v4 }
 0x607   : > { %v9800_v36 = vpack.c.bf16 %v5307_v34, %v9712_v5  ;;  %v9803_v28 = vpack.c.bf16 %v5308_v26, %v9715_v6  ;;  %5341 = vst [vmem:[#allocation2 + $0x8] sm:$0xff] %v9782_v12  ;;  %5342 = vst [vmem:[#allocation2 + $0x10] sm:$0xff] %v9785_v17  ;;  %v11585_v42 = vsub.f32 %v9358_v55, %v9619_v19  ;;  %v11596_v59 = vmax.f32 %v9727_v41, 0.0 }
 0x608   : > { %v11586_v48 = vsub.f32 %v9366_v31, %v9619_v19  ;;  %5343 = vst [vmem:[#allocation2 + $0x18] sm:$0xff] %v9788_v39  ;;  %5344 = vst [vmem:[#allocation2 + $0x20] sm:$0xff] %v9791_v9  ;;  %v11587_v4 = vsub.f32 %v9387_v58, %v9619_v19  ;;  %v11588_v55 = vsub.f32 %v9391_v16, %v9619_v19  ;;  %v11597_v44 = vmax.f32 %v9729_v32, 0.0 }
 0x609   : > { %v5141_v25 = vmul.f32 %v7179_v63, %v11585_v42  ;;  %5345 = vst [vmem:[#allocation2 + $0x28] sm:$0xff] %v9794_v11  ;;  %5346 = vst [vmem:[#allocation2 + $0x30] sm:$0xff] %v9797_v62  ;;  %v11589_v31 = vsub.f32 %v9545_v24, %v9619_v19  ;;  %v11590_v21 = vsub.f32 %v9551_v53, %v9619_v19  ;;  %v11598_v50 = vmax.f32 %v9731_v61, 0.0 }
 0x60a   : > { %v5142_v29 = vmul.f32 %v7179_v63, %v11586_v48  ;;  %v5143_v5 = vmul.f32 %v7179_v63, %v11587_v4  ;;  %v5144_v6 = vmul.f32 %v7179_v63, %v11588_v55  ;;  %5347 = vst [vmem:[#allocation2 + $0x38] sm:$0xff] %v9800_v36  ;;  %5348 = vst [vmem:[#allocation2 + $0x40] sm:$0xff] %v9803_v28  ;;  %5538 = vmatprep.subr.bf16.mxu0 (!%p6953_p5), %v9785_v17 }
 0x60b   : > { %v5145_v33 = vmul.f32 %v7179_v63, %v11589_v31  ;;  %v5146_v27 = vmul.f32 %v7179_v63, %v11590_v21  ;;  %v11591_v58 = vsub.f32 %v9568_v30, %v9619_v19  ;;  %v11593_v16 = vsub.f32 %v11592_v8, %v9619_v19  ;;  %5651 = vmatprep.subr.bf16.mxu1 (!%p6953_p5), %v9791_v9 }
 0x60c   : > { %v5197_v52 = vmul.f32 %v11594_v54, %v5141_v25  ;;  %v5198_v24 = vmul.f32 %v11594_v54, %v5142_v29  ;;  %v5199_v53 = vmul.f32 %v11594_v54, %v5143_v5  ;;  %v5200_v10 = vmul.f32 %v11594_v54, %v5144_v6  ;;  %5539 = vmatpush1.bf16.msra.mxu0 (!%p6953_p5), %v9782_v12 }
 0x60d   : > { %v5147_v1 = vmul.f32 %v7179_v63, %v11591_v58  ;;  %v5148_v56 = vmul.f32 %v7179_v63, %v11593_v16  ;;  %v5201_v2 = vmul.f32 %v11594_v54, %v5145_v33  ;;  %v5202_v60 = vmul.f32 %v11594_v54, %v5146_v27  ;;  %5652 = vmatpush1.bf16.msra.mxu1 (!%p6953_p5), %v9788_v39 }
 0x60e   : > { %v5253_v45 = vadd.f32 %v5227_v22, %v5197_v52  ;;  %v5254_v19 = vadd.f32 %v5227_v22, %v5198_v24  ;;  %v5255_v63 = vadd.f32 %v5227_v22, %v5199_v53  ;;  %v5256_v37 = vadd.f32 %v5227_v22, %v5200_v10  ;;  %v5379_v52 = vld [vmem:[%s11358_s5 + $0x10] sm:$0xff] (!%p6953_p5)  ;;  %v9940_v24 = vld [vmem:[%s11357_s4 + $0x8] sm:$0xff] (!%p6953_p5)   ;;  %v5380_v53 = vld [vmem:[%s11358_s5 + $0x18] sm:$0xff] (!%p6953_p5) }
 0x60f   : > { %v5203_v30 = vmul.f32 %v11594_v54, %v5147_v1  ;;  %v5204_v51 = vmul.f32 %v11594_v54, %v5148_v56  ;;  %v5257_v40 = vadd.f32 %v5227_v22, %v5201_v2  ;;  %v5258_v43 = vadd.f32 %v5227_v22, %v5202_v60  ;;  %v9967_v10 = vld [vmem:[%s11357_s4 + $0x10] sm:$0xff] (!%p6953_p5)   ;;  %v5384_v60 = vld [vmem:[%s11358_s5 + $0x38] sm:$0xff] (!%p6953_p5) }
 0x610   : > { %v5285_v26 = vmax.f32 %v5253_v45, 0.0  ;;  %v5286_v42 = vmax.f32 %v5254_v19, 0.0  ;;  %v5287_v25 = vmax.f32 %v5255_v63, 0.0  ;;  %v5288_v48 = vmax.f32 %v5256_v37, 0.0  ;;  %v5383_v2 = vld [vmem:[%s11358_s5 + $0x30] sm:$0xff] (!%p6953_p5)  ;;  %v9990_v45 = vld [vmem:[%s11357_s4 + $0x18] sm:$0xff] (!%p6953_p5)  }
 0x611   : > { %v5259_v49 = vadd.f32 %v5227_v22, %v5203_v30  ;;  %v5260_v34 = vadd.f32 %v5227_v22, %v5204_v51  ;;  %v5289_v29 = vmax.f32 %v5257_v40, 0.0  ;;  %v5290_v4 = vmax.f32 %v5258_v43, 0.0  ;;  %v5378_v22 = vld [vmem:[%s11358_s5 + $0x8] sm:$0xff] (!%p6953_p5)  ;;  %v5385_v30 = vld [vmem:[%s11358_s5 + $0x40] sm:$0xff] (!%p6953_p5)  ;;  %v5387_v19 = vld [vmem:[%s11358_s5 + $0x50] sm:$0xff] (!%p6953_p5) }
 0x612   : > { %v5309_v6 = vmul.f32 %v5277_v57, %v9286_v35  ;;  %v5310_v31 = vmul.f32 %v5278_v47, %v9290_v13  ;;  %v5311_v33 = vmul.f32 %v5279_v7, %v9303_v14  ;;  %v5312_v21 = vmul.f32 %v5280_v20, %v9308_v15  ;;  %v5386_v51 = vld [vmem:[%s11358_s5 + $0x48] sm:$0xff] (!%p6953_p5)  ;;  %v5388_v63 = vld [vmem:[%s11358_s5 + $0x58] sm:$0xff] (!%p6953_p5)  ;;  %v5389_v37 = vld [vmem:[%s11358_s5 + $0x60] sm:$0xff] (!%p6953_p5) }
 0x613   : > { %v5291_v5 = vmax.f32 %v5259_v49, 0.0  ;;  %v5292_v55 = vmax.f32 %v5260_v34, 0.0  ;;  %v11595_v27 = vmax.f32 %v9725_v18, 0.0  ;;  %v5314_v57 = vmul.f32 %v11596_v59, %v9483_v38  ;;  %v5390_v40 = vld [vmem:[%s11358_s5 + $0x68] sm:$0xff] (!%p6953_p5)  ;;  %v7186_v43 = vld [vmem:[%s11357_s4 + $0x20] sm:$0xff] (!%p6953_p5)   ;;  %v5391_v49 = vld [vmem:[%s11358_s5 + $0x70] sm:$0xff] (!%p6953_p5) }
 0x614   : > { %v5315_v47 = vmul.f32 %v11597_v44, %v9498_v0  ;;  %v5316_v7 = vmul.f32 %v11598_v50, %v9501_v3  ;;  %v5317_v1 = vmul.f32 %v5285_v26, %v9286_v35  ;;  %v5318_v46 = vmul.f32 %v5286_v42, %v9290_v13  ;;  %v5392_v34 = vld [vmem:[%s11358_s5 + $0x78] sm:$0xff] (!%p6953_p5)  ;;  %v7187_v26 = vld [vmem:[%s11357_s4 + $0x28] sm:$0xff] (!%p6953_p5)   ;;  %v7188_v42 = vld [vmem:[%s11357_s4 + $0x30] sm:$0xff] (!%p6953_p5)  }
 0x615   : > { %v5313_v58 = vmul.f32 %v11595_v27, %v9480_v23  ;;  %v5319_v20 = vmul.f32 %v5287_v25, %v9303_v14  ;;  %v5320_v18 = vmul.f32 %v5288_v48, %v9308_v15  ;;  %v5321_v8 = vmul.f32 %v5289_v29, %v9480_v23  ;;  %v7189_v25 = vld [vmem:[%s11357_s4 + $0x38] sm:$0xff] (!%p6953_p5)   ;;  %v6138_v48 = vld [vmem:[%s11358_s5 + $0xa0] sm:$0xff] (!%p6953_p5)  ;;  %v6139_v29 = vld [vmem:[%s11358_s5 + $0xa8] sm:$0xff] (!%p6953_p5) }
 0x616   : > { %v5322_v41 = vmul.f32 %v5290_v4, %v9483_v38  ;;  %v5323_v16 = vmul.f32 %v5291_v5, %v9498_v0  ;;  %v5324_v32 = vmul.f32 %v5292_v55, %v9501_v3  ;;  %v9877_v56 = vpack.c.bf16 %v5317_v1, %v5309_v6  ;;  %5360 = sbr.rel (%p6953_p5) target bundleno = 2033 (0x7f1), region = 56  ;;  %v9913_v0 = vld [vmem:[%s11357_s4] sm:$0xff] (!%p6953_p5)   ;;  %v6140_v4 = vld [vmem:[%s11358_s5 + $0xb0] sm:$0xff] (!%p6953_p5)  ;;  %v6141_v5 = vld [vmem:[%s11358_s5 + $0xb8] sm:$0xff] (!%p6953_p5) }
 0x617   : > { %v9879_v61 = vpack.c.bf16 %v5318_v46, %v5310_v31  ;;  %v9881_v54 = vpack.c.bf16 %v5319_v20, %v5311_v33  ;;  %v9883_v35 = vpack.c.bf16 %v5320_v18, %v5312_v21  ;;  %v9885_v13 = vpack.c.bf16 %v5321_v8, %v5313_v58  ;;  %v5377_v3 = vld [vmem:[%s11358_s5] sm:$0xff] (!%p6953_p5)  ;;  %v6143_v6 = vld [vmem:[%s11358_s5 + $0xc8] sm:$0xff] (!%p6953_p5)  ;;  %v6144_v31 = vld [vmem:[%s11358_s5 + $0xd0] sm:$0xff] (!%p6953_p5) }
 0x618   : > { %v9887_v14 = vpack.c.bf16 %v5322_v41, %v5314_v57  ;;  %v9889_v15 = vpack.c.bf16 %v5323_v16, %v5315_v47  ;;  %v9891_v23 = vpack.c.bf16 %v5324_v32, %v5316_v7  ;;  %5349 = vst [vmem:[#allocation2 + $0x50] sm:$0xff] %v9877_v56  ;;  %v7232_v38 = vmov (!%p6953_p5), 0   ;;  %v6142_v55 = vld [vmem:[%s11358_s5 + $0xc0] sm:$0xff] (!%p6953_p5)  ;;  %v6145_v21 = vld [vmem:[%s11358_s5 + $0xd8] sm:$0xff] (!%p6953_p5)  ;;  %v7191_v58 = vld [vmem:[%s11357_s4 + $0x48] sm:$0xff] (!%p6953_p5)  }
 0x619   : > { %5350 = vst [vmem:[#allocation2 + $0x58] sm:$0xff] %v9879_v61  ;;  %5351 = vst [vmem:[#allocation2 + $0x60] sm:$0xff] %v9881_v54  ;;  %5540 = vmatprep.subr.bf16.mxu0 (!%p6953_p5), %v9879_v61  ;;  %5653 = vmatprep.subr.bf16.mxu1 (!%p6953_p5), %v9883_v35  ;;  %v7190_v33 = vld [vmem:[%s11357_s4 + $0x40] sm:$0xff] (!%p6953_p5)   ;;  %v7192_v59 = vld [vmem:[%s11357_s4 + $0x50] sm:$0xff] (!%p6953_p5)  }
 0x61a   : > { %5352 = vst [vmem:[#allocation2 + $0x68] sm:$0xff] %v9883_v35  ;;  %5353 = vst [vmem:[#allocation2 + $0x70] sm:$0xff] %v9885_v13  ;;  %5570 = vmatprep.mubr.bf16.mxu0 (!%p6953_p5), %v7232_v38  ;;  %5683 = vmatprep.mubr.bf16.mxu1 (!%p6953_p5), %v7232_v38  ;;  %v6146_v27 = vld [vmem:[%s11358_s5 + $0xe0] sm:$0xff] (!%p6953_p5)  ;;  %v6149_v57 = vld [vmem:[%s11358_s5 + $0xf8] sm:$0xff] (!%p6953_p5) }
 0x61b   : > { %5354 = vst [vmem:[#allocation2 + $0x78] sm:$0xff] %v9887_v14  ;;  %5355 = vst [vmem:[#allocation2 + $0x80] sm:$0xff] %v9889_v15  ;;  %7180 = vset.pattern.permute.xlu0 (!%p6953_p5), %v7232_v38  ;;  %7181 = vset.pattern.permute.xlu1 (!%p6953_p5), %v7232_v38  ;;  %v10170_v44 = vld [vmem:[%s11357_s4 + $0x58] sm:$0xff] (!%p6953_p5)   ;;  %v10181_v47 = vld [vmem:[%s11357_s4 + $0x60] sm:$0xff] (!%p6953_p5)  }
 0x61c   : > { %5356 = vst [vmem:[#allocation2 + $0x88] sm:$0xff] %v9891_v23  ;;  %5541 = vmatpush1.bf16.msra.mxu0 (!%p6953_p5), %v9877_v56  ;;  %5654 = vmatpush1.bf16.msra.mxu1 (!%p6953_p5), %v9881_v54  ;;  %v10192_v50 = vld [vmem:[%s11357_s4 + $0x68] sm:$0xff] (!%p6953_p5)   ;;  %v10203_v7 = vld [vmem:[%s11357_s4 + $0x70] sm:$0xff] (!%p6953_p5)   ;;  %v10214_v1 = vld [vmem:[%s11357_s4 + $0x78] sm:$0xff] (!%p6953_p5)  }
 0x61d   : > { %5764 = vmatprep.subr.bf16.mxu0 %v9797_v62  ;;  %5877 = vmatprep.subr.bf16.mxu1 %v9803_v28 }
 0x61e   : > { %5395 = vperm.xlu0 %7180, %v5377_v3   ;;  %5405 = vperm.xlu1 %7181, %v5379_v52  }
 0x61f   : > { %6962 = vmatmul.mubr.msk.bf16.vlgmr.msra.gmra.mrb[0].mxu0 %vm5513_vm15, %v9913_v0  ;;  %6970 = vmatmul.mubr.msk.bf16.vlgmr.msra.gmra.mrb[0].mxu1 %vm5513_vm15, %v9913_v0 }
 0x620   : > { %5765 = vmatpush1.bf16.msra.mxu0 %v9794_v11  ;;  %5878 = vmatpush1.bf16.msra.mxu1 %v9800_v36 }
 0x621   : > { %5580 = vmatprep.mubr.bf16.mxu0 %v7232_v38  ;;  %5693 = vmatprep.mubr.bf16.mxu1 %v7232_v38 }
 0x622   : > { %5766 = vmatprep.subr.bf16.mxu0 %v9887_v14  ;;  %5879 = vmatprep.subr.bf16.mxu1 %v9891_v23 }
 0x623   : > { %5400 = vperm.xlu0 %7180, %v5378_v22   ;;  %5410 = vperm.xlu1 %7181, %v5380_v53  }
 0x624   : > { %5767 = vmatpush1.bf16.msra.mxu0 %v9885_v13  ;;  %5880 = vmatpush1.bf16.msra.mxu1 %v9889_v15 }
 0x625   : > { %6294 = vmatprep.subr.bf16.mxu0 %v9785_v17  ;;  %6407 = vmatprep.subr.bf16.mxu1 %v9791_v9  ;;  %v5381_v17 = vld [vmem:[%s11358_s5 + $0x20] sm:$0xff]  ;;  %v5382_v9 = vld [vmem:[%s11358_s5 + $0x28] sm:$0xff] }
 0x627   : > { %6963 = vmatmul.mubr.msk.bf16.gmra.mrb[4].mxu0 %vm5513_vm15, %v9940_v24  ;;  %6971 = vmatmul.mubr.msk.bf16.gmra.mrb[4].mxu1 %vm5513_vm15, %v9940_v24 }
 0x628   : > { %5590 = vmatprep.mubr.bf16.mxu0 %v7232_v38  ;;  %5703 = vmatprep.mubr.bf16.mxu1 %v7232_v38 }
 0x629   : > { %5415 = vperm.xlu0 %7180, %v5381_v17   ;;  %5420 = vperm.xlu1 %7181, %v5382_v9  }
 0x62d   : > { %5425 = vperm.xlu0 %7180, %v5383_v2   ;;  %5430 = vperm.xlu1 %7181, %v5384_v60  }
 0x62f   : > { %6964 = vmatmul.mubr.msk.bf16.gmra.mrb[8].mxu0 %vm5513_vm15, %v9967_v10  ;;  %6972 = vmatmul.mubr.msk.bf16.gmra.mrb[8].mxu1 %vm5513_vm15, %v9967_v10 }
 0x630   : > { %5600 = vmatprep.mubr.bf16.mxu0 %v7232_v38  ;;  %5713 = vmatprep.mubr.bf16.mxu1 %v7232_v38 }
 0x631   : > { %5435 = vperm.xlu0 %7180, %v5385_v30   ;;  %5440 = vperm.xlu1 %7181, %v5386_v51  }
 0x635   : > { %5445 = vperm.xlu0 %7180, %v5387_v19   ;;  %5450 = vperm.xlu1 %7181, %v5388_v63  }
 0x637   : > { %6965 = vmatmul.mubr.msk.bf16.gmra.mrb[12].mxu0 %vm5513_vm15, %v9990_v45  ;;  %6973 = vmatmul.mubr.msk.bf16.gmra.mrb[12].mxu1 %vm5513_vm15, %v9990_v45 }
 0x638   : > { %5610 = vmatprep.mubr.bf16.mxu0 %v7232_v38  ;;  %5723 = vmatprep.mubr.bf16.mxu1 %v7232_v38 }
 0x639   : > { %5455 = vperm.xlu0 %7180, %v5389_v37   ;;  %5460 = vperm.xlu1 %7181, %v5390_v40  }
 0x63d   : > { %5465 = vperm.xlu0 %7180, %v5391_v49   ;;  %5470 = vperm.xlu1 %7181, %v5392_v34  }
 0x63f   : > { %6966 = vmatmul.mubr.msk.bf16.gmra.mrb[16].mxu0 %vm5513_vm15, %v7186_v43  ;;  %6974 = vmatmul.mubr.msk.bf16.gmra.mrb[16].mxu1 %vm5513_vm15, %v7186_v43 }
 0x640   : > { %5620 = vmatprep.mubr.bf16.mxu0 %v7232_v38  ;;  %5733 = vmatprep.mubr.bf16.mxu1 %v7232_v38 }
 0x647   : > { %6967 = vmatmul.mubr.msk.bf16.gmra.mrb[20].mxu0 %vm5513_vm15, %v7187_v26  ;;  %6975 = vmatmul.mubr.msk.bf16.gmra.mrb[20].mxu1 %vm5513_vm15, %v7187_v26 }
 0x648   : > { %5630 = vmatprep.mubr.bf16.mxu0 %v7232_v38  ;;  %5743 = vmatprep.mubr.bf16.mxu1 %v7232_v38 }
 0x64f   : > { %6968 = vmatmul.mubr.msk.bf16.gmra.mrb[24].mxu0 %vm5513_vm15, %v7188_v42  ;;  %6976 = vmatmul.mubr.msk.bf16.gmra.mrb[24].mxu1 %vm5513_vm15, %v7188_v42 }
 0x650   : > { %5640 = vmatprep.mubr.bf16.mxu0 %v7232_v38  ;;  %5753 = vmatprep.mubr.bf16.mxu1 %v7232_v38 }
 0x657   : > { %6969 = vmatmul.mubr.msk.bf16.gmra.mrb[28].mxu0 %vm5513_vm15, %v7189_v25  ;;  %6977 = vmatmul.mubr.msk.bf16.gmra.mrb[28].mxu1 %vm5513_vm15, %v7189_v25 }
 0x658   : > { %5796 = vmatprep.mubr.bf16.mxu0 %v7232_v38  ;;  %5909 = vmatprep.mubr.bf16.mxu1 %v7232_v38 }
 0x65f   : > { %6978 = vmatmul.mubr.msk.bf16.vlgmr.msra.gmra.mrb[32].mxu0 %vm5513_vm15, %v9913_v0  ;;  %6986 = vmatmul.mubr.msk.bf16.vlgmr.msra.gmra.mrb[32].mxu1 %vm5513_vm15, %v9913_v0 }
 0x660   : > { %6295 = vmatpush1.bf16.msra.mxu0 %v9782_v12  ;;  %6408 = vmatpush1.bf16.msra.mxu1 %v9788_v39  ;;  %v6134_v12 = vld [vmem:[%s11358_s5 + $0x80] sm:$0xff]  ;;  %v6135_v39 = vld [vmem:[%s11358_s5 + $0x88] sm:$0xff] }
 0x661   : > { %5806 = vmatprep.mubr.bf16.mxu0 %v7232_v38  ;;  %5919 = vmatprep.mubr.bf16.mxu1 %v7232_v38 }
 0x662   : > { %6296 = vmatprep.subr.bf16.mxu0 %v9879_v61  ;;  %6409 = vmatprep.subr.bf16.mxu1 %v9883_v35 }
 0x663   : > { %6152 = vperm.xlu0 %7180, %v6134_v12   ;;  %6157 = vperm.xlu1 %7181, %v6135_v39  }
 0x664   : > { %6297 = vmatpush1.bf16.msra.mxu0 %v9877_v56  ;;  %6410 = vmatpush1.bf16.msra.mxu1 %v9881_v54 }
 0x665   : > { %6520 = vmatprep.subr.bf16.mxu0 %v9797_v62  ;;  %6633 = vmatprep.subr.bf16.mxu1 %v9803_v28  ;;  %v6136_v62 = vld [vmem:[%s11358_s5 + $0x90] sm:$0xff]  ;;  %v6137_v28 = vld [vmem:[%s11358_s5 + $0x98] sm:$0xff] }
 0x667   : > { %6979 = vmatmul.mubr.msk.bf16.gmra.mrb[36].mxu0 %vm5513_vm15, %v9940_v24  ;;  %6987 = vmatmul.mubr.msk.bf16.gmra.mrb[36].mxu1 %vm5513_vm15, %v9940_v24 }
 0x668   : > { %5816 = vmatprep.mubr.bf16.mxu0 %v7232_v38  ;;  %5929 = vmatprep.mubr.bf16.mxu1 %v7232_v38 }
 0x669   : > { %6162 = vperm.xlu0 %7180, %v6136_v62   ;;  %6167 = vperm.xlu1 %7181, %v6137_v28  }
 0x66d   : > { %6172 = vperm.xlu0 %7180, %v6138_v48   ;;  %6177 = vperm.xlu1 %7181, %v6139_v29  }
 0x66f   : > { %6980 = vmatmul.mubr.msk.bf16.gmra.mrb[40].mxu0 %vm5513_vm15, %v9967_v10  ;;  %6988 = vmatmul.mubr.msk.bf16.gmra.mrb[40].mxu1 %vm5513_vm15, %v9967_v10 }
 0x670   : > { %5826 = vmatprep.mubr.bf16.mxu0 %v7232_v38  ;;  %5939 = vmatprep.mubr.bf16.mxu1 %v7232_v38 }
 0x671   : > { %6182 = vperm.xlu0 %7180, %v6140_v4   ;;  %6187 = vperm.xlu1 %7181, %v6141_v5  }
 0x675   : > { %6192 = vperm.xlu0 %7180, %v6142_v55   ;;  %6197 = vperm.xlu1 %7181, %v6143_v6  }
 0x677   : > { %6981 = vmatmul.mubr.msk.bf16.gmra.mrb[44].mxu0 %vm5513_vm15, %v9990_v45  ;;  %6989 = vmatmul.mubr.msk.bf16.gmra.mrb[44].mxu1 %vm5513_vm15, %v9990_v45 }
 0x678   : > { %5836 = vmatprep.mubr.bf16.mxu0 %v7232_v38  ;;  %5949 = vmatprep.mubr.bf16.mxu1 %v7232_v38 }
 0x679   : > { %6202 = vperm.xlu0 %7180, %v6144_v31   ;;  %6207 = vperm.xlu1 %7181, %v6145_v21  }
 0x67d   : > { %6212 = vperm.xlu0 %7180, %v6146_v27  }
 0x67f   : > { %6982 = vmatmul.mubr.msk.bf16.gmra.mrb[48].mxu0 %vm5513_vm15, %v7186_v43  ;;  %6990 = vmatmul.mubr.msk.bf16.gmra.mrb[48].mxu1 %vm5513_vm15, %v7186_v43 }
 0x680   : > { %5846 = vmatprep.mubr.bf16.mxu0 %v7232_v38  ;;  %5959 = vmatprep.mubr.bf16.mxu1 %v7232_v38 }
 0x687   : > { %6983 = vmatmul.mubr.msk.bf16.gmra.mrb[52].mxu0 %vm5513_vm15, %v7187_v26  ;;  %6991 = vmatmul.mubr.msk.bf16.gmra.mrb[52].mxu1 %vm5513_vm15, %v7187_v26 }
 0x688   : > { %5856 = vmatprep.mubr.bf16.mxu0 %v7232_v38  ;;  %5969 = vmatprep.mubr.bf16.mxu1 %v7232_v38 }
 0x68f   : > { %6984 = vmatmul.mubr.msk.bf16.gmra.mrb[56].mxu0 %vm5513_vm15, %v7188_v42  ;;  %6992 = vmatmul.mubr.msk.bf16.gmra.mrb[56].mxu1 %vm5513_vm15, %v7188_v42 }
 0x690   : > { %5866 = vmatprep.mubr.bf16.mxu0 %v7232_v38  ;;  %5979 = vmatprep.mubr.bf16.mxu1 %v7232_v38 }
 0x697   : > { %6985 = vmatmul.mubr.msk.bf16.gmra.mrb[60].mxu0 %vm5513_vm15, %v7189_v25  ;;  %6993 = vmatmul.mubr.msk.bf16.gmra.mrb[60].mxu1 %vm5513_vm15, %v7189_v25 }
 0x698   : > { %6326 = vmatprep.mubr.bf16.mxu0 %v7232_v38  ;;  %6439 = vmatprep.mubr.bf16.mxu1 %v7232_v38 }
 0x69d   : > { %v10230_v46 = vpop.permute.xlu0 %5395  ;;  %v10238_v18 = vpop.permute.xlu1 %5405 }
 0x69f   : > { %7002 = vmatmul.mubr.msk.bf16.vlgmr.msra.gmra.mrb[64].mxu0 %vm5513_vm15, %v7190_v33  ;;  %7010 = vmatmul.mubr.msk.bf16.vlgmr.msra.gmra.mrb[64].mxu1 %vm5513_vm15, %v7190_v33 }
 0x6a0   : > { %6521 = vmatpush1.bf16.msra.mxu0 %v9794_v11  ;;  %6634 = vmatpush1.bf16.msra.mxu1 %v9800_v36  ;;  %v6147_v11 = vld [vmem:[%s11358_s5 + $0xe8] sm:$0xff]  ;;  %v6148_v36 = vld [vmem:[%s11358_s5 + $0xf0] sm:$0xff] }
 0x6a1   : > { %6336 = vmatprep.mubr.bf16.mxu0 %v7232_v38  ;;  %6449 = vmatprep.mubr.bf16.mxu1 %v7232_v38 }
 0x6a2   : > { %6522 = vmatprep.subr.bf16.mxu0 %v9887_v14  ;;  %6635 = vmatprep.subr.bf16.mxu1 %v9891_v23  ;;  %v10236_v20 = vpop.permute.xlu0 %5400  ;;  %v10278_v22 = vpop.permute.xlu1 %5410 }
 0x6a3   : > { %6217 = vperm.xlu1 %7181, %v6147_v11   ;;  %6222 = vperm.xlu0 %7180, %v6148_v36  }
 0x6a4   : > { %6523 = vmatpush1.bf16.msra.mxu0 %v9885_v13  ;;  %6636 = vmatpush1.bf16.msra.mxu1 %v9889_v15 }
 0x6a7   : > { %7003 = vmatmul.mubr.msk.bf16.gmra.mrb[68].mxu0 %vm5513_vm15, %v7191_v58  ;;  %7011 = vmatmul.mubr.msk.bf16.gmra.mrb[68].mxu1 %vm5513_vm15, %v7191_v58 }
 0x6a8   : > { %6346 = vmatprep.mubr.bf16.mxu0 %v7232_v38  ;;  %6459 = vmatprep.mubr.bf16.mxu1 %v7232_v38  ;;  %v10316_v26 = vpop.permute.xlu0 %5415  ;;  %v10320_v42 = vpop.permute.xlu1 %5420 }
 0x6a9   : > { %6227 = vperm.xlu1 %7181, %v6149_v57  }
 0x6ac   : > { %v10358_v11 = vpop.permute.xlu0 %5425  ;;  %v10362_v36 = vpop.permute.xlu1 %5430 }
 0x6af   : > { %7004 = vmatmul.mubr.msk.bf16.gmra.mrb[72].mxu0 %vm5513_vm15, %v7192_v59  ;;  %7012 = vmatmul.mubr.msk.bf16.gmra.mrb[72].mxu1 %vm5513_vm15, %v7192_v59 }
 0x6b0   : > { %6356 = vmatprep.mubr.bf16.mxu0 %v7232_v38  ;;  %6469 = vmatprep.mubr.bf16.mxu1 %v7232_v38 }
 0x6b7   : > { %7005 = vmatmul.mubr.msk.bf16.gmra.mrb[76].mxu0 %vm5513_vm15, %v10170_v44  ;;  %7013 = vmatmul.mubr.msk.bf16.gmra.mrb[76].mxu1 %vm5513_vm15, %v10170_v44 }
 0x6b8   : > { %6366 = vmatprep.mubr.bf16.mxu0 %v7232_v38  ;;  %6479 = vmatprep.mubr.bf16.mxu1 %v7232_v38 }
 0x6bf   : > { %7006 = vmatmul.mubr.msk.bf16.gmra.mrb[80].mxu0 %vm5513_vm15, %v10181_v47  ;;  %7014 = vmatmul.mubr.msk.bf16.gmra.mrb[80].mxu1 %vm5513_vm15, %v10181_v47 }
 0x6c0   : > { %6376 = vmatprep.mubr.bf16.mxu0 %v7232_v38  ;;  %6489 = vmatprep.mubr.bf16.mxu1 %v7232_v38 }
 0x6c7   : > { %7007 = vmatmul.mubr.msk.bf16.gmra.mrb[84].mxu0 %vm5513_vm15, %v10192_v50  ;;  %7015 = vmatmul.mubr.msk.bf16.gmra.mrb[84].mxu1 %vm5513_vm15, %v10192_v50 }
 0x6c8   : > { %6386 = vmatprep.mubr.bf16.mxu0 %v7232_v38  ;;  %6499 = vmatprep.mubr.bf16.mxu1 %v7232_v38 }
 0x6cf   : > { %7008 = vmatmul.mubr.msk.bf16.gmra.mrb[88].mxu0 %vm5513_vm15, %v10203_v7  ;;  %7016 = vmatmul.mubr.msk.bf16.gmra.mrb[88].mxu1 %vm5513_vm15, %v10203_v7 }
 0x6d0   : > { %6396 = vmatprep.mubr.bf16.mxu0 %v7232_v38  ;;  %6509 = vmatprep.mubr.bf16.mxu1 %v7232_v38 }
 0x6d7   : > { %7009 = vmatmul.mubr.msk.bf16.gmra.mrb[92].mxu0 %vm5513_vm15, %v10214_v1  ;;  %7017 = vmatmul.mubr.msk.bf16.gmra.mrb[92].mxu1 %vm5513_vm15, %v10214_v1 }
 0x6d8   : > { %6552 = vmatprep.mubr.bf16.mxu0 %v7232_v38  ;;  %6665 = vmatprep.mubr.bf16.mxu1 %v7232_v38 }
 0x6df   : > { %7018 = vmatmul.mubr.msk.bf16.vlgmr.msra.gmra.mrb[96].mxu0 %vm5513_vm15, %v7190_v33  ;;  %7026 = vmatmul.mubr.msk.bf16.vlgmr.msra.gmra.mrb[96].mxu1 %vm5513_vm15, %v7190_v33 }
 0x6e0   : > { %6562 = vmatprep.mubr.bf16.mxu0 %v7232_v38  ;;  %6675 = vmatprep.mubr.bf16.mxu1 %v7232_v38 }
 0x6e7   : > { %7019 = vmatmul.mubr.msk.bf16.gmra.mrb[100].mxu0 %vm5513_vm15, %v7191_v58  ;;  %7027 = vmatmul.mubr.msk.bf16.gmra.mrb[100].mxu1 %vm5513_vm15, %v7191_v58 }
 0x6e8   : > { %6572 = vmatprep.mubr.bf16.mxu0 %v7232_v38  ;;  %6685 = vmatprep.mubr.bf16.mxu1 %v7232_v38 }
 0x6ef   : > { %7020 = vmatmul.mubr.msk.bf16.gmra.mrb[104].mxu0 %vm5513_vm15, %v7192_v59  ;;  %7028 = vmatmul.mubr.msk.bf16.gmra.mrb[104].mxu1 %vm5513_vm15, %v7192_v59 }
 0x6f0   : > { %6582 = vmatprep.mubr.bf16.mxu0 %v7232_v38  ;;  %6695 = vmatprep.mubr.bf16.mxu1 %v7232_v38 }
 0x6f2   : > { %v5572_v8 = vpop.f32.mrb[0].mxu0  ;;  %v5685_v41 = vpop.f32.mrb[0].mxu1 }
 0x6f3   : > { %v5573_v16 = vadd.f32 %v5572_v8, %v10230_v46  ;;  %v5686_v32 = vadd.f32 %v5685_v41, %v10230_v46  ;;  %v5574_v56 = vpop.f32.mrb[1].mxu0  ;;  %v5687_v61 = vpop.f32.mrb[1].mxu1 }
 0x6f4   : > { %v5575_v54 = vadd.f32 %v5574_v56, %v10230_v46  ;;  %v5688_v35 = vadd.f32 %v5687_v61, %v10230_v46  ;;  %v5576_v13 = vpop.f32.mrb[2].mxu0  ;;  %v5689_v14 = vpop.f32.mrb[2].mxu1 }
 0x6f5   : > { %5990 = vst [vmem:[%s11360_s7] sm:$0xff] %v5573_v16  ;;  %5992 = vst [vmem:[%s11360_s7 + $0x10] sm:$0xff] %v5686_v32  ;;  %v5577_v15 = vadd.f32 %v5576_v13, %v10236_v20  ;;  %v5690_v23 = vadd.f32 %v5689_v14, %v10236_v20  ;;  %v5578_v0 = vpop.f32.mrb[3].mxu0  ;;  %v5691_v3 = vpop.f32.mrb[3].mxu1 }
 0x6f6   : > { %5991 = vst [vmem:[%s11360_s7 + $0x8] sm:$0xff] %v5575_v54  ;;  %5993 = vst [vmem:[%s11360_s7 + $0x18] sm:$0xff] %v5688_v35  ;;  %v5579_v52 = vadd.f32 %v5578_v0, %v10236_v20  ;;  %v5692_v24 = vadd.f32 %v5691_v3, %v10236_v20  ;;  %v10404_v0 = vpop.permute.xlu1 %5440 }
 0x6f7   : > { %5998 = vst [vmem:[%s11360_s7 + $0x40] sm:$0xff] %v5577_v15  ;;  %6000 = vst [vmem:[%s11360_s7 + $0x50] sm:$0xff] %v5690_v23  ;;  %7021 = vmatmul.mubr.msk.bf16.gmra.mrb[108].mxu0 %vm5513_vm15, %v10170_v44  ;;  %7029 = vmatmul.mubr.msk.bf16.gmra.mrb[108].mxu1 %vm5513_vm15, %v10170_v44  ;;  %v10400_v23 = vpop.permute.xlu0 %5435 }
 0x6f8   : > { %5999 = vst [vmem:[%s11360_s7 + $0x48] sm:$0xff] %v5579_v52  ;;  %6001 = vst [vmem:[%s11360_s7 + $0x58] sm:$0xff] %v5692_v24  ;;  %6592 = vmatprep.mubr.bf16.mxu0 %v7232_v38  ;;  %6705 = vmatprep.mubr.bf16.mxu1 %v7232_v38 }
 0x6fa   : > { %v5582_v53 = vpop.f32.mrb[4].mxu0  ;;  %v5695_v17 = vpop.f32.mrb[4].mxu1 }
 0x6fb   : > { %v5583_v9 = vadd.f32 %v5582_v53, %v10238_v18  ;;  %v5696_v10 = vadd.f32 %v5695_v17, %v10238_v18  ;;  %v5584_v2 = vpop.f32.mrb[5].mxu0  ;;  %v5697_v60 = vpop.f32.mrb[5].mxu1 }
 0x6fc   : > { %v5585_v30 = vadd.f32 %v5584_v2, %v10238_v18  ;;  %v5698_v51 = vadd.f32 %v5697_v60, %v10238_v18  ;;  %v5586_v45 = vpop.f32.mrb[6].mxu0  ;;  %v5699_v19 = vpop.f32.mrb[6].mxu1 }
 0x6fd   : > { %6006 = vst [vmem:[%s11360_s7 + $0x80] sm:$0xff] %v5583_v9  ;;  %6008 = vst [vmem:[%s11360_s7 + $0x90] sm:$0xff] %v5696_v10  ;;  %v5587_v63 = vadd.f32 %v5586_v45, %v10278_v22  ;;  %v5700_v37 = vadd.f32 %v5699_v19, %v10278_v22  ;;  %v5588_v40 = vpop.f32.mrb[7].mxu0  ;;  %v5701_v43 = vpop.f32.mrb[7].mxu1 }
 0x6fe   : > { %6007 = vst [vmem:[%s11360_s7 + $0x88] sm:$0xff] %v5585_v30  ;;  %6009 = vst [vmem:[%s11360_s7 + $0x98] sm:$0xff] %v5698_v51  ;;  %v5589_v49 = vadd.f32 %v5588_v40, %v10278_v22  ;;  %v5702_v34 = vadd.f32 %v5701_v43, %v10278_v22  ;;  %v10444_v40 = vpop.permute.xlu1 %5450 }
 0x6ff   : > { %6014 = vst [vmem:[%s11360_s7 + $0xc0] sm:$0xff] %v5587_v63  ;;  %6016 = vst [vmem:[%s11360_s7 + $0xd0] sm:$0xff] %v5700_v37  ;;  %7022 = vmatmul.mubr.msk.bf16.gmra.mrb[112].mxu0 %vm5513_vm15, %v10181_v47  ;;  %7030 = vmatmul.mubr.msk.bf16.gmra.mrb[112].mxu1 %vm5513_vm15, %v10181_v47  ;;  %v10442_v37 = vpop.permute.xlu0 %5445 }
 0x700   : > { %6015 = vst [vmem:[%s11360_s7 + $0xc8] sm:$0xff] %v5589_v49  ;;  %6017 = vst [vmem:[%s11360_s7 + $0xd8] sm:$0xff] %v5702_v34  ;;  %6602 = vmatprep.mubr.bf16.mxu0 %v7232_v38  ;;  %6715 = vmatprep.mubr.bf16.mxu1 %v7232_v38 }
 0x702   : > { %v5592_v25 = vpop.f32.mrb[8].mxu0  ;;  %v5705_v12 = vpop.f32.mrb[8].mxu1 }
 0x703   : > { %v5593_v39 = vadd.f32 %v5592_v25, %v10316_v26  ;;  %v5706_v62 = vadd.f32 %v5705_v12, %v10316_v26  ;;  %v5594_v28 = vpop.f32.mrb[9].mxu0  ;;  %v5707_v48 = vpop.f32.mrb[9].mxu1 }
 0x704   : > { %v5595_v29 = vadd.f32 %v5594_v28, %v10316_v26  ;;  %v5708_v4 = vadd.f32 %v5707_v48, %v10316_v26  ;;  %v5596_v5 = vpop.f32.mrb[10].mxu0  ;;  %v5709_v55 = vpop.f32.mrb[10].mxu1 }
 0x705   : > { %6022 = vst [vmem:[%s11360_s7 + $0x100] sm:$0xff] %v5593_v39  ;;  %6024 = vst [vmem:[%s11360_s7 + $0x110] sm:$0xff] %v5706_v62  ;;  %v5597_v6 = vadd.f32 %v5596_v5, %v10320_v42  ;;  %v5710_v31 = vadd.f32 %v5709_v55, %v10320_v42  ;;  %v5598_v33 = vpop.f32.mrb[11].mxu0  ;;  %v5711_v21 = vpop.f32.mrb[11].mxu1 }
 0x706   : > { %6023 = vst [vmem:[%s11360_s7 + $0x108] sm:$0xff] %v5595_v29  ;;  %6025 = vst [vmem:[%s11360_s7 + $0x118] sm:$0xff] %v5708_v4  ;;  %v5599_v27 = vadd.f32 %v5598_v33, %v10320_v42  ;;  %v5712_v58 = vadd.f32 %v5711_v21, %v10320_v42  ;;  %v10478_v33 = vpop.permute.xlu0 %5455  ;;  %v10480_v21 = vpop.permute.xlu1 %5460 }
 0x707   : > { %6030 = vst [vmem:[%s11360_s7 + $0x140] sm:$0xff] %v5597_v6  ;;  %6032 = vst [vmem:[%s11360_s7 + $0x150] sm:$0xff] %v5710_v31  ;;  %7023 = vmatmul.mubr.msk.bf16.gmra.mrb[116].mxu0 %vm5513_vm15, %v10192_v50  ;;  %7031 = vmatmul.mubr.msk.bf16.gmra.mrb[116].mxu1 %vm5513_vm15, %v10192_v50 }
 0x708   : > { %6031 = vst [vmem:[%s11360_s7 + $0x148] sm:$0xff] %v5599_v27  ;;  %6033 = vst [vmem:[%s11360_s7 + $0x158] sm:$0xff] %v5712_v58  ;;  %6612 = vmatprep.mubr.bf16.mxu0 %v7232_v38  ;;  %6725 = vmatprep.mubr.bf16.mxu1 %v7232_v38 }
 0x70a   : > { %v5602_v59 = vpop.f32.mrb[12].mxu0  ;;  %v5715_v57 = vpop.f32.mrb[12].mxu1 }
 0x70b   : > { %v5603_v44 = vadd.f32 %v5602_v59, %v10358_v11  ;;  %v5716_v47 = vadd.f32 %v5715_v57, %v10358_v11  ;;  %v5604_v50 = vpop.f32.mrb[13].mxu0  ;;  %v5717_v8 = vpop.f32.mrb[13].mxu1 }
 0x70c   : > { %v5605_v41 = vadd.f32 %v5604_v50, %v10358_v11  ;;  %v5718_v16 = vadd.f32 %v5717_v8, %v10358_v11  ;;  %v5606_v32 = vpop.f32.mrb[14].mxu0  ;;  %v5719_v56 = vpop.f32.mrb[14].mxu1 }
 0x70d   : > { %6038 = vst [vmem:[%s11360_s7 + $0x180] sm:$0xff] %v5603_v44  ;;  %6040 = vst [vmem:[%s11360_s7 + $0x190] sm:$0xff] %v5716_v47  ;;  %v5607_v61 = vadd.f32 %v5606_v32, %v10362_v36  ;;  %v5720_v54 = vadd.f32 %v5719_v56, %v10362_v36  ;;  %v5608_v35 = vpop.f32.mrb[15].mxu0  ;;  %v5721_v13 = vpop.f32.mrb[15].mxu1 }
 0x70e   : > { %6039 = vst [vmem:[%s11360_s7 + $0x188] sm:$0xff] %v5605_v41  ;;  %6041 = vst [vmem:[%s11360_s7 + $0x198] sm:$0xff] %v5718_v16  ;;  %v5609_v14 = vadd.f32 %v5608_v35, %v10362_v36  ;;  %v5722_v15 = vadd.f32 %v5721_v13, %v10362_v36 }
 0x70f   : > { %6046 = vst [vmem:[%s11360_s7 + $0x1c0] sm:$0xff] %v5607_v61  ;;  %6048 = vst [vmem:[%s11360_s7 + $0x1d0] sm:$0xff] %v5720_v54  ;;  %7024 = vmatmul.mubr.msk.bf16.gmra.mrb[120].mxu0 %vm5513_vm15, %v10203_v7  ;;  %7032 = vmatmul.mubr.msk.bf16.gmra.mrb[120].mxu1 %vm5513_vm15, %v10203_v7 }
 0x710   : > { %6047 = vst [vmem:[%s11360_s7 + $0x1c8] sm:$0xff] %v5609_v14  ;;  %6049 = vst [vmem:[%s11360_s7 + $0x1d8] sm:$0xff] %v5722_v15  ;;  %6622 = vmatprep.mubr.bf16.mxu0 %v7232_v38  ;;  %6735 = vmatprep.mubr.bf16.mxu1 %v7232_v38  ;;  %v10514_v14 = vpop.permute.xlu0 %5465  ;;  %v10516_v15 = vpop.permute.xlu1 %5470 }
 0x712   : > { %v5612_v3 = vpop.f32.mrb[16].mxu0  ;;  %v5725_v52 = vpop.f32.mrb[16].mxu1 }
 0x713   : > { %v5613_v7 = vadd.f32 %v5612_v3, %v10400_v23  ;;  %v5726_v24 = vadd.f32 %v5725_v52, %v10400_v23  ;;  %v5614_v53 = vpop.f32.mrb[17].mxu0  ;;  %v5727_v17 = vpop.f32.mrb[17].mxu1 }
 0x714   : > { %v5615_v9 = vadd.f32 %v5614_v53, %v10400_v23  ;;  %v5728_v10 = vadd.f32 %v5727_v17, %v10400_v23  ;;  %v5616_v2 = vpop.f32.mrb[18].mxu0  ;;  %v5729_v60 = vpop.f32.mrb[18].mxu1 }
 0x715   : > { %6054 = vst [vmem:[%s11360_s7 + $0x200] sm:$0xff] %v5613_v7  ;;  %6056 = vst [vmem:[%s11360_s7 + $0x210] sm:$0xff] %v5726_v24  ;;  %v5617_v38 = vadd.f32 %v5616_v2, %v10404_v0  ;;  %v5730_v30 = vadd.f32 %v5729_v60, %v10404_v0  ;;  %v5618_v51 = vpop.f32.mrb[19].mxu0  ;;  %v5731_v45 = vpop.f32.mrb[19].mxu1 }
 0x716   : > { %6055 = vst [vmem:[%s11360_s7 + $0x208] sm:$0xff] %v5615_v9  ;;  %6057 = vst [vmem:[%s11360_s7 + $0x218] sm:$0xff] %v5728_v10  ;;  %v5619_v19 = vadd.f32 %v5618_v51, %v10404_v0  ;;  %v5732_v63 = vadd.f32 %v5731_v45, %v10404_v0 }
 0x717   : > { %6062 = vst [vmem:[%s11360_s7 + $0x240] sm:$0xff] %v5617_v38  ;;  %6064 = vst [vmem:[%s11360_s7 + $0x250] sm:$0xff] %v5730_v30  ;;  %7025 = vmatmul.mubr.msk.bf16.gmra.mrb[124].mxu0 %vm5513_vm15, %v10214_v1  ;;  %7033 = vmatmul.mubr.msk.bf16.gmra.mrb[124].mxu1 %vm5513_vm15, %v10214_v1 }
 0x718   : > { %6063 = vst [vmem:[%s11360_s7 + $0x248] sm:$0xff] %v5619_v19  ;;  %6065 = vst [vmem:[%s11360_s7 + $0x258] sm:$0xff] %v5732_v63 }
 0x71a   : > { %v5622_v43 = vpop.f32.mrb[20].mxu0  ;;  %v5735_v49 = vpop.f32.mrb[20].mxu1 }
 0x71b   : > { %v5623_v34 = vadd.f32 %v5622_v43, %v10442_v37  ;;  %v5736_v25 = vadd.f32 %v5735_v49, %v10442_v37  ;;  %v5624_v12 = vpop.f32.mrb[21].mxu0  ;;  %v5737_v1 = vpop.f32.mrb[21].mxu1 }
 0x71c   : > { %v5625_v39 = vadd.f32 %v5624_v12, %v10442_v37  ;;  %v5738_v62 = vadd.f32 %v5737_v1, %v10442_v37  ;;  %v5626_v28 = vpop.f32.mrb[22].mxu0  ;;  %v5739_v48 = vpop.f32.mrb[22].mxu1 }
 0x71d   : > { %6070 = vst [vmem:[%s11360_s7 + $0x280] sm:$0xff] %v5623_v34  ;;  %6072 = vst [vmem:[%s11360_s7 + $0x290] sm:$0xff] %v5736_v25  ;;  %v5627_v29 = vadd.f32 %v5626_v28, %v10444_v40  ;;  %v5740_v4 = vadd.f32 %v5739_v48, %v10444_v40  ;;  %v5628_v5 = vpop.f32.mrb[23].mxu0  ;;  %v5741_v55 = vpop.f32.mrb[23].mxu1 }
 0x71e   : > { %6071 = vst [vmem:[%s11360_s7 + $0x288] sm:$0xff] %v5625_v39  ;;  %6073 = vst [vmem:[%s11360_s7 + $0x298] sm:$0xff] %v5738_v62  ;;  %v5629_v6 = vadd.f32 %v5628_v5, %v10444_v40  ;;  %v5742_v31 = vadd.f32 %v5741_v55, %v10444_v40 }
 0x71f   : > { %6078 = vst [vmem:[%s11360_s7 + $0x2c0] sm:$0xff] %v5627_v29  ;;  %6080 = vst [vmem:[%s11360_s7 + $0x2d0] sm:$0xff] %v5740_v4 }
 0x720   : > { %6079 = vst [vmem:[%s11360_s7 + $0x2c8] sm:$0xff] %v5629_v6  ;;  %6081 = vst [vmem:[%s11360_s7 + $0x2d8] sm:$0xff] %v5742_v31 }
 0x722   : > { %v5632_v27 = vpop.f32.mrb[24].mxu0  ;;  %v5745_v58 = vpop.f32.mrb[24].mxu1 }
 0x723   : > { %v5633_v59 = vadd.f32 %v5632_v27, %v10478_v33  ;;  %v5746_v57 = vadd.f32 %v5745_v58, %v10478_v33  ;;  %v5634_v44 = vpop.f32.mrb[25].mxu0  ;;  %v5747_v47 = vpop.f32.mrb[25].mxu1 }
 0x724   : > { %v5635_v50 = vadd.f32 %v5634_v44, %v10478_v33  ;;  %v5748_v8 = vadd.f32 %v5747_v47, %v10478_v33  ;;  %v5636_v41 = vpop.f32.mrb[26].mxu0  ;;  %v5749_v16 = vpop.f32.mrb[26].mxu1 }
 0x725   : > { %6086 = vst [vmem:[%s11360_s7 + $0x300] sm:$0xff] %v5633_v59  ;;  %6088 = vst [vmem:[%s11360_s7 + $0x310] sm:$0xff] %v5746_v57  ;;  %v5637_v32 = vadd.f32 %v5636_v41, %v10480_v21  ;;  %v5750_v56 = vadd.f32 %v5749_v16, %v10480_v21  ;;  %v5638_v61 = vpop.f32.mrb[27].mxu0  ;;  %v5751_v54 = vpop.f32.mrb[27].mxu1 }
 0x726   : > { %6087 = vst [vmem:[%s11360_s7 + $0x308] sm:$0xff] %v5635_v50  ;;  %6089 = vst [vmem:[%s11360_s7 + $0x318] sm:$0xff] %v5748_v8  ;;  %v5639_v35 = vadd.f32 %v5638_v61, %v10480_v21  ;;  %v5752_v13 = vadd.f32 %v5751_v54, %v10480_v21 }
 0x727   : > { %6094 = vst [vmem:[%s11360_s7 + $0x340] sm:$0xff] %v5637_v32  ;;  %6096 = vst [vmem:[%s11360_s7 + $0x350] sm:$0xff] %v5750_v56 }
 0x728   : > { %6095 = vst [vmem:[%s11360_s7 + $0x348] sm:$0xff] %v5639_v35  ;;  %6097 = vst [vmem:[%s11360_s7 + $0x358] sm:$0xff] %v5752_v13 }
 0x72a   : > { %v5642_v3 = vpop.f32.mrb[28].mxu0  ;;  %v5755_v52 = vpop.f32.mrb[28].mxu1 }
 0x72b   : > { %v5643_v7 = vadd.f32 %v5642_v3, %v10514_v14  ;;  %v5756_v24 = vadd.f32 %v5755_v52, %v10514_v14  ;;  %v5644_v53 = vpop.f32.mrb[29].mxu0  ;;  %v5757_v17 = vpop.f32.mrb[29].mxu1 }
 0x72c   : > { %v5645_v9 = vadd.f32 %v5644_v53, %v10514_v14  ;;  %v5758_v10 = vadd.f32 %v5757_v17, %v10514_v14  ;;  %v5646_v2 = vpop.f32.mrb[30].mxu0  ;;  %v5759_v60 = vpop.f32.mrb[30].mxu1 }
 0x72d   : > { %6102 = vst [vmem:[%s11360_s7 + $0x380] sm:$0xff] %v5643_v7  ;;  %6104 = vst [vmem:[%s11360_s7 + $0x390] sm:$0xff] %v5756_v24  ;;  %v5647_v38 = vadd.f32 %v5646_v2, %v10516_v15  ;;  %v5760_v30 = vadd.f32 %v5759_v60, %v10516_v15  ;;  %v5648_v51 = vpop.f32.mrb[31].mxu0  ;;  %v5761_v45 = vpop.f32.mrb[31].mxu1 }
 0x72e   : > { %6103 = vst [vmem:[%s11360_s7 + $0x388] sm:$0xff] %v5645_v9  ;;  %6105 = vst [vmem:[%s11360_s7 + $0x398] sm:$0xff] %v5758_v10  ;;  %v5649_v19 = vadd.f32 %v5648_v51, %v10516_v15  ;;  %v5762_v63 = vadd.f32 %v5761_v45, %v10516_v15 }
 0x72f   : > { %6110 = vst [vmem:[%s11360_s7 + $0x3c0] sm:$0xff] %v5647_v38  ;;  %6112 = vst [vmem:[%s11360_s7 + $0x3d0] sm:$0xff] %v5760_v30 }
 0x730   : > { %6111 = vst [vmem:[%s11360_s7 + $0x3c8] sm:$0xff] %v5649_v19  ;;  %6113 = vst [vmem:[%s11360_s7 + $0x3d8] sm:$0xff] %v5762_v63 }
 0x732   : > { %v5798_v43 = vpop.f32.mrb[32].mxu0  ;;  %v5911_v49 = vpop.f32.mrb[32].mxu1 }
 0x733   : > { %v5799_v34 = vadd.f32 %v5798_v43, %v10230_v46  ;;  %v5912_v25 = vadd.f32 %v5911_v49, %v10230_v46  ;;  %v5800_v12 = vpop.f32.mrb[33].mxu0  ;;  %v5913_v1 = vpop.f32.mrb[33].mxu1 }
 0x734   : > { %v5801_v39 = vadd.f32 %v5800_v12, %v10230_v46  ;;  %v5914_v62 = vadd.f32 %v5913_v1, %v10230_v46  ;;  %v5802_v28 = vpop.f32.mrb[34].mxu0  ;;  %v5915_v48 = vpop.f32.mrb[34].mxu1 }
 0x735   : > { %5994 = vst [vmem:[%s11360_s7 + $0x20] sm:$0xff] %v5799_v34  ;;  %5996 = vst [vmem:[%s11360_s7 + $0x30] sm:$0xff] %v5912_v25  ;;  %v5803_v29 = vadd.f32 %v5802_v28, %v10236_v20  ;;  %v5916_v4 = vadd.f32 %v5915_v48, %v10236_v20  ;;  %v5804_v5 = vpop.f32.mrb[35].mxu0  ;;  %v5917_v55 = vpop.f32.mrb[35].mxu1 }
 0x736   : > { %5995 = vst [vmem:[%s11360_s7 + $0x28] sm:$0xff] %v5801_v39  ;;  %5997 = vst [vmem:[%s11360_s7 + $0x38] sm:$0xff] %v5914_v62  ;;  %v5805_v46 = vadd.f32 %v5804_v5, %v10236_v20  ;;  %v5918_v6 = vadd.f32 %v5917_v55, %v10236_v20 }
 0x737   : > { %6002 = vst [vmem:[%s11360_s7 + $0x60] sm:$0xff] %v5803_v29  ;;  %6004 = vst [vmem:[%s11360_s7 + $0x70] sm:$0xff] %v5916_v4 }
 0x738   : > { %6003 = vst [vmem:[%s11360_s7 + $0x68] sm:$0xff] %v5805_v46  ;;  %6005 = vst [vmem:[%s11360_s7 + $0x78] sm:$0xff] %v5918_v6 }
 0x73a   : > { %v5808_v31 = vpop.f32.mrb[36].mxu0  ;;  %v5921_v27 = vpop.f32.mrb[36].mxu1 }
 0x73b   : > { %v5809_v20 = vadd.f32 %v5808_v31, %v10238_v18  ;;  %v5922_v58 = vadd.f32 %v5921_v27, %v10238_v18  ;;  %v5810_v59 = vpop.f32.mrb[37].mxu0  ;;  %v5923_v57 = vpop.f32.mrb[37].mxu1 }
 0x73c   : > { %v5811_v44 = vadd.f32 %v5810_v59, %v10238_v18  ;;  %v5924_v47 = vadd.f32 %v5923_v57, %v10238_v18  ;;  %v5812_v50 = vpop.f32.mrb[38].mxu0  ;;  %v5925_v8 = vpop.f32.mrb[38].mxu1 }
 0x73d   : > { %6010 = vst [vmem:[%s11360_s7 + $0xa0] sm:$0xff] %v5809_v20  ;;  %6012 = vst [vmem:[%s11360_s7 + $0xb0] sm:$0xff] %v5922_v58  ;;  %v5813_v41 = vadd.f32 %v5812_v50, %v10278_v22  ;;  %v5926_v16 = vadd.f32 %v5925_v8, %v10278_v22  ;;  %v5814_v32 = vpop.f32.mrb[39].mxu0  ;;  %v5927_v56 = vpop.f32.mrb[39].mxu1 }
 0x73e   : > { %6011 = vst [vmem:[%s11360_s7 + $0xa8] sm:$0xff] %v5811_v44  ;;  %6013 = vst [vmem:[%s11360_s7 + $0xb8] sm:$0xff] %v5924_v47  ;;  %v5815_v18 = vadd.f32 %v5814_v32, %v10278_v22  ;;  %v5928_v61 = vadd.f32 %v5927_v56, %v10278_v22 }
 0x73f   : > { %6018 = vst [vmem:[%s11360_s7 + $0xe0] sm:$0xff] %v5813_v41  ;;  %6020 = vst [vmem:[%s11360_s7 + $0xf0] sm:$0xff] %v5926_v16 }
 0x740   : > { %6019 = vst [vmem:[%s11360_s7 + $0xe8] sm:$0xff] %v5815_v18  ;;  %6021 = vst [vmem:[%s11360_s7 + $0xf8] sm:$0xff] %v5928_v61 }
 0x742   : > { %v5818_v54 = vpop.f32.mrb[40].mxu0  ;;  %v5931_v35 = vpop.f32.mrb[40].mxu1 }
 0x743   : > { %v5819_v22 = vadd.f32 %v5818_v54, %v10316_v26  ;;  %v5932_v13 = vadd.f32 %v5931_v35, %v10316_v26  ;;  %v5820_v3 = vpop.f32.mrb[41].mxu0  ;;  %v5933_v52 = vpop.f32.mrb[41].mxu1 }
 0x744   : > { %v5821_v7 = vadd.f32 %v5820_v3, %v10316_v26  ;;  %v5934_v24 = vadd.f32 %v5933_v52, %v10316_v26  ;;  %v5822_v53 = vpop.f32.mrb[42].mxu0  ;;  %v5935_v17 = vpop.f32.mrb[42].mxu1 }
 0x745   : > { %6026 = vst [vmem:[%s11360_s7 + $0x120] sm:$0xff] %v5819_v22  ;;  %6028 = vst [vmem:[%s11360_s7 + $0x130] sm:$0xff] %v5932_v13  ;;  %v5823_v9 = vadd.f32 %v5822_v53, %v10320_v42  ;;  %v5936_v10 = vadd.f32 %v5935_v17, %v10320_v42  ;;  %v5824_v2 = vpop.f32.mrb[43].mxu0  ;;  %v5937_v60 = vpop.f32.mrb[43].mxu1 }
 0x746   : > { %6027 = vst [vmem:[%s11360_s7 + $0x128] sm:$0xff] %v5821_v7  ;;  %6029 = vst [vmem:[%s11360_s7 + $0x138] sm:$0xff] %v5934_v24  ;;  %v5825_v26 = vadd.f32 %v5824_v2, %v10320_v42  ;;  %v5938_v38 = vadd.f32 %v5937_v60, %v10320_v42 }
 0x747   : > { %6034 = vst [vmem:[%s11360_s7 + $0x160] sm:$0xff] %v5823_v9  ;;  %6036 = vst [vmem:[%s11360_s7 + $0x170] sm:$0xff] %v5936_v10 }
 0x748   : > { %6035 = vst [vmem:[%s11360_s7 + $0x168] sm:$0xff] %v5825_v26  ;;  %6037 = vst [vmem:[%s11360_s7 + $0x178] sm:$0xff] %v5938_v38 }
 0x74a   : > { %v5828_v30 = vpop.f32.mrb[44].mxu0  ;;  %v5941_v51 = vpop.f32.mrb[44].mxu1 }
 0x74b   : > { %v5829_v42 = vadd.f32 %v5828_v30, %v10358_v11  ;;  %v5942_v45 = vadd.f32 %v5941_v51, %v10358_v11  ;;  %v5830_v19 = vpop.f32.mrb[45].mxu0  ;;  %v5943_v63 = vpop.f32.mrb[45].mxu1 }
 0x74c   : > { %v5831_v43 = vadd.f32 %v5830_v19, %v10358_v11  ;;  %v5944_v49 = vadd.f32 %v5943_v63, %v10358_v11  ;;  %v5832_v34 = vpop.f32.mrb[46].mxu0  ;;  %v5945_v25 = vpop.f32.mrb[46].mxu1 }
 0x74d   : > { %6042 = vst [vmem:[%s11360_s7 + $0x1a0] sm:$0xff] %v5829_v42  ;;  %6044 = vst [vmem:[%s11360_s7 + $0x1b0] sm:$0xff] %v5942_v45  ;;  %v5833_v12 = vadd.f32 %v5832_v34, %v10362_v36  ;;  %v5946_v1 = vadd.f32 %v5945_v25, %v10362_v36  ;;  %v5834_v39 = vpop.f32.mrb[47].mxu0  ;;  %v5947_v62 = vpop.f32.mrb[47].mxu1 }
 0x74e   : > { %6043 = vst [vmem:[%s11360_s7 + $0x1a8] sm:$0xff] %v5831_v43  ;;  %6045 = vst [vmem:[%s11360_s7 + $0x1b8] sm:$0xff] %v5944_v49  ;;  %v5835_v11 = vadd.f32 %v5834_v39, %v10362_v36  ;;  %v5948_v28 = vadd.f32 %v5947_v62, %v10362_v36 }
 0x74f   : > { %6050 = vst [vmem:[%s11360_s7 + $0x1e0] sm:$0xff] %v5833_v12  ;;  %6052 = vst [vmem:[%s11360_s7 + $0x1f0] sm:$0xff] %v5946_v1 }
 0x750   : > { %6051 = vst [vmem:[%s11360_s7 + $0x1e8] sm:$0xff] %v5835_v11  ;;  %6053 = vst [vmem:[%s11360_s7 + $0x1f8] sm:$0xff] %v5948_v28 }
 0x752   : > { %v5838_v48 = vpop.f32.mrb[48].mxu0  ;;  %v5951_v29 = vpop.f32.mrb[48].mxu1 }
 0x753   : > { %v5839_v36 = vadd.f32 %v5838_v48, %v10400_v23  ;;  %v5952_v4 = vadd.f32 %v5951_v29, %v10400_v23  ;;  %v5840_v5 = vpop.f32.mrb[49].mxu0  ;;  %v5953_v55 = vpop.f32.mrb[49].mxu1 }
 0x754   : > { %v5841_v46 = vadd.f32 %v5840_v5, %v10400_v23  ;;  %v5954_v6 = vadd.f32 %v5953_v55, %v10400_v23  ;;  %v5842_v31 = vpop.f32.mrb[50].mxu0  ;;  %v5955_v27 = vpop.f32.mrb[50].mxu1 }
 0x755   : > { %6058 = vst [vmem:[%s11360_s7 + $0x220] sm:$0xff] %v5839_v36  ;;  %6060 = vst [vmem:[%s11360_s7 + $0x230] sm:$0xff] %v5952_v4  ;;  %v5843_v20 = vadd.f32 %v5842_v31, %v10404_v0  ;;  %v5956_v58 = vadd.f32 %v5955_v27, %v10404_v0  ;;  %v5844_v59 = vpop.f32.mrb[51].mxu0  ;;  %v5957_v57 = vpop.f32.mrb[51].mxu1 }
 0x756   : > { %6059 = vst [vmem:[%s11360_s7 + $0x228] sm:$0xff] %v5841_v46  ;;  %6061 = vst [vmem:[%s11360_s7 + $0x238] sm:$0xff] %v5954_v6  ;;  %v5845_v23 = vadd.f32 %v5844_v59, %v10404_v0  ;;  %v5958_v44 = vadd.f32 %v5957_v57, %v10404_v0  ;;  %v10806_v29 = vpop.permute.xlu0 %6152  ;;  %v10808_v36 = vpop.permute.xlu1 %6157 }
 0x757   : > { %6066 = vst [vmem:[%s11360_s7 + $0x260] sm:$0xff] %v5843_v20  ;;  %6068 = vst [vmem:[%s11360_s7 + $0x270] sm:$0xff] %v5956_v58 }
 0x758   : > { %6067 = vst [vmem:[%s11360_s7 + $0x268] sm:$0xff] %v5845_v23  ;;  %6069 = vst [vmem:[%s11360_s7 + $0x278] sm:$0xff] %v5958_v44 }
 0x75a   : > { %v5848_v47 = vpop.f32.mrb[52].mxu0  ;;  %v5961_v50 = vpop.f32.mrb[52].mxu1 }
 0x75b   : > { %v5849_v0 = vadd.f32 %v5848_v47, %v10442_v37  ;;  %v5962_v8 = vadd.f32 %v5961_v50, %v10442_v37  ;;  %v5850_v41 = vpop.f32.mrb[53].mxu0  ;;  %v5963_v16 = vpop.f32.mrb[53].mxu1 }
 0x75c   : > { %v5851_v32 = vadd.f32 %v5850_v41, %v10442_v37  ;;  %v5964_v56 = vadd.f32 %v5963_v16, %v10442_v37  ;;  %v5852_v18 = vpop.f32.mrb[54].mxu0  ;;  %v5965_v61 = vpop.f32.mrb[54].mxu1 }
 0x75d   : > { %6074 = vst [vmem:[%s11360_s7 + $0x2a0] sm:$0xff] %v5849_v0  ;;  %6076 = vst [vmem:[%s11360_s7 + $0x2b0] sm:$0xff] %v5962_v8  ;;  %v5853_v54 = vadd.f32 %v5852_v18, %v10444_v40  ;;  %v5966_v35 = vadd.f32 %v5965_v61, %v10444_v40  ;;  %v5854_v22 = vpop.f32.mrb[55].mxu0  ;;  %v5967_v13 = vpop.f32.mrb[55].mxu1 }
 0x75e   : > { %6075 = vst [vmem:[%s11360_s7 + $0x2a8] sm:$0xff] %v5851_v32  ;;  %6077 = vst [vmem:[%s11360_s7 + $0x2b8] sm:$0xff] %v5964_v56  ;;  %v5855_v37 = vadd.f32 %v5854_v22, %v10444_v40  ;;  %v5968_v3 = vadd.f32 %v5967_v13, %v10444_v40  ;;  %v10842_v0 = vpop.permute.xlu0 %6162  ;;  %v10844_v8 = vpop.permute.xlu1 %6167 }
 0x75f   : > { %6082 = vst [vmem:[%s11360_s7 + $0x2e0] sm:$0xff] %v5853_v54  ;;  %6084 = vst [vmem:[%s11360_s7 + $0x2f0] sm:$0xff] %v5966_v35 }
 0x760   : > { %6083 = vst [vmem:[%s11360_s7 + $0x2e8] sm:$0xff] %v5855_v37  ;;  %6085 = vst [vmem:[%s11360_s7 + $0x2f8] sm:$0xff] %v5968_v3 }
 0x762   : > { %v5858_v52 = vpop.f32.mrb[56].mxu0  ;;  %v5971_v7 = vpop.f32.mrb[56].mxu1 }
 0x763   : > { %v5859_v40 = vadd.f32 %v5858_v52, %v10478_v33  ;;  %v5972_v24 = vadd.f32 %v5971_v7, %v10478_v33  ;;  %v5860_v53 = vpop.f32.mrb[57].mxu0  ;;  %v5973_v17 = vpop.f32.mrb[57].mxu1 }
 0x764   : > { %v5861_v9 = vadd.f32 %v5860_v53, %v10478_v33  ;;  %v5974_v10 = vadd.f32 %v5973_v17, %v10478_v33  ;;  %v5862_v2 = vpop.f32.mrb[58].mxu0  ;;  %v5975_v60 = vpop.f32.mrb[58].mxu1 }
 0x765   : > { %6090 = vst [vmem:[%s11360_s7 + $0x320] sm:$0xff] %v5859_v40  ;;  %6092 = vst [vmem:[%s11360_s7 + $0x330] sm:$0xff] %v5972_v24  ;;  %v5863_v26 = vadd.f32 %v5862_v2, %v10480_v21  ;;  %v5976_v38 = vadd.f32 %v5975_v60, %v10480_v21  ;;  %v5864_v30 = vpop.f32.mrb[59].mxu0  ;;  %v5977_v51 = vpop.f32.mrb[59].mxu1 }
 0x766   : > { %6091 = vst [vmem:[%s11360_s7 + $0x328] sm:$0xff] %v5861_v9  ;;  %6093 = vst [vmem:[%s11360_s7 + $0x338] sm:$0xff] %v5974_v10  ;;  %v5865_v33 = vadd.f32 %v5864_v30, %v10480_v21  ;;  %v5978_v42 = vadd.f32 %v5977_v51, %v10480_v21  ;;  %v10878_v53 = vpop.permute.xlu0 %6172  ;;  %v10880_v17 = vpop.permute.xlu1 %6177 }
 0x767   : > { %6098 = vst [vmem:[%s11360_s7 + $0x360] sm:$0xff] %v5863_v26  ;;  %6100 = vst [vmem:[%s11360_s7 + $0x370] sm:$0xff] %v5976_v38 }
 0x768   : > { %6099 = vst [vmem:[%s11360_s7 + $0x368] sm:$0xff] %v5865_v33  ;;  %6101 = vst [vmem:[%s11360_s7 + $0x378] sm:$0xff] %v5978_v42 }
 0x76a   : > { %v5868_v45 = vpop.f32.mrb[60].mxu0  ;;  %v5981_v19 = vpop.f32.mrb[60].mxu1 }
 0x76b   : > { %v5869_v21 = vadd.f32 %v5868_v45, %v10514_v14  ;;  %v5982_v63 = vadd.f32 %v5981_v19, %v10514_v14  ;;  %v5870_v43 = vpop.f32.mrb[61].mxu0  ;;  %v5983_v49 = vpop.f32.mrb[61].mxu1 }
 0x76c   : > { %v5871_v34 = vadd.f32 %v5870_v43, %v10514_v14  ;;  %v5984_v25 = vadd.f32 %v5983_v49, %v10514_v14  ;;  %v5872_v12 = vpop.f32.mrb[62].mxu0  ;;  %v5985_v1 = vpop.f32.mrb[62].mxu1 }
 0x76d   : > { %6106 = vst [vmem:[%s11360_s7 + $0x3a0] sm:$0xff] %v5869_v21  ;;  %6108 = vst [vmem:[%s11360_s7 + $0x3b0] sm:$0xff] %v5982_v63  ;;  %v5873_v39 = vadd.f32 %v5872_v12, %v10516_v15  ;;  %v5986_v62 = vadd.f32 %v5985_v1, %v10516_v15  ;;  %v5874_v11 = vpop.f32.mrb[63].mxu0  ;;  %v5987_v28 = vpop.f32.mrb[63].mxu1 }
 0x76e   : > { %6107 = vst [vmem:[%s11360_s7 + $0x3a8] sm:$0xff] %v5871_v34  ;;  %6109 = vst [vmem:[%s11360_s7 + $0x3b8] sm:$0xff] %v5984_v25  ;;  %v5875_v14 = vadd.f32 %v5874_v11, %v10516_v15  ;;  %v5988_v48 = vadd.f32 %v5987_v28, %v10516_v15  ;;  %v10914_v34 = vpop.permute.xlu0 %6182  ;;  %v10916_v25 = vpop.permute.xlu1 %6187 }
 0x76f   : > { %6114 = vst [vmem:[%s11360_s7 + $0x3e0] sm:$0xff] %v5873_v39  ;;  %6116 = vst [vmem:[%s11360_s7 + $0x3f0] sm:$0xff] %v5986_v62 }
 0x770   : > { %6115 = vst [vmem:[%s11360_s7 + $0x3e8] sm:$0xff] %v5875_v14  ;;  %6117 = vst [vmem:[%s11360_s7 + $0x3f8] sm:$0xff] %v5988_v48 }
 0x772   : > { %v6328_v15 = vpop.f32.mrb[64].mxu0  ;;  %v6441_v4 = vpop.f32.mrb[64].mxu1 }
 0x773   : > { %v6329_v5 = vadd.f32 %v6328_v15, %v10806_v29  ;;  %v6442_v55 = vadd.f32 %v6441_v4, %v10806_v29  ;;  %v6330_v46 = vpop.f32.mrb[65].mxu0  ;;  %v6443_v6 = vpop.f32.mrb[65].mxu1 }
 0x774   : > { %v6331_v31 = vadd.f32 %v6330_v46, %v10806_v29  ;;  %v6444_v27 = vadd.f32 %v6443_v6, %v10806_v29  ;;  %v6332_v20 = vpop.f32.mrb[66].mxu0  ;;  %v6445_v58 = vpop.f32.mrb[66].mxu1 }
 0x775   : > { %6746 = vst [vmem:[%s11360_s7 + $0x400] sm:$0xff] %v6329_v5  ;;  %6748 = vst [vmem:[%s11360_s7 + $0x410] sm:$0xff] %v6442_v55  ;;  %v6333_v59 = vadd.f32 %v6332_v20, %v10808_v36  ;;  %v6446_v57 = vadd.f32 %v6445_v58, %v10808_v36  ;;  %v6334_v23 = vpop.f32.mrb[67].mxu0  ;;  %v6447_v44 = vpop.f32.mrb[67].mxu1 }
 0x776   : > { %6747 = vst [vmem:[%s11360_s7 + $0x408] sm:$0xff] %v6331_v31  ;;  %6749 = vst [vmem:[%s11360_s7 + $0x418] sm:$0xff] %v6444_v27  ;;  %v6335_v47 = vadd.f32 %v6334_v23, %v10808_v36  ;;  %v6448_v50 = vadd.f32 %v6447_v44, %v10808_v36  ;;  %v10950_v20 = vpop.permute.xlu0 %6192  ;;  %v10952_v58 = vpop.permute.xlu1 %6197 }
 0x777   : > { %6754 = vst [vmem:[%s11360_s7 + $0x440] sm:$0xff] %v6333_v59  ;;  %6756 = vst [vmem:[%s11360_s7 + $0x450] sm:$0xff] %v6446_v57 }
 0x778   : > { %6755 = vst [vmem:[%s11360_s7 + $0x448] sm:$0xff] %v6335_v47  ;;  %6757 = vst [vmem:[%s11360_s7 + $0x458] sm:$0xff] %v6448_v50 }
 0x77a   : > { %v6338_v41 = vpop.f32.mrb[68].mxu0  ;;  %v6451_v16 = vpop.f32.mrb[68].mxu1 }
 0x77b   : > { %v6339_v32 = vadd.f32 %v6338_v41, %v10842_v0  ;;  %v6452_v56 = vadd.f32 %v6451_v16, %v10842_v0  ;;  %v6340_v18 = vpop.f32.mrb[69].mxu0  ;;  %v6453_v61 = vpop.f32.mrb[69].mxu1 }
 0x77c   : > { %v6341_v54 = vadd.f32 %v6340_v18, %v10842_v0  ;;  %v6454_v35 = vadd.f32 %v6453_v61, %v10842_v0  ;;  %v6342_v22 = vpop.f32.mrb[70].mxu0  ;;  %v6455_v13 = vpop.f32.mrb[70].mxu1 }
 0x77d   : > { %6762 = vst [vmem:[%s11360_s7 + $0x480] sm:$0xff] %v6339_v32  ;;  %6764 = vst [vmem:[%s11360_s7 + $0x490] sm:$0xff] %v6452_v56  ;;  %v6343_v37 = vadd.f32 %v6342_v22, %v10844_v8  ;;  %v6456_v3 = vadd.f32 %v6455_v13, %v10844_v8  ;;  %v6344_v52 = vpop.f32.mrb[71].mxu0  ;;  %v6457_v7 = vpop.f32.mrb[71].mxu1 }
 0x77e   : > { %6763 = vst [vmem:[%s11360_s7 + $0x488] sm:$0xff] %v6341_v54  ;;  %6765 = vst [vmem:[%s11360_s7 + $0x498] sm:$0xff] %v6454_v35  ;;  %v6345_v40 = vadd.f32 %v6344_v52, %v10844_v8  ;;  %v6458_v24 = vadd.f32 %v6457_v7, %v10844_v8 }
 0x77f   : > { %6770 = vst [vmem:[%s11360_s7 + $0x4c0] sm:$0xff] %v6343_v37  ;;  %6772 = vst [vmem:[%s11360_s7 + $0x4d0] sm:$0xff] %v6456_v3  ;;  %v10986_v37 = vpop.permute.xlu0 %6202  ;;  %v10988_v3 = vpop.permute.xlu1 %6207 }
 0x780   : > { %6771 = vst [vmem:[%s11360_s7 + $0x4c8] sm:$0xff] %v6345_v40  ;;  %6773 = vst [vmem:[%s11360_s7 + $0x4d8] sm:$0xff] %v6458_v24 }
 0x782   : > { %v6348_v9 = vpop.f32.mrb[72].mxu0  ;;  %v6461_v10 = vpop.f32.mrb[72].mxu1 }
 0x783   : > { %v6349_v2 = vadd.f32 %v6348_v9, %v10878_v53  ;;  %v6462_v60 = vadd.f32 %v6461_v10, %v10878_v53  ;;  %v6350_v26 = vpop.f32.mrb[73].mxu0  ;;  %v6463_v38 = vpop.f32.mrb[73].mxu1 }
 0x784   : > { %v6351_v30 = vadd.f32 %v6350_v26, %v10878_v53  ;;  %v6464_v51 = vadd.f32 %v6463_v38, %v10878_v53  ;;  %v6352_v33 = vpop.f32.mrb[74].mxu0  ;;  %v6465_v42 = vpop.f32.mrb[74].mxu1 }
 0x785   : > { %6778 = vst [vmem:[%s11360_s7 + $0x500] sm:$0xff] %v6349_v2  ;;  %6780 = vst [vmem:[%s11360_s7 + $0x510] sm:$0xff] %v6462_v60  ;;  %v6353_v45 = vadd.f32 %v6352_v33, %v10880_v17  ;;  %v6466_v19 = vadd.f32 %v6465_v42, %v10880_v17  ;;  %v6354_v21 = vpop.f32.mrb[75].mxu0  ;;  %v6467_v63 = vpop.f32.mrb[75].mxu1 }
 0x786   : > { %6779 = vst [vmem:[%s11360_s7 + $0x508] sm:$0xff] %v6351_v30  ;;  %6781 = vst [vmem:[%s11360_s7 + $0x518] sm:$0xff] %v6464_v51  ;;  %v6355_v43 = vadd.f32 %v6354_v21, %v10880_v17  ;;  %v6468_v49 = vadd.f32 %v6467_v63, %v10880_v17  ;;  %v11022_v21 = vpop.permute.xlu0 %6212  ;;  %v11024_v63 = vpop.permute.xlu1 %6217 }
 0x787   : > { %6786 = vst [vmem:[%s11360_s7 + $0x540] sm:$0xff] %v6353_v45  ;;  %6788 = vst [vmem:[%s11360_s7 + $0x550] sm:$0xff] %v6466_v19 }
 0x788   : > { %6787 = vst [vmem:[%s11360_s7 + $0x548] sm:$0xff] %v6355_v43  ;;  %6789 = vst [vmem:[%s11360_s7 + $0x558] sm:$0xff] %v6468_v49 }
 0x78a   : > { %v6358_v12 = vpop.f32.mrb[76].mxu0  ;;  %v6471_v1 = vpop.f32.mrb[76].mxu1 }
 0x78b   : > { %v6359_v39 = vadd.f32 %v6358_v12, %v10914_v34  ;;  %v6472_v62 = vadd.f32 %v6471_v1, %v10914_v34  ;;  %v6360_v11 = vpop.f32.mrb[77].mxu0  ;;  %v6473_v28 = vpop.f32.mrb[77].mxu1 }
 0x78c   : > { %v6361_v14 = vadd.f32 %v6360_v11, %v10914_v34  ;;  %v6474_v48 = vadd.f32 %v6473_v28, %v10914_v34  ;;  %v6362_v15 = vpop.f32.mrb[78].mxu0  ;;  %v6475_v4 = vpop.f32.mrb[78].mxu1 }
 0x78d   : > { %6794 = vst [vmem:[%s11360_s7 + $0x580] sm:$0xff] %v6359_v39  ;;  %6796 = vst [vmem:[%s11360_s7 + $0x590] sm:$0xff] %v6472_v62  ;;  %v6363_v5 = vadd.f32 %v6362_v15, %v10916_v25  ;;  %v6476_v55 = vadd.f32 %v6475_v4, %v10916_v25  ;;  %v6364_v46 = vpop.f32.mrb[79].mxu0  ;;  %v6477_v6 = vpop.f32.mrb[79].mxu1 }
 0x78e   : > { %6795 = vst [vmem:[%s11360_s7 + $0x588] sm:$0xff] %v6361_v14  ;;  %6797 = vst [vmem:[%s11360_s7 + $0x598] sm:$0xff] %v6474_v48  ;;  %v6365_v31 = vadd.f32 %v6364_v46, %v10916_v25  ;;  %v6478_v27 = vadd.f32 %v6477_v6, %v10916_v25 }
 0x78f   : > { %6802 = vst [vmem:[%s11360_s7 + $0x5c0] sm:$0xff] %v6363_v5  ;;  %6804 = vst [vmem:[%s11360_s7 + $0x5d0] sm:$0xff] %v6476_v55 }
 0x790   : > { %6803 = vst [vmem:[%s11360_s7 + $0x5c8] sm:$0xff] %v6365_v31  ;;  %6805 = vst [vmem:[%s11360_s7 + $0x5d8] sm:$0xff] %v6478_v27  ;;  %v11058_v31 = vpop.permute.xlu0 %6222  ;;  %v11060_v27 = vpop.permute.xlu1 %6227 }
 0x792   : > { %v6368_v59 = vpop.f32.mrb[80].mxu0  ;;  %v6481_v57 = vpop.f32.mrb[80].mxu1 }
 0x793   : > { %v6369_v23 = vadd.f32 %v6368_v59, %v10950_v20  ;;  %v6482_v44 = vadd.f32 %v6481_v57, %v10950_v20  ;;  %v6370_v47 = vpop.f32.mrb[81].mxu0  ;;  %v6483_v50 = vpop.f32.mrb[81].mxu1 }
 0x794   : > { %v6371_v41 = vadd.f32 %v6370_v47, %v10950_v20  ;;  %v6484_v16 = vadd.f32 %v6483_v50, %v10950_v20  ;;  %v6372_v32 = vpop.f32.mrb[82].mxu0  ;;  %v6485_v56 = vpop.f32.mrb[82].mxu1 }
 0x795   : > { %6810 = vst [vmem:[%s11360_s7 + $0x600] sm:$0xff] %v6369_v23  ;;  %6812 = vst [vmem:[%s11360_s7 + $0x610] sm:$0xff] %v6482_v44  ;;  %v6373_v18 = vadd.f32 %v6372_v32, %v10952_v58  ;;  %v6486_v61 = vadd.f32 %v6485_v56, %v10952_v58  ;;  %v6374_v54 = vpop.f32.mrb[83].mxu0  ;;  %v6487_v35 = vpop.f32.mrb[83].mxu1 }
 0x796   : > { %6811 = vst [vmem:[%s11360_s7 + $0x608] sm:$0xff] %v6371_v41  ;;  %6813 = vst [vmem:[%s11360_s7 + $0x618] sm:$0xff] %v6484_v16  ;;  %v6375_v22 = vadd.f32 %v6374_v54, %v10952_v58  ;;  %v6488_v13 = vadd.f32 %v6487_v35, %v10952_v58 }
 0x797   : > { %6818 = vst [vmem:[%s11360_s7 + $0x640] sm:$0xff] %v6373_v18  ;;  %6820 = vst [vmem:[%s11360_s7 + $0x650] sm:$0xff] %v6486_v61 }
 0x798   : > { %6819 = vst [vmem:[%s11360_s7 + $0x648] sm:$0xff] %v6375_v22  ;;  %6821 = vst [vmem:[%s11360_s7 + $0x658] sm:$0xff] %v6488_v13 }
 0x79a   : > { %v6378_v52 = vpop.f32.mrb[84].mxu0  ;;  %v6491_v7 = vpop.f32.mrb[84].mxu1 }
 0x79b   : > { %v6379_v40 = vadd.f32 %v6378_v52, %v10986_v37  ;;  %v6492_v24 = vadd.f32 %v6491_v7, %v10986_v37  ;;  %v6380_v9 = vpop.f32.mrb[85].mxu0  ;;  %v6493_v10 = vpop.f32.mrb[85].mxu1 }
 0x79c   : > { %v6381_v2 = vadd.f32 %v6380_v9, %v10986_v37  ;;  %v6494_v60 = vadd.f32 %v6493_v10, %v10986_v37  ;;  %v6382_v26 = vpop.f32.mrb[86].mxu0  ;;  %v6495_v38 = vpop.f32.mrb[86].mxu1 }
 0x79d   : > { %6826 = vst [vmem:[%s11360_s7 + $0x680] sm:$0xff] %v6379_v40  ;;  %6828 = vst [vmem:[%s11360_s7 + $0x690] sm:$0xff] %v6492_v24  ;;  %v6383_v30 = vadd.f32 %v6382_v26, %v10988_v3  ;;  %v6496_v51 = vadd.f32 %v6495_v38, %v10988_v3  ;;  %v6384_v33 = vpop.f32.mrb[87].mxu0  ;;  %v6497_v42 = vpop.f32.mrb[87].mxu1 }
 0x79e   : > { %6827 = vst [vmem:[%s11360_s7 + $0x688] sm:$0xff] %v6381_v2  ;;  %6829 = vst [vmem:[%s11360_s7 + $0x698] sm:$0xff] %v6494_v60  ;;  %v6385_v45 = vadd.f32 %v6384_v33, %v10988_v3  ;;  %v6498_v19 = vadd.f32 %v6497_v42, %v10988_v3 }
 0x79f   : > { %6834 = vst [vmem:[%s11360_s7 + $0x6c0] sm:$0xff] %v6383_v30  ;;  %6836 = vst [vmem:[%s11360_s7 + $0x6d0] sm:$0xff] %v6496_v51 }
 0x7a0   : > { %6835 = vst [vmem:[%s11360_s7 + $0x6c8] sm:$0xff] %v6385_v45  ;;  %6837 = vst [vmem:[%s11360_s7 + $0x6d8] sm:$0xff] %v6498_v19 }
 0x7a2   : > { %v6388_v43 = vpop.f32.mrb[88].mxu0  ;;  %v6501_v49 = vpop.f32.mrb[88].mxu1 }
 0x7a3   : > { %v6389_v12 = vadd.f32 %v6388_v43, %v11022_v21  ;;  %v6502_v1 = vadd.f32 %v6501_v49, %v11022_v21  ;;  %v6390_v39 = vpop.f32.mrb[89].mxu0  ;;  %v6503_v62 = vpop.f32.mrb[89].mxu1 }
 0x7a4   : > { %v6391_v11 = vadd.f32 %v6390_v39, %v11022_v21  ;;  %v6504_v28 = vadd.f32 %v6503_v62, %v11022_v21  ;;  %v6392_v14 = vpop.f32.mrb[90].mxu0  ;;  %v6505_v48 = vpop.f32.mrb[90].mxu1 }
 0x7a5   : > { %6842 = vst [vmem:[%s11360_s7 + $0x700] sm:$0xff] %v6389_v12  ;;  %6844 = vst [vmem:[%s11360_s7 + $0x710] sm:$0xff] %v6502_v1  ;;  %v6393_v15 = vadd.f32 %v6392_v14, %v11024_v63  ;;  %v6506_v4 = vadd.f32 %v6505_v48, %v11024_v63  ;;  %v6394_v5 = vpop.f32.mrb[91].mxu0  ;;  %v6507_v55 = vpop.f32.mrb[91].mxu1 }
 0x7a6   : > { %6843 = vst [vmem:[%s11360_s7 + $0x708] sm:$0xff] %v6391_v11  ;;  %6845 = vst [vmem:[%s11360_s7 + $0x718] sm:$0xff] %v6504_v28  ;;  %v6395_v46 = vadd.f32 %v6394_v5, %v11024_v63  ;;  %v6508_v6 = vadd.f32 %v6507_v55, %v11024_v63 }
 0x7a7   : > { %6850 = vst [vmem:[%s11360_s7 + $0x740] sm:$0xff] %v6393_v15  ;;  %6852 = vst [vmem:[%s11360_s7 + $0x750] sm:$0xff] %v6506_v4 }
 0x7a8   : > { %6851 = vst [vmem:[%s11360_s7 + $0x748] sm:$0xff] %v6395_v46  ;;  %6853 = vst [vmem:[%s11360_s7 + $0x758] sm:$0xff] %v6508_v6 }
 0x7aa   : > { %v6398_v59 = vpop.f32.mrb[92].mxu0  ;;  %v6511_v57 = vpop.f32.mrb[92].mxu1 }
 0x7ab   : > { %v6399_v23 = vadd.f32 %v6398_v59, %v11058_v31  ;;  %v6512_v44 = vadd.f32 %v6511_v57, %v11058_v31  ;;  %v6400_v47 = vpop.f32.mrb[93].mxu0  ;;  %v6513_v50 = vpop.f32.mrb[93].mxu1 }
 0x7ac   : > { %v6401_v41 = vadd.f32 %v6400_v47, %v11058_v31  ;;  %v6514_v16 = vadd.f32 %v6513_v50, %v11058_v31  ;;  %v6402_v32 = vpop.f32.mrb[94].mxu0  ;;  %v6515_v56 = vpop.f32.mrb[94].mxu1 }
 0x7ad   : > { %6858 = vst [vmem:[%s11360_s7 + $0x780] sm:$0xff] %v6399_v23  ;;  %6860 = vst [vmem:[%s11360_s7 + $0x790] sm:$0xff] %v6512_v44  ;;  %v6403_v18 = vadd.f32 %v6402_v32, %v11060_v27  ;;  %v6516_v61 = vadd.f32 %v6515_v56, %v11060_v27  ;;  %v6404_v54 = vpop.f32.mrb[95].mxu0  ;;  %v6517_v35 = vpop.f32.mrb[95].mxu1 }
 0x7ae   : > { %6859 = vst [vmem:[%s11360_s7 + $0x788] sm:$0xff] %v6401_v41  ;;  %6861 = vst [vmem:[%s11360_s7 + $0x798] sm:$0xff] %v6514_v16  ;;  %v6405_v22 = vadd.f32 %v6404_v54, %v11060_v27  ;;  %v6518_v13 = vadd.f32 %v6517_v35, %v11060_v27 }
 0x7af   : > { %6866 = vst [vmem:[%s11360_s7 + $0x7c0] sm:$0xff] %v6403_v18  ;;  %6868 = vst [vmem:[%s11360_s7 + $0x7d0] sm:$0xff] %v6516_v61 }
 0x7b0   : > { %6867 = vst [vmem:[%s11360_s7 + $0x7c8] sm:$0xff] %v6405_v22  ;;  %6869 = vst [vmem:[%s11360_s7 + $0x7d8] sm:$0xff] %v6518_v13 }
 0x7b2   : > { %v6554_v52 = vpop.f32.mrb[96].mxu0  ;;  %v6667_v7 = vpop.f32.mrb[96].mxu1 }
 0x7b3   : > { %v6555_v40 = vadd.f32 %v6554_v52, %v10806_v29  ;;  %v6668_v24 = vadd.f32 %v6667_v7, %v10806_v29  ;;  %v6556_v9 = vpop.f32.mrb[97].mxu0  ;;  %v6669_v10 = vpop.f32.mrb[97].mxu1 }
 0x7b4   : > { %v6557_v2 = vadd.f32 %v6556_v9, %v10806_v29  ;;  %v6670_v60 = vadd.f32 %v6669_v10, %v10806_v29  ;;  %v6558_v26 = vpop.f32.mrb[98].mxu0  ;;  %v6671_v38 = vpop.f32.mrb[98].mxu1 }
 0x7b5   : > { %6750 = vst [vmem:[%s11360_s7 + $0x420] sm:$0xff] %v6555_v40  ;;  %6752 = vst [vmem:[%s11360_s7 + $0x430] sm:$0xff] %v6668_v24  ;;  %v6559_v30 = vadd.f32 %v6558_v26, %v10808_v36  ;;  %v6672_v51 = vadd.f32 %v6671_v38, %v10808_v36  ;;  %v6560_v33 = vpop.f32.mrb[99].mxu0  ;;  %v6673_v42 = vpop.f32.mrb[99].mxu1 }
 0x7b6   : > { %6751 = vst [vmem:[%s11360_s7 + $0x428] sm:$0xff] %v6557_v2  ;;  %6753 = vst [vmem:[%s11360_s7 + $0x438] sm:$0xff] %v6670_v60  ;;  %v6561_v29 = vadd.f32 %v6560_v33, %v10808_v36  ;;  %v6674_v45 = vadd.f32 %v6673_v42, %v10808_v36 }
 0x7b7   : > { %6758 = vst [vmem:[%s11360_s7 + $0x460] sm:$0xff] %v6559_v30  ;;  %6760 = vst [vmem:[%s11360_s7 + $0x470] sm:$0xff] %v6672_v51 }
 0x7b8   : > { %6759 = vst [vmem:[%s11360_s7 + $0x468] sm:$0xff] %v6561_v29  ;;  %6761 = vst [vmem:[%s11360_s7 + $0x478] sm:$0xff] %v6674_v45 }
 0x7ba   : > { %v6564_v19 = vpop.f32.mrb[100].mxu0  ;;  %v6677_v43 = vpop.f32.mrb[100].mxu1 }
 0x7bb   : > { %v6565_v36 = vadd.f32 %v6564_v19, %v10842_v0  ;;  %v6678_v49 = vadd.f32 %v6677_v43, %v10842_v0  ;;  %v6566_v12 = vpop.f32.mrb[101].mxu0  ;;  %v6679_v1 = vpop.f32.mrb[101].mxu1 }
 0x7bc   : > { %v6567_v39 = vadd.f32 %v6566_v12, %v10842_v0  ;;  %v6680_v62 = vadd.f32 %v6679_v1, %v10842_v0  ;;  %v6568_v11 = vpop.f32.mrb[102].mxu0  ;;  %v6681_v28 = vpop.f32.mrb[102].mxu1 }
 0x7bd   : > { %6766 = vst [vmem:[%s11360_s7 + $0x4a0] sm:$0xff] %v6565_v36  ;;  %6768 = vst [vmem:[%s11360_s7 + $0x4b0] sm:$0xff] %v6678_v49  ;;  %v6569_v14 = vadd.f32 %v6568_v11, %v10844_v8  ;;  %v6682_v48 = vadd.f32 %v6681_v28, %v10844_v8  ;;  %v6570_v15 = vpop.f32.mrb[103].mxu0  ;;  %v6683_v4 = vpop.f32.mrb[103].mxu1 }
 0x7be   : > { %6767 = vst [vmem:[%s11360_s7 + $0x4a8] sm:$0xff] %v6567_v39  ;;  %6769 = vst [vmem:[%s11360_s7 + $0x4b8] sm:$0xff] %v6680_v62  ;;  %v6571_v0 = vadd.f32 %v6570_v15, %v10844_v8  ;;  %v6684_v5 = vadd.f32 %v6683_v4, %v10844_v8 }
 0x7bf   : > { %6774 = vst [vmem:[%s11360_s7 + $0x4e0] sm:$0xff] %v6569_v14  ;;  %6776 = vst [vmem:[%s11360_s7 + $0x4f0] sm:$0xff] %v6682_v48 }
 0x7c0   : > { %6775 = vst [vmem:[%s11360_s7 + $0x4e8] sm:$0xff] %v6571_v0  ;;  %6777 = vst [vmem:[%s11360_s7 + $0x4f8] sm:$0xff] %v6684_v5 }
 0x7c2   : > { %v6574_v55 = vpop.f32.mrb[104].mxu0  ;;  %v6687_v46 = vpop.f32.mrb[104].mxu1 }
 0x7c3   : > { %v6575_v8 = vadd.f32 %v6574_v55, %v10878_v53  ;;  %v6688_v6 = vadd.f32 %v6687_v46, %v10878_v53  ;;  %v6576_v59 = vpop.f32.mrb[105].mxu0  ;;  %v6689_v57 = vpop.f32.mrb[105].mxu1 }
 0x7c4   : > { %v6577_v23 = vadd.f32 %v6576_v59, %v10878_v53  ;;  %v6690_v44 = vadd.f32 %v6689_v57, %v10878_v53  ;;  %v6578_v47 = vpop.f32.mrb[106].mxu0  ;;  %v6691_v50 = vpop.f32.mrb[106].mxu1 }
 0x7c5   : > { %6782 = vst [vmem:[%s11360_s7 + $0x520] sm:$0xff] %v6575_v8  ;;  %6784 = vst [vmem:[%s11360_s7 + $0x530] sm:$0xff] %v6688_v6  ;;  %v6579_v41 = vadd.f32 %v6578_v47, %v10880_v17  ;;  %v6692_v16 = vadd.f32 %v6691_v50, %v10880_v17  ;;  %v6580_v32 = vpop.f32.mrb[107].mxu0  ;;  %v6693_v56 = vpop.f32.mrb[107].mxu1 }
 0x7c6   : > { %6783 = vst [vmem:[%s11360_s7 + $0x528] sm:$0xff] %v6577_v23  ;;  %6785 = vst [vmem:[%s11360_s7 + $0x538] sm:$0xff] %v6690_v44  ;;  %v6581_v53 = vadd.f32 %v6580_v32, %v10880_v17  ;;  %v6694_v18 = vadd.f32 %v6693_v56, %v10880_v17 }
 0x7c7   : > { %6790 = vst [vmem:[%s11360_s7 + $0x560] sm:$0xff] %v6579_v41  ;;  %6792 = vst [vmem:[%s11360_s7 + $0x570] sm:$0xff] %v6692_v16 }
 0x7c8   : > { %6791 = vst [vmem:[%s11360_s7 + $0x568] sm:$0xff] %v6581_v53  ;;  %6793 = vst [vmem:[%s11360_s7 + $0x578] sm:$0xff] %v6694_v18 }
 0x7ca   : > { %v6584_v61 = vpop.f32.mrb[108].mxu0  ;;  %v6697_v54 = vpop.f32.mrb[108].mxu1 }
 0x7cb   : > { %v6585_v17 = vadd.f32 %v6584_v61, %v10914_v34  ;;  %v6698_v35 = vadd.f32 %v6697_v54, %v10914_v34  ;;  %v6586_v22 = vpop.f32.mrb[109].mxu0  ;;  %v6699_v13 = vpop.f32.mrb[109].mxu1 }
 0x7cc   : > { %v6587_v52 = vadd.f32 %v6586_v22, %v10914_v34  ;;  %v6700_v7 = vadd.f32 %v6699_v13, %v10914_v34  ;;  %v6588_v40 = vpop.f32.mrb[110].mxu0  ;;  %v6701_v24 = vpop.f32.mrb[110].mxu1 }
 0x7cd   : > { %6798 = vst [vmem:[%s11360_s7 + $0x5a0] sm:$0xff] %v6585_v17  ;;  %6800 = vst [vmem:[%s11360_s7 + $0x5b0] sm:$0xff] %v6698_v35  ;;  %v6589_v9 = vadd.f32 %v6588_v40, %v10916_v25  ;;  %v6702_v10 = vadd.f32 %v6701_v24, %v10916_v25  ;;  %v6590_v2 = vpop.f32.mrb[111].mxu0  ;;  %v6703_v60 = vpop.f32.mrb[111].mxu1 }
 0x7ce   : > { %6799 = vst [vmem:[%s11360_s7 + $0x5a8] sm:$0xff] %v6587_v52  ;;  %6801 = vst [vmem:[%s11360_s7 + $0x5b8] sm:$0xff] %v6700_v7  ;;  %v6591_v34 = vadd.f32 %v6590_v2, %v10916_v25  ;;  %v6704_v26 = vadd.f32 %v6703_v60, %v10916_v25 }
 0x7cf   : > { %6806 = vst [vmem:[%s11360_s7 + $0x5e0] sm:$0xff] %v6589_v9  ;;  %6808 = vst [vmem:[%s11360_s7 + $0x5f0] sm:$0xff] %v6702_v10 }
 0x7d0   : > { %6807 = vst [vmem:[%s11360_s7 + $0x5e8] sm:$0xff] %v6591_v34  ;;  %6809 = vst [vmem:[%s11360_s7 + $0x5f8] sm:$0xff] %v6704_v26 }
 0x7d2   : > { %v6594_v38 = vpop.f32.mrb[112].mxu0  ;;  %v6707_v30 = vpop.f32.mrb[112].mxu1 }
 0x7d3   : > { %v6595_v25 = vadd.f32 %v6594_v38, %v10950_v20  ;;  %v6708_v51 = vadd.f32 %v6707_v30, %v10950_v20  ;;  %v6596_v33 = vpop.f32.mrb[113].mxu0  ;;  %v6709_v42 = vpop.f32.mrb[113].mxu1 }
 0x7d4   : > { %v6597_v29 = vadd.f32 %v6596_v33, %v10950_v20  ;;  %v6710_v45 = vadd.f32 %v6709_v42, %v10950_v20  ;;  %v6598_v19 = vpop.f32.mrb[114].mxu0  ;;  %v6711_v43 = vpop.f32.mrb[114].mxu1 }
 0x7d5   : > { %6814 = vst [vmem:[%s11360_s7 + $0x620] sm:$0xff] %v6595_v25  ;;  %6816 = vst [vmem:[%s11360_s7 + $0x630] sm:$0xff] %v6708_v51  ;;  %v6599_v36 = vadd.f32 %v6598_v19, %v10952_v58  ;;  %v6712_v49 = vadd.f32 %v6711_v43, %v10952_v58  ;;  %v6600_v12 = vpop.f32.mrb[115].mxu0  ;;  %v6713_v1 = vpop.f32.mrb[115].mxu1 }
 0x7d6   : > { %6815 = vst [vmem:[%s11360_s7 + $0x628] sm:$0xff] %v6597_v29  ;;  %6817 = vst [vmem:[%s11360_s7 + $0x638] sm:$0xff] %v6710_v45  ;;  %v6601_v20 = vadd.f32 %v6600_v12, %v10952_v58  ;;  %v6714_v39 = vadd.f32 %v6713_v1, %v10952_v58 }
 0x7d7   : > { %6822 = vst [vmem:[%s11360_s7 + $0x660] sm:$0xff] %v6599_v36  ;;  %6824 = vst [vmem:[%s11360_s7 + $0x670] sm:$0xff] %v6712_v49 }
 0x7d8   : > { %6823 = vst [vmem:[%s11360_s7 + $0x668] sm:$0xff] %v6601_v20  ;;  %6825 = vst [vmem:[%s11360_s7 + $0x678] sm:$0xff] %v6714_v39 }
 0x7da   : > { %v6604_v62 = vpop.f32.mrb[116].mxu0  ;;  %v6717_v11 = vpop.f32.mrb[116].mxu1 }
 0x7db   : > { %v6605_v58 = vadd.f32 %v6604_v62, %v10986_v37  ;;  %v6718_v28 = vadd.f32 %v6717_v11, %v10986_v37  ;;  %v6606_v14 = vpop.f32.mrb[117].mxu0  ;;  %v6719_v48 = vpop.f32.mrb[117].mxu1 }
 0x7dc   : > { %v6607_v15 = vadd.f32 %v6606_v14, %v10986_v37  ;;  %v6720_v4 = vadd.f32 %v6719_v48, %v10986_v37  ;;  %v6608_v0 = vpop.f32.mrb[118].mxu0  ;;  %v6721_v5 = vpop.f32.mrb[118].mxu1 }
 0x7dd   : > { %6830 = vst [vmem:[%s11360_s7 + $0x6a0] sm:$0xff] %v6605_v58  ;;  %6832 = vst [vmem:[%s11360_s7 + $0x6b0] sm:$0xff] %v6718_v28  ;;  %v6609_v55 = vadd.f32 %v6608_v0, %v10988_v3  ;;  %v6722_v46 = vadd.f32 %v6721_v5, %v10988_v3  ;;  %v6610_v8 = vpop.f32.mrb[119].mxu0  ;;  %v6723_v6 = vpop.f32.mrb[119].mxu1 }
 0x7de   : > { %6831 = vst [vmem:[%s11360_s7 + $0x6a8] sm:$0xff] %v6607_v15  ;;  %6833 = vst [vmem:[%s11360_s7 + $0x6b8] sm:$0xff] %v6720_v4  ;;  %v6611_v37 = vadd.f32 %v6610_v8, %v10988_v3  ;;  %v6724_v59 = vadd.f32 %v6723_v6, %v10988_v3 }
 0x7df   : > { %6838 = vst [vmem:[%s11360_s7 + $0x6e0] sm:$0xff] %v6609_v55  ;;  %6840 = vst [vmem:[%s11360_s7 + $0x6f0] sm:$0xff] %v6722_v46 }
 0x7e0   : > { %6839 = vst [vmem:[%s11360_s7 + $0x6e8] sm:$0xff] %v6611_v37  ;;  %6841 = vst [vmem:[%s11360_s7 + $0x6f8] sm:$0xff] %v6724_v59 }
 0x7e2   : > { %v6614_v57 = vpop.f32.mrb[120].mxu0  ;;  %v6727_v23 = vpop.f32.mrb[120].mxu1 }
 0x7e3   : > { %v6615_v3 = vadd.f32 %v6614_v57, %v11022_v21  ;;  %v6728_v44 = vadd.f32 %v6727_v23, %v11022_v21  ;;  %v6616_v47 = vpop.f32.mrb[121].mxu0  ;;  %v6729_v50 = vpop.f32.mrb[121].mxu1 }
 0x7e4   : > { %v6617_v41 = vadd.f32 %v6616_v47, %v11022_v21  ;;  %v6730_v16 = vadd.f32 %v6729_v50, %v11022_v21  ;;  %v6618_v32 = vpop.f32.mrb[122].mxu0  ;;  %v6731_v56 = vpop.f32.mrb[122].mxu1 }
 0x7e5   : > { %6846 = vst [vmem:[%s11360_s7 + $0x720] sm:$0xff] %v6615_v3  ;;  %6848 = vst [vmem:[%s11360_s7 + $0x730] sm:$0xff] %v6728_v44  ;;  %v6619_v53 = vadd.f32 %v6618_v32, %v11024_v63  ;;  %v6732_v18 = vadd.f32 %v6731_v56, %v11024_v63  ;;  %v6620_v61 = vpop.f32.mrb[123].mxu0  ;;  %v6733_v54 = vpop.f32.mrb[123].mxu1 }
 0x7e6   : > { %6847 = vst [vmem:[%s11360_s7 + $0x728] sm:$0xff] %v6617_v41  ;;  %6849 = vst [vmem:[%s11360_s7 + $0x738] sm:$0xff] %v6730_v16  ;;  %v6621_v21 = vadd.f32 %v6620_v61, %v11024_v63  ;;  %v6734_v17 = vadd.f32 %v6733_v54, %v11024_v63 }
 0x7e7   : > { %6854 = vst [vmem:[%s11360_s7 + $0x760] sm:$0xff] %v6619_v53  ;;  %6856 = vst [vmem:[%s11360_s7 + $0x770] sm:$0xff] %v6732_v18 }
 0x7e8   : > { %6855 = vst [vmem:[%s11360_s7 + $0x768] sm:$0xff] %v6621_v21  ;;  %6857 = vst [vmem:[%s11360_s7 + $0x778] sm:$0xff] %v6734_v17 }
 0x7ea   : > { %v6624_v35 = vpop.f32.mrb[124].mxu0  ;;  %v6737_v22 = vpop.f32.mrb[124].mxu1 }
 0x7eb   : > { %v6625_v63 = vadd.f32 %v6624_v35, %v11058_v31  ;;  %v6738_v13 = vadd.f32 %v6737_v22, %v11058_v31  ;;  %v6626_v52 = vpop.f32.mrb[125].mxu0  ;;  %v6739_v7 = vpop.f32.mrb[125].mxu1 }
 0x7ec   : > { %v6627_v40 = vadd.f32 %v6626_v52, %v11058_v31  ;;  %v6740_v24 = vadd.f32 %v6739_v7, %v11058_v31  ;;  %v6628_v9 = vpop.f32.mrb[126].mxu0  ;;  %v6741_v10 = vpop.f32.mrb[126].mxu1 }
 0x7ed   : > { %6862 = vst [vmem:[%s11360_s7 + $0x7a0] sm:$0xff] %v6625_v63  ;;  %6864 = vst [vmem:[%s11360_s7 + $0x7b0] sm:$0xff] %v6738_v13  ;;  %v6629_v2 = vadd.f32 %v6628_v9, %v11060_v27  ;;  %v6742_v60 = vadd.f32 %v6741_v10, %v11060_v27  ;;  %v6630_v34 = vpop.f32.mrb[127].mxu0  ;;  %v6743_v26 = vpop.f32.mrb[127].mxu1 }
 0x7ee   : > { %6863 = vst [vmem:[%s11360_s7 + $0x7a8] sm:$0xff] %v6627_v40  ;;  %6865 = vst [vmem:[%s11360_s7 + $0x7b8] sm:$0xff] %v6740_v24  ;;  %v6631_v31 = vadd.f32 %v6630_v34, %v11060_v27  ;;  %v6744_v38 = vadd.f32 %v6743_v26, %v11060_v27 }
 0x7ef   : > { %6870 = vst [vmem:[%s11360_s7 + $0x7e0] sm:$0xff] %v6629_v2  ;;  %6872 = vst [vmem:[%s11360_s7 + $0x7f0] sm:$0xff] %v6742_v60 }
 0x7f0   : > { %6871 = vst [vmem:[%s11360_s7 + $0x7e8] sm:$0xff] %v6631_v31  ;;  %6873 = vst [vmem:[%s11360_s7 + $0x7f8] sm:$0xff] %v6744_v38 }
 0x7f1 PF: > { %s17_s24 = sadd.s32 1, %s7204_s24  }
 0x7f2   : > { %p14_p6 = scmp.ge.s32.totalorder %s17_s24, 10  }
 0x7f4   :  { %16 = sbr.rel (!%p14_p6) target bundleno = 1 (0x1), region = 88 }

</bundles_post_ra>
